<compile_context>
chip_gen: v7x
topology: tpu7x:2x2x1
jax: 0.10.0
libtpu: 0.0.40
codegen_flags: <defaults>
</compile_context>

<pallas_src>
import jax
import jax.numpy as jnp
from jax.experimental import pallas as pl
from jax.experimental.pallas import tpu as pltpu


def _round_up(x, m):
    return ((x + m - 1) // m) * m


# ----------------------------------------------------------------------------- Pallas kernel
def _conv_bn_lrelu_kernel(x_ref, w_ref, shift_ref, o_ref):
    """o = LeakyReLU_0.2( x @ w + shift );  BN scale pre-folded into w, f32 accumulation."""
    acc = jnp.dot(x_ref[...], w_ref[...], preferred_element_type=jnp.float32)
    y = acc + shift_ref[...]
    y = jnp.maximum(y, 0.2 * y)                        # LeakyReLU(0.2)
    o_ref[...] = y.astype(o_ref.dtype)


def fused_matmul_bn_lrelu(pat, w, shift, cout):
    """pat: (M, K) bf16, w: (K, 128) bf16 (scale-folded), shift: (1, 128) f32 -> (M, cout) bf16."""
    M, K = pat.shape
    Npad = w.shape[1]

    # Tile selection (all multiples of 16 for dense bf16 sublanes / unmasked stores):
    #   big M     -> tm=2048 to amortize the ~0.35us per-grid-step overhead
    #   medium M  -> 2 tiles so each v7x TensorCore gets >= 512 rows
    #   small M   -> a single tile; splitting tiny matmuls only adds launch overhead
    if M >= 4096:
        tm = 2048
    elif M >= 1024:
        tm = _round_up(M // 2, 256)
    else:
        tm = _round_up(M, 16)
    Mpad = _round_up(M, tm)
    if Mpad != M:
        pat = jnp.pad(pat, ((0, Mpad - M), (0, 0)))

    out = pl.pallas_call(
        _conv_bn_lrelu_kernel,
        out_shape=jax.ShapeDtypeStruct((Mpad, Npad), jnp.bfloat16),
        grid_spec=pltpu.PrefetchScalarGridSpec(
            num_scalar_prefetch=0,
            grid=(Mpad // tm,),
            in_specs=[
                pl.BlockSpec((tm, K), lambda i: (i, 0)),     # activation tile (full K)
                pl.BlockSpec((K, Npad), lambda i: (0, 0)),   # full weight, stays resident
                pl.BlockSpec((1, Npad), lambda i: (0, 0)),   # folded conv-bias + BN shift
            ],
            out_specs=pl.BlockSpec((tm, Npad), lambda i: (i, 0)),
        ),
        compiler_params=pltpu.CompilerParams(dimension_semantics=("parallel",)),
    )(pat, w, shift)
    # One fused slice for padded rows + padded channels (identity for aligned layers).
    return out[:M, :cout]


# ----------------------------------------------------------------------------- layer glue
def conv_block(x, layer):
    """Conv2d(Cin, Cout, 4, 2, 1) + BN(eval) + LeakyReLU(0.2).

    x: (B, H, W, Cin) NHWC bf16  ->  (B, H/2, W/2, Cout) NHWC bf16
    """
    B, H, W, Cin = x.shape
    OH, OW = H // 2, W // 2

    xp = jnp.pad(x, ((0, 0), (1, 1), (1, 1), (0, 0)))
    # strided im2col: (B, OH, OW, 16, Cin) -> (M, 16*Cin), K ordered as (kh, kw, cin)
    patches = [xp[:, kh:kh + 2 * OH:2, kw:kw + 2 * OW:2, :]
               for kh in range(4) for kw in range(4)]
    pat = jnp.stack(patches, axis=3).reshape(B * OH * OW, 16 * Cin)

    out = fused_matmul_bn_lrelu(pat, layer["w"], layer["shift"], layer["cout"])
    return out.reshape(B, OH, OW, layer["cout"])


def e2_forward(net, layers, sep, size):
    # Matches torch: net = self.full(net) in NCHW, then net.view(-1, sep*size*size)
    x = jnp.transpose(net, (0, 2, 3, 1)).astype(jnp.bfloat16)   # NCHW -> NHWC, bf16 pipeline
    # Pad layer-1 input channels (3 -> 8) so K = 128; matching zero weight rows at init.
    cin_pad0 = layers[0]["cin_pad"]
    x = jnp.pad(x, ((0, 0), (0, 0), (0, 0), (0, cin_pad0 - x.shape[-1])))
    for layer in layers:
        x = conv_block(x, layer)
    x = jnp.transpose(x, (0, 3, 1, 2)).astype(jnp.float32)      # back to NCHW
    return x.reshape(-1, sep * size * size)


# ----------------------------------------------------------------------------- parameters
def init_params(key, sep):
    """Deterministic synthetic parameters matching the torch module's shapes.

    Conv bias + inference-mode BatchNorm are folded in: the per-channel BN scale is
    multiplied into the weight columns (f32) and only the shift stays as a kernel
    operand.  Weights are laid out as (16*cin_pad, 128): im2col K-order (kh, kw, cin),
    input channels of layer 1 zero-padded 3 -> 8, output channels zero-padded to 128
    for lane-dense stores.
    """
    chans = [3, 32, 64, 128, 128, 128, sep]
    eps = 1e-5
    layers = []
    for li in range(6):
        cin, cout = chans[li], chans[li + 1]
        cin_pad = 8 if li == 0 else cin
        key, k_w, k_b, k_g, k_be, k_m, k_v = jax.random.split(key, 7)
        weight = 0.05 * jax.random.normal(k_w, (cout, cin, 4, 4), jnp.float32)
        bias = 0.05 * jax.random.normal(k_b, (cout,), jnp.float32)
        gamma = 1.0 + 0.1 * jax.random.normal(k_g, (cout,), jnp.float32)
        beta = 0.1 * jax.random.normal(k_be, (cout,), jnp.float32)
        r_mean = 0.1 * jax.random.normal(k_m, (cout,), jnp.float32)
        r_var = 1.0 + 0.1 * jnp.abs(jax.random.normal(k_v, (cout,), jnp.float32))

        s = gamma / jnp.sqrt(r_var + eps)            # BN(eval) scale
        shift = (bias - r_mean) * s + beta           # folded conv bias + BN shift

        # (Cout, Cin, KH, KW) -> (KH, KW, Cin, Cout); pad Cin; fold scale into columns.
        wc = jnp.transpose(weight, (2, 3, 1, 0))
        wc = jnp.pad(wc, ((0, 0), (0, 0), (0, cin_pad - cin), (0, 0)))
        wc = wc.reshape(16 * cin_pad, cout) * s[None, :]

        npad = _round_up(cout, 128)                  # lane-dense output channels
        wc = jnp.pad(wc, ((0, 0), (0, npad - cout))).astype(jnp.bfloat16)
        shift = jnp.pad(shift, (0, npad - cout)).reshape(1, npad)

        layers.append({"w": wc, "shift": shift, "cout": cout, "cin_pad": cin_pad})
    return layers


# ----------------------------------------------------------------------------- main
if __name__ == "__main__":
    sep, size, batch = 32, 2, 2
    hw = 64 * size                                   # 6 stride-2 convs: hw -> size

    key = jax.random.PRNGKey(0)
    key, k_in = jax.random.split(key)
    layers = init_params(key, sep)

    # NCHW image input, exactly what the torch forward consumes.
    net = jax.random.normal(k_in, (batch, 3, hw, hw), jnp.float32)

    fwd = jax.jit(lambda n: e2_forward(n, layers, sep, size))
    out = jax.block_until_ready(fwd(net))

    assert out.shape == (batch, sep * size * size), out.shape
    assert bool(jnp.all(jnp.isfinite(out)))
    print("KERNEL_OK")
</pallas_src>

<mosaic_0001>
module attributes {stable_mosaic.version = 11 : i64} {
  func.func @_conv_bn_lrelu_kernel(%arg0: i32, %arg1: memref<2048x128xbf16, #tpu.memory_space<vmem>>, %arg2: memref<128x128xbf16, #tpu.memory_space<vmem>>, %arg3: memref<1x128xf32, #tpu.memory_space<vmem>>, %arg4: memref<2048x128xbf16, #tpu.memory_space<vmem>>) attributes {dimension_semantics = [#tpu.dimension_semantics<parallel>], iteration_bounds = array<i64: 4>, scalar_prefetch = 0 : i64, scratch_operands = 0 : i64, tpu.core_type = #tpu.core_type<tc>, window_params = [{transform_indices = @transform_0, window_bounds = array<i64: 2048, 128>}, {pipeline_mode = #tpu.pipeline_mode<synchronous>, transform_indices = @transform_1, window_bounds = array<i64: 128, 128>}, {pipeline_mode = #tpu.pipeline_mode<synchronous>, transform_indices = @transform_2, window_bounds = array<i64: 1, 128>}, {transform_indices = @transform_3, window_bounds = array<i64: 2048, 128>}]} {
    %c0 = arith.constant 0 : index
    %c0_0 = arith.constant 0 : index
    %0 = vector.load %arg1[%c0, %c0_0] : memref<2048x128xbf16, #tpu.memory_space<vmem>>, vector<2048x128xbf16>
    %c0_1 = arith.constant 0 : index
    %c0_2 = arith.constant 0 : index
    %1 = vector.load %arg2[%c0_1, %c0_2] : memref<128x128xbf16, #tpu.memory_space<vmem>>, vector<128x128xbf16>
    %cst = arith.constant dense<0.000000e+00> : vector<2048x128xf32>
    %2 = tpu.matmul %0, %1, %cst {dimension_numbers = #tpu.dot_dimension_numbers<[1], [0], [0], [1], [0, 0, 1, 1], [], []>} : vector<2048x128xbf16>, vector<128x128xbf16>, vector<2048x128xf32> -> vector<2048x128xf32>
    %c0_3 = arith.constant 0 : index
    %c0_4 = arith.constant 0 : index
    %3 = vector.load %arg3[%c0_3, %c0_4] : memref<1x128xf32, #tpu.memory_space<vmem>>, vector<1x128xf32>
    %4 = vector.broadcast %3 : vector<1x128xf32> to vector<2048x128xf32>
    %5 = arith.addf %2, %4 : vector<2048x128xf32>
    %cst_5 = arith.constant 2.000000e-01 : f32
    %6 = vector.broadcast %cst_5 : f32 to vector<2048x128xf32>
    %7 = arith.mulf %6, %5 : vector<2048x128xf32>
    %8 = arith.maximumf %5, %7 : vector<2048x128xf32>
    %9 = arith.truncf %8 : vector<2048x128xf32> to vector<2048x128xbf16>
    %c0_6 = arith.constant 0 : index
    %c0_7 = arith.constant 0 : index
    %10 = vector.load %arg4[%c0_6, %c0_7] : memref<2048x128xbf16, #tpu.memory_space<vmem>>, vector<2048x128xbf16>
    tpu.vector_store %arg4[%c0_6, %c0_7], %9 {strides = array<i32>} : memref<2048x128xbf16, #tpu.memory_space<vmem>>, vector<2048x128xbf16>,
    return
  }
  func.func @transform_0(%arg0: i32) -> (i32, i32) {
    %c0_i32 = arith.constant 0 : i32
    %c0_i32_0 = arith.constant 0 : i32
    return %arg0, %c0_i32 : i32, i32
  }
  func.func @transform_1(%arg0: i32) -> (i32, i32) {
    %c0_i32 = arith.constant 0 : i32
    %c0_i32_0 = arith.constant 0 : i32
    %c0_i32_1 = arith.constant 0 : i32
    return %c0_i32, %c0_i32_0 : i32, i32
  }
  func.func @transform_2(%arg0: i32) -> (i32, i32) {
    %c0_i32 = arith.constant 0 : i32
    %c0_i32_0 = arith.constant 0 : i32
    %c0_i32_1 = arith.constant 0 : i32
    return %c0_i32, %c0_i32_0 : i32, i32
  }
  func.func @transform_3(%arg0: i32) -> (i32, i32) {
    %c0_i32 = arith.constant 0 : i32
    %c0_i32_0 = arith.constant 0 : i32
    return %arg0, %c0_i32 : i32, i32
  }
}

module attributes {stable_mosaic.version = 11 : i64} {
  func.func @_conv_bn_lrelu_kernel(%arg0: i32, %arg1: memref<1024x512xbf16, #tpu.memory_space<vmem>>, %arg2: memref<512x128xbf16, #tpu.memory_space<vmem>>, %arg3: memref<1x128xf32, #tpu.memory_space<vmem>>, %arg4: memref<1024x128xbf16, #tpu.memory_space<vmem>>) attributes {dimension_semantics = [#tpu.dimension_semantics<parallel>], iteration_bounds = array<i64: 2>, scalar_prefetch = 0 : i64, scratch_operands = 0 : i64, tpu.core_type = #tpu.core_type<tc>, window_params = [{transform_indices = @transform_0, window_bounds = array<i64: 1024, 512>}, {pipeline_mode = #tpu.pipeline_mode<synchronous>, transform_indices = @transform_1, window_bounds = array<i64: 512, 128>}, {pipeline_mode = #tpu.pipeline_mode<synchronous>, transform_indices = @transform_2, window_bounds = array<i64: 1, 128>}, {transform_indices = @transform_3, window_bounds = array<i64: 1024, 128>}]} {
    %c0 = arith.constant 0 : index
    %c0_0 = arith.constant 0 : index
    %0 = vector.load %arg1[%c0, %c0_0] : memref<1024x512xbf16, #tpu.memory_space<vmem>>, vector<1024x512xbf16>
    %c0_1 = arith.constant 0 : index
    %c0_2 = arith.constant 0 : index
    %1 = vector.load %arg2[%c0_1, %c0_2] : memref<512x128xbf16, #tpu.memory_space<vmem>>, vector<512x128xbf16>
    %cst = arith.constant dense<0.000000e+00> : vector<1024x128xf32>
    %2 = tpu.matmul %0, %1, %cst {dimension_numbers = #tpu.dot_dimension_numbers<[1], [0], [0], [1], [0, 0, 1, 1], [], []>} : vector<1024x512xbf16>, vector<512x128xbf16>, vector<1024x128xf32> -> vector<1024x128xf32>
    %c0_3 = arith.constant 0 : index
    %c0_4 = arith.constant 0 : index
    %3 = vector.load %arg3[%c0_3, %c0_4] : memref<1x128xf32, #tpu.memory_space<vmem>>, vector<1x128xf32>
    %4 = vector.broadcast %3 : vector<1x128xf32> to vector<1024x128xf32>
    %5 = arith.addf %2, %4 : vector<1024x128xf32>
    %cst_5 = arith.constant 2.000000e-01 : f32
    %6 = vector.broadcast %cst_5 : f32 to vector<1024x128xf32>
    %7 = arith.mulf %6, %5 : vector<1024x128xf32>
    %8 = arith.maximumf %5, %7 : vector<1024x128xf32>
    %9 = arith.truncf %8 : vector<1024x128xf32> to vector<1024x128xbf16>
    %c0_6 = arith.constant 0 : index
    %c0_7 = arith.constant 0 : index
    %10 = vector.load %arg4[%c0_6, %c0_7] : memref<1024x128xbf16, #tpu.memory_space<vmem>>, vector<1024x128xbf16>
    tpu.vector_store %arg4[%c0_6, %c0_7], %9 {strides = array<i32>} : memref<1024x128xbf16, #tpu.memory_space<vmem>>, vector<1024x128xbf16>,
    return
  }
  func.func @transform_0(%arg0: i32) -> (i32, i32) {
    %c0_i32 = arith.constant 0 : i32
    %c0_i32_0 = arith.constant 0 : i32
    return %arg0, %c0_i32 : i32, i32
  }
  func.func @transform_1(%arg0: i32) -> (i32, i32) {
    %c0_i32 = arith.constant 0 : i32
    %c0_i32_0 = arith.constant 0 : i32
    %c0_i32_1 = arith.constant 0 : i32
    return %c0_i32, %c0_i32_0 : i32, i32
  }
  func.func @transform_2(%arg0: i32) -> (i32, i32) {
    %c0_i32 = arith.constant 0 : i32
    %c0_i32_0 = arith.constant 0 : i32
    %c0_i32_1 = arith.constant 0 : i32
    return %c0_i32, %c0_i32_0 : i32, i32
  }
  func.func @transform_3(%arg0: i32) -> (i32, i32) {
    %c0_i32 = arith.constant 0 : i32
    %c0_i32_0 = arith.constant 0 : i32
    return %arg0, %c0_i32 : i32, i32
  }
}

module attributes {stable_mosaic.version = 11 : i64} {
  func.func @_conv_bn_lrelu_kernel(%arg0: i32, %arg1: memref<512x1024xbf16, #tpu.memory_space<vmem>>, %arg2: memref<1024x128xbf16, #tpu.memory_space<vmem>>, %arg3: memref<1x128xf32, #tpu.memory_space<vmem>>, %arg4: memref<512x128xbf16, #tpu.memory_space<vmem>>) attributes {dimension_semantics = [#tpu.dimension_semantics<parallel>], iteration_bounds = array<i64: 1>, scalar_prefetch = 0 : i64, scratch_operands = 0 : i64, tpu.core_type = #tpu.core_type<tc>, window_params = [{transform_indices = @transform_0, window_bounds = array<i64: 512, 1024>}, {pipeline_mode = #tpu.pipeline_mode<synchronous>, transform_indices = @transform_1, window_bounds = array<i64: 1024, 128>}, {pipeline_mode = #tpu.pipeline_mode<synchronous>, transform_indices = @transform_2, window_bounds = array<i64: 1, 128>}, {transform_indices = @transform_3, window_bounds = array<i64: 512, 128>}]} {
    %c0 = arith.constant 0 : index
    %c0_0 = arith.constant 0 : index
    %0 = vector.load %arg1[%c0, %c0_0] : memref<512x1024xbf16, #tpu.memory_space<vmem>>, vector<512x1024xbf16>
    %c0_1 = arith.constant 0 : index
    %c0_2 = arith.constant 0 : index
    %1 = vector.load %arg2[%c0_1, %c0_2] : memref<1024x128xbf16, #tpu.memory_space<vmem>>, vector<1024x128xbf16>
    %cst = arith.constant dense<0.000000e+00> : vector<512x128xf32>
    %2 = tpu.matmul %0, %1, %cst {dimension_numbers = #tpu.dot_dimension_numbers<[1], [0], [0], [1], [0, 0, 1, 1], [], []>} : vector<512x1024xbf16>, vector<1024x128xbf16>, vector<512x128xf32> -> vector<512x128xf32>
    %c0_3 = arith.constant 0 : index
    %c0_4 = arith.constant 0 : index
    %3 = vector.load %arg3[%c0_3, %c0_4] : memref<1x128xf32, #tpu.memory_space<vmem>>, vector<1x128xf32>
    %4 = vector.broadcast %3 : vector<1x128xf32> to vector<512x128xf32>
    %5 = arith.addf %2, %4 : vector<512x128xf32>
    %cst_5 = arith.constant 2.000000e-01 : f32
    %6 = vector.broadcast %cst_5 : f32 to vector<512x128xf32>
    %7 = arith.mulf %6, %5 : vector<512x128xf32>
    %8 = arith.maximumf %5, %7 : vector<512x128xf32>
    %9 = arith.truncf %8 : vector<512x128xf32> to vector<512x128xbf16>
    %c0_6 = arith.constant 0 : index
    %c0_7 = arith.constant 0 : index
    %10 = vector.load %arg4[%c0_6, %c0_7] : memref<512x128xbf16, #tpu.memory_space<vmem>>, vector<512x128xbf16>
    tpu.vector_store %arg4[%c0_6, %c0_7], %9 {strides = array<i32>} : memref<512x128xbf16, #tpu.memory_space<vmem>>, vector<512x128xbf16>,
    return
  }
  func.func @transform_0(%arg0: i32) -> (i32, i32) {
    %c0_i32 = arith.constant 0 : i32
    %c0_i32_0 = arith.constant 0 : i32
    return %arg0, %c0_i32 : i32, i32
  }
  func.func @transform_1(%arg0: i32) -> (i32, i32) {
    %c0_i32 = arith.constant 0 : i32
    %c0_i32_0 = arith.constant 0 : i32
    %c0_i32_1 = arith.constant 0 : i32
    return %c0_i32, %c0_i32_0 : i32, i32
  }
  func.func @transform_2(%arg0: i32) -> (i32, i32) {
    %c0_i32 = arith.constant 0 : i32
    %c0_i32_0 = arith.constant 0 : i32
    %c0_i32_1 = arith.constant 0 : i32
    return %c0_i32, %c0_i32_0 : i32, i32
  }
  func.func @transform_3(%arg0: i32) -> (i32, i32) {
    %c0_i32 = arith.constant 0 : i32
    %c0_i32_0 = arith.constant 0 : i32
    return %arg0, %c0_i32 : i32, i32
  }
}

module attributes {stable_mosaic.version = 11 : i64} {
  func.func @_conv_bn_lrelu_kernel(%arg0: i32, %arg1: memref<128x2048xbf16, #tpu.memory_space<vmem>>, %arg2: memref<2048x128xbf16, #tpu.memory_space<vmem>>, %arg3: memref<1x128xf32, #tpu.memory_space<vmem>>, %arg4: memref<128x128xbf16, #tpu.memory_space<vmem>>) attributes {dimension_semantics = [#tpu.dimension_semantics<parallel>], iteration_bounds = array<i64: 1>, scalar_prefetch = 0 : i64, scratch_operands = 0 : i64, tpu.core_type = #tpu.core_type<tc>, window_params = [{transform_indices = @transform_0, window_bounds = array<i64: 128, 2048>}, {pipeline_mode = #tpu.pipeline_mode<synchronous>, transform_indices = @transform_1, window_bounds = array<i64: 2048, 128>}, {pipeline_mode = #tpu.pipeline_mode<synchronous>, transform_indices = @transform_2, window_bounds = array<i64: 1, 128>}, {transform_indices = @transform_3, window_bounds = array<i64: 128, 128>}]} {
    %c0 = arith.constant 0 : index
    %c0_0 = arith.constant 0 : index
    %0 = vector.load %arg1[%c0, %c0_0] : memref<128x2048xbf16, #tpu.memory_space<vmem>>, vector<128x2048xbf16>
    %c0_1 = arith.constant 0 : index
    %c0_2 = arith.constant 0 : index
    %1 = vector.load %arg2[%c0_1, %c0_2] : memref<2048x128xbf16, #tpu.memory_space<vmem>>, vector<2048x128xbf16>
    %cst = arith.constant dense<0.000000e+00> : vector<128x128xf32>
    %2 = tpu.matmul %0, %1, %cst {dimension_numbers = #tpu.dot_dimension_numbers<[1], [0], [0], [1], [0, 0, 1, 1], [], []>} : vector<128x2048xbf16>, vector<2048x128xbf16>, vector<128x128xf32> -> vector<128x128xf32>
    %c0_3 = arith.constant 0 : index
    %c0_4 = arith.constant 0 : index
    %3 = vector.load %arg3[%c0_3, %c0_4] : memref<1x128xf32, #tpu.memory_space<vmem>>, vector<1x128xf32>
    %4 = vector.broadcast %3 : vector<1x128xf32> to vector<128x128xf32>
    %5 = arith.addf %2, %4 : vector<128x128xf32>
    %cst_5 = arith.constant 2.000000e-01 : f32
    %6 = vector.broadcast %cst_5 : f32 to vector<128x128xf32>
    %7 = arith.mulf %6, %5 : vector<128x128xf32>
    %8 = arith.maximumf %5, %7 : vector<128x128xf32>
    %9 = arith.truncf %8 : vector<128x128xf32> to vector<128x128xbf16>
    %c0_6 = arith.constant 0 : index
    %c0_7 = arith.constant 0 : index
    %10 = vector.load %arg4[%c0_6, %c0_7] : memref<128x128xbf16, #tpu.memory_space<vmem>>, vector<128x128xbf16>
    tpu.vector_store %arg4[%c0_6, %c0_7], %9 {strides = array<i32>} : memref<128x128xbf16, #tpu.memory_space<vmem>>, vector<128x128xbf16>,
    return
  }
  func.func @transform_0(%arg0: i32) -> (i32, i32) {
    %c0_i32 = arith.constant 0 : i32
    %c0_i32_0 = arith.constant 0 : i32
    return %arg0, %c0_i32 : i32, i32
  }
  func.func @transform_1(%arg0: i32) -> (i32, i32) {
    %c0_i32 = arith.constant 0 : i32
    %c0_i32_0 = arith.constant 0 : i32
    %c0_i32_1 = arith.constant 0 : i32
    return %c0_i32, %c0_i32_0 : i32, i32
  }
  func.func @transform_2(%arg0: i32) -> (i32, i32) {
    %c0_i32 = arith.constant 0 : i32
    %c0_i32_0 = arith.constant 0 : i32
    %c0_i32_1 = arith.constant 0 : i32
    return %c0_i32, %c0_i32_0 : i32, i32
  }
  func.func @transform_3(%arg0: i32) -> (i32, i32) {
    %c0_i32 = arith.constant 0 : i32
    %c0_i32_0 = arith.constant 0 : i32
    return %arg0, %c0_i32 : i32, i32
  }
}

module attributes {stable_mosaic.version = 11 : i64} {
  func.func @_conv_bn_lrelu_kernel(%arg0: i32, %arg1: memref<32x2048xbf16, #tpu.memory_space<vmem>>, %arg2: memref<2048x128xbf16, #tpu.memory_space<vmem>>, %arg3: memref<1x128xf32, #tpu.memory_space<vmem>>, %arg4: memref<32x128xbf16, #tpu.memory_space<vmem>>) attributes {dimension_semantics = [#tpu.dimension_semantics<parallel>], iteration_bounds = array<i64: 1>, scalar_prefetch = 0 : i64, scratch_operands = 0 : i64, tpu.core_type = #tpu.core_type<tc>, window_params = [{transform_indices = @transform_0, window_bounds = array<i64: 32, 2048>}, {pipeline_mode = #tpu.pipeline_mode<synchronous>, transform_indices = @transform_1, window_bounds = array<i64: 2048, 128>}, {pipeline_mode = #tpu.pipeline_mode<synchronous>, transform_indices = @transform_2, window_bounds = array<i64: 1, 128>}, {transform_indices = @transform_3, window_bounds = array<i64: 32, 128>}]} {
    %c0 = arith.constant 0 : index
    %c0_0 = arith.constant 0 : index
    %0 = vector.load %arg1[%c0, %c0_0] : memref<32x2048xbf16, #tpu.memory_space<vmem>>, vector<32x2048xbf16>
    %c0_1 = arith.constant 0 : index
    %c0_2 = arith.constant 0 : index
    %1 = vector.load %arg2[%c0_1, %c0_2] : memref<2048x128xbf16, #tpu.memory_space<vmem>>, vector<2048x128xbf16>
    %cst = arith.constant dense<0.000000e+00> : vector<32x128xf32>
    %2 = tpu.matmul %0, %1, %cst {dimension_numbers = #tpu.dot_dimension_numbers<[1], [0], [0], [1], [0, 0, 1, 1], [], []>} : vector<32x2048xbf16>, vector<2048x128xbf16>, vector<32x128xf32> -> vector<32x128xf32>
    %c0_3 = arith.constant 0 : index
    %c0_4 = arith.constant 0 : index
    %3 = vector.load %arg3[%c0_3, %c0_4] : memref<1x128xf32, #tpu.memory_space<vmem>>, vector<1x128xf32>
    %4 = vector.broadcast %3 : vector<1x128xf32> to vector<32x128xf32>
    %5 = arith.addf %2, %4 : vector<32x128xf32>
    %cst_5 = arith.constant 2.000000e-01 : f32
    %6 = vector.broadcast %cst_5 : f32 to vector<32x128xf32>
    %7 = arith.mulf %6, %5 : vector<32x128xf32>
    %8 = arith.maximumf %5, %7 : vector<32x128xf32>
    %9 = arith.truncf %8 : vector<32x128xf32> to vector<32x128xbf16>
    %c0_6 = arith.constant 0 : index
    %c0_7 = arith.constant 0 : index
    %10 = vector.load %arg4[%c0_6, %c0_7] : memref<32x128xbf16, #tpu.memory_space<vmem>>, vector<32x128xbf16>
    tpu.vector_store %arg4[%c0_6, %c0_7], %9 {strides = array<i32>} : memref<32x128xbf16, #tpu.memory_space<vmem>>, vector<32x128xbf16>,
    return
  }
  func.func @transform_0(%arg0: i32) -> (i32, i32) {
    %c0_i32 = arith.constant 0 : i32
    %c0_i32_0 = arith.constant 0 : i32
    return %arg0, %c0_i32 : i32, i32
  }
  func.func @transform_1(%arg0: i32) -> (i32, i32) {
    %c0_i32 = arith.constant 0 : i32
    %c0_i32_0 = arith.constant 0 : i32
    %c0_i32_1 = arith.constant 0 : i32
    return %c0_i32, %c0_i32_0 : i32, i32
  }
  func.func @transform_2(%arg0: i32) -> (i32, i32) {
    %c0_i32 = arith.constant 0 : i32
    %c0_i32_0 = arith.constant 0 : i32
    %c0_i32_1 = arith.constant 0 : i32
    return %c0_i32, %c0_i32_0 : i32, i32
  }
  func.func @transform_3(%arg0: i32) -> (i32, i32) {
    %c0_i32 = arith.constant 0 : i32
    %c0_i32_0 = arith.constant 0 : i32
    return %arg0, %c0_i32 : i32, i32
  }
}

module attributes {stable_mosaic.version = 11 : i64} {
  func.func @_conv_bn_lrelu_kernel(%arg0: i32, %arg1: memref<16x2048xbf16, #tpu.memory_space<vmem>>, %arg2: memref<2048x128xbf16, #tpu.memory_space<vmem>>, %arg3: memref<1x128xf32, #tpu.memory_space<vmem>>, %arg4: memref<16x128xbf16, #tpu.memory_space<vmem>>) attributes {dimension_semantics = [#tpu.dimension_semantics<parallel>], iteration_bounds = array<i64: 1>, scalar_prefetch = 0 : i64, scratch_operands = 0 : i64, tpu.core_type = #tpu.core_type<tc>, window_params = [{transform_indices = @transform_0, window_bounds = array<i64: 16, 2048>}, {pipeline_mode = #tpu.pipeline_mode<synchronous>, transform_indices = @transform_1, window_bounds = array<i64: 2048, 128>}, {pipeline_mode = #tpu.pipeline_mode<synchronous>, transform_indices = @transform_2, window_bounds = array<i64: 1, 128>}, {transform_indices = @transform_3, window_bounds = array<i64: 16, 128>}]} {
    %c0 = arith.constant 0 : index
    %c0_0 = arith.constant 0 : index
    %0 = vector.load %arg1[%c0, %c0_0] : memref<16x2048xbf16, #tpu.memory_space<vmem>>, vector<16x2048xbf16>
    %c0_1 = arith.constant 0 : index
    %c0_2 = arith.constant 0 : index
    %1 = vector.load %arg2[%c0_1, %c0_2] : memref<2048x128xbf16, #tpu.memory_space<vmem>>, vector<2048x128xbf16>
    %cst = arith.constant dense<0.000000e+00> : vector<16x128xf32>
    %2 = tpu.matmul %0, %1, %cst {dimension_numbers = #tpu.dot_dimension_numbers<[1], [0], [0], [1], [0, 0, 1, 1], [], []>} : vector<16x2048xbf16>, vector<2048x128xbf16>, vector<16x128xf32> -> vector<16x128xf32>
    %c0_3 = arith.constant 0 : index
    %c0_4 = arith.constant 0 : index
    %3 = vector.load %arg3[%c0_3, %c0_4] : memref<1x128xf32, #tpu.memory_space<vmem>>, vector<1x128xf32>
    %4 = vector.broadcast %3 : vector<1x128xf32> to vector<16x128xf32>
    %5 = arith.addf %2, %4 : vector<16x128xf32>
    %cst_5 = arith.constant 2.000000e-01 : f32
    %6 = vector.broadcast %cst_5 : f32 to vector<16x128xf32>
    %7 = arith.mulf %6, %5 : vector<16x128xf32>
    %8 = arith.maximumf %5, %7 : vector<16x128xf32>
    %9 = arith.truncf %8 : vector<16x128xf32> to vector<16x128xbf16>
    %c0_6 = arith.constant 0 : index
    %c0_7 = arith.constant 0 : index
    %10 = vector.load %arg4[%c0_6, %c0_7] : memref<16x128xbf16, #tpu.memory_space<vmem>>, vector<16x128xbf16>
    tpu.vector_store %arg4[%c0_6, %c0_7], %9 {strides = array<i32>} : memref<16x128xbf16, #tpu.memory_space<vmem>>, vector<16x128xbf16>,
    return
  }
  func.func @transform_0(%arg0: i32) -> (i32, i32) {
    %c0_i32 = arith.constant 0 : i32
    %c0_i32_0 = arith.constant 0 : i32
    return %arg0, %c0_i32 : i32, i32
  }
  func.func @transform_1(%arg0: i32) -> (i32, i32) {
    %c0_i32 = arith.constant 0 : i32
    %c0_i32_0 = arith.constant 0 : i32
    %c0_i32_1 = arith.constant 0 : i32
    return %c0_i32, %c0_i32_0 : i32, i32
  }
  func.func @transform_2(%arg0: i32) -> (i32, i32) {
    %c0_i32 = arith.constant 0 : i32
    %c0_i32_0 = arith.constant 0 : i32
    %c0_i32_1 = arith.constant 0 : i32
    return %c0_i32, %c0_i32_0 : i32, i32
  }
  func.func @transform_3(%arg0: i32) -> (i32, i32) {
    %c0_i32 = arith.constant 0 : i32
    %c0_i32_0 = arith.constant 0 : i32
    return %arg0, %c0_i32 : i32, i32
  }
}

</mosaic_0001>

<bundles_post_ra>
// kernel: _lambda_.6
= control target key start
LH: loop header
LB: loop body
LE: loop exit
PB: predicated region body
PF: predicated region fallthrough
CT: control target
= control target key end

     0   :  { %s6200_s12 = smov 0   ;;  %s6779_s0 = inlined_call_operand.vmem [shape: bf16[8192,128], index: 0, kind: input, shape index: {}]   ;;  %s6780_s1 = inlined_call_operand.vmem [shape: bf16[128,128], index: 1, kind: input, shape index: {}]   ;;  %s6781_s2 = inlined_call_operand.vmem [shape: f32[1,128], index: 2, kind: input, shape index: {}]   ;;  %s6782_s3 = inlined_call_operand.vmem [shape: bf16[8192,128], index: 3, kind: output, shape index: {}]  }
   0x1 LB: > { %s4175_s13 = sadd.s32 4294967295, %s6178_s12   ;;  %p4179_p0 = scmp.ge.s32.totalorder %s6178_s12, 1  ;;  %s6178_s12 = sphi %s6200_s12, %s13_s12  }
   0x2   : > { %p138_p1 = scmp.lt.s32.totalorder %s6178_s12, 5 }
   0x4   : > { %p139_p2 = pnand %p4179_p0, %p138_p1 }
   0x5   : > { %v6034_v0 = vld [vmem:[%s6780_s1] sm:$0xff] (!%p139_p2)   ;;  %s4180_s16 = sshll.u32 (!%p139_p2), %s4175_s13, 8  ;;  %v6035_v1 = vld [vmem:[%s6780_s1 + $0x8] sm:$0xff] (!%p139_p2)   ;;  %v6036_v2 = vld [vmem:[%s6780_s1 + $0x10] sm:$0xff] (!%p139_p2)  }
   0x6   : > { %142 = sbr.rel (%p139_p2) target bundleno = 511 (0x1ff), region = 32  ;;  %p163_p3 = scmp.lt.s32.totalorder (!%p139_p2), %s4180_s16, 1023  ;;  %5738 = vmatprep.subr.bf16.mxu0 (!%p139_p2), %v6034_v0  ;;  %6010 = vmatprep.subr.bf16.mxu1 (!%p139_p2), %v6034_v0  ;;  %v6037_v3 = vld [vmem:[%s6780_s1 + $0x18] sm:$0xff] (!%p139_p2)   ;;  %v6038_v6 = vld [vmem:[%s6780_s1 + $0x20] sm:$0xff] (!%p139_p2)   ;;  %v6039_v7 = vld [vmem:[%s6780_s1 + $0x28] sm:$0xff] (!%p139_p2)  }
   0x7   : > { %5739 = vmatpush3.bf16.msra.mxu0 (!%p139_p2), %v6034_v0  ;;  %6018 = vmatpush3.bf16.msra.mxu1 (!%p139_p2), %v6034_v0  ;;  %v6040_v8 = vld [vmem:[%s6780_s1 + $0x30] sm:$0xff] (!%p139_p2)   ;;  %v6041_v9 = vld [vmem:[%s6780_s1 + $0x38] sm:$0xff] (!%p139_p2)  }
   0x8   : > { %5740 = vmatprep.subr.bf16.mxu0 (!%p139_p2), %v6035_v1  ;;  %6011 = vmatprep.subr.bf16.mxu1 (!%p139_p2), %v6035_v1 }
   0xb   : > { %5741 = vmatpush3.bf16.msra.mxu0 (!%p139_p2), %v6035_v1  ;;  %6019 = vmatpush3.bf16.msra.mxu1 (!%p139_p2), %v6035_v1 }
   0xc   : > { %5742 = vmatprep.subr.bf16.mxu0 (!%p139_p2), %v6036_v2  ;;  %6012 = vmatprep.subr.bf16.mxu1 (!%p139_p2), %v6036_v2 }
   0xd   : > { %s6784_s16 = smov (!%p163_p3, %s4180_s16), 1023 }
   0xe   : > { %s4181_s21 = sshll.u32 %s6784_s16, 2 }
   0xf   : > { %s6225_s24 = scalar_lea.vmem %s6779_s0, %s4181_s21  ;;  %5743 = vmatpush3.bf16.msra.mxu0 %v6036_v2  ;;  %6020 = vmatpush3.bf16.msra.mxu1 %v6036_v2  ;;  %s6374_s13 = scalar_lea.vmem %s6782_s3, %s4181_s21 }
  0x10   : > { %v6042_v4 = vld [vmem:[%s6225_s24] sm:$0xff]   ;;  %5744 = vmatprep.subr.bf16.mxu0 %v6037_v3  ;;  %6013 = vmatprep.subr.bf16.mxu1 %v6037_v3  ;;  %v6044_v10 = vld [vmem:[%s6225_s24 + $0x8] sm:$0xff]   ;;  %v6046_v12 = vld [vmem:[%s6225_s24 + $0x10] sm:$0xff]  }
  0x11   : > { %v6043_v5 = vld [vmem:[%s6225_s24 + $0x200] sm:$0xff]   ;;  %5754 = vmatprep.mubr.bf16.mxu0 %v6042_v4  ;;  %v6045_v11 = vld [vmem:[%s6225_s24 + $0x208] sm:$0xff]   ;;  %v6047_v13 = vld [vmem:[%s6225_s24 + $0x210] sm:$0xff]  }
  0x12   : > { %5882 = vmatprep.mubr.bf16.mxu1 %v6043_v5  ;;  %v6048_v14 = vld [vmem:[%s6225_s24 + $0x18] sm:$0xff]   ;;  %v6050_v16 = vld [vmem:[%s6225_s24 + $0x20] sm:$0xff]   ;;  %v6052_v18 = vld [vmem:[%s6225_s24 + $0x28] sm:$0xff]  }
  0x13   : > { %5745 = vmatpush3.bf16.msra.mxu0 %v6037_v3  ;;  %6021 = vmatpush3.bf16.msra.mxu1 %v6037_v3  ;;  %v6049_v15 = vld [vmem:[%s6225_s24 + $0x218] sm:$0xff]   ;;  %v6051_v17 = vld [vmem:[%s6225_s24 + $0x220] sm:$0xff]   ;;  %v6053_v19 = vld [vmem:[%s6225_s24 + $0x228] sm:$0xff]  }
  0x14   : > { %5746 = vmatprep.subr.bf16.mxu0 %v6038_v6  ;;  %6014 = vmatprep.subr.bf16.mxu1 %v6038_v6  ;;  %v6054_v20 = vld [vmem:[%s6225_s24 + $0x30] sm:$0xff]   ;;  %v6056_v22 = vld [vmem:[%s6225_s24 + $0x38] sm:$0xff]   ;;  %v6058_v24 = vld [vmem:[%s6225_s24 + $0x40] sm:$0xff]  }
  0x15   : > { %v6055_v21 = vld [vmem:[%s6225_s24 + $0x230] sm:$0xff]   ;;  %v6057_v23 = vld [vmem:[%s6225_s24 + $0x238] sm:$0xff]   ;;  %v6059_v25 = vld [vmem:[%s6225_s24 + $0x240] sm:$0xff]  }
  0x16   : > { %v6060_v26 = vld [vmem:[%s6225_s24 + $0x48] sm:$0xff]   ;;  %v6062_v28 = vld [vmem:[%s6225_s24 + $0x50] sm:$0xff]   ;;  %v6064_v30 = vld [vmem:[%s6225_s24 + $0x58] sm:$0xff]  }
  0x17   : > { %5747 = vmatpush3.bf16.msra.mxu0 %v6038_v6  ;;  %6022 = vmatpush3.bf16.msra.mxu1 %v6038_v6  ;;  %v6061_v27 = vld [vmem:[%s6225_s24 + $0x248] sm:$0xff]   ;;  %v6063_v29 = vld [vmem:[%s6225_s24 + $0x250] sm:$0xff]   ;;  %v6065_v31 = vld [vmem:[%s6225_s24 + $0x258] sm:$0xff]  }
  0x18   : > { %5748 = vmatprep.subr.bf16.mxu0 %v6039_v7  ;;  %6015 = vmatprep.subr.bf16.mxu1 %v6039_v7  ;;  %v6066_v32 = vld [vmem:[%s6225_s24 + $0x60] sm:$0xff]   ;;  %v6068_v34 = vld [vmem:[%s6225_s24 + $0x68] sm:$0xff]   ;;  %v6070_v36 = vld [vmem:[%s6225_s24 + $0x70] sm:$0xff]  }
  0x19   : > { %v6067_v33 = vld [vmem:[%s6225_s24 + $0x260] sm:$0xff]   ;;  %v6069_v35 = vld [vmem:[%s6225_s24 + $0x268] sm:$0xff]   ;;  %v6071_v37 = vld [vmem:[%s6225_s24 + $0x270] sm:$0xff]  }
  0x1a   : > { %v6072_v38 = vld [vmem:[%s6225_s24 + $0x78] sm:$0xff]   ;;  %v6074_v40 = vld [vmem:[%s6225_s24 + $0x80] sm:$0xff]   ;;  %v6076_v42 = vld [vmem:[%s6225_s24 + $0x88] sm:$0xff]  }
  0x1b   : > { %5749 = vmatpush3.bf16.msra.mxu0 %v6039_v7  ;;  %6023 = vmatpush3.bf16.msra.mxu1 %v6039_v7  ;;  %v6073_v39 = vld [vmem:[%s6225_s24 + $0x278] sm:$0xff]   ;;  %v6075_v41 = vld [vmem:[%s6225_s24 + $0x280] sm:$0xff]   ;;  %v6077_v43 = vld [vmem:[%s6225_s24 + $0x288] sm:$0xff]  }
  0x1c   : > { %5750 = vmatprep.subr.bf16.mxu0 %v6040_v8  ;;  %6016 = vmatprep.subr.bf16.mxu1 %v6040_v8  ;;  %v6078_v44 = vld [vmem:[%s6225_s24 + $0x90] sm:$0xff]   ;;  %v6080_v46 = vld [vmem:[%s6225_s24 + $0x98] sm:$0xff]   ;;  %v6082_v48 = vld [vmem:[%s6225_s24 + $0xa0] sm:$0xff]  }
  0x1d   : > { %v6079_v45 = vld [vmem:[%s6225_s24 + $0x290] sm:$0xff]   ;;  %v6081_v47 = vld [vmem:[%s6225_s24 + $0x298] sm:$0xff]   ;;  %v6083_v49 = vld [vmem:[%s6225_s24 + $0x2a0] sm:$0xff]  }
  0x1e   : > { %v6084_v50 = vld [vmem:[%s6225_s24 + $0xa8] sm:$0xff]   ;;  %v6086_v52 = vld [vmem:[%s6225_s24 + $0xb0] sm:$0xff]   ;;  %v6088_v54 = vld [vmem:[%s6225_s24 + $0xb8] sm:$0xff]  }
  0x1f   : > { %5751 = vmatpush3.bf16.msra.mxu0 %v6040_v8  ;;  %6024 = vmatpush3.bf16.msra.mxu1 %v6040_v8  ;;  %v6085_v51 = vld [vmem:[%s6225_s24 + $0x2a8] sm:$0xff]   ;;  %v6087_v53 = vld [vmem:[%s6225_s24 + $0x2b0] sm:$0xff]   ;;  %v6089_v55 = vld [vmem:[%s6225_s24 + $0x2b8] sm:$0xff]  }
  0x20   : > { %5752 = vmatprep.subr.bf16.mxu0 %v6041_v9  ;;  %6017 = vmatprep.subr.bf16.mxu1 %v6041_v9  ;;  %v6090_v56 = vld [vmem:[%s6225_s24 + $0xc0] sm:$0xff]   ;;  %v6092_v58 = vld [vmem:[%s6225_s24 + $0xc8] sm:$0xff]   ;;  %v6094_v60 = vld [vmem:[%s6225_s24 + $0xd0] sm:$0xff]  }
  0x21   : > { %v6091_v57 = vld [vmem:[%s6225_s24 + $0x2c0] sm:$0xff]   ;;  %v6093_v59 = vld [vmem:[%s6225_s24 + $0x2c8] sm:$0xff]   ;;  %v6095_v61 = vld [vmem:[%s6225_s24 + $0x2d0] sm:$0xff]  }
  0x22   : > { %v6096_v62 = vld [vmem:[%s6225_s24 + $0xd8] sm:$0xff]   ;;  %v6098_v0 = vld [vmem:[%s6225_s24 + $0xe0] sm:$0xff]   ;;  %v6100_v2 = vld [vmem:[%s6225_s24 + $0xe8] sm:$0xff]  }
  0x23   : > { %5753 = vmatpush3.bf16.msra.mxu0 %v6041_v9  ;;  %6025 = vmatpush3.bf16.msra.mxu1 %v6041_v9  ;;  %v6097_v63 = vld [vmem:[%s6225_s24 + $0x2d8] sm:$0xff]   ;;  %v6099_v1 = vld [vmem:[%s6225_s24 + $0x2e0] sm:$0xff]   ;;  %v6101_v3 = vld [vmem:[%s6225_s24 + $0x2e8] sm:$0xff]  }
  0x24   : > { %v6102_v4 = vld [vmem:[%s6225_s24 + $0xf0] sm:$0xff]   ;;  %v6104_v6 = vld [vmem:[%s6225_s24 + $0xf8] sm:$0xff]   ;;  %v6106_v8 = vld [vmem:[%s6225_s24 + $0x100] sm:$0xff]  }
  0x25   : > { %v6103_v5 = vld [vmem:[%s6225_s24 + $0x2f0] sm:$0xff]   ;;  %v6105_v7 = vld [vmem:[%s6225_s24 + $0x2f8] sm:$0xff]   ;;  %v6107_v9 = vld [vmem:[%s6225_s24 + $0x300] sm:$0xff]  }
  0x26   : > { %5755 = vmatmul.mubr.bf16.vlgmr.msra.gmra.mrb[0].mxu0 %v6044_v10  ;;  %5883 = vmatmul.mubr.bf16.vlgmr.msra.gmra.mrb[0].mxu1 %v6045_v11  ;;  %v6108_v10 = vld [vmem:[%s6225_s24 + $0x108] sm:$0xff]  }
  0x27   : > { %5758 = vmatprep.mubr.bf16.mxu0 %v6046_v12  ;;  %5886 = vmatprep.mubr.bf16.mxu1 %v6047_v13  ;;  %v6109_v11 = vld [vmem:[%s6225_s24 + $0x308] sm:$0xff]   ;;  %v6110_v12 = vld [vmem:[%s6225_s24 + $0x110] sm:$0xff]  }
  0x28   : > { %v6111_v13 = vld [vmem:[%s6225_s24 + $0x310] sm:$0xff]  }
  0x2e   : > { %5759 = vmatmul.mubr.bf16.gmra.mrb[4].mxu0 %v6048_v14  ;;  %5887 = vmatmul.mubr.bf16.gmra.mrb[4].mxu1 %v6049_v15  ;;  %v6112_v14 = vld [vmem:[%s6225_s24 + $0x118] sm:$0xff]  }
  0x2f   : > { %5762 = vmatprep.mubr.bf16.mxu0 %v6050_v16  ;;  %5890 = vmatprep.mubr.bf16.mxu1 %v6051_v17  ;;  %v6113_v15 = vld [vmem:[%s6225_s24 + $0x318] sm:$0xff]   ;;  %v6114_v16 = vld [vmem:[%s6225_s24 + $0x120] sm:$0xff]  }
  0x30   : > { %v6115_v17 = vld [vmem:[%s6225_s24 + $0x320] sm:$0xff]  }
  0x36   : > { %5763 = vmatmul.mubr.bf16.gmra.mrb[8].mxu0 %v6052_v18  ;;  %5891 = vmatmul.mubr.bf16.gmra.mrb[8].mxu1 %v6053_v19  ;;  %v6116_v18 = vld [vmem:[%s6225_s24 + $0x128] sm:$0xff]  }
  0x37   : > { %5766 = vmatprep.mubr.bf16.mxu0 %v6054_v20  ;;  %5894 = vmatprep.mubr.bf16.mxu1 %v6055_v21  ;;  %v6117_v19 = vld [vmem:[%s6225_s24 + $0x328] sm:$0xff]   ;;  %v6118_v20 = vld [vmem:[%s6225_s24 + $0x130] sm:$0xff]  }
  0x38   : > { %v6119_v21 = vld [vmem:[%s6225_s24 + $0x330] sm:$0xff]  }
  0x3e   : > { %5767 = vmatmul.mubr.bf16.gmra.mrb[12].mxu0 %v6056_v22  ;;  %5895 = vmatmul.mubr.bf16.gmra.mrb[12].mxu1 %v6057_v23  ;;  %v6120_v22 = vld [vmem:[%s6225_s24 + $0x138] sm:$0xff]  }
  0x3f   : > { %5770 = vmatprep.mubr.bf16.mxu0 %v6058_v24  ;;  %5898 = vmatprep.mubr.bf16.mxu1 %v6059_v25  ;;  %v6121_v23 = vld [vmem:[%s6225_s24 + $0x338] sm:$0xff]   ;;  %v6122_v24 = vld [vmem:[%s6225_s24 + $0x140] sm:$0xff]  }
  0x40   : > { %v6123_v25 = vld [vmem:[%s6225_s24 + $0x340] sm:$0xff]  }
  0x46   : > { %5771 = vmatmul.mubr.bf16.gmra.mrb[16].mxu0 %v6060_v26  ;;  %5899 = vmatmul.mubr.bf16.gmra.mrb[16].mxu1 %v6061_v27  ;;  %v6124_v26 = vld [vmem:[%s6225_s24 + $0x148] sm:$0xff]  }
  0x47   : > { %5774 = vmatprep.mubr.bf16.mxu0 %v6062_v28  ;;  %5902 = vmatprep.mubr.bf16.mxu1 %v6063_v29  ;;  %v6125_v27 = vld [vmem:[%s6225_s24 + $0x348] sm:$0xff]   ;;  %v6126_v28 = vld [vmem:[%s6225_s24 + $0x150] sm:$0xff]  }
  0x48   : > { %v6127_v29 = vld [vmem:[%s6225_s24 + $0x350] sm:$0xff]  }
  0x4e   : > { %5775 = vmatmul.mubr.bf16.gmra.mrb[20].mxu0 %v6064_v30  ;;  %5903 = vmatmul.mubr.bf16.gmra.mrb[20].mxu1 %v6065_v31  ;;  %v6128_v30 = vld [vmem:[%s6225_s24 + $0x158] sm:$0xff]  }
  0x4f   : > { %5778 = vmatprep.mubr.bf16.mxu0 %v6066_v32  ;;  %5906 = vmatprep.mubr.bf16.mxu1 %v6067_v33  ;;  %v6129_v31 = vld [vmem:[%s6225_s24 + $0x358] sm:$0xff]   ;;  %v6130_v32 = vld [vmem:[%s6225_s24 + $0x160] sm:$0xff]  }
  0x50   : > { %v6131_v33 = vld [vmem:[%s6225_s24 + $0x360] sm:$0xff]  }
  0x56   : > { %5779 = vmatmul.mubr.bf16.gmra.mrb[24].mxu0 %v6068_v34  ;;  %5907 = vmatmul.mubr.bf16.gmra.mrb[24].mxu1 %v6069_v35  ;;  %v6132_v34 = vld [vmem:[%s6225_s24 + $0x168] sm:$0xff]  }
  0x57   : > { %5782 = vmatprep.mubr.bf16.mxu0 %v6070_v36  ;;  %5910 = vmatprep.mubr.bf16.mxu1 %v6071_v37  ;;  %v6133_v35 = vld [vmem:[%s6225_s24 + $0x368] sm:$0xff]   ;;  %v6134_v36 = vld [vmem:[%s6225_s24 + $0x170] sm:$0xff]  }
  0x58   : > { %v6135_v37 = vld [vmem:[%s6225_s24 + $0x370] sm:$0xff]  }
  0x5e   : > { %5783 = vmatmul.mubr.bf16.gmra.mrb[28].mxu0 %v6072_v38  ;;  %5911 = vmatmul.mubr.bf16.gmra.mrb[28].mxu1 %v6073_v39  ;;  %v6136_v38 = vld [vmem:[%s6225_s24 + $0x178] sm:$0xff]  }
  0x5f   : > { %5786 = vmatprep.mubr.bf16.mxu0 %v6074_v40  ;;  %5914 = vmatprep.mubr.bf16.mxu1 %v6075_v41  ;;  %v6137_v39 = vld [vmem:[%s6225_s24 + $0x378] sm:$0xff]   ;;  %v6138_v40 = vld [vmem:[%s6225_s24 + $0x180] sm:$0xff]  }
  0x60   : > { %v6139_v41 = vld [vmem:[%s6225_s24 + $0x380] sm:$0xff]  }
  0x66   : > { %5787 = vmatmul.mubr.bf16.gmra.mrb[32].mxu0 %v6076_v42  ;;  %5915 = vmatmul.mubr.bf16.gmra.mrb[32].mxu1 %v6077_v43  ;;  %v6140_v42 = vld [vmem:[%s6225_s24 + $0x188] sm:$0xff]  }
  0x67   : > { %5790 = vmatprep.mubr.bf16.mxu0 %v6078_v44  ;;  %5918 = vmatprep.mubr.bf16.mxu1 %v6079_v45  ;;  %v6141_v43 = vld [vmem:[%s6225_s24 + $0x388] sm:$0xff]   ;;  %v6142_v44 = vld [vmem:[%s6225_s24 + $0x190] sm:$0xff]  }
  0x68   : > { %v6143_v45 = vld [vmem:[%s6225_s24 + $0x390] sm:$0xff]  }
  0x6e   : > { %5791 = vmatmul.mubr.bf16.gmra.mrb[36].mxu0 %v6080_v46  ;;  %5919 = vmatmul.mubr.bf16.gmra.mrb[36].mxu1 %v6081_v47  ;;  %v6144_v46 = vld [vmem:[%s6225_s24 + $0x198] sm:$0xff]  }
  0x6f   : > { %5794 = vmatprep.mubr.bf16.mxu0 %v6082_v48  ;;  %5922 = vmatprep.mubr.bf16.mxu1 %v6083_v49  ;;  %v6145_v47 = vld [vmem:[%s6225_s24 + $0x398] sm:$0xff]   ;;  %v6146_v48 = vld [vmem:[%s6225_s24 + $0x1a0] sm:$0xff]  }
  0x70   : > { %v6147_v49 = vld [vmem:[%s6225_s24 + $0x3a0] sm:$0xff]  }
  0x76   : > { %5795 = vmatmul.mubr.bf16.gmra.mrb[40].mxu0 %v6084_v50  ;;  %5923 = vmatmul.mubr.bf16.gmra.mrb[40].mxu1 %v6085_v51  ;;  %v6148_v50 = vld [vmem:[%s6225_s24 + $0x1a8] sm:$0xff]  }
  0x77   : > { %5798 = vmatprep.mubr.bf16.mxu0 %v6086_v52  ;;  %5926 = vmatprep.mubr.bf16.mxu1 %v6087_v53  ;;  %v6149_v51 = vld [vmem:[%s6225_s24 + $0x3a8] sm:$0xff]   ;;  %v6150_v52 = vld [vmem:[%s6225_s24 + $0x1b0] sm:$0xff]  }
  0x78   : > { %v6151_v53 = vld [vmem:[%s6225_s24 + $0x3b0] sm:$0xff]  }
  0x7e   : > { %5799 = vmatmul.mubr.bf16.gmra.mrb[44].mxu0 %v6088_v54  ;;  %5927 = vmatmul.mubr.bf16.gmra.mrb[44].mxu1 %v6089_v55  ;;  %v6355_v54 = vld [vmem:[%s6781_s2] ss:$0 sm:$0xff] }
  0x7f   : > { %5802 = vmatprep.mubr.bf16.mxu0 %v6090_v56  ;;  %5930 = vmatprep.mubr.bf16.mxu1 %v6091_v57 }
  0x86   : > { %5803 = vmatmul.mubr.bf16.gmra.mrb[48].mxu0 %v6092_v58  ;;  %5931 = vmatmul.mubr.bf16.gmra.mrb[48].mxu1 %v6093_v59 }
  0x87   : > { %5806 = vmatprep.mubr.bf16.mxu0 %v6094_v60  ;;  %5934 = vmatprep.mubr.bf16.mxu1 %v6095_v61  ;;  %v6152_v61 = vld [vmem:[%s6225_s24 + $0x1b8] sm:$0xff]  }
  0x8e   : > { %5807 = vmatmul.mubr.bf16.gmra.mrb[52].mxu0 %v6096_v62  ;;  %5935 = vmatmul.mubr.bf16.gmra.mrb[52].mxu1 %v6097_v63  ;;  %v6153_v62 = vld [vmem:[%s6225_s24 + $0x3b8] sm:$0xff]  }
  0x8f   : > { %5810 = vmatprep.mubr.bf16.mxu0 %v6098_v0  ;;  %5938 = vmatprep.mubr.bf16.mxu1 %v6099_v1 }
  0x96   : > { %5811 = vmatmul.mubr.bf16.gmra.mrb[56].mxu0 %v6100_v2  ;;  %5939 = vmatmul.mubr.bf16.gmra.mrb[56].mxu1 %v6101_v3  ;;  %v6154_v3 = vld [vmem:[%s6225_s24 + $0x1c0] sm:$0xff]  }
  0x97   : > { %5814 = vmatprep.mubr.bf16.mxu0 %v6102_v4  ;;  %5942 = vmatprep.mubr.bf16.mxu1 %v6103_v5  ;;  %v6155_v4 = vld [vmem:[%s6225_s24 + $0x3c0] sm:$0xff]  }
  0x9e   : > { %5815 = vmatmul.mubr.bf16.gmra.mrb[60].mxu0 %v6104_v6  ;;  %5943 = vmatmul.mubr.bf16.gmra.mrb[60].mxu1 %v6105_v7 }
  0x9f   : > { %5818 = vmatprep.mubr.bf16.mxu0 %v6106_v8  ;;  %5946 = vmatprep.mubr.bf16.mxu1 %v6107_v9 }
  0xa6   : > { %5819 = vmatmul.mubr.bf16.gmra.mrb[64].mxu0 %v6108_v10  ;;  %5947 = vmatmul.mubr.bf16.gmra.mrb[64].mxu1 %v6109_v11 }
  0xa7   : > { %5822 = vmatprep.mubr.bf16.mxu0 %v6110_v12  ;;  %5950 = vmatprep.mubr.bf16.mxu1 %v6111_v13 }
  0xae   : > { %5823 = vmatmul.mubr.bf16.gmra.mrb[68].mxu0 %v6112_v14  ;;  %5951 = vmatmul.mubr.bf16.gmra.mrb[68].mxu1 %v6113_v15 }
  0xaf   : > { %5826 = vmatprep.mubr.bf16.mxu0 %v6114_v16  ;;  %5954 = vmatprep.mubr.bf16.mxu1 %v6115_v17 }
  0xb6   : > { %5827 = vmatmul.mubr.bf16.gmra.mrb[72].mxu0 %v6116_v18  ;;  %5955 = vmatmul.mubr.bf16.gmra.mrb[72].mxu1 %v6117_v19 }
  0xb7   : > { %5830 = vmatprep.mubr.bf16.mxu0 %v6118_v20  ;;  %5958 = vmatprep.mubr.bf16.mxu1 %v6119_v21 }
  0xbe   : > { %5831 = vmatmul.mubr.bf16.gmra.mrb[76].mxu0 %v6120_v22  ;;  %5959 = vmatmul.mubr.bf16.gmra.mrb[76].mxu1 %v6121_v23 }
  0xbf   : > { %5834 = vmatprep.mubr.bf16.mxu0 %v6122_v24  ;;  %5962 = vmatprep.mubr.bf16.mxu1 %v6123_v25 }
  0xc6   : > { %5835 = vmatmul.mubr.bf16.gmra.mrb[80].mxu0 %v6124_v26  ;;  %5963 = vmatmul.mubr.bf16.gmra.mrb[80].mxu1 %v6125_v27 }
  0xc7   : > { %5838 = vmatprep.mubr.bf16.mxu0 %v6126_v28  ;;  %5966 = vmatprep.mubr.bf16.mxu1 %v6127_v29 }
  0xce   : > { %5839 = vmatmul.mubr.bf16.gmra.mrb[84].mxu0 %v6128_v30  ;;  %5967 = vmatmul.mubr.bf16.gmra.mrb[84].mxu1 %v6129_v31 }
  0xcf   : > { %5842 = vmatprep.mubr.bf16.mxu0 %v6130_v32  ;;  %5970 = vmatprep.mubr.bf16.mxu1 %v6131_v33 }
  0xd6   : > { %5843 = vmatmul.mubr.bf16.gmra.mrb[88].mxu0 %v6132_v34  ;;  %5971 = vmatmul.mubr.bf16.gmra.mrb[88].mxu1 %v6133_v35  ;;  %v6156_v35 = vld [vmem:[%s6225_s24 + $0x1c8] sm:$0xff]  }
  0xd7   : > { %5846 = vmatprep.mubr.bf16.mxu0 %v6134_v36  ;;  %5974 = vmatprep.mubr.bf16.mxu1 %v6135_v37  ;;  %v6157_v36 = vld [vmem:[%s6225_s24 + $0x3c8] sm:$0xff]  }
  0xde   : > { %5847 = vmatmul.mubr.bf16.gmra.mrb[92].mxu0 %v6136_v38  ;;  %5975 = vmatmul.mubr.bf16.gmra.mrb[92].mxu1 %v6137_v39 }
  0xdf   : > { %5850 = vmatprep.mubr.bf16.mxu0 %v6138_v40  ;;  %5978 = vmatprep.mubr.bf16.mxu1 %v6139_v41 }
  0xe6   : > { %5851 = vmatmul.mubr.bf16.gmra.mrb[96].mxu0 %v6140_v42  ;;  %5979 = vmatmul.mubr.bf16.gmra.mrb[96].mxu1 %v6141_v43  ;;  %v6158_v43 = vld [vmem:[%s6225_s24 + $0x1d0] sm:$0xff]  }
  0xe7   : > { %5854 = vmatprep.mubr.bf16.mxu0 %v6142_v44  ;;  %5982 = vmatprep.mubr.bf16.mxu1 %v6143_v45  ;;  %v6159_v44 = vld [vmem:[%s6225_s24 + $0x3d0] sm:$0xff]  }
  0xee   : > { %5855 = vmatmul.mubr.bf16.gmra.mrb[100].mxu0 %v6144_v46  ;;  %5983 = vmatmul.mubr.bf16.gmra.mrb[100].mxu1 %v6145_v47 }
  0xef   : > { %5858 = vmatprep.mubr.bf16.mxu0 %v6146_v48  ;;  %5986 = vmatprep.mubr.bf16.mxu1 %v6147_v49 }
  0xf6   : > { %5859 = vmatmul.mubr.bf16.gmra.mrb[104].mxu0 %v6148_v50  ;;  %5987 = vmatmul.mubr.bf16.gmra.mrb[104].mxu1 %v6149_v51 }
  0xf7   : > { %5862 = vmatprep.mubr.bf16.mxu0 %v6150_v52  ;;  %5990 = vmatprep.mubr.bf16.mxu1 %v6151_v53 }
  0xf9   : > { %v5756_v55 = vpop.f32.mrb[0].mxu0  ;;  %v5884_v56 = vpop.f32.mrb[0].mxu1 }
  0xfa   : > { %v1313_v57 = vadd.f32 %v5756_v55, %v6355_v54  ;;  %v1825_v58 = vadd.f32 %v5884_v56, %v6355_v54  ;;  %v1304_v59 = vpop.f32.mrb[1].mxu0  ;;  %v1816_v60 = vpop.f32.mrb[1].mxu1 }
  0xfb   : > { %v1305_v63 = vadd.f32 %v6355_v54, %v1304_v59  ;;  %v1817_v0 = vadd.f32 %v6355_v54, %v1816_v60  ;;  %v5757_v1 = vpop.f32.mrb[2].mxu0  ;;  %v5885_v2 = vpop.f32.mrb[2].mxu1 }
  0xfc   : > { %v2329_v5 = vmul.f32 0.2, %v1313_v57  ;;  %v2457_v6 = vmul.f32 0.2, %v1825_v58  ;;  %v1316_v7 = vadd.f32 %v5757_v1, %v6355_v54  ;;  %v1828_v8 = vadd.f32 %v5885_v2, %v6355_v54  ;;  %v1307_v9 = vpop.f32.mrb[3].mxu0  ;;  %v1819_v10 = vpop.f32.mrb[3].mxu1 }
  0xfd   : > { %v2327_v11 = vmul.f32 0.2, %v1305_v63  ;;  %v2455_v12 = vmul.f32 0.2, %v1817_v0  ;;  %v1308_v13 = vadd.f32 %v6355_v54, %v1307_v9  ;;  %v1820_v14 = vadd.f32 %v6355_v54, %v1819_v10 }
  0xfe   : > { %v2330_v15 = vmul.f32 0.2, %v1316_v7  ;;  %v2458_v16 = vmul.f32 0.2, %v1828_v8  ;;  %5863 = vmatmul.mubr.bf16.gmra.mrb[108].mxu0 %v6152_v61  ;;  %5991 = vmatmul.mubr.bf16.gmra.mrb[108].mxu1 %v6153_v62  ;;  %v2585_v19 = vmax.f32 %v1313_v57, %v2329_v5  ;;  %v2713_v20 = vmax.f32 %v1825_v58, %v2457_v6 }
  0xff   : > { %v2328_v17 = vmul.f32 0.2, %v1308_v13  ;;  %v2456_v18 = vmul.f32 0.2, %v1820_v14  ;;  %5866 = vmatprep.mubr.bf16.mxu0 %v6154_v3  ;;  %5994 = vmatprep.mubr.bf16.mxu1 %v6155_v4  ;;  %v2583_v23 = vmax.f32 %v1305_v63, %v2327_v11  ;;  %v2711_v24 = vmax.f32 %v1817_v0, %v2455_v12  ;;  %v6160_v12 = vld [vmem:[%s6225_s24 + $0x1d8] sm:$0xff]  }
 0x100   : > { %v2586_v21 = vmax.f32 %v1316_v7, %v2330_v15  ;;  %v2714_v22 = vmax.f32 %v1828_v8, %v2458_v16 }
 0x101   : > { %v2584_v25 = vmax.f32 %v1308_v13, %v2328_v17  ;;  %v2712_v26 = vmax.f32 %v1820_v14, %v2456_v18  ;;  %v5760_v27 = vpop.f32.mrb[4].mxu0  ;;  %v5888_v28 = vpop.f32.mrb[4].mxu1  ;;  %v6161_v13 = vld [vmem:[%s6225_s24 + $0x3d8] sm:$0xff]  }
 0x102   : > { %v4843_v29 = vpack.c.bf16 %v2586_v21, %v2585_v19  ;;  %v5163_v30 = vpack.c.bf16 %v2714_v22, %v2713_v20  ;;  %v1329_v31 = vadd.f32 %v5760_v27, %v6355_v54  ;;  %v1841_v32 = vadd.f32 %v5888_v28, %v6355_v54  ;;  %v1320_v33 = vpop.f32.mrb[5].mxu0  ;;  %v1832_v34 = vpop.f32.mrb[5].mxu1  ;;  %v6162_v20 = vld [vmem:[%s6225_s24 + $0x1e0] sm:$0xff]  }
 0x103   : > { %v4838_v37 = vpack.c.bf16 %v2584_v25, %v2583_v23  ;;  %v5158_v38 = vpack.c.bf16 %v2712_v26, %v2711_v24  ;;  %v1321_v39 = vadd.f32 %v6355_v54, %v1320_v33  ;;  %v1833_v40 = vadd.f32 %v6355_v54, %v1832_v34  ;;  %v5761_v41 = vpop.f32.mrb[6].mxu0  ;;  %v5889_v42 = vpop.f32.mrb[6].mxu1  ;;  %v6163_v21 = vld [vmem:[%s6225_s24 + $0x3e0] sm:$0xff]  }
 0x104   : > { %5475 = vst [vmem:[%s6374_s13 + $0x8] sm:$0xff] %v4843_v29   ;;  %5539 = vst [vmem:[%s6374_s13 + $0x208] sm:$0xff] %v5163_v30   ;;  %v2333_v45 = vmul.f32 0.2, %v1329_v31  ;;  %v2461_v46 = vmul.f32 0.2, %v1841_v32  ;;  %v1332_v47 = vadd.f32 %v5761_v41, %v6355_v54  ;;  %v1844_v48 = vadd.f32 %v5889_v42, %v6355_v54 }
 0x105   : > { %v1323_v49 = vpop.f32.mrb[7].mxu0  ;;  %v1835_v50 = vpop.f32.mrb[7].mxu1  ;;  %4839 = vst [vmem:[%s6374_s13] sm:$0xff] %v4838_v37   ;;  %5538 = vst [vmem:[%s6374_s13 + $0x200] sm:$0xff] %v5158_v38   ;;  %v2331_v51 = vmul.f32 0.2, %v1321_v39 }
 0x106   : > { %v2459_v52 = vmul.f32 0.2, %v1833_v40  ;;  %v1324_v53 = vadd.f32 %v6355_v54, %v1323_v49  ;;  %v1836_v55 = vadd.f32 %v6355_v54, %v1835_v50  ;;  %v2334_v56 = vmul.f32 0.2, %v1332_v47  ;;  %5867 = vmatmul.mubr.bf16.gmra.mrb[112].mxu0 %v6156_v35  ;;  %5995 = vmatmul.mubr.bf16.gmra.mrb[112].mxu1 %v6157_v36 }
 0x107   : > { %v2462_v57 = vmul.f32 0.2, %v1844_v48  ;;  %5870 = vmatprep.mubr.bf16.mxu0 %v6158_v43  ;;  %5998 = vmatprep.mubr.bf16.mxu1 %v6159_v44  ;;  %v2589_v60 = vmax.f32 %v1329_v31, %v2333_v45  ;;  %v2717_v61 = vmax.f32 %v1841_v32, %v2461_v46  ;;  %v2587_v0 = vmax.f32 %v1321_v39, %v2331_v51 }
 0x108   : > { %v2332_v58 = vmul.f32 0.2, %v1324_v53  ;;  %v2460_v59 = vmul.f32 0.2, %v1836_v55  ;;  %v2590_v62 = vmax.f32 %v1332_v47, %v2334_v56  ;;  %v2715_v1 = vmax.f32 %v1833_v40, %v2459_v52  ;;  %v6164_v52 = vld [vmem:[%s6225_s24 + $0x1e8] sm:$0xff]  }
 0x109   : > { %v2718_v63 = vmax.f32 %v1844_v48, %v2462_v57  ;;  %v5764_v4 = vpop.f32.mrb[8].mxu0  ;;  %v5892_v5 = vpop.f32.mrb[8].mxu1 }
 0x10a   : > { %v2588_v2 = vmax.f32 %v1324_v53, %v2332_v58  ;;  %v2716_v3 = vmax.f32 %v1836_v55, %v2460_v59  ;;  %v4853_v6 = vpack.c.bf16 %v2590_v62, %v2589_v60  ;;  %v1345_v8 = vadd.f32 %v5764_v4, %v6355_v54  ;;  %v1336_v10 = vpop.f32.mrb[9].mxu0  ;;  %v1848_v11 = vpop.f32.mrb[9].mxu1  ;;  %v6165_v53 = vld [vmem:[%s6225_s24 + $0x3e8] sm:$0xff]   ;;  %v6167_v62 = vld [vmem:[%s6225_s24 + $0x3f0] sm:$0xff]  }
 0x10b   : > { %v5173_v7 = vpack.c.bf16 %v2718_v63, %v2717_v61  ;;  %v1857_v9 = vadd.f32 %v5892_v5, %v6355_v54  ;;  %v1337_v16 = vadd.f32 %v6355_v54, %v1336_v10  ;;  %v1849_v17 = vadd.f32 %v6355_v54, %v1848_v11  ;;  %v5765_v18 = vpop.f32.mrb[10].mxu0  ;;  %v5893_v19 = vpop.f32.mrb[10].mxu1  ;;  %v6166_v61 = vld [vmem:[%s6225_s24 + $0x1f0] sm:$0xff]  }
 0x10c   : > { %v4848_v14 = vpack.c.bf16 %v2588_v2, %v2587_v0  ;;  %v5168_v15 = vpack.c.bf16 %v2716_v3, %v2715_v1  ;;  %5477 = vst [vmem:[%s6374_s13 + $0x18] sm:$0xff] %v4853_v6   ;;  %v2337_v22 = vmul.f32 0.2, %v1345_v8  ;;  %v1348_v24 = vadd.f32 %v5765_v18, %v6355_v54  ;;  %v1339_v26 = vpop.f32.mrb[11].mxu0  ;;  %v1851_v27 = vpop.f32.mrb[11].mxu1 }
 0x10d   : > { %5541 = vst [vmem:[%s6374_s13 + $0x218] sm:$0xff] %v5173_v7   ;;  %v2465_v23 = vmul.f32 0.2, %v1857_v9  ;;  %v1860_v25 = vadd.f32 %v5893_v19, %v6355_v54  ;;  %v2335_v28 = vmul.f32 0.2, %v1337_v16  ;;  %v1340_v30 = vadd.f32 %v6355_v54, %v1339_v26 }
 0x10e   : > { %5476 = vst [vmem:[%s6374_s13 + $0x10] sm:$0xff] %v4848_v14   ;;  %5540 = vst [vmem:[%s6374_s13 + $0x210] sm:$0xff] %v5168_v15   ;;  %v2463_v29 = vmul.f32 0.2, %v1849_v17  ;;  %v1852_v31 = vadd.f32 %v6355_v54, %v1851_v27  ;;  %v2338_v32 = vmul.f32 0.2, %v1348_v24  ;;  %5871 = vmatmul.mubr.bf16.gmra.mrb[116].mxu0 %v6160_v12  ;;  %5999 = vmatmul.mubr.bf16.gmra.mrb[116].mxu1 %v6161_v13 }
 0x10f   : > { %v2466_v33 = vmul.f32 0.2, %v1860_v25  ;;  %v2336_v34 = vmul.f32 0.2, %v1340_v30  ;;  %5874 = vmatprep.mubr.bf16.mxu0 %v6162_v20  ;;  %6002 = vmatprep.mubr.bf16.mxu1 %v6163_v21  ;;  %v2593_v36 = vmax.f32 %v1345_v8, %v2337_v22  ;;  %v2721_v37 = vmax.f32 %v1857_v9, %v2465_v23 }
 0x110   : > { %v2464_v35 = vmul.f32 0.2, %v1852_v31  ;;  %v2594_v38 = vmax.f32 %v1348_v24, %v2338_v32  ;;  %v2591_v40 = vmax.f32 %v1337_v16, %v2335_v28  ;;  %v2719_v41 = vmax.f32 %v1849_v17, %v2463_v29  ;;  %v6168_v29 = vld [vmem:[%s6225_s24 + $0x1f8] sm:$0xff]  }
 0x111   : > { %v2722_v39 = vmax.f32 %v1860_v25, %v2466_v33  ;;  %v2592_v42 = vmax.f32 %v1340_v30, %v2336_v34  ;;  %v5768_v44 = vpop.f32.mrb[12].mxu0  ;;  %v5896_v45 = vpop.f32.mrb[12].mxu1  ;;  %v6169_v30 = vld [vmem:[%s6225_s24 + $0x3f8] sm:$0xff]  }
 0x112   : > { %v2720_v43 = vmax.f32 %v1852_v31, %v2464_v35  ;;  %v4863_v46 = vpack.c.bf16 %v2594_v38, %v2593_v36  ;;  %v1361_v48 = vadd.f32 %v5768_v44, %v6355_v54  ;;  %v1873_v49 = vadd.f32 %v5896_v45, %v6355_v54  ;;  %v1352_v50 = vpop.f32.mrb[13].mxu0  ;;  %v1864_v51 = vpop.f32.mrb[13].mxu1 }
 0x113   : > { %v5183_v47 = vpack.c.bf16 %v2722_v39, %v2721_v37  ;;  %v4858_v55 = vpack.c.bf16 %v2592_v42, %v2591_v40  ;;  %v1353_v57 = vadd.f32 %v6355_v54, %v1352_v50  ;;  %v1865_v58 = vadd.f32 %v6355_v54, %v1864_v51  ;;  %v5769_v59 = vpop.f32.mrb[14].mxu0  ;;  %v5897_v60 = vpop.f32.mrb[14].mxu1 }
 0x114   : > { %v5178_v56 = vpack.c.bf16 %v2720_v43, %v2719_v41  ;;  %5479 = vst [vmem:[%s6374_s13 + $0x28] sm:$0xff] %v4863_v46   ;;  %v2341_v63 = vmul.f32 0.2, %v1361_v48  ;;  %v2469_v0 = vmul.f32 0.2, %v1873_v49  ;;  %v1364_v1 = vadd.f32 %v5769_v59, %v6355_v54  ;;  %v1355_v3 = vpop.f32.mrb[15].mxu0 }
 0x115   : > { %5543 = vst [vmem:[%s6374_s13 + $0x228] sm:$0xff] %v5183_v47   ;;  %v1876_v2 = vadd.f32 %v5897_v60, %v6355_v54  ;;  %v1867_v4 = vpop.f32.mrb[15].mxu1  ;;  %5478 = vst [vmem:[%s6374_s13 + $0x20] sm:$0xff] %v4858_v55   ;;  %v2339_v5 = vmul.f32 0.2, %v1353_v57  ;;  %v1356_v7 = vadd.f32 %v6355_v54, %v1355_v3 }
 0x116   : > { %5542 = vst [vmem:[%s6374_s13 + $0x220] sm:$0xff] %v5178_v56   ;;  %v2467_v6 = vmul.f32 0.2, %v1865_v58  ;;  %v1868_v8 = vadd.f32 %v6355_v54, %v1867_v4  ;;  %v2342_v9 = vmul.f32 0.2, %v1364_v1  ;;  %5875 = vmatmul.mubr.bf16.gmra.mrb[120].mxu0 %v6164_v52  ;;  %6003 = vmatmul.mubr.bf16.gmra.mrb[120].mxu1 %v6165_v53  ;;  %v2597_v13 = vmax.f32 %v1361_v48, %v2341_v63 }
 0x117   : > { %v2470_v10 = vmul.f32 0.2, %v1876_v2  ;;  %v2340_v11 = vmul.f32 0.2, %v1356_v7  ;;  %5878 = vmatprep.mubr.bf16.mxu0 %v6166_v61  ;;  %6006 = vmatprep.mubr.bf16.mxu1 %v6167_v62  ;;  %v2725_v14 = vmax.f32 %v1873_v49, %v2469_v0  ;;  %v2595_v17 = vmax.f32 %v1353_v57, %v2339_v5 }
 0x118   : > { %v2468_v12 = vmul.f32 0.2, %v1868_v8  ;;  %v2598_v15 = vmax.f32 %v1364_v1, %v2342_v9  ;;  %v2723_v18 = vmax.f32 %v1865_v58, %v2467_v6 }
 0x119   : > { %v2726_v16 = vmax.f32 %v1876_v2, %v2470_v10  ;;  %v2596_v19 = vmax.f32 %v1356_v7, %v2340_v11  ;;  %v5772_v21 = vpop.f32.mrb[16].mxu0  ;;  %v5900_v22 = vpop.f32.mrb[16].mxu1 }
 0x11a   : > { %v2724_v20 = vmax.f32 %v1868_v8, %v2468_v12  ;;  %v4873_v23 = vpack.c.bf16 %v2598_v15, %v2597_v13  ;;  %v1377_v25 = vadd.f32 %v5772_v21, %v6355_v54  ;;  %v1889_v26 = vadd.f32 %v5900_v22, %v6355_v54  ;;  %v1368_v27 = vpop.f32.mrb[17].mxu0  ;;  %v1880_v28 = vpop.f32.mrb[17].mxu1 }
 0x11b   : > { %v5193_v24 = vpack.c.bf16 %v2726_v16, %v2725_v14  ;;  %v4868_v31 = vpack.c.bf16 %v2596_v19, %v2595_v17  ;;  %v1369_v33 = vadd.f32 %v6355_v54, %v1368_v27  ;;  %v1881_v34 = vadd.f32 %v6355_v54, %v1880_v28  ;;  %v5773_v35 = vpop.f32.mrb[18].mxu0  ;;  %v5901_v36 = vpop.f32.mrb[18].mxu1 }
 0x11c   : > { %v5188_v32 = vpack.c.bf16 %v2724_v20, %v2723_v18  ;;  %5481 = vst [vmem:[%s6374_s13 + $0x38] sm:$0xff] %v4873_v23   ;;  %v2345_v37 = vmul.f32 0.2, %v1377_v25  ;;  %v2473_v38 = vmul.f32 0.2, %v1889_v26  ;;  %v1380_v39 = vadd.f32 %v5773_v35, %v6355_v54  ;;  %v1371_v41 = vpop.f32.mrb[19].mxu0 }
 0x11d   : > { %5545 = vst [vmem:[%s6374_s13 + $0x238] sm:$0xff] %v5193_v24   ;;  %v1892_v40 = vadd.f32 %v5901_v36, %v6355_v54  ;;  %v1883_v42 = vpop.f32.mrb[19].mxu1  ;;  %5480 = vst [vmem:[%s6374_s13 + $0x30] sm:$0xff] %v4868_v31   ;;  %v2343_v43 = vmul.f32 0.2, %v1369_v33  ;;  %v1372_v45 = vadd.f32 %v6355_v54, %v1371_v41 }
 0x11e   : > { %5544 = vst [vmem:[%s6374_s13 + $0x230] sm:$0xff] %v5188_v32   ;;  %v2471_v44 = vmul.f32 0.2, %v1881_v34  ;;  %v1884_v46 = vadd.f32 %v6355_v54, %v1883_v42  ;;  %v2346_v47 = vmul.f32 0.2, %v1380_v39  ;;  %5879 = vmatmul.mubr.bf16.gmra.mrb[124].mxu0 %v6168_v29  ;;  %6007 = vmatmul.mubr.bf16.gmra.mrb[124].mxu1 %v6169_v30  ;;  %v2601_v51 = vmax.f32 %v1377_v25, %v2345_v37 }
 0x11f   : > { %v2474_v48 = vmul.f32 0.2, %v1892_v40  ;;  %v2344_v49 = vmul.f32 0.2, %v1372_v45  ;;  %v2729_v52 = vmax.f32 %v1889_v26, %v2473_v38  ;;  %v2599_v56 = vmax.f32 %v1369_v33, %v2343_v43 }
 0x120   : > { %v2472_v50 = vmul.f32 0.2, %v1884_v46  ;;  %v2602_v53 = vmax.f32 %v1380_v39, %v2346_v47  ;;  %v2727_v57 = vmax.f32 %v1881_v34, %v2471_v44 }
 0x121   : > { %v2730_v55 = vmax.f32 %v1892_v40, %v2474_v48  ;;  %v2600_v58 = vmax.f32 %v1372_v45, %v2344_v49  ;;  %v5776_v60 = vpop.f32.mrb[20].mxu0  ;;  %v5904_v61 = vpop.f32.mrb[20].mxu1 }
 0x122   : > { %v2728_v59 = vmax.f32 %v1884_v46, %v2472_v50  ;;  %v4883_v62 = vpack.c.bf16 %v2602_v53, %v2601_v51  ;;  %v1393_v0 = vadd.f32 %v5776_v60, %v6355_v54  ;;  %v1905_v1 = vadd.f32 %v5904_v61, %v6355_v54  ;;  %v1384_v2 = vpop.f32.mrb[21].mxu0  ;;  %v1896_v3 = vpop.f32.mrb[21].mxu1 }
 0x123   : > { %v5203_v63 = vpack.c.bf16 %v2730_v55, %v2729_v52  ;;  %v4878_v4 = vpack.c.bf16 %v2600_v58, %v2599_v56  ;;  %v1385_v6 = vadd.f32 %v6355_v54, %v1384_v2  ;;  %v1897_v7 = vadd.f32 %v6355_v54, %v1896_v3  ;;  %v5777_v8 = vpop.f32.mrb[22].mxu0  ;;  %v5905_v9 = vpop.f32.mrb[22].mxu1 }
 0x124   : > { %v5198_v5 = vpack.c.bf16 %v2728_v59, %v2727_v57  ;;  %5483 = vst [vmem:[%s6374_s13 + $0x48] sm:$0xff] %v4883_v62   ;;  %v2349_v10 = vmul.f32 0.2, %v1393_v0  ;;  %v2477_v11 = vmul.f32 0.2, %v1905_v1  ;;  %v1396_v12 = vadd.f32 %v5777_v8, %v6355_v54  ;;  %v1387_v14 = vpop.f32.mrb[23].mxu0 }
 0x125   : > { %5547 = vst [vmem:[%s6374_s13 + $0x248] sm:$0xff] %v5203_v63   ;;  %v1908_v13 = vadd.f32 %v5905_v9, %v6355_v54  ;;  %v1899_v15 = vpop.f32.mrb[23].mxu1  ;;  %5482 = vst [vmem:[%s6374_s13 + $0x40] sm:$0xff] %v4878_v4   ;;  %v2347_v16 = vmul.f32 0.2, %v1385_v6  ;;  %v1388_v18 = vadd.f32 %v6355_v54, %v1387_v14 }
 0x126   : > { %5546 = vst [vmem:[%s6374_s13 + $0x240] sm:$0xff] %v5198_v5   ;;  %v2475_v17 = vmul.f32 0.2, %v1897_v7  ;;  %v1900_v19 = vadd.f32 %v6355_v54, %v1899_v15  ;;  %v2350_v20 = vmul.f32 0.2, %v1396_v12  ;;  %v2605_v24 = vmax.f32 %v1393_v0, %v2349_v10 }
 0x127   : > { %v2478_v21 = vmul.f32 0.2, %v1908_v13  ;;  %v2348_v22 = vmul.f32 0.2, %v1388_v18  ;;  %v2733_v25 = vmax.f32 %v1905_v1, %v2477_v11  ;;  %v2603_v28 = vmax.f32 %v1385_v6, %v2347_v16 }
 0x128   : > { %v2476_v23 = vmul.f32 0.2, %v1900_v19  ;;  %v2606_v26 = vmax.f32 %v1396_v12, %v2350_v20  ;;  %v2731_v29 = vmax.f32 %v1897_v7, %v2475_v17 }
 0x129   : > { %v2734_v27 = vmax.f32 %v1908_v13, %v2478_v21  ;;  %v2604_v30 = vmax.f32 %v1388_v18, %v2348_v22  ;;  %v5780_v32 = vpop.f32.mrb[24].mxu0  ;;  %v5908_v33 = vpop.f32.mrb[24].mxu1 }
 0x12a   : > { %v2732_v31 = vmax.f32 %v1900_v19, %v2476_v23  ;;  %v4893_v34 = vpack.c.bf16 %v2606_v26, %v2605_v24  ;;  %v1409_v36 = vadd.f32 %v5780_v32, %v6355_v54  ;;  %v1921_v37 = vadd.f32 %v5908_v33, %v6355_v54  ;;  %v1400_v38 = vpop.f32.mrb[25].mxu0  ;;  %v1912_v39 = vpop.f32.mrb[25].mxu1 }
 0x12b   : > { %v5213_v35 = vpack.c.bf16 %v2734_v27, %v2733_v25  ;;  %v4888_v40 = vpack.c.bf16 %v2604_v30, %v2603_v28  ;;  %v1401_v42 = vadd.f32 %v6355_v54, %v1400_v38  ;;  %v1913_v43 = vadd.f32 %v6355_v54, %v1912_v39  ;;  %v5781_v44 = vpop.f32.mrb[26].mxu0  ;;  %v5909_v45 = vpop.f32.mrb[26].mxu1 }
 0x12c   : > { %v5208_v41 = vpack.c.bf16 %v2732_v31, %v2731_v29  ;;  %5485 = vst [vmem:[%s6374_s13 + $0x58] sm:$0xff] %v4893_v34   ;;  %v2353_v46 = vmul.f32 0.2, %v1409_v36  ;;  %v2481_v47 = vmul.f32 0.2, %v1921_v37  ;;  %v1412_v48 = vadd.f32 %v5781_v44, %v6355_v54  ;;  %v1403_v50 = vpop.f32.mrb[27].mxu0 }
 0x12d   : > { %5549 = vst [vmem:[%s6374_s13 + $0x258] sm:$0xff] %v5213_v35   ;;  %v1924_v49 = vadd.f32 %v5909_v45, %v6355_v54  ;;  %v1915_v51 = vpop.f32.mrb[27].mxu1  ;;  %5484 = vst [vmem:[%s6374_s13 + $0x50] sm:$0xff] %v4888_v40   ;;  %v2351_v52 = vmul.f32 0.2, %v1401_v42  ;;  %v1404_v55 = vadd.f32 %v6355_v54, %v1403_v50 }
 0x12e   : > { %5548 = vst [vmem:[%s6374_s13 + $0x250] sm:$0xff] %v5208_v41   ;;  %v2479_v53 = vmul.f32 0.2, %v1913_v43  ;;  %v1916_v56 = vadd.f32 %v6355_v54, %v1915_v51  ;;  %v2354_v57 = vmul.f32 0.2, %v1412_v48  ;;  %v2609_v61 = vmax.f32 %v1409_v36, %v2353_v46 }
 0x12f   : > { %v2482_v58 = vmul.f32 0.2, %v1924_v49  ;;  %v2352_v59 = vmul.f32 0.2, %v1404_v55  ;;  %v2737_v62 = vmax.f32 %v1921_v37, %v2481_v47  ;;  %v2607_v1 = vmax.f32 %v1401_v42, %v2351_v52 }
 0x130   : > { %v2480_v60 = vmul.f32 0.2, %v1916_v56  ;;  %v2610_v63 = vmax.f32 %v1412_v48, %v2354_v57  ;;  %v2735_v2 = vmax.f32 %v1913_v43, %v2479_v53 }
 0x131   : > { %v2738_v0 = vmax.f32 %v1924_v49, %v2482_v58  ;;  %v2608_v3 = vmax.f32 %v1404_v55, %v2352_v59  ;;  %v5784_v5 = vpop.f32.mrb[28].mxu0  ;;  %v5912_v6 = vpop.f32.mrb[28].mxu1 }
 0x132   : > { %v2736_v4 = vmax.f32 %v1916_v56, %v2480_v60  ;;  %v4903_v7 = vpack.c.bf16 %v2610_v63, %v2609_v61  ;;  %v1425_v9 = vadd.f32 %v5784_v5, %v6355_v54  ;;  %v1937_v10 = vadd.f32 %v5912_v6, %v6355_v54  ;;  %v1416_v11 = vpop.f32.mrb[29].mxu0  ;;  %v1928_v12 = vpop.f32.mrb[29].mxu1 }
 0x133   : > { %v5223_v8 = vpack.c.bf16 %v2738_v0, %v2737_v62  ;;  %v4898_v13 = vpack.c.bf16 %v2608_v3, %v2607_v1  ;;  %v1417_v15 = vadd.f32 %v6355_v54, %v1416_v11  ;;  %v1929_v16 = vadd.f32 %v6355_v54, %v1928_v12  ;;  %v5785_v17 = vpop.f32.mrb[30].mxu0  ;;  %v5913_v18 = vpop.f32.mrb[30].mxu1 }
 0x134   : > { %v5218_v14 = vpack.c.bf16 %v2736_v4, %v2735_v2  ;;  %5487 = vst [vmem:[%s6374_s13 + $0x68] sm:$0xff] %v4903_v7   ;;  %v2357_v19 = vmul.f32 0.2, %v1425_v9  ;;  %v2485_v20 = vmul.f32 0.2, %v1937_v10  ;;  %v1428_v21 = vadd.f32 %v5785_v17, %v6355_v54  ;;  %v1419_v23 = vpop.f32.mrb[31].mxu0 }
 0x135   : > { %5551 = vst [vmem:[%s6374_s13 + $0x268] sm:$0xff] %v5223_v8   ;;  %v1940_v22 = vadd.f32 %v5913_v18, %v6355_v54  ;;  %v1931_v24 = vpop.f32.mrb[31].mxu1  ;;  %5486 = vst [vmem:[%s6374_s13 + $0x60] sm:$0xff] %v4898_v13   ;;  %v2355_v25 = vmul.f32 0.2, %v1417_v15  ;;  %v1420_v27 = vadd.f32 %v6355_v54, %v1419_v23 }
 0x136   : > { %5550 = vst [vmem:[%s6374_s13 + $0x260] sm:$0xff] %v5218_v14   ;;  %v2483_v26 = vmul.f32 0.2, %v1929_v16  ;;  %v1932_v28 = vadd.f32 %v6355_v54, %v1931_v24  ;;  %v2358_v29 = vmul.f32 0.2, %v1428_v21  ;;  %v2613_v33 = vmax.f32 %v1425_v9, %v2357_v19 }
 0x137   : > { %v2486_v30 = vmul.f32 0.2, %v1940_v22  ;;  %v2356_v31 = vmul.f32 0.2, %v1420_v27  ;;  %v2741_v34 = vmax.f32 %v1937_v10, %v2485_v20  ;;  %v2611_v37 = vmax.f32 %v1417_v15, %v2355_v25 }
 0x138   : > { %v2484_v32 = vmul.f32 0.2, %v1932_v28  ;;  %v2614_v35 = vmax.f32 %v1428_v21, %v2358_v29  ;;  %v2739_v38 = vmax.f32 %v1929_v16, %v2483_v26 }
 0x139   : > { %v2742_v36 = vmax.f32 %v1940_v22, %v2486_v30  ;;  %v2612_v39 = vmax.f32 %v1420_v27, %v2356_v31  ;;  %v5788_v41 = vpop.f32.mrb[32].mxu0  ;;  %v5916_v42 = vpop.f32.mrb[32].mxu1 }
 0x13a   : > { %v2740_v40 = vmax.f32 %v1932_v28, %v2484_v32  ;;  %v4913_v43 = vpack.c.bf16 %v2614_v35, %v2613_v33  ;;  %v1441_v45 = vadd.f32 %v5788_v41, %v6355_v54  ;;  %v1953_v46 = vadd.f32 %v5916_v42, %v6355_v54  ;;  %v1432_v47 = vpop.f32.mrb[33].mxu0  ;;  %v1944_v48 = vpop.f32.mrb[33].mxu1 }
 0x13b   : > { %v5233_v44 = vpack.c.bf16 %v2742_v36, %v2741_v34  ;;  %v4908_v49 = vpack.c.bf16 %v2612_v39, %v2611_v37  ;;  %v1433_v51 = vadd.f32 %v6355_v54, %v1432_v47  ;;  %v1945_v52 = vadd.f32 %v6355_v54, %v1944_v48  ;;  %v5789_v53 = vpop.f32.mrb[34].mxu0  ;;  %v5917_v55 = vpop.f32.mrb[34].mxu1 }
 0x13c   : > { %v5228_v50 = vpack.c.bf16 %v2740_v40, %v2739_v38  ;;  %5489 = vst [vmem:[%s6374_s13 + $0x78] sm:$0xff] %v4913_v43   ;;  %v2361_v56 = vmul.f32 0.2, %v1441_v45  ;;  %v2489_v57 = vmul.f32 0.2, %v1953_v46  ;;  %v1444_v58 = vadd.f32 %v5789_v53, %v6355_v54  ;;  %v1435_v60 = vpop.f32.mrb[35].mxu0 }
 0x13d   : > { %5553 = vst [vmem:[%s6374_s13 + $0x278] sm:$0xff] %v5233_v44   ;;  %v1956_v59 = vadd.f32 %v5917_v55, %v6355_v54  ;;  %v1947_v61 = vpop.f32.mrb[35].mxu1  ;;  %5488 = vst [vmem:[%s6374_s13 + $0x70] sm:$0xff] %v4908_v49   ;;  %v2359_v62 = vmul.f32 0.2, %v1433_v51  ;;  %v1436_v0 = vadd.f32 %v6355_v54, %v1435_v60 }
 0x13e   : > { %5552 = vst [vmem:[%s6374_s13 + $0x270] sm:$0xff] %v5228_v50   ;;  %v2487_v63 = vmul.f32 0.2, %v1945_v52  ;;  %v1948_v1 = vadd.f32 %v6355_v54, %v1947_v61  ;;  %v2362_v2 = vmul.f32 0.2, %v1444_v58  ;;  %v2617_v6 = vmax.f32 %v1441_v45, %v2361_v56 }
 0x13f   : > { %v2490_v3 = vmul.f32 0.2, %v1956_v59  ;;  %v2360_v4 = vmul.f32 0.2, %v1436_v0  ;;  %v2745_v7 = vmax.f32 %v1953_v46, %v2489_v57  ;;  %v2615_v10 = vmax.f32 %v1433_v51, %v2359_v62 }
 0x140   : > { %v2488_v5 = vmul.f32 0.2, %v1948_v1  ;;  %v2618_v8 = vmax.f32 %v1444_v58, %v2362_v2  ;;  %v2743_v11 = vmax.f32 %v1945_v52, %v2487_v63 }
 0x141   : > { %v2746_v9 = vmax.f32 %v1956_v59, %v2490_v3  ;;  %v2616_v12 = vmax.f32 %v1436_v0, %v2360_v4  ;;  %v5792_v14 = vpop.f32.mrb[36].mxu0  ;;  %v5920_v15 = vpop.f32.mrb[36].mxu1 }
 0x142   : > { %v2744_v13 = vmax.f32 %v1948_v1, %v2488_v5  ;;  %v4923_v16 = vpack.c.bf16 %v2618_v8, %v2617_v6  ;;  %v1457_v18 = vadd.f32 %v5792_v14, %v6355_v54  ;;  %v1969_v19 = vadd.f32 %v5920_v15, %v6355_v54  ;;  %v1448_v20 = vpop.f32.mrb[37].mxu0  ;;  %v1960_v21 = vpop.f32.mrb[37].mxu1 }
 0x143   : > { %v5243_v17 = vpack.c.bf16 %v2746_v9, %v2745_v7  ;;  %v4918_v22 = vpack.c.bf16 %v2616_v12, %v2615_v10  ;;  %v1449_v24 = vadd.f32 %v6355_v54, %v1448_v20  ;;  %v1961_v25 = vadd.f32 %v6355_v54, %v1960_v21  ;;  %v5793_v26 = vpop.f32.mrb[38].mxu0  ;;  %v5921_v27 = vpop.f32.mrb[38].mxu1 }
 0x144   : > { %v5238_v23 = vpack.c.bf16 %v2744_v13, %v2743_v11  ;;  %5491 = vst [vmem:[%s6374_s13 + $0x88] sm:$0xff] %v4923_v16   ;;  %v2365_v28 = vmul.f32 0.2, %v1457_v18  ;;  %v2493_v29 = vmul.f32 0.2, %v1969_v19  ;;  %v1460_v30 = vadd.f32 %v5793_v26, %v6355_v54  ;;  %v1451_v32 = vpop.f32.mrb[39].mxu0 }
 0x145   : > { %5555 = vst [vmem:[%s6374_s13 + $0x288] sm:$0xff] %v5243_v17   ;;  %v1972_v31 = vadd.f32 %v5921_v27, %v6355_v54  ;;  %v1963_v33 = vpop.f32.mrb[39].mxu1  ;;  %5490 = vst [vmem:[%s6374_s13 + $0x80] sm:$0xff] %v4918_v22   ;;  %v2363_v34 = vmul.f32 0.2, %v1449_v24  ;;  %v1452_v36 = vadd.f32 %v6355_v54, %v1451_v32 }
 0x146   : > { %5554 = vst [vmem:[%s6374_s13 + $0x280] sm:$0xff] %v5238_v23   ;;  %v2491_v35 = vmul.f32 0.2, %v1961_v25  ;;  %v1964_v37 = vadd.f32 %v6355_v54, %v1963_v33  ;;  %v2366_v38 = vmul.f32 0.2, %v1460_v30  ;;  %v2621_v42 = vmax.f32 %v1457_v18, %v2365_v28 }
 0x147   : > { %v2494_v39 = vmul.f32 0.2, %v1972_v31  ;;  %v2364_v40 = vmul.f32 0.2, %v1452_v36  ;;  %v2749_v43 = vmax.f32 %v1969_v19, %v2493_v29  ;;  %v2619_v46 = vmax.f32 %v1449_v24, %v2363_v34 }
 0x148   : > { %v2492_v41 = vmul.f32 0.2, %v1964_v37  ;;  %v2622_v44 = vmax.f32 %v1460_v30, %v2366_v38  ;;  %v2747_v47 = vmax.f32 %v1961_v25, %v2491_v35 }
 0x149   : > { %v2750_v45 = vmax.f32 %v1972_v31, %v2494_v39  ;;  %v2620_v48 = vmax.f32 %v1452_v36, %v2364_v40  ;;  %v5796_v50 = vpop.f32.mrb[40].mxu0  ;;  %v5924_v51 = vpop.f32.mrb[40].mxu1 }
 0x14a   : > { %v2748_v49 = vmax.f32 %v1964_v37, %v2492_v41  ;;  %v4933_v52 = vpack.c.bf16 %v2622_v44, %v2621_v42  ;;  %v1473_v55 = vadd.f32 %v5796_v50, %v6355_v54  ;;  %v1985_v56 = vadd.f32 %v5924_v51, %v6355_v54  ;;  %v1464_v57 = vpop.f32.mrb[41].mxu0  ;;  %v1976_v58 = vpop.f32.mrb[41].mxu1 }
 0x14b   : > { %v5253_v53 = vpack.c.bf16 %v2750_v45, %v2749_v43  ;;  %v4928_v59 = vpack.c.bf16 %v2620_v48, %v2619_v46  ;;  %v1465_v61 = vadd.f32 %v6355_v54, %v1464_v57  ;;  %v1977_v62 = vadd.f32 %v6355_v54, %v1976_v58  ;;  %v5797_v63 = vpop.f32.mrb[42].mxu0  ;;  %v5925_v0 = vpop.f32.mrb[42].mxu1 }
 0x14c   : > { %v5248_v60 = vpack.c.bf16 %v2748_v49, %v2747_v47  ;;  %5493 = vst [vmem:[%s6374_s13 + $0x98] sm:$0xff] %v4933_v52   ;;  %v2369_v1 = vmul.f32 0.2, %v1473_v55  ;;  %v2497_v2 = vmul.f32 0.2, %v1985_v56  ;;  %v1476_v3 = vadd.f32 %v5797_v63, %v6355_v54  ;;  %v1467_v5 = vpop.f32.mrb[43].mxu0 }
 0x14d   : > { %5557 = vst [vmem:[%s6374_s13 + $0x298] sm:$0xff] %v5253_v53   ;;  %v1988_v4 = vadd.f32 %v5925_v0, %v6355_v54  ;;  %v1979_v6 = vpop.f32.mrb[43].mxu1  ;;  %5492 = vst [vmem:[%s6374_s13 + $0x90] sm:$0xff] %v4928_v59   ;;  %v2367_v7 = vmul.f32 0.2, %v1465_v61  ;;  %v1468_v9 = vadd.f32 %v6355_v54, %v1467_v5 }
 0x14e   : > { %5556 = vst [vmem:[%s6374_s13 + $0x290] sm:$0xff] %v5248_v60   ;;  %v2495_v8 = vmul.f32 0.2, %v1977_v62  ;;  %v1980_v10 = vadd.f32 %v6355_v54, %v1979_v6  ;;  %v2370_v11 = vmul.f32 0.2, %v1476_v3  ;;  %v2625_v15 = vmax.f32 %v1473_v55, %v2369_v1 }
 0x14f   : > { %v2498_v12 = vmul.f32 0.2, %v1988_v4  ;;  %v2368_v13 = vmul.f32 0.2, %v1468_v9  ;;  %v2753_v16 = vmax.f32 %v1985_v56, %v2497_v2  ;;  %v2623_v19 = vmax.f32 %v1465_v61, %v2367_v7 }
 0x150   : > { %v2496_v14 = vmul.f32 0.2, %v1980_v10  ;;  %v2626_v17 = vmax.f32 %v1476_v3, %v2370_v11  ;;  %v2751_v20 = vmax.f32 %v1977_v62, %v2495_v8 }
 0x151   : > { %v2754_v18 = vmax.f32 %v1988_v4, %v2498_v12  ;;  %v2624_v21 = vmax.f32 %v1468_v9, %v2368_v13  ;;  %v5800_v23 = vpop.f32.mrb[44].mxu0  ;;  %v5928_v24 = vpop.f32.mrb[44].mxu1 }
 0x152   : > { %v2752_v22 = vmax.f32 %v1980_v10, %v2496_v14  ;;  %v4943_v25 = vpack.c.bf16 %v2626_v17, %v2625_v15  ;;  %v1489_v27 = vadd.f32 %v5800_v23, %v6355_v54  ;;  %v2001_v28 = vadd.f32 %v5928_v24, %v6355_v54  ;;  %v1480_v29 = vpop.f32.mrb[45].mxu0  ;;  %v1992_v30 = vpop.f32.mrb[45].mxu1 }
 0x153   : > { %v5263_v26 = vpack.c.bf16 %v2754_v18, %v2753_v16  ;;  %v4938_v31 = vpack.c.bf16 %v2624_v21, %v2623_v19  ;;  %v1481_v33 = vadd.f32 %v6355_v54, %v1480_v29  ;;  %v1993_v34 = vadd.f32 %v6355_v54, %v1992_v30  ;;  %v5801_v35 = vpop.f32.mrb[46].mxu0  ;;  %v5929_v36 = vpop.f32.mrb[46].mxu1 }
 0x154   : > { %v5258_v32 = vpack.c.bf16 %v2752_v22, %v2751_v20  ;;  %5495 = vst [vmem:[%s6374_s13 + $0xa8] sm:$0xff] %v4943_v25   ;;  %v2373_v37 = vmul.f32 0.2, %v1489_v27  ;;  %v2501_v38 = vmul.f32 0.2, %v2001_v28  ;;  %v1492_v39 = vadd.f32 %v5801_v35, %v6355_v54  ;;  %v1483_v41 = vpop.f32.mrb[47].mxu0 }
 0x155   : > { %5559 = vst [vmem:[%s6374_s13 + $0x2a8] sm:$0xff] %v5263_v26   ;;  %v2004_v40 = vadd.f32 %v5929_v36, %v6355_v54  ;;  %v1995_v42 = vpop.f32.mrb[47].mxu1  ;;  %5494 = vst [vmem:[%s6374_s13 + $0xa0] sm:$0xff] %v4938_v31   ;;  %v2371_v43 = vmul.f32 0.2, %v1481_v33  ;;  %v1484_v45 = vadd.f32 %v6355_v54, %v1483_v41 }
 0x156   : > { %5558 = vst [vmem:[%s6374_s13 + $0x2a0] sm:$0xff] %v5258_v32   ;;  %v2499_v44 = vmul.f32 0.2, %v1993_v34  ;;  %v1996_v46 = vadd.f32 %v6355_v54, %v1995_v42  ;;  %v2374_v47 = vmul.f32 0.2, %v1492_v39  ;;  %v2629_v51 = vmax.f32 %v1489_v27, %v2373_v37 }
 0x157   : > { %v2502_v48 = vmul.f32 0.2, %v2004_v40  ;;  %v2372_v49 = vmul.f32 0.2, %v1484_v45  ;;  %v2757_v52 = vmax.f32 %v2001_v28, %v2501_v38  ;;  %v2627_v56 = vmax.f32 %v1481_v33, %v2371_v43  ;;  %v6525_v54 = vld [vmem:[%s6781_s2] ss:$0 sm:$0xff] }
 0x158   : > { %v2500_v50 = vmul.f32 0.2, %v1996_v46  ;;  %v2630_v53 = vmax.f32 %v1492_v39, %v2374_v47  ;;  %v2755_v57 = vmax.f32 %v1993_v34, %v2499_v44 }
 0x159   : > { %v2758_v55 = vmax.f32 %v2004_v40, %v2502_v48  ;;  %v2628_v58 = vmax.f32 %v1484_v45, %v2372_v49  ;;  %v5804_v60 = vpop.f32.mrb[48].mxu0  ;;  %v5932_v61 = vpop.f32.mrb[48].mxu1 }
 0x15a   : > { %v2756_v59 = vmax.f32 %v1996_v46, %v2500_v50  ;;  %v4953_v62 = vpack.c.bf16 %v2630_v53, %v2629_v51  ;;  %v1505_v0 = vadd.f32 %v6525_v54, %v5804_v60  ;;  %v2017_v1 = vadd.f32 %v6525_v54, %v5932_v61  ;;  %v1496_v2 = vpop.f32.mrb[49].mxu0  ;;  %v2008_v3 = vpop.f32.mrb[49].mxu1 }
 0x15b   : > { %v5273_v63 = vpack.c.bf16 %v2758_v55, %v2757_v52  ;;  %v4948_v4 = vpack.c.bf16 %v2628_v58, %v2627_v56  ;;  %v1497_v6 = vadd.f32 %v6525_v54, %v1496_v2  ;;  %v2009_v7 = vadd.f32 %v6525_v54, %v2008_v3  ;;  %v5805_v8 = vpop.f32.mrb[50].mxu0  ;;  %v5933_v9 = vpop.f32.mrb[50].mxu1 }
 0x15c   : > { %v5268_v5 = vpack.c.bf16 %v2756_v59, %v2755_v57  ;;  %5497 = vst [vmem:[%s6374_s13 + $0xb8] sm:$0xff] %v4953_v62   ;;  %v2377_v10 = vmul.f32 0.2, %v1505_v0  ;;  %v2505_v11 = vmul.f32 0.2, %v2017_v1  ;;  %v1508_v12 = vadd.f32 %v6525_v54, %v5805_v8  ;;  %v1499_v14 = vpop.f32.mrb[51].mxu0 }
 0x15d   : > { %5561 = vst [vmem:[%s6374_s13 + $0x2b8] sm:$0xff] %v5273_v63   ;;  %v2020_v13 = vadd.f32 %v6525_v54, %v5933_v9  ;;  %v2011_v15 = vpop.f32.mrb[51].mxu1  ;;  %5496 = vst [vmem:[%s6374_s13 + $0xb0] sm:$0xff] %v4948_v4   ;;  %v2375_v16 = vmul.f32 0.2, %v1497_v6  ;;  %v1500_v18 = vadd.f32 %v6525_v54, %v1499_v14 }
 0x15e   : > { %5560 = vst [vmem:[%s6374_s13 + $0x2b0] sm:$0xff] %v5268_v5   ;;  %v2503_v17 = vmul.f32 0.2, %v2009_v7  ;;  %v2012_v19 = vadd.f32 %v6525_v54, %v2011_v15  ;;  %v2378_v20 = vmul.f32 0.2, %v1508_v12  ;;  %v2633_v24 = vmax.f32 %v1505_v0, %v2377_v10 }
 0x15f   : > { %v2506_v21 = vmul.f32 0.2, %v2020_v13  ;;  %v2376_v22 = vmul.f32 0.2, %v1500_v18  ;;  %v2761_v25 = vmax.f32 %v2017_v1, %v2505_v11  ;;  %v2631_v28 = vmax.f32 %v1497_v6, %v2375_v16 }
 0x160   : > { %v2504_v23 = vmul.f32 0.2, %v2012_v19  ;;  %v2634_v26 = vmax.f32 %v1508_v12, %v2378_v20  ;;  %v2759_v29 = vmax.f32 %v2009_v7, %v2503_v17 }
 0x161   : > { %v2762_v27 = vmax.f32 %v2020_v13, %v2506_v21  ;;  %v2632_v30 = vmax.f32 %v1500_v18, %v2376_v22  ;;  %v5808_v32 = vpop.f32.mrb[52].mxu0  ;;  %v5936_v33 = vpop.f32.mrb[52].mxu1 }
 0x162   : > { %v2760_v31 = vmax.f32 %v2012_v19, %v2504_v23  ;;  %v4963_v34 = vpack.c.bf16 %v2634_v26, %v2633_v24  ;;  %v1521_v36 = vadd.f32 %v6525_v54, %v5808_v32  ;;  %v2033_v37 = vadd.f32 %v6525_v54, %v5936_v33  ;;  %v1512_v38 = vpop.f32.mrb[53].mxu0  ;;  %v2024_v39 = vpop.f32.mrb[53].mxu1 }
 0x163   : > { %v5283_v35 = vpack.c.bf16 %v2762_v27, %v2761_v25  ;;  %v4958_v40 = vpack.c.bf16 %v2632_v30, %v2631_v28  ;;  %v1513_v42 = vadd.f32 %v6525_v54, %v1512_v38  ;;  %v2025_v43 = vadd.f32 %v6525_v54, %v2024_v39  ;;  %v5809_v44 = vpop.f32.mrb[54].mxu0  ;;  %v5937_v45 = vpop.f32.mrb[54].mxu1 }
 0x164   : > { %v5278_v41 = vpack.c.bf16 %v2760_v31, %v2759_v29  ;;  %5499 = vst [vmem:[%s6374_s13 + $0xc8] sm:$0xff] %v4963_v34   ;;  %v2381_v46 = vmul.f32 0.2, %v1521_v36  ;;  %v2509_v47 = vmul.f32 0.2, %v2033_v37  ;;  %v1524_v48 = vadd.f32 %v6525_v54, %v5809_v44  ;;  %v1515_v50 = vpop.f32.mrb[55].mxu0 }
 0x165   : > { %5563 = vst [vmem:[%s6374_s13 + $0x2c8] sm:$0xff] %v5283_v35   ;;  %v2036_v49 = vadd.f32 %v6525_v54, %v5937_v45  ;;  %v2027_v51 = vpop.f32.mrb[55].mxu1  ;;  %5498 = vst [vmem:[%s6374_s13 + $0xc0] sm:$0xff] %v4958_v40   ;;  %v2379_v52 = vmul.f32 0.2, %v1513_v42  ;;  %v1516_v55 = vadd.f32 %v6525_v54, %v1515_v50 }
 0x166   : > { %5562 = vst [vmem:[%s6374_s13 + $0x2c0] sm:$0xff] %v5278_v41   ;;  %v2507_v53 = vmul.f32 0.2, %v2025_v43  ;;  %v2028_v56 = vadd.f32 %v6525_v54, %v2027_v51  ;;  %v2382_v57 = vmul.f32 0.2, %v1524_v48  ;;  %v2637_v61 = vmax.f32 %v1521_v36, %v2381_v46 }
 0x167   : > { %v2510_v58 = vmul.f32 0.2, %v2036_v49  ;;  %v2380_v59 = vmul.f32 0.2, %v1516_v55  ;;  %v2765_v62 = vmax.f32 %v2033_v37, %v2509_v47  ;;  %v2635_v1 = vmax.f32 %v1513_v42, %v2379_v52 }
 0x168   : > { %v2508_v60 = vmul.f32 0.2, %v2028_v56  ;;  %v2638_v63 = vmax.f32 %v1524_v48, %v2382_v57  ;;  %v2763_v2 = vmax.f32 %v2025_v43, %v2507_v53 }
 0x169   : > { %v2766_v0 = vmax.f32 %v2036_v49, %v2510_v58  ;;  %v2636_v3 = vmax.f32 %v1516_v55, %v2380_v59  ;;  %v5812_v5 = vpop.f32.mrb[56].mxu0  ;;  %v5940_v6 = vpop.f32.mrb[56].mxu1 }
 0x16a   : > { %v2764_v4 = vmax.f32 %v2028_v56, %v2508_v60  ;;  %v4973_v7 = vpack.c.bf16 %v2638_v63, %v2637_v61  ;;  %v1537_v9 = vadd.f32 %v6525_v54, %v5812_v5  ;;  %v2049_v10 = vadd.f32 %v6525_v54, %v5940_v6  ;;  %v1528_v11 = vpop.f32.mrb[57].mxu0  ;;  %v2040_v12 = vpop.f32.mrb[57].mxu1 }
 0x16b   : > { %v5293_v8 = vpack.c.bf16 %v2766_v0, %v2765_v62  ;;  %v4968_v13 = vpack.c.bf16 %v2636_v3, %v2635_v1  ;;  %v1529_v15 = vadd.f32 %v6525_v54, %v1528_v11  ;;  %v2041_v16 = vadd.f32 %v6525_v54, %v2040_v12  ;;  %v5813_v17 = vpop.f32.mrb[58].mxu0  ;;  %v5941_v18 = vpop.f32.mrb[58].mxu1 }
 0x16c   : > { %v5288_v14 = vpack.c.bf16 %v2764_v4, %v2763_v2  ;;  %5501 = vst [vmem:[%s6374_s13 + $0xd8] sm:$0xff] %v4973_v7   ;;  %v2385_v19 = vmul.f32 0.2, %v1537_v9  ;;  %v2513_v20 = vmul.f32 0.2, %v2049_v10  ;;  %v1540_v21 = vadd.f32 %v6525_v54, %v5813_v17  ;;  %v1531_v23 = vpop.f32.mrb[59].mxu0 }
 0x16d   : > { %5565 = vst [vmem:[%s6374_s13 + $0x2d8] sm:$0xff] %v5293_v8   ;;  %v2052_v22 = vadd.f32 %v6525_v54, %v5941_v18  ;;  %v2043_v24 = vpop.f32.mrb[59].mxu1  ;;  %5500 = vst [vmem:[%s6374_s13 + $0xd0] sm:$0xff] %v4968_v13   ;;  %v2383_v25 = vmul.f32 0.2, %v1529_v15  ;;  %v1532_v27 = vadd.f32 %v6525_v54, %v1531_v23 }
 0x16e   : > { %5564 = vst [vmem:[%s6374_s13 + $0x2d0] sm:$0xff] %v5288_v14   ;;  %v2511_v26 = vmul.f32 0.2, %v2041_v16  ;;  %v2044_v28 = vadd.f32 %v6525_v54, %v2043_v24  ;;  %v2386_v29 = vmul.f32 0.2, %v1540_v21  ;;  %v2641_v33 = vmax.f32 %v1537_v9, %v2385_v19 }
 0x16f   : > { %v2514_v30 = vmul.f32 0.2, %v2052_v22  ;;  %v2384_v31 = vmul.f32 0.2, %v1532_v27  ;;  %v2769_v34 = vmax.f32 %v2049_v10, %v2513_v20  ;;  %v2639_v37 = vmax.f32 %v1529_v15, %v2383_v25 }
 0x170   : > { %v2512_v32 = vmul.f32 0.2, %v2044_v28  ;;  %v2642_v35 = vmax.f32 %v1540_v21, %v2386_v29  ;;  %v2767_v38 = vmax.f32 %v2041_v16, %v2511_v26 }
 0x171   : > { %v2770_v36 = vmax.f32 %v2052_v22, %v2514_v30  ;;  %v2640_v39 = vmax.f32 %v1532_v27, %v2384_v31  ;;  %v5816_v41 = vpop.f32.mrb[60].mxu0  ;;  %v5944_v42 = vpop.f32.mrb[60].mxu1 }
 0x172   : > { %v2768_v40 = vmax.f32 %v2044_v28, %v2512_v32  ;;  %v4983_v43 = vpack.c.bf16 %v2642_v35, %v2641_v33  ;;  %v1553_v45 = vadd.f32 %v6525_v54, %v5816_v41  ;;  %v2065_v46 = vadd.f32 %v6525_v54, %v5944_v42  ;;  %v1544_v47 = vpop.f32.mrb[61].mxu0  ;;  %v2056_v48 = vpop.f32.mrb[61].mxu1 }
 0x173   : > { %v5303_v44 = vpack.c.bf16 %v2770_v36, %v2769_v34  ;;  %v4978_v49 = vpack.c.bf16 %v2640_v39, %v2639_v37  ;;  %v1545_v51 = vadd.f32 %v6525_v54, %v1544_v47  ;;  %v2057_v52 = vadd.f32 %v6525_v54, %v2056_v48  ;;  %v5817_v53 = vpop.f32.mrb[62].mxu0  ;;  %v5945_v55 = vpop.f32.mrb[62].mxu1 }
 0x174   : > { %v5298_v50 = vpack.c.bf16 %v2768_v40, %v2767_v38  ;;  %5503 = vst [vmem:[%s6374_s13 + $0xe8] sm:$0xff] %v4983_v43   ;;  %v2389_v56 = vmul.f32 0.2, %v1553_v45  ;;  %v2517_v57 = vmul.f32 0.2, %v2065_v46  ;;  %v1556_v58 = vadd.f32 %v6525_v54, %v5817_v53  ;;  %v1547_v60 = vpop.f32.mrb[63].mxu0 }
 0x175   : > { %5567 = vst [vmem:[%s6374_s13 + $0x2e8] sm:$0xff] %v5303_v44   ;;  %v2068_v59 = vadd.f32 %v6525_v54, %v5945_v55  ;;  %v2059_v61 = vpop.f32.mrb[63].mxu1  ;;  %5502 = vst [vmem:[%s6374_s13 + $0xe0] sm:$0xff] %v4978_v49   ;;  %v2387_v62 = vmul.f32 0.2, %v1545_v51  ;;  %v1548_v0 = vadd.f32 %v6525_v54, %v1547_v60 }
 0x176   : > { %5566 = vst [vmem:[%s6374_s13 + $0x2e0] sm:$0xff] %v5298_v50   ;;  %v2515_v63 = vmul.f32 0.2, %v2057_v52  ;;  %v2060_v1 = vadd.f32 %v6525_v54, %v2059_v61  ;;  %v2390_v2 = vmul.f32 0.2, %v1556_v58  ;;  %v2645_v6 = vmax.f32 %v1553_v45, %v2389_v56 }
 0x177   : > { %v2518_v3 = vmul.f32 0.2, %v2068_v59  ;;  %v2388_v4 = vmul.f32 0.2, %v1548_v0  ;;  %v2773_v7 = vmax.f32 %v2065_v46, %v2517_v57  ;;  %v2643_v10 = vmax.f32 %v1545_v51, %v2387_v62 }
 0x178   : > { %v2516_v5 = vmul.f32 0.2, %v2060_v1  ;;  %v2646_v8 = vmax.f32 %v1556_v58, %v2390_v2  ;;  %v2771_v11 = vmax.f32 %v2057_v52, %v2515_v63 }
 0x179   : > { %v2774_v9 = vmax.f32 %v2068_v59, %v2518_v3  ;;  %v2644_v12 = vmax.f32 %v1548_v0, %v2388_v4  ;;  %v5820_v14 = vpop.f32.mrb[64].mxu0  ;;  %v5948_v15 = vpop.f32.mrb[64].mxu1 }
 0x17a   : > { %v2772_v13 = vmax.f32 %v2060_v1, %v2516_v5  ;;  %v4993_v16 = vpack.c.bf16 %v2646_v8, %v2645_v6  ;;  %v1569_v18 = vadd.f32 %v6525_v54, %v5820_v14  ;;  %v2081_v19 = vadd.f32 %v6525_v54, %v5948_v15  ;;  %v1560_v20 = vpop.f32.mrb[65].mxu0  ;;  %v2072_v21 = vpop.f32.mrb[65].mxu1 }
 0x17b   : > { %v5313_v17 = vpack.c.bf16 %v2774_v9, %v2773_v7  ;;  %v4988_v22 = vpack.c.bf16 %v2644_v12, %v2643_v10  ;;  %v1561_v24 = vadd.f32 %v6525_v54, %v1560_v20  ;;  %v2073_v25 = vadd.f32 %v6525_v54, %v2072_v21  ;;  %v5821_v26 = vpop.f32.mrb[66].mxu0  ;;  %v5949_v27 = vpop.f32.mrb[66].mxu1 }
 0x17c   : > { %v5308_v23 = vpack.c.bf16 %v2772_v13, %v2771_v11  ;;  %5505 = vst [vmem:[%s6374_s13 + $0xf8] sm:$0xff] %v4993_v16   ;;  %v2393_v28 = vmul.f32 0.2, %v1569_v18  ;;  %v2521_v29 = vmul.f32 0.2, %v2081_v19  ;;  %v1572_v30 = vadd.f32 %v6525_v54, %v5821_v26  ;;  %v1563_v32 = vpop.f32.mrb[67].mxu0 }
 0x17d   : > { %5569 = vst [vmem:[%s6374_s13 + $0x2f8] sm:$0xff] %v5313_v17   ;;  %v2084_v31 = vadd.f32 %v6525_v54, %v5949_v27  ;;  %v2075_v33 = vpop.f32.mrb[67].mxu1  ;;  %5504 = vst [vmem:[%s6374_s13 + $0xf0] sm:$0xff] %v4988_v22   ;;  %v2391_v34 = vmul.f32 0.2, %v1561_v24  ;;  %v1564_v36 = vadd.f32 %v6525_v54, %v1563_v32 }
 0x17e   : > { %5568 = vst [vmem:[%s6374_s13 + $0x2f0] sm:$0xff] %v5308_v23   ;;  %v2519_v35 = vmul.f32 0.2, %v2073_v25  ;;  %v2076_v37 = vadd.f32 %v6525_v54, %v2075_v33  ;;  %v2394_v38 = vmul.f32 0.2, %v1572_v30  ;;  %v2649_v42 = vmax.f32 %v1569_v18, %v2393_v28 }
 0x17f   : > { %v2522_v39 = vmul.f32 0.2, %v2084_v31  ;;  %v2392_v40 = vmul.f32 0.2, %v1564_v36  ;;  %v2777_v43 = vmax.f32 %v2081_v19, %v2521_v29  ;;  %v2647_v46 = vmax.f32 %v1561_v24, %v2391_v34 }
 0x180   : > { %v2520_v41 = vmul.f32 0.2, %v2076_v37  ;;  %v2650_v44 = vmax.f32 %v1572_v30, %v2394_v38  ;;  %v2775_v47 = vmax.f32 %v2073_v25, %v2519_v35 }
 0x181   : > { %v2778_v45 = vmax.f32 %v2084_v31, %v2522_v39  ;;  %v2648_v48 = vmax.f32 %v1564_v36, %v2392_v40  ;;  %v5824_v50 = vpop.f32.mrb[68].mxu0  ;;  %v5952_v51 = vpop.f32.mrb[68].mxu1 }
 0x182   : > { %v2776_v49 = vmax.f32 %v2076_v37, %v2520_v41  ;;  %v5003_v52 = vpack.c.bf16 %v2650_v44, %v2649_v42  ;;  %v1585_v55 = vadd.f32 %v6525_v54, %v5824_v50  ;;  %v2097_v56 = vadd.f32 %v6525_v54, %v5952_v51  ;;  %v1576_v57 = vpop.f32.mrb[69].mxu0  ;;  %v2088_v58 = vpop.f32.mrb[69].mxu1 }
 0x183   : > { %v5323_v53 = vpack.c.bf16 %v2778_v45, %v2777_v43  ;;  %v4998_v59 = vpack.c.bf16 %v2648_v48, %v2647_v46  ;;  %v1577_v61 = vadd.f32 %v6525_v54, %v1576_v57  ;;  %v2089_v62 = vadd.f32 %v6525_v54, %v2088_v58  ;;  %v5825_v63 = vpop.f32.mrb[70].mxu0  ;;  %v5953_v0 = vpop.f32.mrb[70].mxu1 }
 0x184   : > { %v5318_v60 = vpack.c.bf16 %v2776_v49, %v2775_v47  ;;  %5507 = vst [vmem:[%s6374_s13 + $0x108] sm:$0xff] %v5003_v52   ;;  %v2397_v1 = vmul.f32 0.2, %v1585_v55  ;;  %v2525_v2 = vmul.f32 0.2, %v2097_v56  ;;  %v1588_v3 = vadd.f32 %v6525_v54, %v5825_v63  ;;  %v1579_v5 = vpop.f32.mrb[71].mxu0 }
 0x185   : > { %5571 = vst [vmem:[%s6374_s13 + $0x308] sm:$0xff] %v5323_v53   ;;  %v2100_v4 = vadd.f32 %v6525_v54, %v5953_v0  ;;  %v2091_v6 = vpop.f32.mrb[71].mxu1  ;;  %5506 = vst [vmem:[%s6374_s13 + $0x100] sm:$0xff] %v4998_v59   ;;  %v2395_v7 = vmul.f32 0.2, %v1577_v61  ;;  %v1580_v9 = vadd.f32 %v6525_v54, %v1579_v5 }
 0x186   : > { %5570 = vst [vmem:[%s6374_s13 + $0x300] sm:$0xff] %v5318_v60   ;;  %v2523_v8 = vmul.f32 0.2, %v2089_v62  ;;  %v2092_v10 = vadd.f32 %v6525_v54, %v2091_v6  ;;  %v2398_v11 = vmul.f32 0.2, %v1588_v3  ;;  %v2653_v15 = vmax.f32 %v1585_v55, %v2397_v1 }
 0x187   : > { %v2526_v12 = vmul.f32 0.2, %v2100_v4  ;;  %v2396_v13 = vmul.f32 0.2, %v1580_v9  ;;  %v2781_v16 = vmax.f32 %v2097_v56, %v2525_v2  ;;  %v2651_v19 = vmax.f32 %v1577_v61, %v2395_v7 }
 0x188   : > { %v2524_v14 = vmul.f32 0.2, %v2092_v10  ;;  %v2654_v17 = vmax.f32 %v1588_v3, %v2398_v11  ;;  %v2779_v20 = vmax.f32 %v2089_v62, %v2523_v8 }
 0x189   : > { %v2782_v18 = vmax.f32 %v2100_v4, %v2526_v12  ;;  %v2652_v21 = vmax.f32 %v1580_v9, %v2396_v13  ;;  %v5828_v23 = vpop.f32.mrb[72].mxu0  ;;  %v5956_v24 = vpop.f32.mrb[72].mxu1 }
 0x18a   : > { %v2780_v22 = vmax.f32 %v2092_v10, %v2524_v14  ;;  %v5013_v25 = vpack.c.bf16 %v2654_v17, %v2653_v15  ;;  %v1601_v27 = vadd.f32 %v6525_v54, %v5828_v23  ;;  %v2113_v28 = vadd.f32 %v6525_v54, %v5956_v24  ;;  %v1592_v29 = vpop.f32.mrb[73].mxu0  ;;  %v2104_v30 = vpop.f32.mrb[73].mxu1 }
 0x18b   : > { %v5333_v26 = vpack.c.bf16 %v2782_v18, %v2781_v16  ;;  %v5008_v31 = vpack.c.bf16 %v2652_v21, %v2651_v19  ;;  %v1593_v33 = vadd.f32 %v6525_v54, %v1592_v29  ;;  %v2105_v34 = vadd.f32 %v6525_v54, %v2104_v30  ;;  %v5829_v35 = vpop.f32.mrb[74].mxu0  ;;  %v5957_v36 = vpop.f32.mrb[74].mxu1 }
 0x18c   : > { %v5328_v32 = vpack.c.bf16 %v2780_v22, %v2779_v20  ;;  %5509 = vst [vmem:[%s6374_s13 + $0x118] sm:$0xff] %v5013_v25   ;;  %v2401_v37 = vmul.f32 0.2, %v1601_v27  ;;  %v2529_v38 = vmul.f32 0.2, %v2113_v28  ;;  %v1604_v39 = vadd.f32 %v6525_v54, %v5829_v35  ;;  %v1595_v41 = vpop.f32.mrb[75].mxu0 }
 0x18d   : > { %5573 = vst [vmem:[%s6374_s13 + $0x318] sm:$0xff] %v5333_v26   ;;  %v2116_v40 = vadd.f32 %v6525_v54, %v5957_v36  ;;  %v2107_v42 = vpop.f32.mrb[75].mxu1  ;;  %5508 = vst [vmem:[%s6374_s13 + $0x110] sm:$0xff] %v5008_v31   ;;  %v2399_v43 = vmul.f32 0.2, %v1593_v33  ;;  %v1596_v45 = vadd.f32 %v6525_v54, %v1595_v41 }
 0x18e   : > { %5572 = vst [vmem:[%s6374_s13 + $0x310] sm:$0xff] %v5328_v32   ;;  %v2527_v44 = vmul.f32 0.2, %v2105_v34  ;;  %v2108_v46 = vadd.f32 %v6525_v54, %v2107_v42  ;;  %v2402_v47 = vmul.f32 0.2, %v1604_v39  ;;  %v2657_v51 = vmax.f32 %v1601_v27, %v2401_v37 }
 0x18f   : > { %v2530_v48 = vmul.f32 0.2, %v2116_v40  ;;  %v2400_v49 = vmul.f32 0.2, %v1596_v45  ;;  %v2785_v52 = vmax.f32 %v2113_v28, %v2529_v38  ;;  %v2655_v56 = vmax.f32 %v1593_v33, %v2399_v43 }
 0x190   : > { %v2528_v50 = vmul.f32 0.2, %v2108_v46  ;;  %v2658_v53 = vmax.f32 %v1604_v39, %v2402_v47  ;;  %v2783_v57 = vmax.f32 %v2105_v34, %v2527_v44 }
 0x191   : > { %v2786_v55 = vmax.f32 %v2116_v40, %v2530_v48  ;;  %v2656_v58 = vmax.f32 %v1596_v45, %v2400_v49  ;;  %v5832_v60 = vpop.f32.mrb[76].mxu0  ;;  %v5960_v61 = vpop.f32.mrb[76].mxu1 }
 0x192   : > { %v2784_v59 = vmax.f32 %v2108_v46, %v2528_v50  ;;  %v5023_v62 = vpack.c.bf16 %v2658_v53, %v2657_v51  ;;  %v1617_v0 = vadd.f32 %v6525_v54, %v5832_v60  ;;  %v2129_v1 = vadd.f32 %v6525_v54, %v5960_v61  ;;  %v1608_v2 = vpop.f32.mrb[77].mxu0  ;;  %v2120_v3 = vpop.f32.mrb[77].mxu1 }
 0x193   : > { %v5343_v63 = vpack.c.bf16 %v2786_v55, %v2785_v52  ;;  %v5018_v4 = vpack.c.bf16 %v2656_v58, %v2655_v56  ;;  %v1609_v6 = vadd.f32 %v6525_v54, %v1608_v2  ;;  %v2121_v7 = vadd.f32 %v6525_v54, %v2120_v3  ;;  %v5833_v8 = vpop.f32.mrb[78].mxu0  ;;  %v5961_v9 = vpop.f32.mrb[78].mxu1 }
 0x194   : > { %v5338_v5 = vpack.c.bf16 %v2784_v59, %v2783_v57  ;;  %5511 = vst [vmem:[%s6374_s13 + $0x128] sm:$0xff] %v5023_v62   ;;  %v2405_v10 = vmul.f32 0.2, %v1617_v0  ;;  %v2533_v11 = vmul.f32 0.2, %v2129_v1  ;;  %v1620_v12 = vadd.f32 %v6525_v54, %v5833_v8  ;;  %v1611_v14 = vpop.f32.mrb[79].mxu0 }
 0x195   : > { %5575 = vst [vmem:[%s6374_s13 + $0x328] sm:$0xff] %v5343_v63   ;;  %v2132_v13 = vadd.f32 %v6525_v54, %v5961_v9  ;;  %v2123_v15 = vpop.f32.mrb[79].mxu1  ;;  %5510 = vst [vmem:[%s6374_s13 + $0x120] sm:$0xff] %v5018_v4   ;;  %v2403_v16 = vmul.f32 0.2, %v1609_v6  ;;  %v1612_v18 = vadd.f32 %v6525_v54, %v1611_v14 }
 0x196   : > { %5574 = vst [vmem:[%s6374_s13 + $0x320] sm:$0xff] %v5338_v5   ;;  %v2531_v17 = vmul.f32 0.2, %v2121_v7  ;;  %v2124_v19 = vadd.f32 %v6525_v54, %v2123_v15  ;;  %v2406_v20 = vmul.f32 0.2, %v1620_v12  ;;  %v2661_v24 = vmax.f32 %v1617_v0, %v2405_v10 }
 0x197   : > { %v2534_v21 = vmul.f32 0.2, %v2132_v13  ;;  %v2404_v22 = vmul.f32 0.2, %v1612_v18  ;;  %v2789_v25 = vmax.f32 %v2129_v1, %v2533_v11  ;;  %v2659_v28 = vmax.f32 %v1609_v6, %v2403_v16 }
 0x198   : > { %v2532_v23 = vmul.f32 0.2, %v2124_v19  ;;  %v2662_v26 = vmax.f32 %v1620_v12, %v2406_v20  ;;  %v2787_v29 = vmax.f32 %v2121_v7, %v2531_v17 }
 0x199   : > { %v2790_v27 = vmax.f32 %v2132_v13, %v2534_v21  ;;  %v2660_v30 = vmax.f32 %v1612_v18, %v2404_v22  ;;  %v5836_v32 = vpop.f32.mrb[80].mxu0  ;;  %v5964_v33 = vpop.f32.mrb[80].mxu1 }
 0x19a   : > { %v2788_v31 = vmax.f32 %v2124_v19, %v2532_v23  ;;  %v5033_v34 = vpack.c.bf16 %v2662_v26, %v2661_v24  ;;  %v1633_v36 = vadd.f32 %v6525_v54, %v5836_v32  ;;  %v2145_v37 = vadd.f32 %v6525_v54, %v5964_v33  ;;  %v1624_v38 = vpop.f32.mrb[81].mxu0  ;;  %v2136_v39 = vpop.f32.mrb[81].mxu1 }
 0x19b   : > { %v5353_v35 = vpack.c.bf16 %v2790_v27, %v2789_v25  ;;  %v5028_v40 = vpack.c.bf16 %v2660_v30, %v2659_v28  ;;  %v1625_v42 = vadd.f32 %v6525_v54, %v1624_v38  ;;  %v2137_v43 = vadd.f32 %v6525_v54, %v2136_v39  ;;  %v5837_v44 = vpop.f32.mrb[82].mxu0  ;;  %v5965_v45 = vpop.f32.mrb[82].mxu1 }
 0x19c   : > { %v5348_v41 = vpack.c.bf16 %v2788_v31, %v2787_v29  ;;  %5513 = vst [vmem:[%s6374_s13 + $0x138] sm:$0xff] %v5033_v34   ;;  %v2409_v46 = vmul.f32 0.2, %v1633_v36  ;;  %v2537_v47 = vmul.f32 0.2, %v2145_v37  ;;  %v1636_v48 = vadd.f32 %v6525_v54, %v5837_v44  ;;  %v1627_v50 = vpop.f32.mrb[83].mxu0 }
 0x19d   : > { %5577 = vst [vmem:[%s6374_s13 + $0x338] sm:$0xff] %v5353_v35   ;;  %v2148_v49 = vadd.f32 %v6525_v54, %v5965_v45  ;;  %v2139_v51 = vpop.f32.mrb[83].mxu1  ;;  %5512 = vst [vmem:[%s6374_s13 + $0x130] sm:$0xff] %v5028_v40   ;;  %v2407_v52 = vmul.f32 0.2, %v1625_v42  ;;  %v1628_v55 = vadd.f32 %v6525_v54, %v1627_v50 }
 0x19e   : > { %5576 = vst [vmem:[%s6374_s13 + $0x330] sm:$0xff] %v5348_v41   ;;  %v2535_v53 = vmul.f32 0.2, %v2137_v43  ;;  %v2140_v56 = vadd.f32 %v6525_v54, %v2139_v51  ;;  %v2410_v57 = vmul.f32 0.2, %v1636_v48  ;;  %v2665_v61 = vmax.f32 %v1633_v36, %v2409_v46 }
 0x19f   : > { %v2538_v58 = vmul.f32 0.2, %v2148_v49  ;;  %v2408_v59 = vmul.f32 0.2, %v1628_v55  ;;  %v2793_v62 = vmax.f32 %v2145_v37, %v2537_v47  ;;  %v2663_v1 = vmax.f32 %v1625_v42, %v2407_v52 }
 0x1a0   : > { %v2536_v60 = vmul.f32 0.2, %v2140_v56  ;;  %v2666_v63 = vmax.f32 %v1636_v48, %v2410_v57  ;;  %v2791_v2 = vmax.f32 %v2137_v43, %v2535_v53 }
 0x1a1   : > { %v2794_v0 = vmax.f32 %v2148_v49, %v2538_v58  ;;  %v2664_v3 = vmax.f32 %v1628_v55, %v2408_v59  ;;  %v5840_v5 = vpop.f32.mrb[84].mxu0  ;;  %v5968_v6 = vpop.f32.mrb[84].mxu1 }
 0x1a2   : > { %v2792_v4 = vmax.f32 %v2140_v56, %v2536_v60  ;;  %v5043_v7 = vpack.c.bf16 %v2666_v63, %v2665_v61  ;;  %v1649_v9 = vadd.f32 %v6525_v54, %v5840_v5  ;;  %v2161_v10 = vadd.f32 %v6525_v54, %v5968_v6  ;;  %v1640_v11 = vpop.f32.mrb[85].mxu0  ;;  %v2152_v12 = vpop.f32.mrb[85].mxu1 }
 0x1a3   : > { %v5363_v8 = vpack.c.bf16 %v2794_v0, %v2793_v62  ;;  %v5038_v13 = vpack.c.bf16 %v2664_v3, %v2663_v1  ;;  %v1641_v15 = vadd.f32 %v6525_v54, %v1640_v11  ;;  %v2153_v16 = vadd.f32 %v6525_v54, %v2152_v12  ;;  %v5841_v17 = vpop.f32.mrb[86].mxu0  ;;  %v5969_v18 = vpop.f32.mrb[86].mxu1 }
 0x1a4   : > { %v5358_v14 = vpack.c.bf16 %v2792_v4, %v2791_v2  ;;  %5515 = vst [vmem:[%s6374_s13 + $0x148] sm:$0xff] %v5043_v7   ;;  %v2413_v19 = vmul.f32 0.2, %v1649_v9  ;;  %v2541_v20 = vmul.f32 0.2, %v2161_v10  ;;  %v1652_v21 = vadd.f32 %v6525_v54, %v5841_v17  ;;  %v1643_v23 = vpop.f32.mrb[87].mxu0 }
 0x1a5   : > { %5579 = vst [vmem:[%s6374_s13 + $0x348] sm:$0xff] %v5363_v8   ;;  %v2164_v22 = vadd.f32 %v6525_v54, %v5969_v18  ;;  %v2155_v24 = vpop.f32.mrb[87].mxu1  ;;  %5514 = vst [vmem:[%s6374_s13 + $0x140] sm:$0xff] %v5038_v13   ;;  %v2411_v25 = vmul.f32 0.2, %v1641_v15  ;;  %v1644_v27 = vadd.f32 %v6525_v54, %v1643_v23 }
 0x1a6   : > { %5578 = vst [vmem:[%s6374_s13 + $0x340] sm:$0xff] %v5358_v14   ;;  %v2539_v26 = vmul.f32 0.2, %v2153_v16  ;;  %v2156_v28 = vadd.f32 %v6525_v54, %v2155_v24  ;;  %v2414_v29 = vmul.f32 0.2, %v1652_v21  ;;  %v2669_v33 = vmax.f32 %v1649_v9, %v2413_v19 }
 0x1a7   : > { %v2542_v30 = vmul.f32 0.2, %v2164_v22  ;;  %v2412_v31 = vmul.f32 0.2, %v1644_v27  ;;  %v2797_v34 = vmax.f32 %v2161_v10, %v2541_v20  ;;  %v2667_v37 = vmax.f32 %v1641_v15, %v2411_v25 }
 0x1a8   : > { %v2540_v32 = vmul.f32 0.2, %v2156_v28  ;;  %v2670_v35 = vmax.f32 %v1652_v21, %v2414_v29  ;;  %v2795_v38 = vmax.f32 %v2153_v16, %v2539_v26 }
 0x1a9   : > { %v2798_v36 = vmax.f32 %v2164_v22, %v2542_v30  ;;  %v2668_v39 = vmax.f32 %v1644_v27, %v2412_v31  ;;  %v5844_v41 = vpop.f32.mrb[88].mxu0  ;;  %v5972_v42 = vpop.f32.mrb[88].mxu1 }
 0x1aa   : > { %v2796_v40 = vmax.f32 %v2156_v28, %v2540_v32  ;;  %v5053_v43 = vpack.c.bf16 %v2670_v35, %v2669_v33  ;;  %v1665_v45 = vadd.f32 %v6525_v54, %v5844_v41  ;;  %v2177_v46 = vadd.f32 %v6525_v54, %v5972_v42  ;;  %v1656_v47 = vpop.f32.mrb[89].mxu0  ;;  %v2168_v48 = vpop.f32.mrb[89].mxu1 }
 0x1ab   : > { %v5373_v44 = vpack.c.bf16 %v2798_v36, %v2797_v34  ;;  %v5048_v49 = vpack.c.bf16 %v2668_v39, %v2667_v37  ;;  %v1657_v51 = vadd.f32 %v6525_v54, %v1656_v47  ;;  %v2169_v52 = vadd.f32 %v6525_v54, %v2168_v48  ;;  %v5845_v53 = vpop.f32.mrb[90].mxu0  ;;  %v5973_v55 = vpop.f32.mrb[90].mxu1 }
 0x1ac   : > { %v5368_v50 = vpack.c.bf16 %v2796_v40, %v2795_v38  ;;  %5517 = vst [vmem:[%s6374_s13 + $0x158] sm:$0xff] %v5053_v43   ;;  %v2417_v56 = vmul.f32 0.2, %v1665_v45  ;;  %v2545_v57 = vmul.f32 0.2, %v2177_v46  ;;  %v1668_v58 = vadd.f32 %v6525_v54, %v5845_v53  ;;  %v1659_v60 = vpop.f32.mrb[91].mxu0 }
 0x1ad   : > { %5581 = vst [vmem:[%s6374_s13 + $0x358] sm:$0xff] %v5373_v44   ;;  %v2180_v59 = vadd.f32 %v6525_v54, %v5973_v55  ;;  %v2171_v61 = vpop.f32.mrb[91].mxu1  ;;  %5516 = vst [vmem:[%s6374_s13 + $0x150] sm:$0xff] %v5048_v49   ;;  %v2415_v62 = vmul.f32 0.2, %v1657_v51  ;;  %v1660_v0 = vadd.f32 %v6525_v54, %v1659_v60 }
 0x1ae   : > { %5580 = vst [vmem:[%s6374_s13 + $0x350] sm:$0xff] %v5368_v50   ;;  %v2543_v63 = vmul.f32 0.2, %v2169_v52  ;;  %v2172_v1 = vadd.f32 %v6525_v54, %v2171_v61  ;;  %v2418_v2 = vmul.f32 0.2, %v1668_v58  ;;  %v2673_v6 = vmax.f32 %v1665_v45, %v2417_v56 }
 0x1af   : > { %v2546_v3 = vmul.f32 0.2, %v2180_v59  ;;  %v2416_v4 = vmul.f32 0.2, %v1660_v0  ;;  %v2801_v7 = vmax.f32 %v2177_v46, %v2545_v57  ;;  %v2671_v10 = vmax.f32 %v1657_v51, %v2415_v62 }
 0x1b0   : > { %v2544_v5 = vmul.f32 0.2, %v2172_v1  ;;  %v2674_v8 = vmax.f32 %v1668_v58, %v2418_v2  ;;  %v2799_v11 = vmax.f32 %v2169_v52, %v2543_v63 }
 0x1b1   : > { %v2802_v9 = vmax.f32 %v2180_v59, %v2546_v3  ;;  %v2672_v12 = vmax.f32 %v1660_v0, %v2416_v4  ;;  %v5848_v14 = vpop.f32.mrb[92].mxu0  ;;  %v5976_v15 = vpop.f32.mrb[92].mxu1 }
 0x1b2   : > { %v2800_v13 = vmax.f32 %v2172_v1, %v2544_v5  ;;  %v5063_v16 = vpack.c.bf16 %v2674_v8, %v2673_v6  ;;  %v1681_v18 = vadd.f32 %v6525_v54, %v5848_v14  ;;  %v2193_v19 = vadd.f32 %v6525_v54, %v5976_v15  ;;  %v1672_v20 = vpop.f32.mrb[93].mxu0  ;;  %v2184_v21 = vpop.f32.mrb[93].mxu1 }
 0x1b3   : > { %v5383_v17 = vpack.c.bf16 %v2802_v9, %v2801_v7  ;;  %v5058_v22 = vpack.c.bf16 %v2672_v12, %v2671_v10  ;;  %v1673_v24 = vadd.f32 %v6525_v54, %v1672_v20  ;;  %v2185_v25 = vadd.f32 %v6525_v54, %v2184_v21  ;;  %v5849_v26 = vpop.f32.mrb[94].mxu0  ;;  %v5977_v27 = vpop.f32.mrb[94].mxu1 }
 0x1b4   : > { %v5378_v23 = vpack.c.bf16 %v2800_v13, %v2799_v11  ;;  %5519 = vst [vmem:[%s6374_s13 + $0x168] sm:$0xff] %v5063_v16   ;;  %v2421_v28 = vmul.f32 0.2, %v1681_v18  ;;  %v2549_v29 = vmul.f32 0.2, %v2193_v19  ;;  %v1684_v30 = vadd.f32 %v6525_v54, %v5849_v26  ;;  %v1675_v32 = vpop.f32.mrb[95].mxu0 }
 0x1b5   : > { %5583 = vst [vmem:[%s6374_s13 + $0x368] sm:$0xff] %v5383_v17   ;;  %v2196_v31 = vadd.f32 %v6525_v54, %v5977_v27  ;;  %v2187_v33 = vpop.f32.mrb[95].mxu1  ;;  %5518 = vst [vmem:[%s6374_s13 + $0x160] sm:$0xff] %v5058_v22   ;;  %v2419_v34 = vmul.f32 0.2, %v1673_v24  ;;  %v1676_v36 = vadd.f32 %v6525_v54, %v1675_v32 }
 0x1b6   : > { %5582 = vst [vmem:[%s6374_s13 + $0x360] sm:$0xff] %v5378_v23   ;;  %v2547_v35 = vmul.f32 0.2, %v2185_v25  ;;  %v2188_v37 = vadd.f32 %v6525_v54, %v2187_v33  ;;  %v2422_v38 = vmul.f32 0.2, %v1684_v30  ;;  %v2677_v42 = vmax.f32 %v1681_v18, %v2421_v28 }
 0x1b7   : > { %v2550_v39 = vmul.f32 0.2, %v2196_v31  ;;  %v2420_v40 = vmul.f32 0.2, %v1676_v36  ;;  %v2805_v43 = vmax.f32 %v2193_v19, %v2549_v29  ;;  %v2675_v46 = vmax.f32 %v1673_v24, %v2419_v34 }
 0x1b8   : > { %v2548_v41 = vmul.f32 0.2, %v2188_v37  ;;  %v2678_v44 = vmax.f32 %v1684_v30, %v2422_v38  ;;  %v2803_v47 = vmax.f32 %v2185_v25, %v2547_v35 }
 0x1b9   : > { %v2806_v45 = vmax.f32 %v2196_v31, %v2550_v39  ;;  %v2676_v48 = vmax.f32 %v1676_v36, %v2420_v40  ;;  %v5852_v50 = vpop.f32.mrb[96].mxu0  ;;  %v5980_v51 = vpop.f32.mrb[96].mxu1 }
 0x1ba   : > { %v2804_v49 = vmax.f32 %v2188_v37, %v2548_v41  ;;  %v5073_v52 = vpack.c.bf16 %v2678_v44, %v2677_v42  ;;  %v1697_v55 = vadd.f32 %v6525_v54, %v5852_v50  ;;  %v2209_v56 = vadd.f32 %v6525_v54, %v5980_v51  ;;  %v1688_v57 = vpop.f32.mrb[97].mxu0  ;;  %v2200_v58 = vpop.f32.mrb[97].mxu1 }
 0x1bb   : > { %v5393_v53 = vpack.c.bf16 %v2806_v45, %v2805_v43  ;;  %v5068_v59 = vpack.c.bf16 %v2676_v48, %v2675_v46  ;;  %v1689_v61 = vadd.f32 %v6525_v54, %v1688_v57  ;;  %v2201_v62 = vadd.f32 %v6525_v54, %v2200_v58  ;;  %v5853_v63 = vpop.f32.mrb[98].mxu0  ;;  %v5981_v0 = vpop.f32.mrb[98].mxu1 }
 0x1bc   : > { %v5388_v60 = vpack.c.bf16 %v2804_v49, %v2803_v47  ;;  %5521 = vst [vmem:[%s6374_s13 + $0x178] sm:$0xff] %v5073_v52   ;;  %v2425_v1 = vmul.f32 0.2, %v1697_v55  ;;  %v2553_v2 = vmul.f32 0.2, %v2209_v56  ;;  %v1700_v3 = vadd.f32 %v6525_v54, %v5853_v63  ;;  %v1691_v5 = vpop.f32.mrb[99].mxu0 }
 0x1bd   : > { %5585 = vst [vmem:[%s6374_s13 + $0x378] sm:$0xff] %v5393_v53   ;;  %v2212_v4 = vadd.f32 %v6525_v54, %v5981_v0  ;;  %v2203_v6 = vpop.f32.mrb[99].mxu1  ;;  %5520 = vst [vmem:[%s6374_s13 + $0x170] sm:$0xff] %v5068_v59   ;;  %v2423_v7 = vmul.f32 0.2, %v1689_v61  ;;  %v1692_v9 = vadd.f32 %v6525_v54, %v1691_v5 }
 0x1be   : > { %5584 = vst [vmem:[%s6374_s13 + $0x370] sm:$0xff] %v5388_v60   ;;  %v2551_v8 = vmul.f32 0.2, %v2201_v62  ;;  %v2204_v10 = vadd.f32 %v6525_v54, %v2203_v6  ;;  %v2426_v11 = vmul.f32 0.2, %v1700_v3  ;;  %v2681_v15 = vmax.f32 %v1697_v55, %v2425_v1 }
 0x1bf   : > { %v2554_v12 = vmul.f32 0.2, %v2212_v4  ;;  %v2424_v13 = vmul.f32 0.2, %v1692_v9  ;;  %v2809_v16 = vmax.f32 %v2209_v56, %v2553_v2  ;;  %v2679_v19 = vmax.f32 %v1689_v61, %v2423_v7  ;;  %v6686_v54 = vld [vmem:[%s6781_s2] ss:$0 sm:$0xff] }
 0x1c0   : > { %v2552_v14 = vmul.f32 0.2, %v2204_v10  ;;  %v2682_v17 = vmax.f32 %v1700_v3, %v2426_v11  ;;  %v2807_v20 = vmax.f32 %v2201_v62, %v2551_v8 }
 0x1c1   : > { %v2810_v18 = vmax.f32 %v2212_v4, %v2554_v12  ;;  %v2680_v21 = vmax.f32 %v1692_v9, %v2424_v13  ;;  %v5856_v23 = vpop.f32.mrb[100].mxu0  ;;  %v5984_v24 = vpop.f32.mrb[100].mxu1 }
 0x1c2   : > { %v2808_v22 = vmax.f32 %v2204_v10, %v2552_v14  ;;  %v5083_v25 = vpack.c.bf16 %v2682_v17, %v2681_v15  ;;  %v1713_v27 = vadd.f32 %v6686_v54, %v5856_v23  ;;  %v2225_v28 = vadd.f32 %v6686_v54, %v5984_v24  ;;  %v1704_v29 = vpop.f32.mrb[101].mxu0  ;;  %v2216_v30 = vpop.f32.mrb[101].mxu1 }
 0x1c3   : > { %v5403_v26 = vpack.c.bf16 %v2810_v18, %v2809_v16  ;;  %v5078_v31 = vpack.c.bf16 %v2680_v21, %v2679_v19  ;;  %v1705_v33 = vadd.f32 %v6686_v54, %v1704_v29  ;;  %v2217_v34 = vadd.f32 %v6686_v54, %v2216_v30  ;;  %v5857_v35 = vpop.f32.mrb[102].mxu0  ;;  %v5985_v36 = vpop.f32.mrb[102].mxu1 }
 0x1c4   : > { %v5398_v32 = vpack.c.bf16 %v2808_v22, %v2807_v20  ;;  %5523 = vst [vmem:[%s6374_s13 + $0x188] sm:$0xff] %v5083_v25   ;;  %v2429_v37 = vmul.f32 0.2, %v1713_v27  ;;  %v2557_v38 = vmul.f32 0.2, %v2225_v28  ;;  %v1716_v39 = vadd.f32 %v6686_v54, %v5857_v35  ;;  %v1707_v41 = vpop.f32.mrb[103].mxu0 }
 0x1c5   : > { %5587 = vst [vmem:[%s6374_s13 + $0x388] sm:$0xff] %v5403_v26   ;;  %v2228_v40 = vadd.f32 %v6686_v54, %v5985_v36  ;;  %v2219_v42 = vpop.f32.mrb[103].mxu1  ;;  %5522 = vst [vmem:[%s6374_s13 + $0x180] sm:$0xff] %v5078_v31   ;;  %v2427_v43 = vmul.f32 0.2, %v1705_v33  ;;  %v1708_v45 = vadd.f32 %v6686_v54, %v1707_v41 }
 0x1c6   : > { %5586 = vst [vmem:[%s6374_s13 + $0x380] sm:$0xff] %v5398_v32   ;;  %v2555_v44 = vmul.f32 0.2, %v2217_v34  ;;  %v2220_v46 = vadd.f32 %v6686_v54, %v2219_v42  ;;  %v2430_v47 = vmul.f32 0.2, %v1716_v39  ;;  %v2685_v51 = vmax.f32 %v1713_v27, %v2429_v37 }
 0x1c7   : > { %v2558_v48 = vmul.f32 0.2, %v2228_v40  ;;  %v2428_v49 = vmul.f32 0.2, %v1708_v45  ;;  %v2813_v52 = vmax.f32 %v2225_v28, %v2557_v38  ;;  %v2683_v56 = vmax.f32 %v1705_v33, %v2427_v43 }
 0x1c8   : > { %v2556_v50 = vmul.f32 0.2, %v2220_v46  ;;  %v2686_v53 = vmax.f32 %v1716_v39, %v2430_v47  ;;  %v2811_v57 = vmax.f32 %v2217_v34, %v2555_v44 }
 0x1c9   : > { %v2814_v55 = vmax.f32 %v2228_v40, %v2558_v48  ;;  %v2684_v58 = vmax.f32 %v1708_v45, %v2428_v49  ;;  %v5860_v60 = vpop.f32.mrb[104].mxu0  ;;  %v5988_v61 = vpop.f32.mrb[104].mxu1 }
 0x1ca   : > { %v2812_v59 = vmax.f32 %v2220_v46, %v2556_v50  ;;  %v5093_v62 = vpack.c.bf16 %v2686_v53, %v2685_v51  ;;  %v1729_v0 = vadd.f32 %v6686_v54, %v5860_v60  ;;  %v2241_v1 = vadd.f32 %v6686_v54, %v5988_v61  ;;  %v1720_v2 = vpop.f32.mrb[105].mxu0  ;;  %v2232_v3 = vpop.f32.mrb[105].mxu1 }
 0x1cb   : > { %v5413_v63 = vpack.c.bf16 %v2814_v55, %v2813_v52  ;;  %v5088_v4 = vpack.c.bf16 %v2684_v58, %v2683_v56  ;;  %v1721_v6 = vadd.f32 %v6686_v54, %v1720_v2  ;;  %v2233_v7 = vadd.f32 %v6686_v54, %v2232_v3  ;;  %v5861_v8 = vpop.f32.mrb[106].mxu0  ;;  %v5989_v9 = vpop.f32.mrb[106].mxu1 }
 0x1cc   : > { %v5408_v5 = vpack.c.bf16 %v2812_v59, %v2811_v57  ;;  %5525 = vst [vmem:[%s6374_s13 + $0x198] sm:$0xff] %v5093_v62   ;;  %v2433_v10 = vmul.f32 0.2, %v1729_v0  ;;  %v2561_v11 = vmul.f32 0.2, %v2241_v1  ;;  %v1732_v12 = vadd.f32 %v6686_v54, %v5861_v8  ;;  %v1723_v14 = vpop.f32.mrb[107].mxu0 }
 0x1cd   : > { %5589 = vst [vmem:[%s6374_s13 + $0x398] sm:$0xff] %v5413_v63   ;;  %v2244_v13 = vadd.f32 %v6686_v54, %v5989_v9  ;;  %v2235_v15 = vpop.f32.mrb[107].mxu1  ;;  %5524 = vst [vmem:[%s6374_s13 + $0x190] sm:$0xff] %v5088_v4   ;;  %v2431_v16 = vmul.f32 0.2, %v1721_v6  ;;  %v1724_v18 = vadd.f32 %v6686_v54, %v1723_v14 }
 0x1ce   : > { %5588 = vst [vmem:[%s6374_s13 + $0x390] sm:$0xff] %v5408_v5   ;;  %v2559_v17 = vmul.f32 0.2, %v2233_v7  ;;  %v2236_v19 = vadd.f32 %v6686_v54, %v2235_v15  ;;  %v2434_v20 = vmul.f32 0.2, %v1732_v12  ;;  %v2689_v24 = vmax.f32 %v1729_v0, %v2433_v10 }
 0x1cf   : > { %v2562_v21 = vmul.f32 0.2, %v2244_v13  ;;  %v2432_v22 = vmul.f32 0.2, %v1724_v18  ;;  %v2817_v25 = vmax.f32 %v2241_v1, %v2561_v11  ;;  %v2687_v28 = vmax.f32 %v1721_v6, %v2431_v16 }
 0x1d0   : > { %v2560_v23 = vmul.f32 0.2, %v2236_v19  ;;  %v2690_v26 = vmax.f32 %v1732_v12, %v2434_v20  ;;  %v2815_v29 = vmax.f32 %v2233_v7, %v2559_v17 }
 0x1d1   : > { %v2818_v27 = vmax.f32 %v2244_v13, %v2562_v21  ;;  %v2688_v30 = vmax.f32 %v1724_v18, %v2432_v22  ;;  %v5864_v32 = vpop.f32.mrb[108].mxu0  ;;  %v5992_v33 = vpop.f32.mrb[108].mxu1 }
 0x1d2   : > { %v2816_v31 = vmax.f32 %v2236_v19, %v2560_v23  ;;  %v5103_v34 = vpack.c.bf16 %v2690_v26, %v2689_v24  ;;  %v1745_v36 = vadd.f32 %v6686_v54, %v5864_v32  ;;  %v2257_v37 = vadd.f32 %v6686_v54, %v5992_v33  ;;  %v1736_v38 = vpop.f32.mrb[109].mxu0  ;;  %v2248_v39 = vpop.f32.mrb[109].mxu1 }
 0x1d3   : > { %v5423_v35 = vpack.c.bf16 %v2818_v27, %v2817_v25  ;;  %v5098_v40 = vpack.c.bf16 %v2688_v30, %v2687_v28  ;;  %v1737_v42 = vadd.f32 %v6686_v54, %v1736_v38  ;;  %v2249_v43 = vadd.f32 %v6686_v54, %v2248_v39  ;;  %v5865_v44 = vpop.f32.mrb[110].mxu0  ;;  %v5993_v45 = vpop.f32.mrb[110].mxu1 }
 0x1d4   : > { %v5418_v41 = vpack.c.bf16 %v2816_v31, %v2815_v29  ;;  %5527 = vst [vmem:[%s6374_s13 + $0x1a8] sm:$0xff] %v5103_v34   ;;  %v2437_v46 = vmul.f32 0.2, %v1745_v36  ;;  %v2565_v47 = vmul.f32 0.2, %v2257_v37  ;;  %v1748_v48 = vadd.f32 %v6686_v54, %v5865_v44  ;;  %v1739_v50 = vpop.f32.mrb[111].mxu0 }
 0x1d5   : > { %5591 = vst [vmem:[%s6374_s13 + $0x3a8] sm:$0xff] %v5423_v35   ;;  %v2260_v49 = vadd.f32 %v6686_v54, %v5993_v45  ;;  %v2251_v51 = vpop.f32.mrb[111].mxu1  ;;  %5526 = vst [vmem:[%s6374_s13 + $0x1a0] sm:$0xff] %v5098_v40   ;;  %v2435_v52 = vmul.f32 0.2, %v1737_v42  ;;  %v1740_v55 = vadd.f32 %v6686_v54, %v1739_v50 }
 0x1d6   : > { %5590 = vst [vmem:[%s6374_s13 + $0x3a0] sm:$0xff] %v5418_v41   ;;  %v2563_v53 = vmul.f32 0.2, %v2249_v43  ;;  %v2252_v56 = vadd.f32 %v6686_v54, %v2251_v51  ;;  %v2438_v57 = vmul.f32 0.2, %v1748_v48  ;;  %v2693_v61 = vmax.f32 %v1745_v36, %v2437_v46 }
 0x1d7   : > { %v2566_v58 = vmul.f32 0.2, %v2260_v49  ;;  %v2436_v59 = vmul.f32 0.2, %v1740_v55  ;;  %v2821_v62 = vmax.f32 %v2257_v37, %v2565_v47  ;;  %v2691_v1 = vmax.f32 %v1737_v42, %v2435_v52 }
 0x1d8   : > { %v2564_v60 = vmul.f32 0.2, %v2252_v56  ;;  %v2694_v63 = vmax.f32 %v1748_v48, %v2438_v57  ;;  %v2819_v2 = vmax.f32 %v2249_v43, %v2563_v53 }
 0x1d9   : > { %v2822_v0 = vmax.f32 %v2260_v49, %v2566_v58  ;;  %v2692_v3 = vmax.f32 %v1740_v55, %v2436_v59  ;;  %v5868_v5 = vpop.f32.mrb[112].mxu0  ;;  %v5996_v6 = vpop.f32.mrb[112].mxu1 }
 0x1da   : > { %v2820_v4 = vmax.f32 %v2252_v56, %v2564_v60  ;;  %v5113_v7 = vpack.c.bf16 %v2694_v63, %v2693_v61  ;;  %v1761_v9 = vadd.f32 %v6686_v54, %v5868_v5  ;;  %v2273_v10 = vadd.f32 %v6686_v54, %v5996_v6  ;;  %v1752_v11 = vpop.f32.mrb[113].mxu0  ;;  %v2264_v12 = vpop.f32.mrb[113].mxu1 }
 0x1db   : > { %v5433_v8 = vpack.c.bf16 %v2822_v0, %v2821_v62  ;;  %v5108_v13 = vpack.c.bf16 %v2692_v3, %v2691_v1  ;;  %v1753_v15 = vadd.f32 %v6686_v54, %v1752_v11  ;;  %v2265_v16 = vadd.f32 %v6686_v54, %v2264_v12  ;;  %v5869_v17 = vpop.f32.mrb[114].mxu0  ;;  %v5997_v18 = vpop.f32.mrb[114].mxu1 }
 0x1dc   : > { %v5428_v14 = vpack.c.bf16 %v2820_v4, %v2819_v2  ;;  %5529 = vst [vmem:[%s6374_s13 + $0x1b8] sm:$0xff] %v5113_v7   ;;  %v2441_v19 = vmul.f32 0.2, %v1761_v9  ;;  %v2569_v20 = vmul.f32 0.2, %v2273_v10  ;;  %v1764_v21 = vadd.f32 %v6686_v54, %v5869_v17  ;;  %v1755_v23 = vpop.f32.mrb[115].mxu0 }
 0x1dd   : > { %5593 = vst [vmem:[%s6374_s13 + $0x3b8] sm:$0xff] %v5433_v8   ;;  %v2276_v22 = vadd.f32 %v6686_v54, %v5997_v18  ;;  %v2267_v24 = vpop.f32.mrb[115].mxu1  ;;  %5528 = vst [vmem:[%s6374_s13 + $0x1b0] sm:$0xff] %v5108_v13   ;;  %v2439_v25 = vmul.f32 0.2, %v1753_v15  ;;  %v1756_v27 = vadd.f32 %v6686_v54, %v1755_v23 }
 0x1de   : > { %5592 = vst [vmem:[%s6374_s13 + $0x3b0] sm:$0xff] %v5428_v14   ;;  %v2567_v26 = vmul.f32 0.2, %v2265_v16  ;;  %v2268_v28 = vadd.f32 %v6686_v54, %v2267_v24  ;;  %v2442_v29 = vmul.f32 0.2, %v1764_v21  ;;  %v2697_v33 = vmax.f32 %v1761_v9, %v2441_v19 }
 0x1df   : > { %v2570_v30 = vmul.f32 0.2, %v2276_v22  ;;  %v2440_v31 = vmul.f32 0.2, %v1756_v27  ;;  %v2825_v34 = vmax.f32 %v2273_v10, %v2569_v20  ;;  %v2695_v37 = vmax.f32 %v1753_v15, %v2439_v25 }
 0x1e0   : > { %v2568_v32 = vmul.f32 0.2, %v2268_v28  ;;  %v2698_v35 = vmax.f32 %v1764_v21, %v2442_v29  ;;  %v2823_v38 = vmax.f32 %v2265_v16, %v2567_v26 }
 0x1e1   : > { %v2826_v36 = vmax.f32 %v2276_v22, %v2570_v30  ;;  %v2696_v39 = vmax.f32 %v1756_v27, %v2440_v31  ;;  %v5872_v41 = vpop.f32.mrb[116].mxu0  ;;  %v6000_v42 = vpop.f32.mrb[116].mxu1 }
 0x1e2   : > { %v2824_v40 = vmax.f32 %v2268_v28, %v2568_v32  ;;  %v5123_v43 = vpack.c.bf16 %v2698_v35, %v2697_v33  ;;  %v1777_v45 = vadd.f32 %v6686_v54, %v5872_v41  ;;  %v2289_v46 = vadd.f32 %v6686_v54, %v6000_v42  ;;  %v1768_v47 = vpop.f32.mrb[117].mxu0  ;;  %v2280_v48 = vpop.f32.mrb[117].mxu1 }
 0x1e3   : > { %v5443_v44 = vpack.c.bf16 %v2826_v36, %v2825_v34  ;;  %v5118_v49 = vpack.c.bf16 %v2696_v39, %v2695_v37  ;;  %v1769_v51 = vadd.f32 %v6686_v54, %v1768_v47  ;;  %v2281_v52 = vadd.f32 %v6686_v54, %v2280_v48  ;;  %v5873_v53 = vpop.f32.mrb[118].mxu0  ;;  %v6001_v55 = vpop.f32.mrb[118].mxu1 }
 0x1e4   : > { %v5438_v50 = vpack.c.bf16 %v2824_v40, %v2823_v38  ;;  %5531 = vst [vmem:[%s6374_s13 + $0x1c8] sm:$0xff] %v5123_v43   ;;  %v2445_v56 = vmul.f32 0.2, %v1777_v45  ;;  %v2573_v57 = vmul.f32 0.2, %v2289_v46  ;;  %v1780_v58 = vadd.f32 %v6686_v54, %v5873_v53  ;;  %v1771_v60 = vpop.f32.mrb[119].mxu0 }
 0x1e5   : > { %5595 = vst [vmem:[%s6374_s13 + $0x3c8] sm:$0xff] %v5443_v44   ;;  %v2292_v59 = vadd.f32 %v6686_v54, %v6001_v55  ;;  %v2283_v61 = vpop.f32.mrb[119].mxu1  ;;  %5530 = vst [vmem:[%s6374_s13 + $0x1c0] sm:$0xff] %v5118_v49   ;;  %v2443_v62 = vmul.f32 0.2, %v1769_v51  ;;  %v1772_v0 = vadd.f32 %v6686_v54, %v1771_v60 }
 0x1e6   : > { %5594 = vst [vmem:[%s6374_s13 + $0x3c0] sm:$0xff] %v5438_v50   ;;  %v2571_v63 = vmul.f32 0.2, %v2281_v52  ;;  %v2284_v1 = vadd.f32 %v6686_v54, %v2283_v61  ;;  %v2446_v2 = vmul.f32 0.2, %v1780_v58  ;;  %v2701_v6 = vmax.f32 %v1777_v45, %v2445_v56 }
 0x1e7   : > { %v2574_v3 = vmul.f32 0.2, %v2292_v59  ;;  %v2444_v4 = vmul.f32 0.2, %v1772_v0  ;;  %v2829_v7 = vmax.f32 %v2289_v46, %v2573_v57  ;;  %v2699_v10 = vmax.f32 %v1769_v51, %v2443_v62 }
 0x1e8   : > { %v2572_v5 = vmul.f32 0.2, %v2284_v1  ;;  %v2702_v8 = vmax.f32 %v1780_v58, %v2446_v2  ;;  %v2827_v11 = vmax.f32 %v2281_v52, %v2571_v63 }
 0x1e9   : > { %v2830_v9 = vmax.f32 %v2292_v59, %v2574_v3  ;;  %v2700_v12 = vmax.f32 %v1772_v0, %v2444_v4  ;;  %v5876_v14 = vpop.f32.mrb[120].mxu0  ;;  %v6004_v15 = vpop.f32.mrb[120].mxu1 }
 0x1ea   : > { %v2828_v13 = vmax.f32 %v2284_v1, %v2572_v5  ;;  %v5133_v16 = vpack.c.bf16 %v2702_v8, %v2701_v6  ;;  %v1793_v18 = vadd.f32 %v6686_v54, %v5876_v14  ;;  %v2305_v19 = vadd.f32 %v6686_v54, %v6004_v15  ;;  %v1784_v20 = vpop.f32.mrb[121].mxu0  ;;  %v2296_v21 = vpop.f32.mrb[121].mxu1 }
 0x1eb   : > { %v5453_v17 = vpack.c.bf16 %v2830_v9, %v2829_v7  ;;  %v5128_v22 = vpack.c.bf16 %v2700_v12, %v2699_v10  ;;  %v1785_v24 = vadd.f32 %v6686_v54, %v1784_v20  ;;  %v2297_v25 = vadd.f32 %v6686_v54, %v2296_v21  ;;  %v5877_v26 = vpop.f32.mrb[122].mxu0  ;;  %v6005_v27 = vpop.f32.mrb[122].mxu1 }
 0x1ec   : > { %v5448_v23 = vpack.c.bf16 %v2828_v13, %v2827_v11  ;;  %5533 = vst [vmem:[%s6374_s13 + $0x1d8] sm:$0xff] %v5133_v16   ;;  %v2449_v28 = vmul.f32 0.2, %v1793_v18  ;;  %v2577_v29 = vmul.f32 0.2, %v2305_v19  ;;  %v1796_v30 = vadd.f32 %v6686_v54, %v5877_v26  ;;  %v1787_v32 = vpop.f32.mrb[123].mxu0 }
 0x1ed   : > { %5597 = vst [vmem:[%s6374_s13 + $0x3d8] sm:$0xff] %v5453_v17   ;;  %v2308_v31 = vadd.f32 %v6686_v54, %v6005_v27  ;;  %v2299_v33 = vpop.f32.mrb[123].mxu1  ;;  %5532 = vst [vmem:[%s6374_s13 + $0x1d0] sm:$0xff] %v5128_v22   ;;  %v2447_v34 = vmul.f32 0.2, %v1785_v24  ;;  %v1788_v36 = vadd.f32 %v6686_v54, %v1787_v32 }
 0x1ee   : > { %5596 = vst [vmem:[%s6374_s13 + $0x3d0] sm:$0xff] %v5448_v23   ;;  %v2575_v35 = vmul.f32 0.2, %v2297_v25  ;;  %v2300_v37 = vadd.f32 %v6686_v54, %v2299_v33  ;;  %v2450_v38 = vmul.f32 0.2, %v1796_v30  ;;  %v2705_v42 = vmax.f32 %v1793_v18, %v2449_v28 }
 0x1ef   : > { %v2578_v39 = vmul.f32 0.2, %v2308_v31  ;;  %v2448_v40 = vmul.f32 0.2, %v1788_v36  ;;  %v2833_v43 = vmax.f32 %v2305_v19, %v2577_v29  ;;  %v2703_v46 = vmax.f32 %v1785_v24, %v2447_v34 }
 0x1f0   : > { %v2576_v41 = vmul.f32 0.2, %v2300_v37  ;;  %v2706_v44 = vmax.f32 %v1796_v30, %v2450_v38  ;;  %v2831_v47 = vmax.f32 %v2297_v25, %v2575_v35 }
 0x1f1   : > { %v2834_v45 = vmax.f32 %v2308_v31, %v2578_v39  ;;  %v2704_v48 = vmax.f32 %v1788_v36, %v2448_v40  ;;  %v5880_v50 = vpop.f32.mrb[124].mxu0  ;;  %v6008_v51 = vpop.f32.mrb[124].mxu1 }
 0x1f2   : > { %v2832_v49 = vmax.f32 %v2300_v37, %v2576_v41  ;;  %v5143_v52 = vpack.c.bf16 %v2706_v44, %v2705_v42  ;;  %v1809_v55 = vadd.f32 %v6686_v54, %v5880_v50  ;;  %v2321_v56 = vadd.f32 %v6686_v54, %v6008_v51  ;;  %v1800_v57 = vpop.f32.mrb[125].mxu0  ;;  %v2312_v58 = vpop.f32.mrb[125].mxu1 }
 0x1f3   : > { %v5463_v53 = vpack.c.bf16 %v2834_v45, %v2833_v43  ;;  %v5138_v59 = vpack.c.bf16 %v2704_v48, %v2703_v46  ;;  %v1801_v61 = vadd.f32 %v6686_v54, %v1800_v57  ;;  %v2313_v62 = vadd.f32 %v6686_v54, %v2312_v58  ;;  %v5881_v63 = vpop.f32.mrb[126].mxu0  ;;  %v6009_v0 = vpop.f32.mrb[126].mxu1 }
 0x1f4   : > { %v5458_v60 = vpack.c.bf16 %v2832_v49, %v2831_v47  ;;  %5535 = vst [vmem:[%s6374_s13 + $0x1e8] sm:$0xff] %v5143_v52   ;;  %v2453_v1 = vmul.f32 0.2, %v1809_v55  ;;  %v2581_v2 = vmul.f32 0.2, %v2321_v56  ;;  %v1812_v3 = vadd.f32 %v6686_v54, %v5881_v63  ;;  %v1803_v5 = vpop.f32.mrb[127].mxu0 }
 0x1f5   : > { %5599 = vst [vmem:[%s6374_s13 + $0x3e8] sm:$0xff] %v5463_v53   ;;  %v2324_v4 = vadd.f32 %v6686_v54, %v6009_v0  ;;  %v2315_v6 = vpop.f32.mrb[127].mxu1  ;;  %5534 = vst [vmem:[%s6374_s13 + $0x1e0] sm:$0xff] %v5138_v59   ;;  %v2451_v7 = vmul.f32 0.2, %v1801_v61  ;;  %v1804_v9 = vadd.f32 %v6686_v54, %v1803_v5 }
 0x1f6   : > { %5598 = vst [vmem:[%s6374_s13 + $0x3e0] sm:$0xff] %v5458_v60   ;;  %v2579_v8 = vmul.f32 0.2, %v2313_v62  ;;  %v2316_v10 = vadd.f32 %v6686_v54, %v2315_v6  ;;  %v2454_v11 = vmul.f32 0.2, %v1812_v3  ;;  %v2709_v15 = vmax.f32 %v1809_v55, %v2453_v1 }
 0x1f7   : > { %v2582_v12 = vmul.f32 0.2, %v2324_v4  ;;  %v2452_v13 = vmul.f32 0.2, %v1804_v9  ;;  %v2837_v16 = vmax.f32 %v2321_v56, %v2581_v2  ;;  %v2707_v19 = vmax.f32 %v1801_v61, %v2451_v7 }
 0x1f8   : > { %v2580_v14 = vmul.f32 0.2, %v2316_v10  ;;  %v2710_v17 = vmax.f32 %v1812_v3, %v2454_v11  ;;  %v2835_v20 = vmax.f32 %v2313_v62, %v2579_v8 }
 0x1f9   : > { %v2838_v18 = vmax.f32 %v2324_v4, %v2582_v12  ;;  %v2708_v21 = vmax.f32 %v1804_v9, %v2452_v13 }
 0x1fa   : > { %v2836_v22 = vmax.f32 %v2316_v10, %v2580_v14  ;;  %v5153_v23 = vpack.c.bf16 %v2710_v17, %v2709_v15 }
 0x1fb   : > { %v5473_v24 = vpack.c.bf16 %v2838_v18, %v2837_v16  ;;  %v5148_v25 = vpack.c.bf16 %v2708_v21, %v2707_v19 }
 0x1fc   : > { %v5468_v54 = vpack.c.bf16 %v2836_v22, %v2835_v20  ;;  %5537 = vst [vmem:[%s6374_s13 + $0x1f8] sm:$0xff] %v5153_v23  }
 0x1fd   : > { %5601 = vst [vmem:[%s6374_s13 + $0x3f8] sm:$0xff] %v5473_v24   ;;  %5536 = vst [vmem:[%s6374_s13 + $0x1f0] sm:$0xff] %v5148_v25  }
 0x1fe   : > { %5600 = vst [vmem:[%s6374_s13 + $0x3f0] sm:$0xff] %v5468_v54  }
 0x1ff PF: > { %s13_s12 = sadd.s32 1, %s6178_s12  }
 0x200   : > { %p10_p4 = scmp.ge.s32.totalorder %s13_s12, 6  }
 0x202   :  { %12 = sbr.rel (!%p10_p4) target bundleno = 1 (0x1), region = 62 }

// kernel: _lambda_.7
= control target key start
LH: loop header
LB: loop body
LE: loop exit
PB: predicated region body
PF: predicated region fallthrough
CT: control target
= control target key end

     0   :  { %s5672_s12 = smov 0   ;;  %s6290_s0 = inlined_call_operand.vmem [shape: bf16[2048,512], index: 0, kind: input, shape index: {}]   ;;  %s6291_s1 = inlined_call_operand.vmem [shape: bf16[512,128], index: 1, kind: input, shape index: {}]   ;;  %s6292_s2 = inlined_call_operand.vmem [shape: f32[1,128], index: 2, kind: input, shape index: {}]   ;;  %s6293_s3 = inlined_call_operand.vmem [shape: bf16[2048,128], index: 3, kind: output, shape index: {}]  }
   0x1 LB: > { %s4019_s13 = sadd.s32 4294967295, %s5649_s12   ;;  %p4023_p0 = scmp.ge.s32.totalorder %s5649_s12, 1  ;;  %s5649_s12 = sphi %s5672_s12, %s13_s12  }
   0x2   : > { %p139_p1 = scmp.lt.s32.totalorder %s5649_s12, 3 }
   0x4   : > { %p140_p2 = pnand %p4023_p0, %p139_p1 }
   0x5   : > { %v5225_v0 = vld [vmem:[%s6291_s1] sm:$0xff] (!%p140_p2)   ;;  %v5651_v1 = vmov (!%p140_p2), 0   ;;  %v5227_v3 = vld [vmem:[%s6291_s1 + $0x8] sm:$0xff] (!%p140_p2)   ;;  %v5229_v5 = vld [vmem:[%s6291_s1 + $0x10] sm:$0xff] (!%p140_p2)   ;;  %s4024_s7 = sshll.u32 (!%p140_p2), %s4019_s13, 7 }
   0x6   : > { %143 = sbr.rel (%p140_p2) target bundleno = 799 (0x31f), region = 32  ;;  %1977 = vmatprep.subr.bf16.mxu1 (!%p140_p2), %v5651_v1  ;;  %2522 = vmatprep.subr.bf16.mxu0 (!%p140_p2), %v5651_v1  ;;  %v5226_v2 = vld [vmem:[%s6291_s1 + $0x80] sm:$0xff] (!%p140_p2)   ;;  %v5228_v4 = vld [vmem:[%s6291_s1 + $0x88] sm:$0xff] (!%p140_p2)   ;;  %v5230_v6 = vld [vmem:[%s6291_s1 + $0x90] sm:$0xff] (!%p140_p2)   ;;  %p165_p3 = scmp.lt.s32.totalorder (!%p140_p2), %s4024_s7, 255 }
   0x7   : > { %1978 = vmatpush1.bf16.msra.mxu1 (!%p140_p2), %v5225_v0  ;;  %2523 = vmatpush1.bf16.msra.mxu0 (!%p140_p2), %v5226_v2  ;;  %v5231_v7 = vld [vmem:[%s6291_s1 + $0x18] sm:$0xff] (!%p140_p2)   ;;  %v5233_v9 = vld [vmem:[%s6291_s1 + $0x20] sm:$0xff] (!%p140_p2)   ;;  %v5235_v11 = vld [vmem:[%s6291_s1 + $0x28] sm:$0xff] (!%p140_p2)  }
   0x8   : > { %1979 = vmatprep.subr.bf16.mxu1 (!%p140_p2), %v5651_v1  ;;  %2524 = vmatprep.subr.bf16.mxu0 (!%p140_p2), %v5651_v1  ;;  %v5232_v8 = vld [vmem:[%s6291_s1 + $0x98] sm:$0xff] (!%p140_p2)   ;;  %v5234_v10 = vld [vmem:[%s6291_s1 + $0xa0] sm:$0xff] (!%p140_p2)   ;;  %v5236_v12 = vld [vmem:[%s6291_s1 + $0xa8] sm:$0xff] (!%p140_p2)  }
   0x9   : > { %v5237_v13 = vld [vmem:[%s6291_s1 + $0x30] sm:$0xff] (!%p140_p2)   ;;  %v5239_v15 = vld [vmem:[%s6291_s1 + $0x38] sm:$0xff] (!%p140_p2)   ;;  %v5241_v17 = vld [vmem:[%s6291_s1 + $0x40] sm:$0xff] (!%p140_p2)  }
   0xa   : > { %v5238_v14 = vld [vmem:[%s6291_s1 + $0xb0] sm:$0xff] (!%p140_p2)   ;;  %v5240_v16 = vld [vmem:[%s6291_s1 + $0xb8] sm:$0xff] (!%p140_p2)   ;;  %v5242_v18 = vld [vmem:[%s6291_s1 + $0xc0] sm:$0xff] (!%p140_p2)  }
   0xb   : > { %1980 = vmatpush1.bf16.msra.mxu1 (!%p140_p2), %v5227_v3  ;;  %2525 = vmatpush1.bf16.msra.mxu0 (!%p140_p2), %v5228_v4  ;;  %v5243_v20 = vld [vmem:[%s6291_s1 + $0x48] sm:$0xff] (!%p140_p2)   ;;  %v5245_v23 = vld [vmem:[%s6291_s1 + $0x50] sm:$0xff] (!%p140_p2)   ;;  %v5247_v25 = vld [vmem:[%s6291_s1 + $0x58] sm:$0xff] (!%p140_p2)  }
   0xc   : > { %1981 = vmatprep.subr.bf16.mxu1 (!%p140_p2), %v5651_v1  ;;  %2526 = vmatprep.subr.bf16.mxu0 (!%p140_p2), %v5651_v1  ;;  %v5244_v22 = vld [vmem:[%s6291_s1 + $0xc8] sm:$0xff] (!%p140_p2)   ;;  %v5246_v24 = vld [vmem:[%s6291_s1 + $0xd0] sm:$0xff] (!%p140_p2)   ;;  %v5248_v26 = vld [vmem:[%s6291_s1 + $0xd8] sm:$0xff] (!%p140_p2)  }
   0xd   : > { %s6295_s7 = smov (!%p165_p3, %s4024_s7), 255  ;;  %v5249_v27 = vld [vmem:[%s6291_s1 + $0x60] sm:$0xff]   ;;  %v5251_v29 = vld [vmem:[%s6291_s1 + $0x68] sm:$0xff]   ;;  %v5253_v31 = vld [vmem:[%s6291_s1 + $0x70] sm:$0xff]  }
   0xe   : > { %s4448_s21 = sshll.u32 %s6295_s7, 4  ;;  %v5250_v28 = vld [vmem:[%s6291_s1 + $0xe0] sm:$0xff]   ;;  %v5252_v30 = vld [vmem:[%s6291_s1 + $0xe8] sm:$0xff]   ;;  %v5254_v32 = vld [vmem:[%s6291_s1 + $0xf0] sm:$0xff]   ;;  %s4028_s9 = sshll.u32 %s6295_s7, 2 }
   0xf   : > { %1982 = vmatpush1.bf16.msra.mxu1 %v5229_v5  ;;  %2527 = vmatpush1.bf16.msra.mxu0 %v5230_v6  ;;  %s5755_s26 = scalar_lea.vmem %s6290_s0, %s4448_s21  ;;  %v5255_v33 = vld [vmem:[%s6291_s1 + $0x78] sm:$0xff]   ;;  %s5945_s14 = scalar_lea.vmem %s6293_s3, %s4028_s9 }
  0x10   : > { %1983 = vmatprep.subr.bf16.mxu1 %v5651_v1  ;;  %2528 = vmatprep.subr.bf16.mxu0 %v5651_v1  ;;  %v5259_v19 = vld [vmem:[%s5755_s26 + $0x4] ss:$16 sps:$4 sm:$0xff]   ;;  %v5262_v21 = vld [vmem:[%s5755_s26 + $0xc] ss:$16 sps:$4 sm:$0xff]   ;;  %v5257_v35 = vld [vmem:[%s5755_s26] ss:$16 sps:$4 sm:$0xff]  }
  0x11   : > { %2009 = vmatprep.mubr.bf16.mxu1 %v5259_v19  ;;  %2554 = vmatprep.mubr.bf16.mxu0 %v5262_v21  ;;  %v5256_v34 = vld [vmem:[%s6291_s1 + $0xf8] sm:$0xff]   ;;  %v5263_v37 = vld [vmem:[%s5755_s26 + $0x24] ss:$16 sps:$4 sm:$0xff]   ;;  %v5267_v39 = vld [vmem:[%s5755_s26 + $0x20] ss:$16 sps:$4 sm:$0xff]  }
  0x12   : > { %v5260_v36 = vld [vmem:[%s5755_s26 + $0x8] ss:$16 sps:$4 sm:$0xff]   ;;  %v5265_v38 = vld [vmem:[%s5755_s26 + $0x2c] ss:$16 sps:$4 sm:$0xff]   ;;  %v5269_v41 = vld [vmem:[%s5755_s26 + $0x44] ss:$16 sps:$4 sm:$0xff]  }
  0x13   : > { %1984 = vmatpush1.bf16.msra.mxu1 %v5231_v7  ;;  %2529 = vmatpush1.bf16.msra.mxu0 %v5232_v8  ;;  %v5268_v40 = vld [vmem:[%s5755_s26 + $0x28] ss:$16 sps:$4 sm:$0xff]   ;;  %v5271_v42 = vld [vmem:[%s5755_s26 + $0x4c] ss:$16 sps:$4 sm:$0xff]   ;;  %v5273_v43 = vld [vmem:[%s5755_s26 + $0x40] ss:$16 sps:$4 sm:$0xff]  }
  0x14   : > { %1985 = vmatprep.subr.bf16.mxu1 %v5651_v1  ;;  %2530 = vmatprep.subr.bf16.mxu0 %v5651_v1  ;;  %v5274_v44 = vld [vmem:[%s5755_s26 + $0x48] ss:$16 sps:$4 sm:$0xff]   ;;  %v5275_v45 = vld [vmem:[%s5755_s26 + $0x64] ss:$16 sps:$4 sm:$0xff]   ;;  %v5277_v46 = vld [vmem:[%s5755_s26 + $0x6c] ss:$16 sps:$4 sm:$0xff]  }
  0x15   : > { %v5279_v47 = vld [vmem:[%s5755_s26 + $0x60] ss:$16 sps:$4 sm:$0xff]   ;;  %v5280_v48 = vld [vmem:[%s5755_s26 + $0x68] ss:$16 sps:$4 sm:$0xff]   ;;  %v5281_v49 = vld [vmem:[%s5755_s26 + $0x84] ss:$16 sps:$4 sm:$0xff]  }
  0x16   : > { %v5283_v50 = vld [vmem:[%s5755_s26 + $0x8c] ss:$16 sps:$4 sm:$0xff]   ;;  %v5285_v51 = vld [vmem:[%s5755_s26 + $0x80] ss:$16 sps:$4 sm:$0xff]   ;;  %v5286_v52 = vld [vmem:[%s5755_s26 + $0x88] ss:$16 sps:$4 sm:$0xff]  }
  0x17   : > { %1986 = vmatpush1.bf16.msra.mxu1 %v5233_v9  ;;  %2531 = vmatpush1.bf16.msra.mxu0 %v5234_v10  ;;  %v5287_v53 = vld [vmem:[%s5755_s26 + $0xa4] ss:$16 sps:$4 sm:$0xff]   ;;  %v5289_v54 = vld [vmem:[%s5755_s26 + $0xac] ss:$16 sps:$4 sm:$0xff]   ;;  %v5291_v55 = vld [vmem:[%s5755_s26 + $0xa0] ss:$16 sps:$4 sm:$0xff]  }
  0x18   : > { %1987 = vmatprep.subr.bf16.mxu1 %v5651_v1  ;;  %2532 = vmatprep.subr.bf16.mxu0 %v5651_v1  ;;  %v5292_v56 = vld [vmem:[%s5755_s26 + $0xa8] ss:$16 sps:$4 sm:$0xff]   ;;  %v5293_v57 = vld [vmem:[%s5755_s26 + $0xc4] ss:$16 sps:$4 sm:$0xff]   ;;  %v5295_v58 = vld [vmem:[%s5755_s26 + $0xcc] ss:$16 sps:$4 sm:$0xff]  }
  0x19   : > { %v5297_v59 = vld [vmem:[%s5755_s26 + $0xc0] ss:$16 sps:$4 sm:$0xff]   ;;  %v5298_v60 = vld [vmem:[%s5755_s26 + $0xc8] ss:$16 sps:$4 sm:$0xff]   ;;  %v5299_v61 = vld [vmem:[%s5755_s26 + $0xe4] ss:$16 sps:$4 sm:$0xff]  }
  0x1a   : > { %v5301_v62 = vld [vmem:[%s5755_s26 + $0xec] ss:$16 sps:$4 sm:$0xff]   ;;  %v5303_v63 = vld [vmem:[%s5755_s26 + $0xe0] ss:$16 sps:$4 sm:$0xff]   ;;  %v5304_v0 = vld [vmem:[%s5755_s26 + $0xe8] ss:$16 sps:$4 sm:$0xff]  }
  0x1b   : > { %1988 = vmatpush1.bf16.msra.mxu1 %v5235_v11  ;;  %2533 = vmatpush1.bf16.msra.mxu0 %v5236_v12  ;;  %v5307_v2 = vld [vmem:[%s5755_s26 + $0x10c] ss:$16 sps:$4 sm:$0xff]   ;;  %v5309_v3 = vld [vmem:[%s5755_s26 + $0x100] ss:$16 sps:$4 sm:$0xff]   ;;  %v5310_v4 = vld [vmem:[%s5755_s26 + $0x108] ss:$16 sps:$4 sm:$0xff]  }
  0x1c   : > { %1989 = vmatprep.subr.bf16.mxu1 %v5651_v1  ;;  %2534 = vmatprep.subr.bf16.mxu0 %v5651_v1  ;;  %v5311_v5 = vld [vmem:[%s5755_s26 + $0x124] ss:$16 sps:$4 sm:$0xff]   ;;  %v5313_v6 = vld [vmem:[%s5755_s26 + $0x12c] ss:$16 sps:$4 sm:$0xff]   ;;  %v5315_v7 = vld [vmem:[%s5755_s26 + $0x120] ss:$16 sps:$4 sm:$0xff]  }
  0x1d   : > { %v5316_v8 = vld [vmem:[%s5755_s26 + $0x128] ss:$16 sps:$4 sm:$0xff]   ;;  %v5317_v9 = vld [vmem:[%s5755_s26 + $0x144] ss:$16 sps:$4 sm:$0xff]   ;;  %v5319_v10 = vld [vmem:[%s5755_s26 + $0x14c] ss:$16 sps:$4 sm:$0xff]  }
  0x1e   : > { %v5321_v11 = vld [vmem:[%s5755_s26 + $0x140] ss:$16 sps:$4 sm:$0xff]   ;;  %v5322_v12 = vld [vmem:[%s5755_s26 + $0x148] ss:$16 sps:$4 sm:$0xff]   ;;  %v5335_v21 = vld [vmem:[%s5755_s26 + $0x1a4] ss:$16 sps:$4 sm:$0xff]  }
  0x1f   : > { %1990 = vmatpush1.bf16.msra.mxu1 %v5237_v13  ;;  %2535 = vmatpush1.bf16.msra.mxu0 %v5238_v14  ;;  %v5323_v13 = vld [vmem:[%s5755_s26 + $0x164] ss:$16 sps:$4 sm:$0xff]   ;;  %v5325_v14 = vld [vmem:[%s5755_s26 + $0x16c] ss:$16 sps:$4 sm:$0xff]   ;;  %v5333_v19 = vld [vmem:[%s5755_s26 + $0x180] ss:$16 sps:$4 sm:$0xff]  }
  0x20   : > { %1991 = vmatprep.subr.bf16.mxu1 %v5651_v1  ;;  %2536 = vmatprep.subr.bf16.mxu0 %v5651_v1 }
  0x23   : > { %1992 = vmatpush1.bf16.msra.mxu1 %v5239_v15  ;;  %2537 = vmatpush1.bf16.msra.mxu0 %v5240_v16  ;;  %v5327_v15 = vld [vmem:[%s5755_s26 + $0x160] ss:$16 sps:$4 sm:$0xff]   ;;  %v5328_v16 = vld [vmem:[%s5755_s26 + $0x168] ss:$16 sps:$4 sm:$0xff]  }
  0x24   : > { %1993 = vmatprep.subr.bf16.mxu1 %v5651_v1  ;;  %2538 = vmatprep.subr.bf16.mxu0 %v5651_v1 }
  0x27   : > { %1994 = vmatpush1.bf16.msra.mxu1 %v5241_v17  ;;  %2539 = vmatpush1.bf16.msra.mxu0 %v5242_v18  ;;  %v5329_v17 = vld [vmem:[%s5755_s26 + $0x184] ss:$16 sps:$4 sm:$0xff]   ;;  %v5331_v18 = vld [vmem:[%s5755_s26 + $0x18c] ss:$16 sps:$4 sm:$0xff]  }
  0x28   : > { %1995 = vmatprep.subr.bf16.mxu1 %v5651_v1  ;;  %2540 = vmatprep.subr.bf16.mxu0 %v5651_v1 }
  0x2b   : > { %1996 = vmatpush1.bf16.msra.mxu1 %v5243_v20  ;;  %2541 = vmatpush1.bf16.msra.mxu0 %v5244_v22  ;;  %v5334_v20 = vld [vmem:[%s5755_s26 + $0x188] ss:$16 sps:$4 sm:$0xff]   ;;  %v5337_v22 = vld [vmem:[%s5755_s26 + $0x1ac] ss:$16 sps:$4 sm:$0xff]  }
  0x2c   : > { %1997 = vmatprep.subr.bf16.mxu1 %v5651_v1  ;;  %2542 = vmatprep.subr.bf16.mxu0 %v5651_v1 }
  0x2f   : > { %1998 = vmatpush1.bf16.msra.mxu1 %v5245_v23  ;;  %2543 = vmatpush1.bf16.msra.mxu0 %v5246_v24  ;;  %v5339_v23 = vld [vmem:[%s5755_s26 + $0x1a0] ss:$16 sps:$4 sm:$0xff]   ;;  %v5340_v24 = vld [vmem:[%s5755_s26 + $0x1a8] ss:$16 sps:$4 sm:$0xff]  }
  0x30   : > { %1999 = vmatprep.subr.bf16.mxu1 %v5651_v1  ;;  %2544 = vmatprep.subr.bf16.mxu0 %v5651_v1 }
  0x33   : > { %2000 = vmatpush1.bf16.msra.mxu1 %v5247_v25  ;;  %2545 = vmatpush1.bf16.msra.mxu0 %v5248_v26  ;;  %v5341_v25 = vld [vmem:[%s5755_s26 + $0x1c4] ss:$16 sps:$4 sm:$0xff]   ;;  %v5343_v26 = vld [vmem:[%s5755_s26 + $0x1cc] ss:$16 sps:$4 sm:$0xff]  }
  0x34   : > { %2001 = vmatprep.subr.bf16.mxu1 %v5651_v1  ;;  %2546 = vmatprep.subr.bf16.mxu0 %v5651_v1 }
  0x37   : > { %2002 = vmatpush1.bf16.msra.mxu1 %v5249_v27  ;;  %2547 = vmatpush1.bf16.msra.mxu0 %v5250_v28  ;;  %v5345_v27 = vld [vmem:[%s5755_s26 + $0x1c0] ss:$16 sps:$4 sm:$0xff]   ;;  %v5346_v28 = vld [vmem:[%s5755_s26 + $0x1c8] ss:$16 sps:$4 sm:$0xff]  }
  0x38   : > { %2003 = vmatprep.subr.bf16.mxu1 %v5651_v1  ;;  %2548 = vmatprep.subr.bf16.mxu0 %v5651_v1 }
  0x3b   : > { %2004 = vmatpush1.bf16.msra.mxu1 %v5251_v29  ;;  %2549 = vmatpush1.bf16.msra.mxu0 %v5252_v30  ;;  %v5347_v29 = vld [vmem:[%s5755_s26 + $0x1e4] ss:$16 sps:$4 sm:$0xff]   ;;  %v5349_v30 = vld [vmem:[%s5755_s26 + $0x1ec] ss:$16 sps:$4 sm:$0xff]  }
  0x3c   : > { %2005 = vmatprep.subr.bf16.mxu1 %v5651_v1  ;;  %2550 = vmatprep.subr.bf16.mxu0 %v5651_v1 }
  0x3f   : > { %2006 = vmatpush1.bf16.msra.mxu1 %v5253_v31  ;;  %2551 = vmatpush1.bf16.msra.mxu0 %v5254_v32  ;;  %v5351_v31 = vld [vmem:[%s5755_s26 + $0x1e0] ss:$16 sps:$4 sm:$0xff]   ;;  %v5352_v32 = vld [vmem:[%s5755_s26 + $0x1e8] ss:$16 sps:$4 sm:$0xff]  }
  0x40   : > { %2007 = vmatprep.subr.bf16.mxu1 %v5651_v1  ;;  %2552 = vmatprep.subr.bf16.mxu0 %v5651_v1  ;;  %v5305_v1 = vld [vmem:[%s5755_s26 + $0x104] ss:$16 sps:$4 sm:$0xff]  }
  0x43   : > { %2008 = vmatpush1.bf16.msra.mxu1 %v5255_v33  ;;  %2553 = vmatpush1.bf16.msra.mxu0 %v5256_v34  ;;  %v5353_v33 = vld [vmem:[%s5755_s26 + $0x204] ss:$16 sps:$4 sm:$0xff]   ;;  %v5355_v34 = vld [vmem:[%s5755_s26 + $0x20c] ss:$16 sps:$4 sm:$0xff]  }
  0x46   : > { %2010 = vmatmul.mubr.bf16.vlgmr.msra.gmra.mrb[0].mxu1 %v5257_v35  ;;  %2555 = vmatmul.mubr.bf16.vlgmr.msra.gmra.mrb[0].mxu0 %v5260_v36  ;;  %v5357_v35 = vld [vmem:[%s5755_s26 + $0x200] ss:$16 sps:$4 sm:$0xff]   ;;  %v5358_v36 = vld [vmem:[%s5755_s26 + $0x208] ss:$16 sps:$4 sm:$0xff]  }
  0x47   : > { %2017 = vmatprep.mubr.bf16.mxu1 %v5263_v37  ;;  %2562 = vmatprep.mubr.bf16.mxu0 %v5265_v38  ;;  %v5359_v37 = vld [vmem:[%s5755_s26 + $0x224] ss:$16 sps:$4 sm:$0xff]   ;;  %v5361_v38 = vld [vmem:[%s5755_s26 + $0x22c] ss:$16 sps:$4 sm:$0xff]  }
  0x4e   : > { %2018 = vmatmul.mubr.bf16.gmra.mrb[4].mxu1 %v5267_v39  ;;  %2563 = vmatmul.mubr.bf16.gmra.mrb[4].mxu0 %v5268_v40  ;;  %v5363_v39 = vld [vmem:[%s5755_s26 + $0x220] ss:$16 sps:$4 sm:$0xff]   ;;  %v5364_v40 = vld [vmem:[%s5755_s26 + $0x228] ss:$16 sps:$4 sm:$0xff]  }
  0x4f   : > { %2025 = vmatprep.mubr.bf16.mxu1 %v5269_v41  ;;  %2570 = vmatprep.mubr.bf16.mxu0 %v5271_v42  ;;  %v5365_v41 = vld [vmem:[%s5755_s26 + $0x244] ss:$16 sps:$4 sm:$0xff]   ;;  %v5367_v42 = vld [vmem:[%s5755_s26 + $0x24c] ss:$16 sps:$4 sm:$0xff]  }
  0x56   : > { %2026 = vmatmul.mubr.bf16.gmra.mrb[8].mxu1 %v5273_v43  ;;  %2571 = vmatmul.mubr.bf16.gmra.mrb[8].mxu0 %v5274_v44  ;;  %v5369_v43 = vld [vmem:[%s5755_s26 + $0x240] ss:$16 sps:$4 sm:$0xff]   ;;  %v5370_v44 = vld [vmem:[%s5755_s26 + $0x248] ss:$16 sps:$4 sm:$0xff]  }
  0x57   : > { %2033 = vmatprep.mubr.bf16.mxu1 %v5275_v45  ;;  %2578 = vmatprep.mubr.bf16.mxu0 %v5277_v46  ;;  %v5371_v45 = vld [vmem:[%s5755_s26 + $0x264] ss:$16 sps:$4 sm:$0xff]   ;;  %v5373_v46 = vld [vmem:[%s5755_s26 + $0x26c] ss:$16 sps:$4 sm:$0xff]  }
  0x5e   : > { %2034 = vmatmul.mubr.bf16.gmra.mrb[12].mxu1 %v5279_v47  ;;  %2579 = vmatmul.mubr.bf16.gmra.mrb[12].mxu0 %v5280_v48  ;;  %v5375_v47 = vld [vmem:[%s5755_s26 + $0x260] ss:$16 sps:$4 sm:$0xff]   ;;  %v5376_v48 = vld [vmem:[%s5755_s26 + $0x268] ss:$16 sps:$4 sm:$0xff]  }
  0x5f   : > { %2041 = vmatprep.mubr.bf16.mxu1 %v5281_v49  ;;  %2586 = vmatprep.mubr.bf16.mxu0 %v5283_v50  ;;  %v5377_v49 = vld [vmem:[%s5755_s26 + $0x284] ss:$16 sps:$4 sm:$0xff]   ;;  %v5379_v50 = vld [vmem:[%s5755_s26 + $0x28c] ss:$16 sps:$4 sm:$0xff]  }
  0x66   : > { %2042 = vmatmul.mubr.bf16.gmra.mrb[16].mxu1 %v5285_v51  ;;  %2587 = vmatmul.mubr.bf16.gmra.mrb[16].mxu0 %v5286_v52  ;;  %v5381_v51 = vld [vmem:[%s5755_s26 + $0x280] ss:$16 sps:$4 sm:$0xff]   ;;  %v5382_v52 = vld [vmem:[%s5755_s26 + $0x288] ss:$16 sps:$4 sm:$0xff]  }
  0x67   : > { %2049 = vmatprep.mubr.bf16.mxu1 %v5287_v53  ;;  %2594 = vmatprep.mubr.bf16.mxu0 %v5289_v54  ;;  %v5383_v53 = vld [vmem:[%s5755_s26 + $0x2a4] ss:$16 sps:$4 sm:$0xff]   ;;  %v5385_v54 = vld [vmem:[%s5755_s26 + $0x2ac] ss:$16 sps:$4 sm:$0xff]  }
  0x6e   : > { %2050 = vmatmul.mubr.bf16.gmra.mrb[20].mxu1 %v5291_v55  ;;  %2595 = vmatmul.mubr.bf16.gmra.mrb[20].mxu0 %v5292_v56  ;;  %v5387_v55 = vld [vmem:[%s5755_s26 + $0x2a0] ss:$16 sps:$4 sm:$0xff]   ;;  %v5388_v56 = vld [vmem:[%s5755_s26 + $0x2a8] ss:$16 sps:$4 sm:$0xff]  }
  0x6f   : > { %2057 = vmatprep.mubr.bf16.mxu1 %v5293_v57  ;;  %2602 = vmatprep.mubr.bf16.mxu0 %v5295_v58  ;;  %v5389_v57 = vld [vmem:[%s5755_s26 + $0x2c4] ss:$16 sps:$4 sm:$0xff]   ;;  %v5391_v58 = vld [vmem:[%s5755_s26 + $0x2cc] ss:$16 sps:$4 sm:$0xff]  }
  0x76   : > { %2058 = vmatmul.mubr.bf16.gmra.mrb[24].mxu1 %v5297_v59  ;;  %2603 = vmatmul.mubr.bf16.gmra.mrb[24].mxu0 %v5298_v60  ;;  %v5393_v59 = vld [vmem:[%s5755_s26 + $0x2c0] ss:$16 sps:$4 sm:$0xff]   ;;  %v5394_v60 = vld [vmem:[%s5755_s26 + $0x2c8] ss:$16 sps:$4 sm:$0xff]  }
  0x77   : > { %2065 = vmatprep.mubr.bf16.mxu1 %v5299_v61  ;;  %2610 = vmatprep.mubr.bf16.mxu0 %v5301_v62  ;;  %v5395_v61 = vld [vmem:[%s5755_s26 + $0x2e4] ss:$16 sps:$4 sm:$0xff]   ;;  %v5397_v62 = vld [vmem:[%s5755_s26 + $0x2ec] ss:$16 sps:$4 sm:$0xff]  }
  0x7e   : > { %2066 = vmatmul.mubr.bf16.gmra.mrb[28].mxu1 %v5303_v63  ;;  %2611 = vmatmul.mubr.bf16.gmra.mrb[28].mxu0 %v5304_v0  ;;  %v5399_v63 = vld [vmem:[%s5755_s26 + $0x2e0] ss:$16 sps:$4 sm:$0xff]   ;;  %v5400_v0 = vld [vmem:[%s5755_s26 + $0x2e8] ss:$16 sps:$4 sm:$0xff]  }
  0x7f   : > { %2073 = vmatprep.mubr.bf16.mxu1 %v5305_v1  ;;  %2618 = vmatprep.mubr.bf16.mxu0 %v5307_v2  ;;  %v5401_v1 = vld [vmem:[%s5755_s26 + $0x304] ss:$16 sps:$4 sm:$0xff]   ;;  %v5403_v2 = vld [vmem:[%s5755_s26 + $0x30c] ss:$16 sps:$4 sm:$0xff]  }
  0x86   : > { %2074 = vmatmul.mubr.bf16.gmra.mrb[32].mxu1 %v5309_v3  ;;  %2619 = vmatmul.mubr.bf16.gmra.mrb[32].mxu0 %v5310_v4  ;;  %v5405_v3 = vld [vmem:[%s5755_s26 + $0x300] ss:$16 sps:$4 sm:$0xff]   ;;  %v5406_v4 = vld [vmem:[%s5755_s26 + $0x308] ss:$16 sps:$4 sm:$0xff]  }
  0x87   : > { %2081 = vmatprep.mubr.bf16.mxu1 %v5311_v5  ;;  %2626 = vmatprep.mubr.bf16.mxu0 %v5313_v6  ;;  %v5407_v5 = vld [vmem:[%s5755_s26 + $0x324] ss:$16 sps:$4 sm:$0xff]   ;;  %v5409_v6 = vld [vmem:[%s5755_s26 + $0x32c] ss:$16 sps:$4 sm:$0xff]  }
  0x8e   : > { %2082 = vmatmul.mubr.bf16.gmra.mrb[36].mxu1 %v5315_v7  ;;  %2627 = vmatmul.mubr.bf16.gmra.mrb[36].mxu0 %v5316_v8  ;;  %v5411_v7 = vld [vmem:[%s5755_s26 + $0x320] ss:$16 sps:$4 sm:$0xff]   ;;  %v5412_v8 = vld [vmem:[%s5755_s26 + $0x328] ss:$16 sps:$4 sm:$0xff]  }
  0x8f   : > { %2089 = vmatprep.mubr.bf16.mxu1 %v5317_v9  ;;  %2634 = vmatprep.mubr.bf16.mxu0 %v5319_v10  ;;  %v5413_v9 = vld [vmem:[%s5755_s26 + $0x344] ss:$16 sps:$4 sm:$0xff]   ;;  %v5415_v10 = vld [vmem:[%s5755_s26 + $0x34c] ss:$16 sps:$4 sm:$0xff]  }
  0x96   : > { %2090 = vmatmul.mubr.bf16.gmra.mrb[40].mxu1 %v5321_v11  ;;  %2635 = vmatmul.mubr.bf16.gmra.mrb[40].mxu0 %v5322_v12  ;;  %v5417_v11 = vld [vmem:[%s5755_s26 + $0x340] ss:$16 sps:$4 sm:$0xff]   ;;  %v5418_v12 = vld [vmem:[%s5755_s26 + $0x348] ss:$16 sps:$4 sm:$0xff]  }
  0x97   : > { %2097 = vmatprep.mubr.bf16.mxu1 %v5323_v13  ;;  %2642 = vmatprep.mubr.bf16.mxu0 %v5325_v14  ;;  %v5419_v13 = vld [vmem:[%s5755_s26 + $0x364] ss:$16 sps:$4 sm:$0xff]   ;;  %v5421_v14 = vld [vmem:[%s5755_s26 + $0x36c] ss:$16 sps:$4 sm:$0xff]  }
  0x9e   : > { %2098 = vmatmul.mubr.bf16.gmra.mrb[44].mxu1 %v5327_v15  ;;  %2643 = vmatmul.mubr.bf16.gmra.mrb[44].mxu0 %v5328_v16  ;;  %v5931_v15 = vld [vmem:[%s6292_s2] ss:$0 sm:$0xff] }
  0x9f   : > { %2105 = vmatprep.mubr.bf16.mxu1 %v5329_v17  ;;  %2650 = vmatprep.mubr.bf16.mxu0 %v5331_v18 }
  0xa6   : > { %2106 = vmatmul.mubr.bf16.gmra.mrb[48].mxu1 %v5333_v19  ;;  %2651 = vmatmul.mubr.bf16.gmra.mrb[48].mxu0 %v5334_v20  ;;  %v5423_v20 = vld [vmem:[%s5755_s26 + $0x360] ss:$16 sps:$4 sm:$0xff]  }
  0xa7   : > { %2113 = vmatprep.mubr.bf16.mxu1 %v5335_v21  ;;  %2658 = vmatprep.mubr.bf16.mxu0 %v5337_v22 }
  0xae   : > { %2114 = vmatmul.mubr.bf16.gmra.mrb[52].mxu1 %v5339_v23  ;;  %2659 = vmatmul.mubr.bf16.gmra.mrb[52].mxu0 %v5340_v24  ;;  %v5424_v23 = vld [vmem:[%s5755_s26 + $0x368] ss:$16 sps:$4 sm:$0xff]   ;;  %v5425_v24 = vld [vmem:[%s5755_s26 + $0x384] ss:$16 sps:$4 sm:$0xff]  }
  0xaf   : > { %2121 = vmatprep.mubr.bf16.mxu1 %v5341_v25  ;;  %2666 = vmatprep.mubr.bf16.mxu0 %v5343_v26 }
  0xb6   : > { %2122 = vmatmul.mubr.bf16.gmra.mrb[56].mxu1 %v5345_v27  ;;  %2667 = vmatmul.mubr.bf16.gmra.mrb[56].mxu0 %v5346_v28 }
  0xb7   : > { %2129 = vmatprep.mubr.bf16.mxu1 %v5347_v29  ;;  %2674 = vmatprep.mubr.bf16.mxu0 %v5349_v30  ;;  %v5427_v29 = vld [vmem:[%s5755_s26 + $0x38c] ss:$16 sps:$4 sm:$0xff]  }
  0xbe   : > { %2130 = vmatmul.mubr.bf16.gmra.mrb[60].mxu1 %v5351_v31  ;;  %2675 = vmatmul.mubr.bf16.gmra.mrb[60].mxu0 %v5352_v32 }
  0xbf   : > { %2137 = vmatprep.mubr.bf16.mxu1 %v5353_v33  ;;  %2682 = vmatprep.mubr.bf16.mxu0 %v5355_v34 }
  0xc6   : > { %2138 = vmatmul.mubr.bf16.gmra.mrb[64].mxu1 %v5357_v35  ;;  %2683 = vmatmul.mubr.bf16.gmra.mrb[64].mxu0 %v5358_v36 }
  0xc7   : > { %2145 = vmatprep.mubr.bf16.mxu1 %v5359_v37  ;;  %2690 = vmatprep.mubr.bf16.mxu0 %v5361_v38 }
  0xce   : > { %2146 = vmatmul.mubr.bf16.gmra.mrb[68].mxu1 %v5363_v39  ;;  %2691 = vmatmul.mubr.bf16.gmra.mrb[68].mxu0 %v5364_v40  ;;  %v5429_v40 = vld [vmem:[%s5755_s26 + $0x380] ss:$16 sps:$4 sm:$0xff]  }
  0xcf   : > { %2153 = vmatprep.mubr.bf16.mxu1 %v5365_v41  ;;  %2698 = vmatprep.mubr.bf16.mxu0 %v5367_v42 }
  0xd6   : > { %2154 = vmatmul.mubr.bf16.gmra.mrb[72].mxu1 %v5369_v43  ;;  %2699 = vmatmul.mubr.bf16.gmra.mrb[72].mxu0 %v5370_v44  ;;  %v5430_v43 = vld [vmem:[%s5755_s26 + $0x388] ss:$16 sps:$4 sm:$0xff]   ;;  %v5431_v44 = vld [vmem:[%s5755_s26 + $0x3a4] ss:$16 sps:$4 sm:$0xff]  }
  0xd7   : > { %2161 = vmatprep.mubr.bf16.mxu1 %v5371_v45  ;;  %2706 = vmatprep.mubr.bf16.mxu0 %v5373_v46 }
  0xde   : > { %2162 = vmatmul.mubr.bf16.gmra.mrb[76].mxu1 %v5375_v47  ;;  %2707 = vmatmul.mubr.bf16.gmra.mrb[76].mxu0 %v5376_v48 }
  0xdf   : > { %2169 = vmatprep.mubr.bf16.mxu1 %v5377_v49  ;;  %2714 = vmatprep.mubr.bf16.mxu0 %v5379_v50  ;;  %v5433_v50 = vld [vmem:[%s5755_s26 + $0x3ac] ss:$16 sps:$4 sm:$0xff]  }
  0xe6   : > { %2170 = vmatmul.mubr.bf16.gmra.mrb[80].mxu1 %v5381_v51  ;;  %2715 = vmatmul.mubr.bf16.gmra.mrb[80].mxu0 %v5382_v52 }
  0xe7   : > { %2177 = vmatprep.mubr.bf16.mxu1 %v5383_v53  ;;  %2722 = vmatprep.mubr.bf16.mxu0 %v5385_v54 }
  0xee   : > { %2178 = vmatmul.mubr.bf16.gmra.mrb[84].mxu1 %v5387_v55  ;;  %2723 = vmatmul.mubr.bf16.gmra.mrb[84].mxu0 %v5388_v56 }
  0xef   : > { %2185 = vmatprep.mubr.bf16.mxu1 %v5389_v57  ;;  %2730 = vmatprep.mubr.bf16.mxu0 %v5391_v58 }
  0xf6   : > { %2186 = vmatmul.mubr.bf16.gmra.mrb[88].mxu1 %v5393_v59  ;;  %2731 = vmatmul.mubr.bf16.gmra.mrb[88].mxu0 %v5394_v60 }
  0xf7   : > { %2193 = vmatprep.mubr.bf16.mxu1 %v5395_v61  ;;  %2738 = vmatprep.mubr.bf16.mxu0 %v5397_v62  ;;  %v5435_v61 = vld [vmem:[%s5755_s26 + $0x3a0] ss:$16 sps:$4 sm:$0xff]  }
  0xfe   : > { %2194 = vmatmul.mubr.bf16.gmra.mrb[92].mxu1 %v5399_v63  ;;  %2739 = vmatmul.mubr.bf16.gmra.mrb[92].mxu0 %v5400_v0  ;;  %v5436_v0 = vld [vmem:[%s5755_s26 + $0x3a8] ss:$16 sps:$4 sm:$0xff]  }
  0xff   : > { %2201 = vmatprep.mubr.bf16.mxu1 %v5401_v1  ;;  %2746 = vmatprep.mubr.bf16.mxu0 %v5403_v2  ;;  %v5437_v1 = vld [vmem:[%s5755_s26 + $0x3c4] ss:$16 sps:$4 sm:$0xff]  }
 0x106   : > { %2202 = vmatmul.mubr.bf16.gmra.mrb[96].mxu1 %v5405_v3  ;;  %2747 = vmatmul.mubr.bf16.gmra.mrb[96].mxu0 %v5406_v4 }
 0x107   : > { %2209 = vmatprep.mubr.bf16.mxu1 %v5407_v5  ;;  %2754 = vmatprep.mubr.bf16.mxu0 %v5409_v6 }
 0x10e   : > { %2210 = vmatmul.mubr.bf16.gmra.mrb[100].mxu1 %v5411_v7  ;;  %2755 = vmatmul.mubr.bf16.gmra.mrb[100].mxu0 %v5412_v8  ;;  %v5439_v7 = vld [vmem:[%s5755_s26 + $0x3cc] ss:$16 sps:$4 sm:$0xff]  }
 0x10f   : > { %2217 = vmatprep.mubr.bf16.mxu1 %v5413_v9  ;;  %2762 = vmatprep.mubr.bf16.mxu0 %v5415_v10 }
 0x116   : > { %2218 = vmatmul.mubr.bf16.gmra.mrb[104].mxu1 %v5417_v11  ;;  %2763 = vmatmul.mubr.bf16.gmra.mrb[104].mxu0 %v5418_v12 }
 0x117   : > { %2225 = vmatprep.mubr.bf16.mxu1 %v5419_v13  ;;  %2770 = vmatprep.mubr.bf16.mxu0 %v5421_v14 }
 0x119   : > { %v2011_v16 = vpop.f32.mrb[0].mxu1  ;;  %v2556_v18 = vpop.f32.mrb[0].mxu0 }
 0x11a   : > { %v2012_v17 = vadd.f32 %v5931_v15, %v2011_v16  ;;  %v2013_v19 = vpop.f32.mrb[1].mxu1  ;;  %v2558_v21 = vpop.f32.mrb[1].mxu0 }
 0x11b   : > { %v2014_v22 = vpop.f32.mrb[2].mxu1  ;;  %v2559_v27 = vpop.f32.mrb[2].mxu0  ;;  %v5441_v19 = vld [vmem:[%s5755_s26 + $0x3c0] ss:$16 sps:$4 sm:$0xff]  }
 0x11c   : > { %v2557_v25 = vadd.f32 %v2556_v18, %v2012_v17  ;;  %v2015_v26 = vadd.f32 %v5931_v15, %v2014_v22  ;;  %v2016_v28 = vpop.f32.mrb[3].mxu1  ;;  %v2561_v30 = vpop.f32.mrb[3].mxu0  ;;  %v5442_v22 = vld [vmem:[%s5755_s26 + $0x3c8] ss:$16 sps:$4 sm:$0xff]  }
 0x11e   : > { %v3067_v31 = vmul.f32 0.2, %v2557_v25  ;;  %v2560_v32 = vadd.f32 %v2559_v27, %v2015_v26  ;;  %2226 = vmatmul.mubr.bf16.gmra.mrb[108].mxu1 %v5423_v20  ;;  %2771 = vmatmul.mubr.bf16.gmra.mrb[108].mxu0 %v5424_v23  ;;  %v5443_v23 = vld [vmem:[%s5755_s26 + $0x3e4] ss:$16 sps:$4 sm:$0xff]  }
 0x11f   : > { %2233 = vmatprep.mubr.bf16.mxu1 %v5425_v24  ;;  %2778 = vmatprep.mubr.bf16.mxu0 %v5427_v29  ;;  %v5445_v29 = vld [vmem:[%s5755_s26 + $0x3ec] ss:$16 sps:$4 sm:$0xff]  }
 0x120   : > { %v3068_v33 = vmul.f32 0.2, %v2560_v32  ;;  %v3195_v35 = vmax.f32 %v2557_v25, %v3067_v31 }
 0x121   : > { %v2019_v34 = vpop.f32.mrb[4].mxu1  ;;  %v2564_v38 = vpop.f32.mrb[4].mxu0 }
 0x122   : > { %v3196_v36 = vmax.f32 %v2560_v32, %v3068_v33  ;;  %v2020_v37 = vadd.f32 %v5931_v15, %v2019_v34  ;;  %v2021_v39 = vpop.f32.mrb[5].mxu1  ;;  %v2566_v41 = vpop.f32.mrb[5].mxu0 }
 0x123   : > { %v2022_v42 = vpop.f32.mrb[6].mxu1  ;;  %v2567_v48 = vpop.f32.mrb[6].mxu0 }
 0x124   : > { %v4580_v45 = vpack.c.bf16 %v3196_v36, %v3195_v35  ;;  %v2565_v46 = vadd.f32 %v2564_v38, %v2020_v37  ;;  %v2023_v47 = vadd.f32 %v5931_v15, %v2022_v42  ;;  %v2024_v49 = vpop.f32.mrb[7].mxu1  ;;  %v2569_v51 = vpop.f32.mrb[7].mxu0 }
 0x126   : > { %4581 = vst [vmem:[%s5945_s14] sm:$0xff] %v4580_v45   ;;  %v3069_v52 = vmul.f32 0.2, %v2565_v46  ;;  %v2568_v53 = vadd.f32 %v2567_v48, %v2023_v47  ;;  %2234 = vmatmul.mubr.bf16.gmra.mrb[112].mxu1 %v5429_v40  ;;  %2779 = vmatmul.mubr.bf16.gmra.mrb[112].mxu0 %v5430_v43  ;;  %v5447_v40 = vld [vmem:[%s5755_s26 + $0x3e0] ss:$16 sps:$4 sm:$0xff]   ;;  %v5448_v43 = vld [vmem:[%s5755_s26 + $0x3e8] ss:$16 sps:$4 sm:$0xff]  }
 0x127   : > { %2241 = vmatprep.mubr.bf16.mxu1 %v5431_v44  ;;  %2786 = vmatprep.mubr.bf16.mxu0 %v5433_v50  ;;  %v5449_v44 = vld [vmem:[%s5755_s26 + $0x404] ss:$16 sps:$4 sm:$0xff]   ;;  %v5451_v50 = vld [vmem:[%s5755_s26 + $0x40c] ss:$16 sps:$4 sm:$0xff]  }
 0x128   : > { %v3070_v54 = vmul.f32 0.2, %v2568_v53  ;;  %v3197_v56 = vmax.f32 %v2565_v46, %v3069_v52 }
 0x129   : > { %v2027_v55 = vpop.f32.mrb[8].mxu1  ;;  %v2572_v59 = vpop.f32.mrb[8].mxu0 }
 0x12a   : > { %v3198_v57 = vmax.f32 %v2568_v53, %v3070_v54  ;;  %v2028_v58 = vadd.f32 %v5931_v15, %v2027_v55  ;;  %v2029_v60 = vpop.f32.mrb[9].mxu1  ;;  %v2574_v62 = vpop.f32.mrb[9].mxu0 }
 0x12b   : > { %v2030_v63 = vpop.f32.mrb[10].mxu1  ;;  %v2575_v5 = vpop.f32.mrb[10].mxu0 }
 0x12c   : > { %v4585_v2 = vpack.c.bf16 %v3198_v57, %v3197_v56  ;;  %v2573_v3 = vadd.f32 %v2572_v59, %v2028_v58  ;;  %v2031_v4 = vadd.f32 %v5931_v15, %v2030_v63  ;;  %v2032_v6 = vpop.f32.mrb[11].mxu1  ;;  %v2577_v8 = vpop.f32.mrb[11].mxu0 }
 0x12e   : > { %4897 = vst [vmem:[%s5945_s14 + $0x8] sm:$0xff] %v4585_v2   ;;  %v3071_v9 = vmul.f32 0.2, %v2573_v3  ;;  %v2576_v10 = vadd.f32 %v2575_v5, %v2031_v4  ;;  %2242 = vmatmul.mubr.bf16.gmra.mrb[116].mxu1 %v5435_v61  ;;  %2787 = vmatmul.mubr.bf16.gmra.mrb[116].mxu0 %v5436_v0  ;;  %v5453_v61 = vld [vmem:[%s5755_s26 + $0x400] ss:$16 sps:$4 sm:$0xff]  }
 0x12f   : > { %2249 = vmatprep.mubr.bf16.mxu1 %v5437_v1  ;;  %2794 = vmatprep.mubr.bf16.mxu0 %v5439_v7  ;;  %v5454_v0 = vld [vmem:[%s5755_s26 + $0x408] ss:$16 sps:$4 sm:$0xff]   ;;  %v5455_v1 = vld [vmem:[%s5755_s26 + $0x424] ss:$16 sps:$4 sm:$0xff]   ;;  %v5457_v7 = vld [vmem:[%s5755_s26 + $0x42c] ss:$16 sps:$4 sm:$0xff]  }
 0x130   : > { %v3072_v11 = vmul.f32 0.2, %v2576_v10  ;;  %v3199_v13 = vmax.f32 %v2573_v3, %v3071_v9 }
 0x131   : > { %v2035_v12 = vpop.f32.mrb[12].mxu1  ;;  %v2580_v17 = vpop.f32.mrb[12].mxu0 }
 0x132   : > { %v3200_v14 = vmax.f32 %v2576_v10, %v3072_v11  ;;  %v2036_v16 = vadd.f32 %v5931_v15, %v2035_v12  ;;  %v2037_v18 = vpop.f32.mrb[13].mxu1  ;;  %v2582_v20 = vpop.f32.mrb[13].mxu0 }
 0x133   : > { %v2038_v21 = vpop.f32.mrb[14].mxu1  ;;  %v2583_v27 = vpop.f32.mrb[14].mxu0 }
 0x134   : > { %v4590_v24 = vpack.c.bf16 %v3200_v14, %v3199_v13  ;;  %v2581_v25 = vadd.f32 %v2580_v17, %v2036_v16  ;;  %v2039_v26 = vadd.f32 %v5931_v15, %v2038_v21  ;;  %v2040_v28 = vpop.f32.mrb[15].mxu1  ;;  %v2585_v30 = vpop.f32.mrb[15].mxu0 }
 0x136   : > { %4898 = vst [vmem:[%s5945_s14 + $0x10] sm:$0xff] %v4590_v24   ;;  %v3073_v31 = vmul.f32 0.2, %v2581_v25  ;;  %v2584_v32 = vadd.f32 %v2583_v27, %v2039_v26  ;;  %2250 = vmatmul.mubr.bf16.gmra.mrb[120].mxu1 %v5441_v19  ;;  %2795 = vmatmul.mubr.bf16.gmra.mrb[120].mxu0 %v5442_v22  ;;  %v5459_v19 = vld [vmem:[%s5755_s26 + $0x420] ss:$16 sps:$4 sm:$0xff]  }
 0x137   : > { %2257 = vmatprep.mubr.bf16.mxu1 %v5443_v23  ;;  %2802 = vmatprep.mubr.bf16.mxu0 %v5445_v29  ;;  %v5460_v22 = vld [vmem:[%s5755_s26 + $0x428] ss:$16 sps:$4 sm:$0xff]   ;;  %v5461_v23 = vld [vmem:[%s5755_s26 + $0x444] ss:$16 sps:$4 sm:$0xff]   ;;  %v5463_v29 = vld [vmem:[%s5755_s26 + $0x44c] ss:$16 sps:$4 sm:$0xff]  }
 0x138   : > { %v3074_v33 = vmul.f32 0.2, %v2584_v32  ;;  %v3201_v35 = vmax.f32 %v2581_v25, %v3073_v31 }
 0x139   : > { %v2043_v34 = vpop.f32.mrb[16].mxu1  ;;  %v2588_v38 = vpop.f32.mrb[16].mxu0 }
 0x13a   : > { %v3202_v36 = vmax.f32 %v2584_v32, %v3074_v33  ;;  %v2044_v37 = vadd.f32 %v5931_v15, %v2043_v34  ;;  %v2045_v39 = vpop.f32.mrb[17].mxu1  ;;  %v2590_v41 = vpop.f32.mrb[17].mxu0 }
 0x13b   : > { %v2046_v42 = vpop.f32.mrb[18].mxu1  ;;  %v2591_v48 = vpop.f32.mrb[18].mxu0 }
 0x13c   : > { %v4595_v45 = vpack.c.bf16 %v3202_v36, %v3201_v35  ;;  %v2589_v46 = vadd.f32 %v2588_v38, %v2044_v37  ;;  %v2047_v47 = vadd.f32 %v5931_v15, %v2046_v42  ;;  %v2048_v49 = vpop.f32.mrb[19].mxu1  ;;  %v2593_v51 = vpop.f32.mrb[19].mxu0 }
 0x13e   : > { %4899 = vst [vmem:[%s5945_s14 + $0x18] sm:$0xff] %v4595_v45   ;;  %v3075_v52 = vmul.f32 0.2, %v2589_v46  ;;  %v2592_v53 = vadd.f32 %v2591_v48, %v2047_v47  ;;  %2258 = vmatmul.mubr.bf16.gmra.mrb[124].mxu1 %v5447_v40  ;;  %2803 = vmatmul.mubr.bf16.gmra.mrb[124].mxu0 %v5448_v43  ;;  %v5465_v40 = vld [vmem:[%s5755_s26 + $0x440] ss:$16 sps:$4 sm:$0xff]  }
 0x13f   : > { %2265 = vmatprep.mubr.bf16.mxu1 %v5449_v44  ;;  %2810 = vmatprep.mubr.bf16.mxu0 %v5451_v50  ;;  %v5466_v43 = vld [vmem:[%s5755_s26 + $0x448] ss:$16 sps:$4 sm:$0xff]   ;;  %v5467_v44 = vld [vmem:[%s5755_s26 + $0x464] ss:$16 sps:$4 sm:$0xff]   ;;  %v5469_v50 = vld [vmem:[%s5755_s26 + $0x46c] ss:$16 sps:$4 sm:$0xff]  }
 0x140   : > { %v3076_v54 = vmul.f32 0.2, %v2592_v53  ;;  %v3203_v56 = vmax.f32 %v2589_v46, %v3075_v52 }
 0x141   : > { %v2051_v55 = vpop.f32.mrb[20].mxu1  ;;  %v2596_v59 = vpop.f32.mrb[20].mxu0 }
 0x142   : > { %v3204_v57 = vmax.f32 %v2592_v53, %v3076_v54  ;;  %v2052_v58 = vadd.f32 %v5931_v15, %v2051_v55  ;;  %v2053_v60 = vpop.f32.mrb[21].mxu1  ;;  %v2598_v62 = vpop.f32.mrb[21].mxu0 }
 0x143   : > { %v2054_v63 = vpop.f32.mrb[22].mxu1  ;;  %v2599_v5 = vpop.f32.mrb[22].mxu0 }
 0x144   : > { %v4600_v2 = vpack.c.bf16 %v3204_v57, %v3203_v56  ;;  %v2597_v3 = vadd.f32 %v2596_v59, %v2052_v58  ;;  %v2055_v4 = vadd.f32 %v5931_v15, %v2054_v63  ;;  %v2056_v6 = vpop.f32.mrb[23].mxu1  ;;  %v2601_v8 = vpop.f32.mrb[23].mxu0 }
 0x146   : > { %4900 = vst [vmem:[%s5945_s14 + $0x20] sm:$0xff] %v4600_v2   ;;  %v3077_v9 = vmul.f32 0.2, %v2597_v3  ;;  %v2600_v10 = vadd.f32 %v2599_v5, %v2055_v4  ;;  %2266 = vmatmul.mubr.bf16.gmra.mrb[128].mxu1 %v5453_v61  ;;  %2811 = vmatmul.mubr.bf16.gmra.mrb[128].mxu0 %v5454_v0  ;;  %v5471_v61 = vld [vmem:[%s5755_s26 + $0x460] ss:$16 sps:$4 sm:$0xff]  }
 0x147   : > { %2273 = vmatprep.mubr.bf16.mxu1 %v5455_v1  ;;  %2818 = vmatprep.mubr.bf16.mxu0 %v5457_v7  ;;  %v5472_v0 = vld [vmem:[%s5755_s26 + $0x468] ss:$16 sps:$4 sm:$0xff]   ;;  %v5473_v1 = vld [vmem:[%s5755_s26 + $0x484] ss:$16 sps:$4 sm:$0xff]   ;;  %v5475_v7 = vld [vmem:[%s5755_s26 + $0x48c] ss:$16 sps:$4 sm:$0xff]  }
 0x148   : > { %v3078_v11 = vmul.f32 0.2, %v2600_v10  ;;  %v3205_v13 = vmax.f32 %v2597_v3, %v3077_v9 }
 0x149   : > { %v2059_v12 = vpop.f32.mrb[24].mxu1  ;;  %v2604_v17 = vpop.f32.mrb[24].mxu0 }
 0x14a   : > { %v3206_v14 = vmax.f32 %v2600_v10, %v3078_v11  ;;  %v2060_v16 = vadd.f32 %v5931_v15, %v2059_v12  ;;  %v2061_v18 = vpop.f32.mrb[25].mxu1  ;;  %v2606_v20 = vpop.f32.mrb[25].mxu0 }
 0x14b   : > { %v2062_v21 = vpop.f32.mrb[26].mxu1  ;;  %v2607_v27 = vpop.f32.mrb[26].mxu0 }
 0x14c   : > { %v4605_v24 = vpack.c.bf16 %v3206_v14, %v3205_v13  ;;  %v2605_v25 = vadd.f32 %v2604_v17, %v2060_v16  ;;  %v2063_v26 = vadd.f32 %v5931_v15, %v2062_v21  ;;  %v2064_v28 = vpop.f32.mrb[27].mxu1  ;;  %v2609_v30 = vpop.f32.mrb[27].mxu0 }
 0x14e   : > { %4901 = vst [vmem:[%s5945_s14 + $0x28] sm:$0xff] %v4605_v24   ;;  %v3079_v31 = vmul.f32 0.2, %v2605_v25  ;;  %v2608_v32 = vadd.f32 %v2607_v27, %v2063_v26  ;;  %2274 = vmatmul.mubr.bf16.gmra.mrb[132].mxu1 %v5459_v19  ;;  %2819 = vmatmul.mubr.bf16.gmra.mrb[132].mxu0 %v5460_v22  ;;  %v5477_v19 = vld [vmem:[%s5755_s26 + $0x480] ss:$16 sps:$4 sm:$0xff]  }
 0x14f   : > { %2281 = vmatprep.mubr.bf16.mxu1 %v5461_v23  ;;  %2826 = vmatprep.mubr.bf16.mxu0 %v5463_v29  ;;  %v5478_v22 = vld [vmem:[%s5755_s26 + $0x488] ss:$16 sps:$4 sm:$0xff]   ;;  %v5479_v23 = vld [vmem:[%s5755_s26 + $0x4a4] ss:$16 sps:$4 sm:$0xff]   ;;  %v5481_v29 = vld [vmem:[%s5755_s26 + $0x4ac] ss:$16 sps:$4 sm:$0xff]  }
 0x150   : > { %v3080_v33 = vmul.f32 0.2, %v2608_v32  ;;  %v3207_v35 = vmax.f32 %v2605_v25, %v3079_v31 }
 0x151   : > { %v2067_v34 = vpop.f32.mrb[28].mxu1  ;;  %v2612_v38 = vpop.f32.mrb[28].mxu0 }
 0x152   : > { %v3208_v36 = vmax.f32 %v2608_v32, %v3080_v33  ;;  %v2068_v37 = vadd.f32 %v5931_v15, %v2067_v34  ;;  %v2069_v39 = vpop.f32.mrb[29].mxu1  ;;  %v2614_v41 = vpop.f32.mrb[29].mxu0 }
 0x153   : > { %v2070_v42 = vpop.f32.mrb[30].mxu1  ;;  %v2615_v48 = vpop.f32.mrb[30].mxu0 }
 0x154   : > { %v4610_v45 = vpack.c.bf16 %v3208_v36, %v3207_v35  ;;  %v2613_v46 = vadd.f32 %v2612_v38, %v2068_v37  ;;  %v2071_v47 = vadd.f32 %v5931_v15, %v2070_v42  ;;  %v2072_v49 = vpop.f32.mrb[31].mxu1  ;;  %v2617_v51 = vpop.f32.mrb[31].mxu0 }
 0x156   : > { %4902 = vst [vmem:[%s5945_s14 + $0x30] sm:$0xff] %v4610_v45   ;;  %v3081_v52 = vmul.f32 0.2, %v2613_v46  ;;  %v2616_v53 = vadd.f32 %v2615_v48, %v2071_v47  ;;  %2282 = vmatmul.mubr.bf16.gmra.mrb[136].mxu1 %v5465_v40  ;;  %2827 = vmatmul.mubr.bf16.gmra.mrb[136].mxu0 %v5466_v43  ;;  %v5483_v40 = vld [vmem:[%s5755_s26 + $0x4a0] ss:$16 sps:$4 sm:$0xff]  }
 0x157   : > { %2289 = vmatprep.mubr.bf16.mxu1 %v5467_v44  ;;  %2834 = vmatprep.mubr.bf16.mxu0 %v5469_v50  ;;  %v5484_v43 = vld [vmem:[%s5755_s26 + $0x4a8] ss:$16 sps:$4 sm:$0xff]   ;;  %v5485_v44 = vld [vmem:[%s5755_s26 + $0x4c4] ss:$16 sps:$4 sm:$0xff]   ;;  %v5487_v50 = vld [vmem:[%s5755_s26 + $0x4cc] ss:$16 sps:$4 sm:$0xff]  }
 0x158   : > { %v3082_v54 = vmul.f32 0.2, %v2616_v53  ;;  %v3209_v56 = vmax.f32 %v2613_v46, %v3081_v52 }
 0x159   : > { %v2075_v55 = vpop.f32.mrb[32].mxu1  ;;  %v2620_v59 = vpop.f32.mrb[32].mxu0 }
 0x15a   : > { %v3210_v57 = vmax.f32 %v2616_v53, %v3082_v54  ;;  %v2076_v58 = vadd.f32 %v5931_v15, %v2075_v55  ;;  %v2077_v60 = vpop.f32.mrb[33].mxu1  ;;  %v2622_v62 = vpop.f32.mrb[33].mxu0 }
 0x15b   : > { %v2078_v63 = vpop.f32.mrb[34].mxu1  ;;  %v2623_v5 = vpop.f32.mrb[34].mxu0 }
 0x15c   : > { %v4615_v2 = vpack.c.bf16 %v3210_v57, %v3209_v56  ;;  %v2621_v3 = vadd.f32 %v2620_v59, %v2076_v58  ;;  %v2079_v4 = vadd.f32 %v5931_v15, %v2078_v63  ;;  %v2080_v6 = vpop.f32.mrb[35].mxu1  ;;  %v2625_v8 = vpop.f32.mrb[35].mxu0 }
 0x15e   : > { %4903 = vst [vmem:[%s5945_s14 + $0x38] sm:$0xff] %v4615_v2   ;;  %v3083_v9 = vmul.f32 0.2, %v2621_v3  ;;  %v2624_v10 = vadd.f32 %v2623_v5, %v2079_v4  ;;  %2290 = vmatmul.mubr.bf16.gmra.mrb[140].mxu1 %v5471_v61  ;;  %2835 = vmatmul.mubr.bf16.gmra.mrb[140].mxu0 %v5472_v0  ;;  %v5489_v61 = vld [vmem:[%s5755_s26 + $0x4c0] ss:$16 sps:$4 sm:$0xff]  }
 0x15f   : > { %2297 = vmatprep.mubr.bf16.mxu1 %v5473_v1  ;;  %2842 = vmatprep.mubr.bf16.mxu0 %v5475_v7  ;;  %v5490_v0 = vld [vmem:[%s5755_s26 + $0x4c8] ss:$16 sps:$4 sm:$0xff]   ;;  %v5491_v1 = vld [vmem:[%s5755_s26 + $0x4e4] ss:$16 sps:$4 sm:$0xff]   ;;  %v5493_v7 = vld [vmem:[%s5755_s26 + $0x4ec] ss:$16 sps:$4 sm:$0xff]  }
 0x160   : > { %v3084_v11 = vmul.f32 0.2, %v2624_v10  ;;  %v3211_v13 = vmax.f32 %v2621_v3, %v3083_v9 }
 0x161   : > { %v2083_v12 = vpop.f32.mrb[36].mxu1  ;;  %v2628_v17 = vpop.f32.mrb[36].mxu0 }
 0x162   : > { %v3212_v14 = vmax.f32 %v2624_v10, %v3084_v11  ;;  %v2084_v16 = vadd.f32 %v5931_v15, %v2083_v12  ;;  %v2085_v18 = vpop.f32.mrb[37].mxu1  ;;  %v2630_v20 = vpop.f32.mrb[37].mxu0 }
 0x163   : > { %v2086_v21 = vpop.f32.mrb[38].mxu1  ;;  %v2631_v27 = vpop.f32.mrb[38].mxu0 }
 0x164   : > { %v4620_v24 = vpack.c.bf16 %v3212_v14, %v3211_v13  ;;  %v2629_v25 = vadd.f32 %v2628_v17, %v2084_v16  ;;  %v2087_v26 = vadd.f32 %v5931_v15, %v2086_v21  ;;  %v2088_v28 = vpop.f32.mrb[39].mxu1  ;;  %v2633_v30 = vpop.f32.mrb[39].mxu0 }
 0x166   : > { %4904 = vst [vmem:[%s5945_s14 + $0x40] sm:$0xff] %v4620_v24   ;;  %v3085_v31 = vmul.f32 0.2, %v2629_v25  ;;  %v2632_v32 = vadd.f32 %v2631_v27, %v2087_v26  ;;  %2298 = vmatmul.mubr.bf16.gmra.mrb[144].mxu1 %v5477_v19  ;;  %2843 = vmatmul.mubr.bf16.gmra.mrb[144].mxu0 %v5478_v22  ;;  %v5495_v19 = vld [vmem:[%s5755_s26 + $0x4e0] ss:$16 sps:$4 sm:$0xff]  }
 0x167   : > { %2305 = vmatprep.mubr.bf16.mxu1 %v5479_v23  ;;  %2850 = vmatprep.mubr.bf16.mxu0 %v5481_v29  ;;  %v5496_v22 = vld [vmem:[%s5755_s26 + $0x4e8] ss:$16 sps:$4 sm:$0xff]   ;;  %v5497_v23 = vld [vmem:[%s5755_s26 + $0x504] ss:$16 sps:$4 sm:$0xff]   ;;  %v5499_v29 = vld [vmem:[%s5755_s26 + $0x50c] ss:$16 sps:$4 sm:$0xff]  }
 0x168   : > { %v3086_v33 = vmul.f32 0.2, %v2632_v32  ;;  %v3213_v35 = vmax.f32 %v2629_v25, %v3085_v31 }
 0x169   : > { %v2091_v34 = vpop.f32.mrb[40].mxu1  ;;  %v2636_v38 = vpop.f32.mrb[40].mxu0 }
 0x16a   : > { %v3214_v36 = vmax.f32 %v2632_v32, %v3086_v33  ;;  %v2092_v37 = vadd.f32 %v5931_v15, %v2091_v34  ;;  %v2093_v39 = vpop.f32.mrb[41].mxu1  ;;  %v2638_v41 = vpop.f32.mrb[41].mxu0 }
 0x16b   : > { %v2094_v42 = vpop.f32.mrb[42].mxu1  ;;  %v2639_v48 = vpop.f32.mrb[42].mxu0 }
 0x16c   : > { %v4625_v45 = vpack.c.bf16 %v3214_v36, %v3213_v35  ;;  %v2637_v46 = vadd.f32 %v2636_v38, %v2092_v37  ;;  %v2095_v47 = vadd.f32 %v5931_v15, %v2094_v42  ;;  %v2096_v49 = vpop.f32.mrb[43].mxu1  ;;  %v2641_v51 = vpop.f32.mrb[43].mxu0 }
 0x16e   : > { %4905 = vst [vmem:[%s5945_s14 + $0x48] sm:$0xff] %v4625_v45   ;;  %v3087_v52 = vmul.f32 0.2, %v2637_v46  ;;  %v2640_v53 = vadd.f32 %v2639_v48, %v2095_v47  ;;  %2306 = vmatmul.mubr.bf16.gmra.mrb[148].mxu1 %v5483_v40  ;;  %2851 = vmatmul.mubr.bf16.gmra.mrb[148].mxu0 %v5484_v43  ;;  %v5501_v40 = vld [vmem:[%s5755_s26 + $0x500] ss:$16 sps:$4 sm:$0xff]  }
 0x16f   : > { %2313 = vmatprep.mubr.bf16.mxu1 %v5485_v44  ;;  %2858 = vmatprep.mubr.bf16.mxu0 %v5487_v50  ;;  %v5502_v43 = vld [vmem:[%s5755_s26 + $0x508] ss:$16 sps:$4 sm:$0xff]   ;;  %v5503_v44 = vld [vmem:[%s5755_s26 + $0x524] ss:$16 sps:$4 sm:$0xff]   ;;  %v5505_v50 = vld [vmem:[%s5755_s26 + $0x52c] ss:$16 sps:$4 sm:$0xff]  }
 0x170   : > { %v3088_v54 = vmul.f32 0.2, %v2640_v53  ;;  %v3215_v56 = vmax.f32 %v2637_v46, %v3087_v52 }
 0x171   : > { %v2099_v55 = vpop.f32.mrb[44].mxu1  ;;  %v2644_v59 = vpop.f32.mrb[44].mxu0 }
 0x172   : > { %v3216_v57 = vmax.f32 %v2640_v53, %v3088_v54  ;;  %v2100_v58 = vadd.f32 %v5931_v15, %v2099_v55  ;;  %v2101_v60 = vpop.f32.mrb[45].mxu1  ;;  %v2646_v62 = vpop.f32.mrb[45].mxu0 }
 0x173   : > { %v2102_v63 = vpop.f32.mrb[46].mxu1  ;;  %v2647_v5 = vpop.f32.mrb[46].mxu0 }
 0x174   : > { %v4630_v2 = vpack.c.bf16 %v3216_v57, %v3215_v56  ;;  %v2645_v3 = vadd.f32 %v2644_v59, %v2100_v58  ;;  %v2103_v4 = vadd.f32 %v5931_v15, %v2102_v63  ;;  %v2104_v6 = vpop.f32.mrb[47].mxu1  ;;  %v2649_v8 = vpop.f32.mrb[47].mxu0 }
 0x176   : > { %4906 = vst [vmem:[%s5945_s14 + $0x50] sm:$0xff] %v4630_v2   ;;  %v3089_v9 = vmul.f32 0.2, %v2645_v3  ;;  %v2648_v10 = vadd.f32 %v2647_v5, %v2103_v4  ;;  %2314 = vmatmul.mubr.bf16.gmra.mrb[152].mxu1 %v5489_v61  ;;  %2859 = vmatmul.mubr.bf16.gmra.mrb[152].mxu0 %v5490_v0  ;;  %v5507_v61 = vld [vmem:[%s5755_s26 + $0x520] ss:$16 sps:$4 sm:$0xff]  }
 0x177   : > { %2321 = vmatprep.mubr.bf16.mxu1 %v5491_v1  ;;  %2866 = vmatprep.mubr.bf16.mxu0 %v5493_v7  ;;  %v5508_v0 = vld [vmem:[%s5755_s26 + $0x528] ss:$16 sps:$4 sm:$0xff]   ;;  %v5509_v1 = vld [vmem:[%s5755_s26 + $0x544] ss:$16 sps:$4 sm:$0xff]   ;;  %v5511_v7 = vld [vmem:[%s5755_s26 + $0x54c] ss:$16 sps:$4 sm:$0xff]  }
 0x178   : > { %v3090_v11 = vmul.f32 0.2, %v2648_v10  ;;  %v3217_v13 = vmax.f32 %v2645_v3, %v3089_v9 }
 0x179   : > { %v2107_v12 = vpop.f32.mrb[48].mxu1  ;;  %v2652_v17 = vpop.f32.mrb[48].mxu0 }
 0x17a   : > { %v3218_v14 = vmax.f32 %v2648_v10, %v3090_v11  ;;  %v2108_v16 = vadd.f32 %v5931_v15, %v2107_v12  ;;  %v2109_v18 = vpop.f32.mrb[49].mxu1  ;;  %v2654_v20 = vpop.f32.mrb[49].mxu0 }
 0x17b   : > { %v2110_v21 = vpop.f32.mrb[50].mxu1  ;;  %v2655_v27 = vpop.f32.mrb[50].mxu0 }
 0x17c   : > { %v4635_v24 = vpack.c.bf16 %v3218_v14, %v3217_v13  ;;  %v2653_v25 = vadd.f32 %v2652_v17, %v2108_v16  ;;  %v2111_v26 = vadd.f32 %v5931_v15, %v2110_v21  ;;  %v2112_v28 = vpop.f32.mrb[51].mxu1  ;;  %v2657_v30 = vpop.f32.mrb[51].mxu0 }
 0x17e   : > { %4907 = vst [vmem:[%s5945_s14 + $0x58] sm:$0xff] %v4635_v24   ;;  %v3091_v31 = vmul.f32 0.2, %v2653_v25  ;;  %v2656_v32 = vadd.f32 %v2655_v27, %v2111_v26  ;;  %2322 = vmatmul.mubr.bf16.gmra.mrb[156].mxu1 %v5495_v19  ;;  %2867 = vmatmul.mubr.bf16.gmra.mrb[156].mxu0 %v5496_v22  ;;  %v5513_v19 = vld [vmem:[%s5755_s26 + $0x540] ss:$16 sps:$4 sm:$0xff]  }
 0x17f   : > { %2329 = vmatprep.mubr.bf16.mxu1 %v5497_v23  ;;  %2874 = vmatprep.mubr.bf16.mxu0 %v5499_v29  ;;  %v5514_v22 = vld [vmem:[%s5755_s26 + $0x548] ss:$16 sps:$4 sm:$0xff]   ;;  %v5515_v23 = vld [vmem:[%s5755_s26 + $0x564] ss:$16 sps:$4 sm:$0xff]   ;;  %v5517_v29 = vld [vmem:[%s5755_s26 + $0x56c] ss:$16 sps:$4 sm:$0xff]  }
 0x180   : > { %v3092_v33 = vmul.f32 0.2, %v2656_v32  ;;  %v3219_v35 = vmax.f32 %v2653_v25, %v3091_v31 }
 0x181   : > { %v2115_v34 = vpop.f32.mrb[52].mxu1  ;;  %v2660_v38 = vpop.f32.mrb[52].mxu0 }
 0x182   : > { %v3220_v36 = vmax.f32 %v2656_v32, %v3092_v33  ;;  %v2116_v37 = vadd.f32 %v5931_v15, %v2115_v34  ;;  %v2117_v39 = vpop.f32.mrb[53].mxu1  ;;  %v2662_v41 = vpop.f32.mrb[53].mxu0 }
 0x183   : > { %v2118_v42 = vpop.f32.mrb[54].mxu1  ;;  %v2663_v48 = vpop.f32.mrb[54].mxu0 }
 0x184   : > { %v4640_v45 = vpack.c.bf16 %v3220_v36, %v3219_v35  ;;  %v2661_v46 = vadd.f32 %v2660_v38, %v2116_v37  ;;  %v2119_v47 = vadd.f32 %v5931_v15, %v2118_v42  ;;  %v2120_v49 = vpop.f32.mrb[55].mxu1  ;;  %v2665_v51 = vpop.f32.mrb[55].mxu0 }
 0x186   : > { %4908 = vst [vmem:[%s5945_s14 + $0x60] sm:$0xff] %v4640_v45   ;;  %v3093_v52 = vmul.f32 0.2, %v2661_v46  ;;  %v2664_v53 = vadd.f32 %v2663_v48, %v2119_v47  ;;  %2330 = vmatmul.mubr.bf16.gmra.mrb[160].mxu1 %v5501_v40  ;;  %2875 = vmatmul.mubr.bf16.gmra.mrb[160].mxu0 %v5502_v43  ;;  %v5519_v40 = vld [vmem:[%s5755_s26 + $0x560] ss:$16 sps:$4 sm:$0xff]  }
 0x187   : > { %2337 = vmatprep.mubr.bf16.mxu1 %v5503_v44  ;;  %2882 = vmatprep.mubr.bf16.mxu0 %v5505_v50  ;;  %v5520_v43 = vld [vmem:[%s5755_s26 + $0x568] ss:$16 sps:$4 sm:$0xff]   ;;  %v5521_v44 = vld [vmem:[%s5755_s26 + $0x584] ss:$16 sps:$4 sm:$0xff]   ;;  %v5523_v50 = vld [vmem:[%s5755_s26 + $0x58c] ss:$16 sps:$4 sm:$0xff]  }
 0x188   : > { %v3094_v54 = vmul.f32 0.2, %v2664_v53  ;;  %v3221_v56 = vmax.f32 %v2661_v46, %v3093_v52 }
 0x189   : > { %v2123_v55 = vpop.f32.mrb[56].mxu1  ;;  %v2668_v59 = vpop.f32.mrb[56].mxu0 }
 0x18a   : > { %v3222_v57 = vmax.f32 %v2664_v53, %v3094_v54  ;;  %v2124_v58 = vadd.f32 %v5931_v15, %v2123_v55  ;;  %v2125_v60 = vpop.f32.mrb[57].mxu1  ;;  %v2670_v62 = vpop.f32.mrb[57].mxu0 }
 0x18b   : > { %v2126_v63 = vpop.f32.mrb[58].mxu1  ;;  %v2671_v5 = vpop.f32.mrb[58].mxu0 }
 0x18c   : > { %v4645_v2 = vpack.c.bf16 %v3222_v57, %v3221_v56  ;;  %v2669_v3 = vadd.f32 %v2668_v59, %v2124_v58  ;;  %v2127_v4 = vadd.f32 %v5931_v15, %v2126_v63  ;;  %v2128_v6 = vpop.f32.mrb[59].mxu1  ;;  %v2673_v8 = vpop.f32.mrb[59].mxu0 }
 0x18e   : > { %4909 = vst [vmem:[%s5945_s14 + $0x68] sm:$0xff] %v4645_v2   ;;  %v3095_v9 = vmul.f32 0.2, %v2669_v3  ;;  %v2672_v10 = vadd.f32 %v2671_v5, %v2127_v4  ;;  %2338 = vmatmul.mubr.bf16.gmra.mrb[164].mxu1 %v5507_v61  ;;  %2883 = vmatmul.mubr.bf16.gmra.mrb[164].mxu0 %v5508_v0  ;;  %v5525_v61 = vld [vmem:[%s5755_s26 + $0x580] ss:$16 sps:$4 sm:$0xff]  }
 0x18f   : > { %2345 = vmatprep.mubr.bf16.mxu1 %v5509_v1  ;;  %2890 = vmatprep.mubr.bf16.mxu0 %v5511_v7  ;;  %v5526_v0 = vld [vmem:[%s5755_s26 + $0x588] ss:$16 sps:$4 sm:$0xff]   ;;  %v5527_v1 = vld [vmem:[%s5755_s26 + $0x5a4] ss:$16 sps:$4 sm:$0xff]   ;;  %v5529_v7 = vld [vmem:[%s5755_s26 + $0x5ac] ss:$16 sps:$4 sm:$0xff]  }
 0x190   : > { %v3096_v11 = vmul.f32 0.2, %v2672_v10  ;;  %v3223_v13 = vmax.f32 %v2669_v3, %v3095_v9 }
 0x191   : > { %v2131_v12 = vpop.f32.mrb[60].mxu1  ;;  %v2676_v17 = vpop.f32.mrb[60].mxu0 }
 0x192   : > { %v3224_v14 = vmax.f32 %v2672_v10, %v3096_v11  ;;  %v2132_v16 = vadd.f32 %v5931_v15, %v2131_v12  ;;  %v2133_v18 = vpop.f32.mrb[61].mxu1  ;;  %v2678_v20 = vpop.f32.mrb[61].mxu0 }
 0x193   : > { %v2134_v21 = vpop.f32.mrb[62].mxu1  ;;  %v2679_v27 = vpop.f32.mrb[62].mxu0 }
 0x194   : > { %v4650_v24 = vpack.c.bf16 %v3224_v14, %v3223_v13  ;;  %v2677_v25 = vadd.f32 %v2676_v17, %v2132_v16  ;;  %v2135_v26 = vadd.f32 %v5931_v15, %v2134_v21  ;;  %v2136_v28 = vpop.f32.mrb[63].mxu1  ;;  %v2681_v30 = vpop.f32.mrb[63].mxu0 }
 0x196   : > { %4910 = vst [vmem:[%s5945_s14 + $0x70] sm:$0xff] %v4650_v24   ;;  %v3097_v31 = vmul.f32 0.2, %v2677_v25  ;;  %v2680_v32 = vadd.f32 %v2679_v27, %v2135_v26  ;;  %2346 = vmatmul.mubr.bf16.gmra.mrb[168].mxu1 %v5513_v19  ;;  %2891 = vmatmul.mubr.bf16.gmra.mrb[168].mxu0 %v5514_v22  ;;  %v5531_v19 = vld [vmem:[%s5755_s26 + $0x5a0] ss:$16 sps:$4 sm:$0xff]  }
 0x197   : > { %2353 = vmatprep.mubr.bf16.mxu1 %v5515_v23  ;;  %2898 = vmatprep.mubr.bf16.mxu0 %v5517_v29  ;;  %v5532_v22 = vld [vmem:[%s5755_s26 + $0x5a8] ss:$16 sps:$4 sm:$0xff]   ;;  %v5533_v23 = vld [vmem:[%s5755_s26 + $0x5c4] ss:$16 sps:$4 sm:$0xff]   ;;  %v5535_v29 = vld [vmem:[%s5755_s26 + $0x5cc] ss:$16 sps:$4 sm:$0xff]  }
 0x198   : > { %v3098_v33 = vmul.f32 0.2, %v2680_v32  ;;  %v3225_v35 = vmax.f32 %v2677_v25, %v3097_v31 }
 0x199   : > { %v2139_v34 = vpop.f32.mrb[64].mxu1  ;;  %v2684_v38 = vpop.f32.mrb[64].mxu0 }
 0x19a   : > { %v3226_v36 = vmax.f32 %v2680_v32, %v3098_v33  ;;  %v2140_v37 = vadd.f32 %v5931_v15, %v2139_v34  ;;  %v2141_v39 = vpop.f32.mrb[65].mxu1  ;;  %v2686_v41 = vpop.f32.mrb[65].mxu0 }
 0x19b   : > { %v2142_v42 = vpop.f32.mrb[66].mxu1  ;;  %v2687_v48 = vpop.f32.mrb[66].mxu0 }
 0x19c   : > { %v4655_v45 = vpack.c.bf16 %v3226_v36, %v3225_v35  ;;  %v2685_v46 = vadd.f32 %v2684_v38, %v2140_v37  ;;  %v2143_v47 = vadd.f32 %v5931_v15, %v2142_v42  ;;  %v2144_v49 = vpop.f32.mrb[67].mxu1  ;;  %v2689_v51 = vpop.f32.mrb[67].mxu0 }
 0x19e   : > { %4911 = vst [vmem:[%s5945_s14 + $0x78] sm:$0xff] %v4655_v45   ;;  %v3099_v52 = vmul.f32 0.2, %v2685_v46  ;;  %v2688_v53 = vadd.f32 %v2687_v48, %v2143_v47  ;;  %2354 = vmatmul.mubr.bf16.gmra.mrb[172].mxu1 %v5519_v40  ;;  %2899 = vmatmul.mubr.bf16.gmra.mrb[172].mxu0 %v5520_v43  ;;  %v5537_v40 = vld [vmem:[%s5755_s26 + $0x5c0] ss:$16 sps:$4 sm:$0xff]  }
 0x19f   : > { %2361 = vmatprep.mubr.bf16.mxu1 %v5521_v44  ;;  %2906 = vmatprep.mubr.bf16.mxu0 %v5523_v50  ;;  %v5538_v43 = vld [vmem:[%s5755_s26 + $0x5c8] ss:$16 sps:$4 sm:$0xff]   ;;  %v5539_v44 = vld [vmem:[%s5755_s26 + $0x5e4] ss:$16 sps:$4 sm:$0xff]   ;;  %v5541_v50 = vld [vmem:[%s5755_s26 + $0x5ec] ss:$16 sps:$4 sm:$0xff]  }
 0x1a0   : > { %v3100_v54 = vmul.f32 0.2, %v2688_v53  ;;  %v3227_v56 = vmax.f32 %v2685_v46, %v3099_v52 }
 0x1a1   : > { %v2147_v55 = vpop.f32.mrb[68].mxu1  ;;  %v2692_v59 = vpop.f32.mrb[68].mxu0 }
 0x1a2   : > { %v3228_v57 = vmax.f32 %v2688_v53, %v3100_v54  ;;  %v2148_v58 = vadd.f32 %v5931_v15, %v2147_v55  ;;  %v2149_v60 = vpop.f32.mrb[69].mxu1  ;;  %v2694_v62 = vpop.f32.mrb[69].mxu0 }
 0x1a3   : > { %v2150_v63 = vpop.f32.mrb[70].mxu1  ;;  %v2695_v5 = vpop.f32.mrb[70].mxu0 }
 0x1a4   : > { %v4660_v2 = vpack.c.bf16 %v3228_v57, %v3227_v56  ;;  %v2693_v3 = vadd.f32 %v2692_v59, %v2148_v58  ;;  %v2151_v4 = vadd.f32 %v5931_v15, %v2150_v63  ;;  %v2152_v6 = vpop.f32.mrb[71].mxu1  ;;  %v2697_v8 = vpop.f32.mrb[71].mxu0 }
 0x1a6   : > { %4912 = vst [vmem:[%s5945_s14 + $0x80] sm:$0xff] %v4660_v2   ;;  %v3101_v9 = vmul.f32 0.2, %v2693_v3  ;;  %v2696_v10 = vadd.f32 %v2695_v5, %v2151_v4  ;;  %2362 = vmatmul.mubr.bf16.gmra.mrb[176].mxu1 %v5525_v61  ;;  %2907 = vmatmul.mubr.bf16.gmra.mrb[176].mxu0 %v5526_v0  ;;  %v5543_v61 = vld [vmem:[%s5755_s26 + $0x5e0] ss:$16 sps:$4 sm:$0xff]  }
 0x1a7   : > { %2369 = vmatprep.mubr.bf16.mxu1 %v5527_v1  ;;  %2914 = vmatprep.mubr.bf16.mxu0 %v5529_v7  ;;  %v5544_v0 = vld [vmem:[%s5755_s26 + $0x5e8] ss:$16 sps:$4 sm:$0xff]   ;;  %v5545_v1 = vld [vmem:[%s5755_s26 + $0x604] ss:$16 sps:$4 sm:$0xff]   ;;  %v5547_v7 = vld [vmem:[%s5755_s26 + $0x60c] ss:$16 sps:$4 sm:$0xff]  }
 0x1a8   : > { %v3102_v11 = vmul.f32 0.2, %v2696_v10  ;;  %v3229_v13 = vmax.f32 %v2693_v3, %v3101_v9 }
 0x1a9   : > { %v2155_v12 = vpop.f32.mrb[72].mxu1  ;;  %v2700_v17 = vpop.f32.mrb[72].mxu0 }
 0x1aa   : > { %v3230_v14 = vmax.f32 %v2696_v10, %v3102_v11  ;;  %v2156_v16 = vadd.f32 %v5931_v15, %v2155_v12  ;;  %v2157_v18 = vpop.f32.mrb[73].mxu1  ;;  %v2702_v20 = vpop.f32.mrb[73].mxu0 }
 0x1ab   : > { %v2158_v21 = vpop.f32.mrb[74].mxu1  ;;  %v2703_v27 = vpop.f32.mrb[74].mxu0 }
 0x1ac   : > { %v4665_v24 = vpack.c.bf16 %v3230_v14, %v3229_v13  ;;  %v2701_v25 = vadd.f32 %v2700_v17, %v2156_v16  ;;  %v2159_v26 = vadd.f32 %v5931_v15, %v2158_v21  ;;  %v2160_v28 = vpop.f32.mrb[75].mxu1  ;;  %v2705_v30 = vpop.f32.mrb[75].mxu0 }
 0x1ae   : > { %4913 = vst [vmem:[%s5945_s14 + $0x88] sm:$0xff] %v4665_v24   ;;  %v3103_v31 = vmul.f32 0.2, %v2701_v25  ;;  %v2704_v32 = vadd.f32 %v2703_v27, %v2159_v26  ;;  %2370 = vmatmul.mubr.bf16.gmra.mrb[180].mxu1 %v5531_v19  ;;  %2915 = vmatmul.mubr.bf16.gmra.mrb[180].mxu0 %v5532_v22  ;;  %v5549_v19 = vld [vmem:[%s5755_s26 + $0x600] ss:$16 sps:$4 sm:$0xff]  }
 0x1af   : > { %2377 = vmatprep.mubr.bf16.mxu1 %v5533_v23  ;;  %2922 = vmatprep.mubr.bf16.mxu0 %v5535_v29  ;;  %v5550_v22 = vld [vmem:[%s5755_s26 + $0x608] ss:$16 sps:$4 sm:$0xff]   ;;  %v5551_v23 = vld [vmem:[%s5755_s26 + $0x624] ss:$16 sps:$4 sm:$0xff]   ;;  %v5553_v29 = vld [vmem:[%s5755_s26 + $0x62c] ss:$16 sps:$4 sm:$0xff]  }
 0x1b0   : > { %v3104_v33 = vmul.f32 0.2, %v2704_v32  ;;  %v3231_v35 = vmax.f32 %v2701_v25, %v3103_v31 }
 0x1b1   : > { %v2163_v34 = vpop.f32.mrb[76].mxu1  ;;  %v2708_v38 = vpop.f32.mrb[76].mxu0 }
 0x1b2   : > { %v3232_v36 = vmax.f32 %v2704_v32, %v3104_v33  ;;  %v2164_v37 = vadd.f32 %v5931_v15, %v2163_v34  ;;  %v2165_v39 = vpop.f32.mrb[77].mxu1  ;;  %v2710_v41 = vpop.f32.mrb[77].mxu0 }
 0x1b3   : > { %v2166_v42 = vpop.f32.mrb[78].mxu1  ;;  %v2711_v48 = vpop.f32.mrb[78].mxu0 }
 0x1b4   : > { %v4670_v45 = vpack.c.bf16 %v3232_v36, %v3231_v35  ;;  %v2709_v46 = vadd.f32 %v2708_v38, %v2164_v37  ;;  %v2167_v47 = vadd.f32 %v5931_v15, %v2166_v42  ;;  %v2168_v49 = vpop.f32.mrb[79].mxu1  ;;  %v2713_v51 = vpop.f32.mrb[79].mxu0  ;;  %v6081_v15 = vld [vmem:[%s6292_s2] ss:$0 sm:$0xff] }
 0x1b6   : > { %4914 = vst [vmem:[%s5945_s14 + $0x90] sm:$0xff] %v4670_v45   ;;  %v3105_v52 = vmul.f32 0.2, %v2709_v46  ;;  %v2712_v53 = vadd.f32 %v2711_v48, %v2167_v47  ;;  %2378 = vmatmul.mubr.bf16.gmra.mrb[184].mxu1 %v5537_v40  ;;  %2923 = vmatmul.mubr.bf16.gmra.mrb[184].mxu0 %v5538_v43  ;;  %v5555_v40 = vld [vmem:[%s5755_s26 + $0x620] ss:$16 sps:$4 sm:$0xff]  }
 0x1b7   : > { %2385 = vmatprep.mubr.bf16.mxu1 %v5539_v44  ;;  %2930 = vmatprep.mubr.bf16.mxu0 %v5541_v50  ;;  %v5556_v43 = vld [vmem:[%s5755_s26 + $0x628] ss:$16 sps:$4 sm:$0xff]   ;;  %v5557_v44 = vld [vmem:[%s5755_s26 + $0x644] ss:$16 sps:$4 sm:$0xff]   ;;  %v5559_v50 = vld [vmem:[%s5755_s26 + $0x64c] ss:$16 sps:$4 sm:$0xff]  }
 0x1b8   : > { %v3106_v54 = vmul.f32 0.2, %v2712_v53  ;;  %v3233_v56 = vmax.f32 %v2709_v46, %v3105_v52 }
 0x1b9   : > { %v2171_v55 = vpop.f32.mrb[80].mxu1  ;;  %v2716_v59 = vpop.f32.mrb[80].mxu0 }
 0x1ba   : > { %v3234_v57 = vmax.f32 %v2712_v53, %v3106_v54  ;;  %v2172_v58 = vadd.f32 %v6081_v15, %v2171_v55  ;;  %v2173_v60 = vpop.f32.mrb[81].mxu1  ;;  %v2718_v62 = vpop.f32.mrb[81].mxu0 }
 0x1bb   : > { %v2174_v63 = vpop.f32.mrb[82].mxu1  ;;  %v2719_v5 = vpop.f32.mrb[82].mxu0 }
 0x1bc   : > { %v4675_v2 = vpack.c.bf16 %v3234_v57, %v3233_v56  ;;  %v2717_v3 = vadd.f32 %v2716_v59, %v2172_v58  ;;  %v2175_v4 = vadd.f32 %v6081_v15, %v2174_v63  ;;  %v2176_v6 = vpop.f32.mrb[83].mxu1  ;;  %v2721_v8 = vpop.f32.mrb[83].mxu0 }
 0x1be   : > { %4915 = vst [vmem:[%s5945_s14 + $0x98] sm:$0xff] %v4675_v2   ;;  %v3107_v9 = vmul.f32 0.2, %v2717_v3  ;;  %v2720_v10 = vadd.f32 %v2719_v5, %v2175_v4  ;;  %2386 = vmatmul.mubr.bf16.gmra.mrb[188].mxu1 %v5543_v61  ;;  %2931 = vmatmul.mubr.bf16.gmra.mrb[188].mxu0 %v5544_v0  ;;  %v5561_v61 = vld [vmem:[%s5755_s26 + $0x640] ss:$16 sps:$4 sm:$0xff]  }
 0x1bf   : > { %2393 = vmatprep.mubr.bf16.mxu1 %v5545_v1  ;;  %2938 = vmatprep.mubr.bf16.mxu0 %v5547_v7  ;;  %v5562_v0 = vld [vmem:[%s5755_s26 + $0x648] ss:$16 sps:$4 sm:$0xff]   ;;  %v5563_v1 = vld [vmem:[%s5755_s26 + $0x664] ss:$16 sps:$4 sm:$0xff]   ;;  %v5565_v7 = vld [vmem:[%s5755_s26 + $0x66c] ss:$16 sps:$4 sm:$0xff]  }
 0x1c0   : > { %v3108_v11 = vmul.f32 0.2, %v2720_v10  ;;  %v3235_v13 = vmax.f32 %v2717_v3, %v3107_v9 }
 0x1c1   : > { %v2179_v12 = vpop.f32.mrb[84].mxu1  ;;  %v2724_v17 = vpop.f32.mrb[84].mxu0 }
 0x1c2   : > { %v3236_v14 = vmax.f32 %v2720_v10, %v3108_v11  ;;  %v2180_v16 = vadd.f32 %v6081_v15, %v2179_v12  ;;  %v2181_v18 = vpop.f32.mrb[85].mxu1  ;;  %v2726_v20 = vpop.f32.mrb[85].mxu0 }
 0x1c3   : > { %v2182_v21 = vpop.f32.mrb[86].mxu1  ;;  %v2727_v27 = vpop.f32.mrb[86].mxu0 }
 0x1c4   : > { %v4680_v24 = vpack.c.bf16 %v3236_v14, %v3235_v13  ;;  %v2725_v25 = vadd.f32 %v2724_v17, %v2180_v16  ;;  %v2183_v26 = vadd.f32 %v6081_v15, %v2182_v21  ;;  %v2184_v28 = vpop.f32.mrb[87].mxu1  ;;  %v2729_v30 = vpop.f32.mrb[87].mxu0 }
 0x1c6   : > { %4916 = vst [vmem:[%s5945_s14 + $0xa0] sm:$0xff] %v4680_v24   ;;  %v3109_v31 = vmul.f32 0.2, %v2725_v25  ;;  %v2728_v32 = vadd.f32 %v2727_v27, %v2183_v26  ;;  %2394 = vmatmul.mubr.bf16.gmra.mrb[192].mxu1 %v5549_v19  ;;  %2939 = vmatmul.mubr.bf16.gmra.mrb[192].mxu0 %v5550_v22  ;;  %v5567_v19 = vld [vmem:[%s5755_s26 + $0x660] ss:$16 sps:$4 sm:$0xff]  }
 0x1c7   : > { %2401 = vmatprep.mubr.bf16.mxu1 %v5551_v23  ;;  %2946 = vmatprep.mubr.bf16.mxu0 %v5553_v29  ;;  %v5568_v22 = vld [vmem:[%s5755_s26 + $0x668] ss:$16 sps:$4 sm:$0xff]   ;;  %v5569_v23 = vld [vmem:[%s5755_s26 + $0x684] ss:$16 sps:$4 sm:$0xff]   ;;  %v5571_v29 = vld [vmem:[%s5755_s26 + $0x68c] ss:$16 sps:$4 sm:$0xff]  }
 0x1c8   : > { %v3110_v33 = vmul.f32 0.2, %v2728_v32  ;;  %v3237_v35 = vmax.f32 %v2725_v25, %v3109_v31 }
 0x1c9   : > { %v2187_v34 = vpop.f32.mrb[88].mxu1  ;;  %v2732_v38 = vpop.f32.mrb[88].mxu0 }
 0x1ca   : > { %v3238_v36 = vmax.f32 %v2728_v32, %v3110_v33  ;;  %v2188_v37 = vadd.f32 %v6081_v15, %v2187_v34  ;;  %v2189_v39 = vpop.f32.mrb[89].mxu1  ;;  %v2734_v41 = vpop.f32.mrb[89].mxu0 }
 0x1cb   : > { %v2190_v42 = vpop.f32.mrb[90].mxu1  ;;  %v2735_v48 = vpop.f32.mrb[90].mxu0 }
 0x1cc   : > { %v4685_v45 = vpack.c.bf16 %v3238_v36, %v3237_v35  ;;  %v2733_v46 = vadd.f32 %v2732_v38, %v2188_v37  ;;  %v2191_v47 = vadd.f32 %v6081_v15, %v2190_v42  ;;  %v2192_v49 = vpop.f32.mrb[91].mxu1  ;;  %v2737_v51 = vpop.f32.mrb[91].mxu0 }
 0x1ce   : > { %4917 = vst [vmem:[%s5945_s14 + $0xa8] sm:$0xff] %v4685_v45   ;;  %v3111_v52 = vmul.f32 0.2, %v2733_v46  ;;  %v2736_v53 = vadd.f32 %v2735_v48, %v2191_v47  ;;  %2402 = vmatmul.mubr.bf16.gmra.mrb[196].mxu1 %v5555_v40  ;;  %2947 = vmatmul.mubr.bf16.gmra.mrb[196].mxu0 %v5556_v43  ;;  %v5573_v40 = vld [vmem:[%s5755_s26 + $0x680] ss:$16 sps:$4 sm:$0xff]  }
 0x1cf   : > { %2409 = vmatprep.mubr.bf16.mxu1 %v5557_v44  ;;  %2954 = vmatprep.mubr.bf16.mxu0 %v5559_v50  ;;  %v5574_v43 = vld [vmem:[%s5755_s26 + $0x688] ss:$16 sps:$4 sm:$0xff]   ;;  %v5575_v44 = vld [vmem:[%s5755_s26 + $0x6a4] ss:$16 sps:$4 sm:$0xff]   ;;  %v5577_v50 = vld [vmem:[%s5755_s26 + $0x6ac] ss:$16 sps:$4 sm:$0xff]  }
 0x1d0   : > { %v3112_v54 = vmul.f32 0.2, %v2736_v53  ;;  %v3239_v56 = vmax.f32 %v2733_v46, %v3111_v52 }
 0x1d1   : > { %v2195_v55 = vpop.f32.mrb[92].mxu1  ;;  %v2740_v59 = vpop.f32.mrb[92].mxu0 }
 0x1d2   : > { %v3240_v57 = vmax.f32 %v2736_v53, %v3112_v54  ;;  %v2196_v58 = vadd.f32 %v6081_v15, %v2195_v55  ;;  %v2197_v60 = vpop.f32.mrb[93].mxu1  ;;  %v2742_v62 = vpop.f32.mrb[93].mxu0 }
 0x1d3   : > { %v2198_v63 = vpop.f32.mrb[94].mxu1  ;;  %v2743_v5 = vpop.f32.mrb[94].mxu0 }
 0x1d4   : > { %v4690_v2 = vpack.c.bf16 %v3240_v57, %v3239_v56  ;;  %v2741_v3 = vadd.f32 %v2740_v59, %v2196_v58  ;;  %v2199_v4 = vadd.f32 %v6081_v15, %v2198_v63  ;;  %v2200_v6 = vpop.f32.mrb[95].mxu1  ;;  %v2745_v8 = vpop.f32.mrb[95].mxu0 }
 0x1d6   : > { %4918 = vst [vmem:[%s5945_s14 + $0xb0] sm:$0xff] %v4690_v2   ;;  %v3113_v9 = vmul.f32 0.2, %v2741_v3  ;;  %v2744_v10 = vadd.f32 %v2743_v5, %v2199_v4  ;;  %2410 = vmatmul.mubr.bf16.gmra.mrb[200].mxu1 %v5561_v61  ;;  %2955 = vmatmul.mubr.bf16.gmra.mrb[200].mxu0 %v5562_v0  ;;  %v5579_v61 = vld [vmem:[%s5755_s26 + $0x6a0] ss:$16 sps:$4 sm:$0xff]  }
 0x1d7   : > { %2417 = vmatprep.mubr.bf16.mxu1 %v5563_v1  ;;  %2962 = vmatprep.mubr.bf16.mxu0 %v5565_v7  ;;  %v5580_v0 = vld [vmem:[%s5755_s26 + $0x6a8] ss:$16 sps:$4 sm:$0xff]   ;;  %v5581_v1 = vld [vmem:[%s5755_s26 + $0x6c4] ss:$16 sps:$4 sm:$0xff]   ;;  %v5583_v7 = vld [vmem:[%s5755_s26 + $0x6cc] ss:$16 sps:$4 sm:$0xff]  }
 0x1d8   : > { %v3114_v11 = vmul.f32 0.2, %v2744_v10  ;;  %v3241_v13 = vmax.f32 %v2741_v3, %v3113_v9 }
 0x1d9   : > { %v2203_v12 = vpop.f32.mrb[96].mxu1  ;;  %v2748_v17 = vpop.f32.mrb[96].mxu0 }
 0x1da   : > { %v3242_v14 = vmax.f32 %v2744_v10, %v3114_v11  ;;  %v2204_v16 = vadd.f32 %v6081_v15, %v2203_v12  ;;  %v2205_v18 = vpop.f32.mrb[97].mxu1  ;;  %v2750_v20 = vpop.f32.mrb[97].mxu0 }
 0x1db   : > { %v2206_v21 = vpop.f32.mrb[98].mxu1  ;;  %v2751_v27 = vpop.f32.mrb[98].mxu0 }
 0x1dc   : > { %v4695_v24 = vpack.c.bf16 %v3242_v14, %v3241_v13  ;;  %v2749_v25 = vadd.f32 %v2748_v17, %v2204_v16  ;;  %v2207_v26 = vadd.f32 %v6081_v15, %v2206_v21  ;;  %v2208_v28 = vpop.f32.mrb[99].mxu1  ;;  %v2753_v30 = vpop.f32.mrb[99].mxu0 }
 0x1de   : > { %4919 = vst [vmem:[%s5945_s14 + $0xb8] sm:$0xff] %v4695_v24   ;;  %v3115_v31 = vmul.f32 0.2, %v2749_v25  ;;  %v2752_v32 = vadd.f32 %v2751_v27, %v2207_v26  ;;  %2418 = vmatmul.mubr.bf16.gmra.mrb[204].mxu1 %v5567_v19  ;;  %2963 = vmatmul.mubr.bf16.gmra.mrb[204].mxu0 %v5568_v22  ;;  %v5585_v19 = vld [vmem:[%s5755_s26 + $0x6c0] ss:$16 sps:$4 sm:$0xff]  }
 0x1df   : > { %2425 = vmatprep.mubr.bf16.mxu1 %v5569_v23  ;;  %2970 = vmatprep.mubr.bf16.mxu0 %v5571_v29  ;;  %v5586_v22 = vld [vmem:[%s5755_s26 + $0x6c8] ss:$16 sps:$4 sm:$0xff]   ;;  %v5587_v23 = vld [vmem:[%s5755_s26 + $0x6e4] ss:$16 sps:$4 sm:$0xff]   ;;  %v5589_v29 = vld [vmem:[%s5755_s26 + $0x6ec] ss:$16 sps:$4 sm:$0xff]  }
 0x1e0   : > { %v3116_v33 = vmul.f32 0.2, %v2752_v32  ;;  %v3243_v35 = vmax.f32 %v2749_v25, %v3115_v31 }
 0x1e1   : > { %v2211_v34 = vpop.f32.mrb[100].mxu1  ;;  %v2756_v38 = vpop.f32.mrb[100].mxu0 }
 0x1e2   : > { %v3244_v36 = vmax.f32 %v2752_v32, %v3116_v33  ;;  %v2212_v37 = vadd.f32 %v6081_v15, %v2211_v34  ;;  %v2213_v39 = vpop.f32.mrb[101].mxu1  ;;  %v2758_v41 = vpop.f32.mrb[101].mxu0 }
 0x1e3   : > { %v2214_v42 = vpop.f32.mrb[102].mxu1  ;;  %v2759_v48 = vpop.f32.mrb[102].mxu0 }
 0x1e4   : > { %v4700_v45 = vpack.c.bf16 %v3244_v36, %v3243_v35  ;;  %v2757_v46 = vadd.f32 %v2756_v38, %v2212_v37  ;;  %v2215_v47 = vadd.f32 %v6081_v15, %v2214_v42  ;;  %v2216_v49 = vpop.f32.mrb[103].mxu1  ;;  %v2761_v51 = vpop.f32.mrb[103].mxu0 }
 0x1e6   : > { %4920 = vst [vmem:[%s5945_s14 + $0xc0] sm:$0xff] %v4700_v45   ;;  %v3117_v52 = vmul.f32 0.2, %v2757_v46  ;;  %v2760_v53 = vadd.f32 %v2759_v48, %v2215_v47  ;;  %2426 = vmatmul.mubr.bf16.gmra.mrb[208].mxu1 %v5573_v40  ;;  %2971 = vmatmul.mubr.bf16.gmra.mrb[208].mxu0 %v5574_v43  ;;  %v5591_v40 = vld [vmem:[%s5755_s26 + $0x6e0] ss:$16 sps:$4 sm:$0xff]  }
 0x1e7   : > { %2433 = vmatprep.mubr.bf16.mxu1 %v5575_v44  ;;  %2978 = vmatprep.mubr.bf16.mxu0 %v5577_v50  ;;  %v5592_v43 = vld [vmem:[%s5755_s26 + $0x6e8] ss:$16 sps:$4 sm:$0xff]   ;;  %v5593_v44 = vld [vmem:[%s5755_s26 + $0x704] ss:$16 sps:$4 sm:$0xff]   ;;  %v5595_v50 = vld [vmem:[%s5755_s26 + $0x70c] ss:$16 sps:$4 sm:$0xff]  }
 0x1e8   : > { %v3118_v54 = vmul.f32 0.2, %v2760_v53  ;;  %v3245_v56 = vmax.f32 %v2757_v46, %v3117_v52 }
 0x1e9   : > { %v2219_v55 = vpop.f32.mrb[104].mxu1  ;;  %v2764_v59 = vpop.f32.mrb[104].mxu0 }
 0x1ea   : > { %v3246_v57 = vmax.f32 %v2760_v53, %v3118_v54  ;;  %v2220_v58 = vadd.f32 %v6081_v15, %v2219_v55  ;;  %v2221_v60 = vpop.f32.mrb[105].mxu1  ;;  %v2766_v62 = vpop.f32.mrb[105].mxu0 }
 0x1eb   : > { %v2222_v63 = vpop.f32.mrb[106].mxu1  ;;  %v2767_v5 = vpop.f32.mrb[106].mxu0 }
 0x1ec   : > { %v4705_v2 = vpack.c.bf16 %v3246_v57, %v3245_v56  ;;  %v2765_v3 = vadd.f32 %v2764_v59, %v2220_v58  ;;  %v2223_v4 = vadd.f32 %v6081_v15, %v2222_v63  ;;  %v2224_v6 = vpop.f32.mrb[107].mxu1  ;;  %v2769_v8 = vpop.f32.mrb[107].mxu0 }
 0x1ee   : > { %4921 = vst [vmem:[%s5945_s14 + $0xc8] sm:$0xff] %v4705_v2   ;;  %v3119_v9 = vmul.f32 0.2, %v2765_v3  ;;  %v2768_v10 = vadd.f32 %v2767_v5, %v2223_v4  ;;  %2434 = vmatmul.mubr.bf16.gmra.mrb[212].mxu1 %v5579_v61  ;;  %2979 = vmatmul.mubr.bf16.gmra.mrb[212].mxu0 %v5580_v0  ;;  %v5597_v61 = vld [vmem:[%s5755_s26 + $0x700] ss:$16 sps:$4 sm:$0xff]  }
 0x1ef   : > { %2441 = vmatprep.mubr.bf16.mxu1 %v5581_v1  ;;  %2986 = vmatprep.mubr.bf16.mxu0 %v5583_v7  ;;  %v5598_v0 = vld [vmem:[%s5755_s26 + $0x708] ss:$16 sps:$4 sm:$0xff]   ;;  %v5599_v1 = vld [vmem:[%s5755_s26 + $0x724] ss:$16 sps:$4 sm:$0xff]   ;;  %v5601_v7 = vld [vmem:[%s5755_s26 + $0x72c] ss:$16 sps:$4 sm:$0xff]  }
 0x1f0   : > { %v3120_v11 = vmul.f32 0.2, %v2768_v10  ;;  %v3247_v13 = vmax.f32 %v2765_v3, %v3119_v9 }
 0x1f1   : > { %v2227_v12 = vpop.f32.mrb[108].mxu1  ;;  %v2772_v17 = vpop.f32.mrb[108].mxu0 }
 0x1f2   : > { %v3248_v14 = vmax.f32 %v2768_v10, %v3120_v11  ;;  %v2228_v16 = vadd.f32 %v6081_v15, %v2227_v12  ;;  %v2229_v18 = vpop.f32.mrb[109].mxu1  ;;  %v2774_v20 = vpop.f32.mrb[109].mxu0 }
 0x1f3   : > { %v2230_v21 = vpop.f32.mrb[110].mxu1  ;;  %v2775_v27 = vpop.f32.mrb[110].mxu0 }
 0x1f4   : > { %v4710_v24 = vpack.c.bf16 %v3248_v14, %v3247_v13  ;;  %v2773_v25 = vadd.f32 %v2772_v17, %v2228_v16  ;;  %v2231_v26 = vadd.f32 %v6081_v15, %v2230_v21  ;;  %v2232_v28 = vpop.f32.mrb[111].mxu1  ;;  %v2777_v30 = vpop.f32.mrb[111].mxu0 }
 0x1f6   : > { %4922 = vst [vmem:[%s5945_s14 + $0xd0] sm:$0xff] %v4710_v24   ;;  %v3121_v31 = vmul.f32 0.2, %v2773_v25  ;;  %v2776_v32 = vadd.f32 %v2775_v27, %v2231_v26  ;;  %2442 = vmatmul.mubr.bf16.gmra.mrb[216].mxu1 %v5585_v19  ;;  %2987 = vmatmul.mubr.bf16.gmra.mrb[216].mxu0 %v5586_v22  ;;  %v5603_v19 = vld [vmem:[%s5755_s26 + $0x720] ss:$16 sps:$4 sm:$0xff]  }
 0x1f7   : > { %2449 = vmatprep.mubr.bf16.mxu1 %v5587_v23  ;;  %2994 = vmatprep.mubr.bf16.mxu0 %v5589_v29  ;;  %v5604_v22 = vld [vmem:[%s5755_s26 + $0x728] ss:$16 sps:$4 sm:$0xff]   ;;  %v5605_v23 = vld [vmem:[%s5755_s26 + $0x744] ss:$16 sps:$4 sm:$0xff]   ;;  %v5607_v29 = vld [vmem:[%s5755_s26 + $0x74c] ss:$16 sps:$4 sm:$0xff]  }
 0x1f8   : > { %v3122_v33 = vmul.f32 0.2, %v2776_v32  ;;  %v3249_v35 = vmax.f32 %v2773_v25, %v3121_v31 }
 0x1f9   : > { %v2235_v34 = vpop.f32.mrb[112].mxu1  ;;  %v2780_v38 = vpop.f32.mrb[112].mxu0 }
 0x1fa   : > { %v3250_v36 = vmax.f32 %v2776_v32, %v3122_v33  ;;  %v2236_v37 = vadd.f32 %v6081_v15, %v2235_v34  ;;  %v2237_v39 = vpop.f32.mrb[113].mxu1  ;;  %v2782_v41 = vpop.f32.mrb[113].mxu0 }
 0x1fb   : > { %v2238_v42 = vpop.f32.mrb[114].mxu1  ;;  %v2783_v48 = vpop.f32.mrb[114].mxu0 }
 0x1fc   : > { %v4715_v45 = vpack.c.bf16 %v3250_v36, %v3249_v35  ;;  %v2781_v46 = vadd.f32 %v2780_v38, %v2236_v37  ;;  %v2239_v47 = vadd.f32 %v6081_v15, %v2238_v42  ;;  %v2240_v49 = vpop.f32.mrb[115].mxu1  ;;  %v2785_v51 = vpop.f32.mrb[115].mxu0 }
 0x1fe   : > { %4923 = vst [vmem:[%s5945_s14 + $0xd8] sm:$0xff] %v4715_v45   ;;  %v3123_v52 = vmul.f32 0.2, %v2781_v46  ;;  %v2784_v53 = vadd.f32 %v2783_v48, %v2239_v47  ;;  %2450 = vmatmul.mubr.bf16.gmra.mrb[220].mxu1 %v5591_v40  ;;  %2995 = vmatmul.mubr.bf16.gmra.mrb[220].mxu0 %v5592_v43  ;;  %v5609_v40 = vld [vmem:[%s5755_s26 + $0x740] ss:$16 sps:$4 sm:$0xff]  }
 0x1ff   : > { %2457 = vmatprep.mubr.bf16.mxu1 %v5593_v44  ;;  %3002 = vmatprep.mubr.bf16.mxu0 %v5595_v50  ;;  %v5610_v43 = vld [vmem:[%s5755_s26 + $0x748] ss:$16 sps:$4 sm:$0xff]   ;;  %v5611_v44 = vld [vmem:[%s5755_s26 + $0x764] ss:$16 sps:$4 sm:$0xff]   ;;  %v5613_v50 = vld [vmem:[%s5755_s26 + $0x76c] ss:$16 sps:$4 sm:$0xff]  }
 0x200   : > { %v3124_v54 = vmul.f32 0.2, %v2784_v53  ;;  %v3251_v56 = vmax.f32 %v2781_v46, %v3123_v52 }
 0x201   : > { %v2243_v55 = vpop.f32.mrb[116].mxu1  ;;  %v2788_v59 = vpop.f32.mrb[116].mxu0 }
 0x202   : > { %v3252_v57 = vmax.f32 %v2784_v53, %v3124_v54  ;;  %v2244_v58 = vadd.f32 %v6081_v15, %v2243_v55  ;;  %v2245_v60 = vpop.f32.mrb[117].mxu1  ;;  %v2790_v62 = vpop.f32.mrb[117].mxu0 }
 0x203   : > { %v2246_v63 = vpop.f32.mrb[118].mxu1  ;;  %v2791_v5 = vpop.f32.mrb[118].mxu0 }
 0x204   : > { %v4720_v2 = vpack.c.bf16 %v3252_v57, %v3251_v56  ;;  %v2789_v3 = vadd.f32 %v2788_v59, %v2244_v58  ;;  %v2247_v4 = vadd.f32 %v6081_v15, %v2246_v63  ;;  %v2248_v6 = vpop.f32.mrb[119].mxu1  ;;  %v2793_v8 = vpop.f32.mrb[119].mxu0 }
 0x206   : > { %4924 = vst [vmem:[%s5945_s14 + $0xe0] sm:$0xff] %v4720_v2   ;;  %v3125_v9 = vmul.f32 0.2, %v2789_v3  ;;  %v2792_v10 = vadd.f32 %v2791_v5, %v2247_v4  ;;  %2458 = vmatmul.mubr.bf16.gmra.mrb[224].mxu1 %v5597_v61  ;;  %3003 = vmatmul.mubr.bf16.gmra.mrb[224].mxu0 %v5598_v0  ;;  %v5615_v61 = vld [vmem:[%s5755_s26 + $0x760] ss:$16 sps:$4 sm:$0xff]  }
 0x207   : > { %2465 = vmatprep.mubr.bf16.mxu1 %v5599_v1  ;;  %3010 = vmatprep.mubr.bf16.mxu0 %v5601_v7  ;;  %v5616_v0 = vld [vmem:[%s5755_s26 + $0x768] ss:$16 sps:$4 sm:$0xff]   ;;  %v5617_v1 = vld [vmem:[%s5755_s26 + $0x784] ss:$16 sps:$4 sm:$0xff]   ;;  %v5619_v7 = vld [vmem:[%s5755_s26 + $0x78c] ss:$16 sps:$4 sm:$0xff]  }
 0x208   : > { %v3126_v11 = vmul.f32 0.2, %v2792_v10  ;;  %v3253_v13 = vmax.f32 %v2789_v3, %v3125_v9 }
 0x209   : > { %v2251_v12 = vpop.f32.mrb[120].mxu1  ;;  %v2796_v17 = vpop.f32.mrb[120].mxu0 }
 0x20a   : > { %v3254_v14 = vmax.f32 %v2792_v10, %v3126_v11  ;;  %v2252_v16 = vadd.f32 %v6081_v15, %v2251_v12  ;;  %v2253_v18 = vpop.f32.mrb[121].mxu1  ;;  %v2798_v20 = vpop.f32.mrb[121].mxu0 }
 0x20b   : > { %v2254_v21 = vpop.f32.mrb[122].mxu1  ;;  %v2799_v27 = vpop.f32.mrb[122].mxu0 }
 0x20c   : > { %v4725_v24 = vpack.c.bf16 %v3254_v14, %v3253_v13  ;;  %v2797_v25 = vadd.f32 %v2796_v17, %v2252_v16  ;;  %v2255_v26 = vadd.f32 %v6081_v15, %v2254_v21  ;;  %v2256_v28 = vpop.f32.mrb[123].mxu1  ;;  %v2801_v30 = vpop.f32.mrb[123].mxu0 }
 0x20e   : > { %4925 = vst [vmem:[%s5945_s14 + $0xe8] sm:$0xff] %v4725_v24   ;;  %v3127_v31 = vmul.f32 0.2, %v2797_v25  ;;  %v2800_v32 = vadd.f32 %v2799_v27, %v2255_v26  ;;  %2466 = vmatmul.mubr.bf16.gmra.mrb[228].mxu1 %v5603_v19  ;;  %3011 = vmatmul.mubr.bf16.gmra.mrb[228].mxu0 %v5604_v22  ;;  %v5621_v19 = vld [vmem:[%s5755_s26 + $0x780] ss:$16 sps:$4 sm:$0xff]  }
 0x20f   : > { %2473 = vmatprep.mubr.bf16.mxu1 %v5605_v23  ;;  %3018 = vmatprep.mubr.bf16.mxu0 %v5607_v29  ;;  %v5622_v22 = vld [vmem:[%s5755_s26 + $0x788] ss:$16 sps:$4 sm:$0xff]   ;;  %v5623_v23 = vld [vmem:[%s5755_s26 + $0x7a4] ss:$16 sps:$4 sm:$0xff]   ;;  %v5625_v29 = vld [vmem:[%s5755_s26 + $0x7ac] ss:$16 sps:$4 sm:$0xff]  }
 0x210   : > { %v3128_v33 = vmul.f32 0.2, %v2800_v32  ;;  %v3255_v35 = vmax.f32 %v2797_v25, %v3127_v31 }
 0x211   : > { %v2259_v34 = vpop.f32.mrb[124].mxu1  ;;  %v2804_v38 = vpop.f32.mrb[124].mxu0 }
 0x212   : > { %v3256_v36 = vmax.f32 %v2800_v32, %v3128_v33  ;;  %v2260_v37 = vadd.f32 %v6081_v15, %v2259_v34  ;;  %v2261_v39 = vpop.f32.mrb[125].mxu1  ;;  %v2806_v41 = vpop.f32.mrb[125].mxu0 }
 0x213   : > { %v2262_v42 = vpop.f32.mrb[126].mxu1  ;;  %v2807_v48 = vpop.f32.mrb[126].mxu0 }
 0x214   : > { %v4730_v45 = vpack.c.bf16 %v3256_v36, %v3255_v35  ;;  %v2805_v46 = vadd.f32 %v2804_v38, %v2260_v37  ;;  %v2263_v47 = vadd.f32 %v6081_v15, %v2262_v42  ;;  %v2264_v49 = vpop.f32.mrb[127].mxu1  ;;  %v2809_v51 = vpop.f32.mrb[127].mxu0 }
 0x216   : > { %4926 = vst [vmem:[%s5945_s14 + $0xf0] sm:$0xff] %v4730_v45   ;;  %v3129_v52 = vmul.f32 0.2, %v2805_v46  ;;  %v2808_v53 = vadd.f32 %v2807_v48, %v2263_v47  ;;  %2474 = vmatmul.mubr.bf16.gmra.mrb[232].mxu1 %v5609_v40  ;;  %3019 = vmatmul.mubr.bf16.gmra.mrb[232].mxu0 %v5610_v43  ;;  %v5627_v40 = vld [vmem:[%s5755_s26 + $0x7a0] ss:$16 sps:$4 sm:$0xff]  }
 0x217   : > { %2481 = vmatprep.mubr.bf16.mxu1 %v5611_v44  ;;  %3026 = vmatprep.mubr.bf16.mxu0 %v5613_v50  ;;  %v5628_v43 = vld [vmem:[%s5755_s26 + $0x7a8] ss:$16 sps:$4 sm:$0xff]   ;;  %v5629_v44 = vld [vmem:[%s5755_s26 + $0x7c4] ss:$16 sps:$4 sm:$0xff]   ;;  %v5631_v50 = vld [vmem:[%s5755_s26 + $0x7cc] ss:$16 sps:$4 sm:$0xff]  }
 0x218   : > { %v3130_v54 = vmul.f32 0.2, %v2808_v53  ;;  %v3257_v56 = vmax.f32 %v2805_v46, %v3129_v52 }
 0x219   : > { %v2267_v55 = vpop.f32.mrb[128].mxu1  ;;  %v2812_v59 = vpop.f32.mrb[128].mxu0 }
 0x21a   : > { %v3258_v57 = vmax.f32 %v2808_v53, %v3130_v54  ;;  %v2268_v58 = vadd.f32 %v6081_v15, %v2267_v55  ;;  %v2269_v60 = vpop.f32.mrb[129].mxu1  ;;  %v2814_v62 = vpop.f32.mrb[129].mxu0 }
 0x21b   : > { %v2270_v63 = vpop.f32.mrb[130].mxu1  ;;  %v2815_v5 = vpop.f32.mrb[130].mxu0 }
 0x21c   : > { %v4735_v2 = vpack.c.bf16 %v3258_v57, %v3257_v56  ;;  %v2813_v3 = vadd.f32 %v2812_v59, %v2268_v58  ;;  %v2271_v4 = vadd.f32 %v6081_v15, %v2270_v63  ;;  %v2272_v6 = vpop.f32.mrb[131].mxu1  ;;  %v2817_v8 = vpop.f32.mrb[131].mxu0 }
 0x21e   : > { %4927 = vst [vmem:[%s5945_s14 + $0xf8] sm:$0xff] %v4735_v2   ;;  %v3131_v9 = vmul.f32 0.2, %v2813_v3  ;;  %v2816_v10 = vadd.f32 %v2815_v5, %v2271_v4  ;;  %2482 = vmatmul.mubr.bf16.gmra.mrb[236].mxu1 %v5615_v61  ;;  %3027 = vmatmul.mubr.bf16.gmra.mrb[236].mxu0 %v5616_v0  ;;  %v5633_v61 = vld [vmem:[%s5755_s26 + $0x7c0] ss:$16 sps:$4 sm:$0xff]  }
 0x21f   : > { %2489 = vmatprep.mubr.bf16.mxu1 %v5617_v1  ;;  %3034 = vmatprep.mubr.bf16.mxu0 %v5619_v7  ;;  %v5634_v0 = vld [vmem:[%s5755_s26 + $0x7c8] ss:$16 sps:$4 sm:$0xff]   ;;  %v5635_v1 = vld [vmem:[%s5755_s26 + $0x7e4] ss:$16 sps:$4 sm:$0xff]   ;;  %v5637_v7 = vld [vmem:[%s5755_s26 + $0x7ec] ss:$16 sps:$4 sm:$0xff]  }
 0x220   : > { %v3132_v11 = vmul.f32 0.2, %v2816_v10  ;;  %v3259_v13 = vmax.f32 %v2813_v3, %v3131_v9 }
 0x221   : > { %v2275_v12 = vpop.f32.mrb[132].mxu1  ;;  %v2820_v17 = vpop.f32.mrb[132].mxu0 }
 0x222   : > { %v3260_v14 = vmax.f32 %v2816_v10, %v3132_v11  ;;  %v2276_v16 = vadd.f32 %v6081_v15, %v2275_v12  ;;  %v2277_v18 = vpop.f32.mrb[133].mxu1  ;;  %v2822_v20 = vpop.f32.mrb[133].mxu0 }
 0x223   : > { %v2278_v21 = vpop.f32.mrb[134].mxu1  ;;  %v2823_v27 = vpop.f32.mrb[134].mxu0 }
 0x224   : > { %v4740_v24 = vpack.c.bf16 %v3260_v14, %v3259_v13  ;;  %v2821_v25 = vadd.f32 %v2820_v17, %v2276_v16  ;;  %v2279_v26 = vadd.f32 %v6081_v15, %v2278_v21  ;;  %v2280_v28 = vpop.f32.mrb[135].mxu1  ;;  %v2825_v30 = vpop.f32.mrb[135].mxu0 }
 0x226   : > { %4928 = vst [vmem:[%s5945_s14 + $0x100] sm:$0xff] %v4740_v24   ;;  %v3133_v31 = vmul.f32 0.2, %v2821_v25  ;;  %v2824_v32 = vadd.f32 %v2823_v27, %v2279_v26  ;;  %2490 = vmatmul.mubr.bf16.gmra.mrb[240].mxu1 %v5621_v19  ;;  %3035 = vmatmul.mubr.bf16.gmra.mrb[240].mxu0 %v5622_v22  ;;  %v5639_v19 = vld [vmem:[%s5755_s26 + $0x7e0] ss:$16 sps:$4 sm:$0xff]  }
 0x227   : > { %2497 = vmatprep.mubr.bf16.mxu1 %v5623_v23  ;;  %3042 = vmatprep.mubr.bf16.mxu0 %v5625_v29  ;;  %v5640_v22 = vld [vmem:[%s5755_s26 + $0x7e8] ss:$16 sps:$4 sm:$0xff]  }
 0x228   : > { %v3134_v33 = vmul.f32 0.2, %v2824_v32  ;;  %v3261_v35 = vmax.f32 %v2821_v25, %v3133_v31 }
 0x229   : > { %v2283_v34 = vpop.f32.mrb[136].mxu1  ;;  %v2828_v38 = vpop.f32.mrb[136].mxu0 }
 0x22a   : > { %v3262_v36 = vmax.f32 %v2824_v32, %v3134_v33  ;;  %v2284_v37 = vadd.f32 %v6081_v15, %v2283_v34  ;;  %v2285_v39 = vpop.f32.mrb[137].mxu1  ;;  %v2830_v41 = vpop.f32.mrb[137].mxu0 }
 0x22b   : > { %v2286_v42 = vpop.f32.mrb[138].mxu1  ;;  %v2831_v48 = vpop.f32.mrb[138].mxu0 }
 0x22c   : > { %v4745_v45 = vpack.c.bf16 %v3262_v36, %v3261_v35  ;;  %v2829_v46 = vadd.f32 %v2828_v38, %v2284_v37  ;;  %v2287_v47 = vadd.f32 %v6081_v15, %v2286_v42  ;;  %v2288_v49 = vpop.f32.mrb[139].mxu1  ;;  %v2833_v51 = vpop.f32.mrb[139].mxu0 }
 0x22e   : > { %4929 = vst [vmem:[%s5945_s14 + $0x108] sm:$0xff] %v4745_v45   ;;  %v3135_v52 = vmul.f32 0.2, %v2829_v46  ;;  %v2832_v53 = vadd.f32 %v2831_v48, %v2287_v47  ;;  %2498 = vmatmul.mubr.bf16.gmra.mrb[244].mxu1 %v5627_v40  ;;  %3043 = vmatmul.mubr.bf16.gmra.mrb[244].mxu0 %v5628_v43 }
 0x22f   : > { %2505 = vmatprep.mubr.bf16.mxu1 %v5629_v44  ;;  %3050 = vmatprep.mubr.bf16.mxu0 %v5631_v50 }
 0x230   : > { %v3136_v54 = vmul.f32 0.2, %v2832_v53  ;;  %v3263_v56 = vmax.f32 %v2829_v46, %v3135_v52 }
 0x231   : > { %v2291_v55 = vpop.f32.mrb[140].mxu1  ;;  %v2836_v59 = vpop.f32.mrb[140].mxu0 }
 0x232   : > { %v3264_v57 = vmax.f32 %v2832_v53, %v3136_v54  ;;  %v2292_v58 = vadd.f32 %v6081_v15, %v2291_v55  ;;  %v2293_v60 = vpop.f32.mrb[141].mxu1  ;;  %v2838_v62 = vpop.f32.mrb[141].mxu0 }
 0x233   : > { %v2294_v63 = vpop.f32.mrb[142].mxu1  ;;  %v2839_v5 = vpop.f32.mrb[142].mxu0 }
 0x234   : > { %v4750_v2 = vpack.c.bf16 %v3264_v57, %v3263_v56  ;;  %v2837_v3 = vadd.f32 %v2836_v59, %v2292_v58  ;;  %v2295_v4 = vadd.f32 %v6081_v15, %v2294_v63  ;;  %v2296_v6 = vpop.f32.mrb[143].mxu1  ;;  %v2841_v8 = vpop.f32.mrb[143].mxu0 }
 0x236   : > { %4930 = vst [vmem:[%s5945_s14 + $0x110] sm:$0xff] %v4750_v2   ;;  %v3137_v9 = vmul.f32 0.2, %v2837_v3  ;;  %v2840_v10 = vadd.f32 %v2839_v5, %v2295_v4  ;;  %2506 = vmatmul.mubr.bf16.gmra.mrb[248].mxu1 %v5633_v61  ;;  %3051 = vmatmul.mubr.bf16.gmra.mrb[248].mxu0 %v5634_v0 }
 0x237   : > { %2513 = vmatprep.mubr.bf16.mxu1 %v5635_v1  ;;  %3058 = vmatprep.mubr.bf16.mxu0 %v5637_v7 }
 0x238   : > { %v3138_v11 = vmul.f32 0.2, %v2840_v10  ;;  %v3265_v13 = vmax.f32 %v2837_v3, %v3137_v9 }
 0x239   : > { %v2299_v12 = vpop.f32.mrb[144].mxu1  ;;  %v2844_v17 = vpop.f32.mrb[144].mxu0 }
 0x23a   : > { %v3266_v14 = vmax.f32 %v2840_v10, %v3138_v11  ;;  %v2300_v16 = vadd.f32 %v6081_v15, %v2299_v12  ;;  %v2301_v18 = vpop.f32.mrb[145].mxu1  ;;  %v2846_v20 = vpop.f32.mrb[145].mxu0 }
 0x23b   : > { %v2302_v21 = vpop.f32.mrb[146].mxu1  ;;  %v2847_v26 = vpop.f32.mrb[146].mxu0 }
 0x23c   : > { %v4755_v23 = vpack.c.bf16 %v3266_v14, %v3265_v13  ;;  %v2845_v24 = vadd.f32 %v2844_v17, %v2300_v16  ;;  %v2303_v25 = vadd.f32 %v6081_v15, %v2302_v21  ;;  %v2304_v27 = vpop.f32.mrb[147].mxu1  ;;  %v2849_v28 = vpop.f32.mrb[147].mxu0 }
 0x23e   : > { %4931 = vst [vmem:[%s5945_s14 + $0x118] sm:$0xff] %v4755_v23   ;;  %v3139_v29 = vmul.f32 0.2, %v2845_v24  ;;  %v2848_v30 = vadd.f32 %v2847_v26, %v2303_v25  ;;  %2514 = vmatmul.mubr.bf16.gmra.mrb[252].mxu1 %v5639_v19  ;;  %3059 = vmatmul.mubr.bf16.gmra.mrb[252].mxu0 %v5640_v22 }
 0x240   : > { %v3140_v31 = vmul.f32 0.2, %v2848_v30  ;;  %v3267_v33 = vmax.f32 %v2845_v24, %v3139_v29 }
 0x241   : > { %v2307_v32 = vpop.f32.mrb[148].mxu1  ;;  %v2852_v36 = vpop.f32.mrb[148].mxu0 }
 0x242   : > { %v3268_v34 = vmax.f32 %v2848_v30, %v3140_v31  ;;  %v2308_v35 = vadd.f32 %v6081_v15, %v2307_v32  ;;  %v2309_v37 = vpop.f32.mrb[149].mxu1  ;;  %v2854_v38 = vpop.f32.mrb[149].mxu0 }
 0x243   : > { %v2310_v39 = vpop.f32.mrb[150].mxu1  ;;  %v2855_v43 = vpop.f32.mrb[150].mxu0 }
 0x244   : > { %v4760_v40 = vpack.c.bf16 %v3268_v34, %v3267_v33  ;;  %v2853_v41 = vadd.f32 %v2852_v36, %v2308_v35  ;;  %v2311_v42 = vadd.f32 %v6081_v15, %v2310_v39  ;;  %v2312_v44 = vpop.f32.mrb[151].mxu1  ;;  %v2857_v45 = vpop.f32.mrb[151].mxu0 }
 0x246   : > { %4932 = vst [vmem:[%s5945_s14 + $0x120] sm:$0xff] %v4760_v40   ;;  %v3141_v46 = vmul.f32 0.2, %v2853_v41  ;;  %v2856_v47 = vadd.f32 %v2855_v43, %v2311_v42 }
 0x248   : > { %v3142_v48 = vmul.f32 0.2, %v2856_v47  ;;  %v3269_v50 = vmax.f32 %v2853_v41, %v3141_v46 }
 0x249   : > { %v2315_v49 = vpop.f32.mrb[152].mxu1  ;;  %v2860_v53 = vpop.f32.mrb[152].mxu0 }
 0x24a   : > { %v3270_v51 = vmax.f32 %v2856_v47, %v3142_v48  ;;  %v2316_v52 = vadd.f32 %v6081_v15, %v2315_v49  ;;  %v2317_v54 = vpop.f32.mrb[153].mxu1  ;;  %v2862_v55 = vpop.f32.mrb[153].mxu0  ;;  %v6216_v47 = vld [vmem:[%s6292_s2] ss:$0 sm:$0xff] }
 0x24b   : > { %v2318_v56 = vpop.f32.mrb[154].mxu1  ;;  %v2863_v60 = vpop.f32.mrb[154].mxu0 }
 0x24c   : > { %v4765_v57 = vpack.c.bf16 %v3270_v51, %v3269_v50  ;;  %v2861_v58 = vadd.f32 %v2860_v53, %v2316_v52  ;;  %v2319_v59 = vadd.f32 %v6081_v15, %v2318_v56  ;;  %v2320_v61 = vpop.f32.mrb[155].mxu1  ;;  %v2865_v62 = vpop.f32.mrb[155].mxu0 }
 0x24e   : > { %4933 = vst [vmem:[%s5945_s14 + $0x128] sm:$0xff] %v4765_v57   ;;  %v3143_v63 = vmul.f32 0.2, %v2861_v58  ;;  %v2864_v0 = vadd.f32 %v2863_v60, %v2319_v59 }
 0x250   : > { %v3144_v1 = vmul.f32 0.2, %v2864_v0  ;;  %v3271_v3 = vmax.f32 %v2861_v58, %v3143_v63 }
 0x251   : > { %v2323_v2 = vpop.f32.mrb[156].mxu1  ;;  %v2868_v6 = vpop.f32.mrb[156].mxu0 }
 0x252   : > { %v3272_v4 = vmax.f32 %v2864_v0, %v3144_v1  ;;  %v2324_v5 = vadd.f32 %v6081_v15, %v2323_v2  ;;  %v2325_v7 = vpop.f32.mrb[157].mxu1  ;;  %v2870_v8 = vpop.f32.mrb[157].mxu0 }
 0x253   : > { %v2326_v9 = vpop.f32.mrb[158].mxu1  ;;  %v2871_v13 = vpop.f32.mrb[158].mxu0 }
 0x254   : > { %v4770_v10 = vpack.c.bf16 %v3272_v4, %v3271_v3  ;;  %v2869_v11 = vadd.f32 %v2868_v6, %v2324_v5  ;;  %v2327_v12 = vadd.f32 %v6081_v15, %v2326_v9  ;;  %v2328_v14 = vpop.f32.mrb[159].mxu1  ;;  %v2873_v16 = vpop.f32.mrb[159].mxu0 }
 0x256   : > { %4934 = vst [vmem:[%s5945_s14 + $0x130] sm:$0xff] %v4770_v10   ;;  %v3145_v17 = vmul.f32 0.2, %v2869_v11  ;;  %v2872_v18 = vadd.f32 %v2871_v13, %v2327_v12 }
 0x258   : > { %v3146_v19 = vmul.f32 0.2, %v2872_v18  ;;  %v3273_v21 = vmax.f32 %v2869_v11, %v3145_v17 }
 0x259   : > { %v2331_v20 = vpop.f32.mrb[160].mxu1  ;;  %v2876_v24 = vpop.f32.mrb[160].mxu0 }
 0x25a   : > { %v3274_v22 = vmax.f32 %v2872_v18, %v3146_v19  ;;  %v2332_v23 = vadd.f32 %v6081_v15, %v2331_v20  ;;  %v2333_v25 = vpop.f32.mrb[161].mxu1  ;;  %v2878_v26 = vpop.f32.mrb[161].mxu0 }
 0x25b   : > { %v2334_v27 = vpop.f32.mrb[162].mxu1  ;;  %v2879_v31 = vpop.f32.mrb[162].mxu0 }
 0x25c   : > { %v4775_v28 = vpack.c.bf16 %v3274_v22, %v3273_v21  ;;  %v2877_v29 = vadd.f32 %v2876_v24, %v2332_v23  ;;  %v2335_v30 = vadd.f32 %v6081_v15, %v2334_v27  ;;  %v2336_v32 = vpop.f32.mrb[163].mxu1  ;;  %v2881_v33 = vpop.f32.mrb[163].mxu0 }
 0x25e   : > { %4935 = vst [vmem:[%s5945_s14 + $0x138] sm:$0xff] %v4775_v28   ;;  %v3147_v34 = vmul.f32 0.2, %v2877_v29  ;;  %v2880_v35 = vadd.f32 %v2879_v31, %v2335_v30 }
 0x260   : > { %v3148_v36 = vmul.f32 0.2, %v2880_v35  ;;  %v3275_v38 = vmax.f32 %v2877_v29, %v3147_v34 }
 0x261   : > { %v2339_v37 = vpop.f32.mrb[164].mxu1  ;;  %v2884_v41 = vpop.f32.mrb[164].mxu0 }
 0x262   : > { %v3276_v39 = vmax.f32 %v2880_v35, %v3148_v36  ;;  %v2340_v40 = vadd.f32 %v6081_v15, %v2339_v37  ;;  %v2341_v42 = vpop.f32.mrb[165].mxu1  ;;  %v2886_v43 = vpop.f32.mrb[165].mxu0 }
 0x263   : > { %v2342_v44 = vpop.f32.mrb[166].mxu1  ;;  %v2887_v49 = vpop.f32.mrb[166].mxu0 }
 0x264   : > { %v4780_v45 = vpack.c.bf16 %v3276_v39, %v3275_v38  ;;  %v2885_v46 = vadd.f32 %v2884_v41, %v2340_v40  ;;  %v2343_v48 = vadd.f32 %v6216_v47, %v2342_v44  ;;  %v2344_v50 = vpop.f32.mrb[167].mxu1  ;;  %v2889_v51 = vpop.f32.mrb[167].mxu0 }
 0x266   : > { %4936 = vst [vmem:[%s5945_s14 + $0x140] sm:$0xff] %v4780_v45   ;;  %v3149_v52 = vmul.f32 0.2, %v2885_v46  ;;  %v2888_v53 = vadd.f32 %v2887_v49, %v2343_v48 }
 0x268   : > { %v3150_v15 = vmul.f32 0.2, %v2888_v53  ;;  %v3277_v55 = vmax.f32 %v2885_v46, %v3149_v52 }
 0x269   : > { %v2347_v54 = vpop.f32.mrb[168].mxu1  ;;  %v2892_v58 = vpop.f32.mrb[168].mxu0 }
 0x26a   : > { %v3278_v56 = vmax.f32 %v2888_v53, %v3150_v15  ;;  %v2348_v57 = vadd.f32 %v6216_v47, %v2347_v54  ;;  %v2349_v59 = vpop.f32.mrb[169].mxu1  ;;  %v2894_v60 = vpop.f32.mrb[169].mxu0 }
 0x26b   : > { %v2350_v61 = vpop.f32.mrb[170].mxu1  ;;  %v2895_v1 = vpop.f32.mrb[170].mxu0 }
 0x26c   : > { %v4785_v62 = vpack.c.bf16 %v3278_v56, %v3277_v55  ;;  %v2893_v63 = vadd.f32 %v2892_v58, %v2348_v57  ;;  %v2351_v0 = vadd.f32 %v6216_v47, %v2350_v61  ;;  %v2352_v2 = vpop.f32.mrb[171].mxu1  ;;  %v2897_v3 = vpop.f32.mrb[171].mxu0 }
 0x26e   : > { %4937 = vst [vmem:[%s5945_s14 + $0x148] sm:$0xff] %v4785_v62   ;;  %v3151_v4 = vmul.f32 0.2, %v2893_v63  ;;  %v2896_v5 = vadd.f32 %v2895_v1, %v2351_v0 }
 0x270   : > { %v3152_v6 = vmul.f32 0.2, %v2896_v5  ;;  %v3279_v8 = vmax.f32 %v2893_v63, %v3151_v4 }
 0x271   : > { %v2355_v7 = vpop.f32.mrb[172].mxu1  ;;  %v2900_v11 = vpop.f32.mrb[172].mxu0 }
 0x272   : > { %v3280_v9 = vmax.f32 %v2896_v5, %v3152_v6  ;;  %v2356_v10 = vadd.f32 %v6216_v47, %v2355_v7  ;;  %v2357_v12 = vpop.f32.mrb[173].mxu1  ;;  %v2902_v13 = vpop.f32.mrb[173].mxu0 }
 0x273   : > { %v2358_v14 = vpop.f32.mrb[174].mxu1  ;;  %v2903_v19 = vpop.f32.mrb[174].mxu0 }
 0x274   : > { %v4790_v16 = vpack.c.bf16 %v3280_v9, %v3279_v8  ;;  %v2901_v17 = vadd.f32 %v2900_v11, %v2356_v10  ;;  %v2359_v18 = vadd.f32 %v6216_v47, %v2358_v14  ;;  %v2360_v20 = vpop.f32.mrb[175].mxu1  ;;  %v2905_v21 = vpop.f32.mrb[175].mxu0 }
 0x276   : > { %4938 = vst [vmem:[%s5945_s14 + $0x150] sm:$0xff] %v4790_v16   ;;  %v3153_v22 = vmul.f32 0.2, %v2901_v17  ;;  %v2904_v23 = vadd.f32 %v2903_v19, %v2359_v18 }
 0x278   : > { %v3154_v24 = vmul.f32 0.2, %v2904_v23  ;;  %v3281_v26 = vmax.f32 %v2901_v17, %v3153_v22 }
 0x279   : > { %v2363_v25 = vpop.f32.mrb[176].mxu1  ;;  %v2908_v29 = vpop.f32.mrb[176].mxu0 }
 0x27a   : > { %v3282_v27 = vmax.f32 %v2904_v23, %v3154_v24  ;;  %v2364_v28 = vadd.f32 %v6216_v47, %v2363_v25  ;;  %v2365_v30 = vpop.f32.mrb[177].mxu1  ;;  %v2910_v31 = vpop.f32.mrb[177].mxu0 }
 0x27b   : > { %v2366_v32 = vpop.f32.mrb[178].mxu1  ;;  %v2911_v36 = vpop.f32.mrb[178].mxu0 }
 0x27c   : > { %v4795_v33 = vpack.c.bf16 %v3282_v27, %v3281_v26  ;;  %v2909_v34 = vadd.f32 %v2908_v29, %v2364_v28  ;;  %v2367_v35 = vadd.f32 %v6216_v47, %v2366_v32  ;;  %v2368_v37 = vpop.f32.mrb[179].mxu1  ;;  %v2913_v38 = vpop.f32.mrb[179].mxu0 }
 0x27e   : > { %4939 = vst [vmem:[%s5945_s14 + $0x158] sm:$0xff] %v4795_v33   ;;  %v3155_v39 = vmul.f32 0.2, %v2909_v34  ;;  %v2912_v40 = vadd.f32 %v2911_v36, %v2367_v35 }
 0x280   : > { %v3156_v41 = vmul.f32 0.2, %v2912_v40  ;;  %v3283_v43 = vmax.f32 %v2909_v34, %v3155_v39 }
 0x281   : > { %v2371_v42 = vpop.f32.mrb[180].mxu1  ;;  %v2916_v46 = vpop.f32.mrb[180].mxu0 }
 0x282   : > { %v3284_v44 = vmax.f32 %v2912_v40, %v3156_v41  ;;  %v2372_v45 = vadd.f32 %v6216_v47, %v2371_v42  ;;  %v2373_v48 = vpop.f32.mrb[181].mxu1  ;;  %v2918_v49 = vpop.f32.mrb[181].mxu0 }
 0x283   : > { %v2374_v50 = vpop.f32.mrb[182].mxu1  ;;  %v2919_v15 = vpop.f32.mrb[182].mxu0 }
 0x284   : > { %v4800_v51 = vpack.c.bf16 %v3284_v44, %v3283_v43  ;;  %v2917_v52 = vadd.f32 %v2916_v46, %v2372_v45  ;;  %v2375_v53 = vadd.f32 %v6216_v47, %v2374_v50  ;;  %v2376_v54 = vpop.f32.mrb[183].mxu1  ;;  %v2921_v55 = vpop.f32.mrb[183].mxu0 }
 0x286   : > { %4940 = vst [vmem:[%s5945_s14 + $0x160] sm:$0xff] %v4800_v51   ;;  %v3157_v56 = vmul.f32 0.2, %v2917_v52  ;;  %v2920_v57 = vadd.f32 %v2919_v15, %v2375_v53 }
 0x288   : > { %v3158_v58 = vmul.f32 0.2, %v2920_v57  ;;  %v3285_v60 = vmax.f32 %v2917_v52, %v3157_v56 }
 0x289   : > { %v2379_v59 = vpop.f32.mrb[184].mxu1  ;;  %v2924_v63 = vpop.f32.mrb[184].mxu0 }
 0x28a   : > { %v3286_v61 = vmax.f32 %v2920_v57, %v3158_v58  ;;  %v2380_v62 = vadd.f32 %v6216_v47, %v2379_v59  ;;  %v2381_v0 = vpop.f32.mrb[185].mxu1  ;;  %v2926_v1 = vpop.f32.mrb[185].mxu0 }
 0x28b   : > { %v2382_v2 = vpop.f32.mrb[186].mxu1  ;;  %v2927_v6 = vpop.f32.mrb[186].mxu0 }
 0x28c   : > { %v4805_v3 = vpack.c.bf16 %v3286_v61, %v3285_v60  ;;  %v2925_v4 = vadd.f32 %v2924_v63, %v2380_v62  ;;  %v2383_v5 = vadd.f32 %v6216_v47, %v2382_v2  ;;  %v2384_v7 = vpop.f32.mrb[187].mxu1  ;;  %v2929_v8 = vpop.f32.mrb[187].mxu0 }
 0x28e   : > { %4941 = vst [vmem:[%s5945_s14 + $0x168] sm:$0xff] %v4805_v3   ;;  %v3159_v9 = vmul.f32 0.2, %v2925_v4  ;;  %v2928_v10 = vadd.f32 %v2927_v6, %v2383_v5 }
 0x290   : > { %v3160_v11 = vmul.f32 0.2, %v2928_v10  ;;  %v3287_v13 = vmax.f32 %v2925_v4, %v3159_v9 }
 0x291   : > { %v2387_v12 = vpop.f32.mrb[188].mxu1  ;;  %v2932_v17 = vpop.f32.mrb[188].mxu0 }
 0x292   : > { %v3288_v14 = vmax.f32 %v2928_v10, %v3160_v11  ;;  %v2388_v16 = vadd.f32 %v6216_v47, %v2387_v12  ;;  %v2389_v18 = vpop.f32.mrb[189].mxu1  ;;  %v2934_v19 = vpop.f32.mrb[189].mxu0 }
 0x293   : > { %v2390_v20 = vpop.f32.mrb[190].mxu1  ;;  %v2935_v24 = vpop.f32.mrb[190].mxu0 }
 0x294   : > { %v4810_v21 = vpack.c.bf16 %v3288_v14, %v3287_v13  ;;  %v2933_v22 = vadd.f32 %v2932_v17, %v2388_v16  ;;  %v2391_v23 = vadd.f32 %v6216_v47, %v2390_v20  ;;  %v2392_v25 = vpop.f32.mrb[191].mxu1  ;;  %v2937_v26 = vpop.f32.mrb[191].mxu0 }
 0x296   : > { %4942 = vst [vmem:[%s5945_s14 + $0x170] sm:$0xff] %v4810_v21   ;;  %v3161_v27 = vmul.f32 0.2, %v2933_v22  ;;  %v2936_v28 = vadd.f32 %v2935_v24, %v2391_v23 }
 0x298   : > { %v3162_v29 = vmul.f32 0.2, %v2936_v28  ;;  %v3289_v31 = vmax.f32 %v2933_v22, %v3161_v27 }
 0x299   : > { %v2395_v30 = vpop.f32.mrb[192].mxu1  ;;  %v2940_v34 = vpop.f32.mrb[192].mxu0 }
 0x29a   : > { %v3290_v32 = vmax.f32 %v2936_v28, %v3162_v29  ;;  %v2396_v33 = vadd.f32 %v6216_v47, %v2395_v30  ;;  %v2397_v35 = vpop.f32.mrb[193].mxu1  ;;  %v2942_v36 = vpop.f32.mrb[193].mxu0 }
 0x29b   : > { %v2398_v37 = vpop.f32.mrb[194].mxu1  ;;  %v2943_v41 = vpop.f32.mrb[194].mxu0 }
 0x29c   : > { %v4815_v38 = vpack.c.bf16 %v3290_v32, %v3289_v31  ;;  %v2941_v39 = vadd.f32 %v2940_v34, %v2396_v33  ;;  %v2399_v40 = vadd.f32 %v6216_v47, %v2398_v37  ;;  %v2400_v42 = vpop.f32.mrb[195].mxu1  ;;  %v2945_v43 = vpop.f32.mrb[195].mxu0 }
 0x29e   : > { %4943 = vst [vmem:[%s5945_s14 + $0x178] sm:$0xff] %v4815_v38   ;;  %v3163_v44 = vmul.f32 0.2, %v2941_v39  ;;  %v2944_v45 = vadd.f32 %v2943_v41, %v2399_v40 }
 0x2a0   : > { %v3164_v46 = vmul.f32 0.2, %v2944_v45  ;;  %v3291_v49 = vmax.f32 %v2941_v39, %v3163_v44 }
 0x2a1   : > { %v2403_v48 = vpop.f32.mrb[196].mxu1  ;;  %v2948_v52 = vpop.f32.mrb[196].mxu0 }
 0x2a2   : > { %v3292_v50 = vmax.f32 %v2944_v45, %v3164_v46  ;;  %v2404_v51 = vadd.f32 %v6216_v47, %v2403_v48  ;;  %v2405_v53 = vpop.f32.mrb[197].mxu1  ;;  %v2950_v15 = vpop.f32.mrb[197].mxu0 }
 0x2a3   : > { %v2406_v54 = vpop.f32.mrb[198].mxu1  ;;  %v2951_v58 = vpop.f32.mrb[198].mxu0 }
 0x2a4   : > { %v4820_v55 = vpack.c.bf16 %v3292_v50, %v3291_v49  ;;  %v2949_v56 = vadd.f32 %v2948_v52, %v2404_v51  ;;  %v2407_v57 = vadd.f32 %v6216_v47, %v2406_v54  ;;  %v2408_v59 = vpop.f32.mrb[199].mxu1  ;;  %v2953_v60 = vpop.f32.mrb[199].mxu0 }
 0x2a6   : > { %4944 = vst [vmem:[%s5945_s14 + $0x180] sm:$0xff] %v4820_v55   ;;  %v3165_v61 = vmul.f32 0.2, %v2949_v56  ;;  %v2952_v62 = vadd.f32 %v2951_v58, %v2407_v57 }
 0x2a8   : > { %v3166_v63 = vmul.f32 0.2, %v2952_v62  ;;  %v3293_v1 = vmax.f32 %v2949_v56, %v3165_v61 }
 0x2a9   : > { %v2411_v0 = vpop.f32.mrb[200].mxu1  ;;  %v2956_v4 = vpop.f32.mrb[200].mxu0 }
 0x2aa   : > { %v3294_v2 = vmax.f32 %v2952_v62, %v3166_v63  ;;  %v2412_v3 = vadd.f32 %v6216_v47, %v2411_v0  ;;  %v2413_v5 = vpop.f32.mrb[201].mxu1  ;;  %v2958_v6 = vpop.f32.mrb[201].mxu0 }
 0x2ab   : > { %v2414_v7 = vpop.f32.mrb[202].mxu1  ;;  %v2959_v11 = vpop.f32.mrb[202].mxu0 }
 0x2ac   : > { %v4825_v8 = vpack.c.bf16 %v3294_v2, %v3293_v1  ;;  %v2957_v9 = vadd.f32 %v2956_v4, %v2412_v3  ;;  %v2415_v10 = vadd.f32 %v6216_v47, %v2414_v7  ;;  %v2416_v12 = vpop.f32.mrb[203].mxu1  ;;  %v2961_v13 = vpop.f32.mrb[203].mxu0 }
 0x2ae   : > { %4945 = vst [vmem:[%s5945_s14 + $0x188] sm:$0xff] %v4825_v8   ;;  %v3167_v14 = vmul.f32 0.2, %v2957_v9  ;;  %v2960_v16 = vadd.f32 %v2959_v11, %v2415_v10 }
 0x2b0   : > { %v3168_v17 = vmul.f32 0.2, %v2960_v16  ;;  %v3295_v19 = vmax.f32 %v2957_v9, %v3167_v14 }
 0x2b1   : > { %v2419_v18 = vpop.f32.mrb[204].mxu1  ;;  %v2964_v22 = vpop.f32.mrb[204].mxu0 }
 0x2b2   : > { %v3296_v20 = vmax.f32 %v2960_v16, %v3168_v17  ;;  %v2420_v21 = vadd.f32 %v6216_v47, %v2419_v18  ;;  %v2421_v23 = vpop.f32.mrb[205].mxu1  ;;  %v2966_v24 = vpop.f32.mrb[205].mxu0 }
 0x2b3   : > { %v2422_v25 = vpop.f32.mrb[206].mxu1  ;;  %v2967_v29 = vpop.f32.mrb[206].mxu0 }
 0x2b4   : > { %v4830_v26 = vpack.c.bf16 %v3296_v20, %v3295_v19  ;;  %v2965_v27 = vadd.f32 %v2964_v22, %v2420_v21  ;;  %v2423_v28 = vadd.f32 %v6216_v47, %v2422_v25  ;;  %v2424_v30 = vpop.f32.mrb[207].mxu1  ;;  %v2969_v31 = vpop.f32.mrb[207].mxu0 }
 0x2b6   : > { %4946 = vst [vmem:[%s5945_s14 + $0x190] sm:$0xff] %v4830_v26   ;;  %v3169_v32 = vmul.f32 0.2, %v2965_v27  ;;  %v2968_v33 = vadd.f32 %v2967_v29, %v2423_v28 }
 0x2b8   : > { %v3170_v34 = vmul.f32 0.2, %v2968_v33  ;;  %v3297_v36 = vmax.f32 %v2965_v27, %v3169_v32 }
 0x2b9   : > { %v2427_v35 = vpop.f32.mrb[208].mxu1  ;;  %v2972_v39 = vpop.f32.mrb[208].mxu0 }
 0x2ba   : > { %v3298_v37 = vmax.f32 %v2968_v33, %v3170_v34  ;;  %v2428_v38 = vadd.f32 %v6216_v47, %v2427_v35  ;;  %v2429_v40 = vpop.f32.mrb[209].mxu1  ;;  %v2974_v41 = vpop.f32.mrb[209].mxu0 }
 0x2bb   : > { %v2430_v42 = vpop.f32.mrb[210].mxu1  ;;  %v2975_v46 = vpop.f32.mrb[210].mxu0 }
 0x2bc   : > { %v4835_v43 = vpack.c.bf16 %v3298_v37, %v3297_v36  ;;  %v2973_v44 = vadd.f32 %v2972_v39, %v2428_v38  ;;  %v2431_v45 = vadd.f32 %v6216_v47, %v2430_v42  ;;  %v2432_v48 = vpop.f32.mrb[211].mxu1  ;;  %v2977_v49 = vpop.f32.mrb[211].mxu0 }
 0x2be   : > { %4947 = vst [vmem:[%s5945_s14 + $0x198] sm:$0xff] %v4835_v43   ;;  %v3171_v50 = vmul.f32 0.2, %v2973_v44  ;;  %v2976_v51 = vadd.f32 %v2975_v46, %v2431_v45 }
 0x2c0   : > { %v3172_v52 = vmul.f32 0.2, %v2976_v51  ;;  %v3299_v15 = vmax.f32 %v2973_v44, %v3171_v50 }
 0x2c1   : > { %v2435_v53 = vpop.f32.mrb[212].mxu1  ;;  %v2980_v56 = vpop.f32.mrb[212].mxu0 }
 0x2c2   : > { %v3300_v54 = vmax.f32 %v2976_v51, %v3172_v52  ;;  %v2436_v55 = vadd.f32 %v6216_v47, %v2435_v53  ;;  %v2437_v57 = vpop.f32.mrb[213].mxu1  ;;  %v2982_v58 = vpop.f32.mrb[213].mxu0 }
 0x2c3   : > { %v2438_v59 = vpop.f32.mrb[214].mxu1  ;;  %v2983_v63 = vpop.f32.mrb[214].mxu0 }
 0x2c4   : > { %v4840_v60 = vpack.c.bf16 %v3300_v54, %v3299_v15  ;;  %v2981_v61 = vadd.f32 %v2980_v56, %v2436_v55  ;;  %v2439_v62 = vadd.f32 %v6216_v47, %v2438_v59  ;;  %v2440_v0 = vpop.f32.mrb[215].mxu1  ;;  %v2985_v1 = vpop.f32.mrb[215].mxu0 }
 0x2c6   : > { %4948 = vst [vmem:[%s5945_s14 + $0x1a0] sm:$0xff] %v4840_v60   ;;  %v3173_v2 = vmul.f32 0.2, %v2981_v61  ;;  %v2984_v3 = vadd.f32 %v2983_v63, %v2439_v62 }
 0x2c8   : > { %v3174_v4 = vmul.f32 0.2, %v2984_v3  ;;  %v3301_v6 = vmax.f32 %v2981_v61, %v3173_v2 }
 0x2c9   : > { %v2443_v5 = vpop.f32.mrb[216].mxu1  ;;  %v2988_v9 = vpop.f32.mrb[216].mxu0 }
 0x2ca   : > { %v3302_v7 = vmax.f32 %v2984_v3, %v3174_v4  ;;  %v2444_v8 = vadd.f32 %v6216_v47, %v2443_v5  ;;  %v2445_v10 = vpop.f32.mrb[217].mxu1  ;;  %v2990_v11 = vpop.f32.mrb[217].mxu0 }
 0x2cb   : > { %v2446_v12 = vpop.f32.mrb[218].mxu1  ;;  %v2991_v17 = vpop.f32.mrb[218].mxu0 }
 0x2cc   : > { %v4845_v13 = vpack.c.bf16 %v3302_v7, %v3301_v6  ;;  %v2989_v14 = vadd.f32 %v2988_v9, %v2444_v8  ;;  %v2447_v16 = vadd.f32 %v6216_v47, %v2446_v12  ;;  %v2448_v18 = vpop.f32.mrb[219].mxu1  ;;  %v2993_v19 = vpop.f32.mrb[219].mxu0 }
 0x2ce   : > { %4949 = vst [vmem:[%s5945_s14 + $0x1a8] sm:$0xff] %v4845_v13   ;;  %v3175_v20 = vmul.f32 0.2, %v2989_v14  ;;  %v2992_v21 = vadd.f32 %v2991_v17, %v2447_v16 }
 0x2d0   : > { %v3176_v22 = vmul.f32 0.2, %v2992_v21  ;;  %v3303_v24 = vmax.f32 %v2989_v14, %v3175_v20 }
 0x2d1   : > { %v2451_v23 = vpop.f32.mrb[220].mxu1  ;;  %v2996_v27 = vpop.f32.mrb[220].mxu0 }
 0x2d2   : > { %v3304_v25 = vmax.f32 %v2992_v21, %v3176_v22  ;;  %v2452_v26 = vadd.f32 %v6216_v47, %v2451_v23  ;;  %v2453_v28 = vpop.f32.mrb[221].mxu1  ;;  %v2998_v29 = vpop.f32.mrb[221].mxu0 }
 0x2d3   : > { %v2454_v30 = vpop.f32.mrb[222].mxu1  ;;  %v2999_v34 = vpop.f32.mrb[222].mxu0 }
 0x2d4   : > { %v4850_v31 = vpack.c.bf16 %v3304_v25, %v3303_v24  ;;  %v2997_v32 = vadd.f32 %v2996_v27, %v2452_v26  ;;  %v2455_v33 = vadd.f32 %v6216_v47, %v2454_v30  ;;  %v2456_v35 = vpop.f32.mrb[223].mxu1  ;;  %v3001_v36 = vpop.f32.mrb[223].mxu0 }
 0x2d6   : > { %4950 = vst [vmem:[%s5945_s14 + $0x1b0] sm:$0xff] %v4850_v31   ;;  %v3177_v37 = vmul.f32 0.2, %v2997_v32  ;;  %v3000_v38 = vadd.f32 %v2999_v34, %v2455_v33 }
 0x2d8   : > { %v3178_v39 = vmul.f32 0.2, %v3000_v38  ;;  %v3305_v41 = vmax.f32 %v2997_v32, %v3177_v37 }
 0x2d9   : > { %v2459_v40 = vpop.f32.mrb[224].mxu1  ;;  %v3004_v44 = vpop.f32.mrb[224].mxu0 }
 0x2da   : > { %v3306_v42 = vmax.f32 %v3000_v38, %v3178_v39  ;;  %v2460_v43 = vadd.f32 %v6216_v47, %v2459_v40  ;;  %v2461_v45 = vpop.f32.mrb[225].mxu1  ;;  %v3006_v46 = vpop.f32.mrb[225].mxu0 }
 0x2db   : > { %v2462_v48 = vpop.f32.mrb[226].mxu1  ;;  %v3007_v52 = vpop.f32.mrb[226].mxu0 }
 0x2dc   : > { %v4855_v49 = vpack.c.bf16 %v3306_v42, %v3305_v41  ;;  %v3005_v50 = vadd.f32 %v3004_v44, %v2460_v43  ;;  %v2463_v51 = vadd.f32 %v6216_v47, %v2462_v48  ;;  %v2464_v53 = vpop.f32.mrb[227].mxu1  ;;  %v3009_v15 = vpop.f32.mrb[227].mxu0 }
 0x2de   : > { %4951 = vst [vmem:[%s5945_s14 + $0x1b8] sm:$0xff] %v4855_v49   ;;  %v3179_v54 = vmul.f32 0.2, %v3005_v50  ;;  %v3008_v55 = vadd.f32 %v3007_v52, %v2463_v51 }
 0x2e0   : > { %v3180_v56 = vmul.f32 0.2, %v3008_v55  ;;  %v3307_v58 = vmax.f32 %v3005_v50, %v3179_v54 }
 0x2e1   : > { %v2467_v57 = vpop.f32.mrb[228].mxu1  ;;  %v3012_v61 = vpop.f32.mrb[228].mxu0 }
 0x2e2   : > { %v3308_v59 = vmax.f32 %v3008_v55, %v3180_v56  ;;  %v2468_v60 = vadd.f32 %v6216_v47, %v2467_v57  ;;  %v2469_v62 = vpop.f32.mrb[229].mxu1  ;;  %v3014_v63 = vpop.f32.mrb[229].mxu0 }
 0x2e3   : > { %v2470_v0 = vpop.f32.mrb[230].mxu1  ;;  %v3015_v4 = vpop.f32.mrb[230].mxu0 }
 0x2e4   : > { %v4860_v1 = vpack.c.bf16 %v3308_v59, %v3307_v58  ;;  %v3013_v2 = vadd.f32 %v3012_v61, %v2468_v60  ;;  %v2471_v3 = vadd.f32 %v6216_v47, %v2470_v0  ;;  %v2472_v5 = vpop.f32.mrb[231].mxu1  ;;  %v3017_v6 = vpop.f32.mrb[231].mxu0 }
 0x2e6   : > { %4952 = vst [vmem:[%s5945_s14 + $0x1c0] sm:$0xff] %v4860_v1   ;;  %v3181_v7 = vmul.f32 0.2, %v3013_v2  ;;  %v3016_v8 = vadd.f32 %v3015_v4, %v2471_v3 }
 0x2e8   : > { %v3182_v9 = vmul.f32 0.2, %v3016_v8  ;;  %v3309_v11 = vmax.f32 %v3013_v2, %v3181_v7 }
 0x2e9   : > { %v2475_v10 = vpop.f32.mrb[232].mxu1  ;;  %v3020_v14 = vpop.f32.mrb[232].mxu0 }
 0x2ea   : > { %v3310_v12 = vmax.f32 %v3016_v8, %v3182_v9  ;;  %v2476_v13 = vadd.f32 %v6216_v47, %v2475_v10  ;;  %v2477_v16 = vpop.f32.mrb[233].mxu1  ;;  %v3022_v17 = vpop.f32.mrb[233].mxu0 }
 0x2eb   : > { %v2478_v18 = vpop.f32.mrb[234].mxu1  ;;  %v3023_v22 = vpop.f32.mrb[234].mxu0 }
 0x2ec   : > { %v4865_v19 = vpack.c.bf16 %v3310_v12, %v3309_v11  ;;  %v3021_v20 = vadd.f32 %v3020_v14, %v2476_v13  ;;  %v2479_v21 = vadd.f32 %v6216_v47, %v2478_v18  ;;  %v2480_v23 = vpop.f32.mrb[235].mxu1  ;;  %v3025_v24 = vpop.f32.mrb[235].mxu0 }
 0x2ee   : > { %4953 = vst [vmem:[%s5945_s14 + $0x1c8] sm:$0xff] %v4865_v19   ;;  %v3183_v25 = vmul.f32 0.2, %v3021_v20  ;;  %v3024_v26 = vadd.f32 %v3023_v22, %v2479_v21 }
 0x2f0   : > { %v3184_v27 = vmul.f32 0.2, %v3024_v26  ;;  %v3311_v29 = vmax.f32 %v3021_v20, %v3183_v25 }
 0x2f1   : > { %v2483_v28 = vpop.f32.mrb[236].mxu1  ;;  %v3028_v32 = vpop.f32.mrb[236].mxu0 }
 0x2f2   : > { %v3312_v30 = vmax.f32 %v3024_v26, %v3184_v27  ;;  %v2484_v31 = vadd.f32 %v6216_v47, %v2483_v28  ;;  %v2485_v33 = vpop.f32.mrb[237].mxu1  ;;  %v3030_v34 = vpop.f32.mrb[237].mxu0 }
 0x2f3   : > { %v2486_v35 = vpop.f32.mrb[238].mxu1  ;;  %v3031_v39 = vpop.f32.mrb[238].mxu0 }
 0x2f4   : > { %v4870_v36 = vpack.c.bf16 %v3312_v30, %v3311_v29  ;;  %v3029_v37 = vadd.f32 %v3028_v32, %v2484_v31  ;;  %v2487_v38 = vadd.f32 %v6216_v47, %v2486_v35  ;;  %v2488_v40 = vpop.f32.mrb[239].mxu1  ;;  %v3033_v41 = vpop.f32.mrb[239].mxu0 }
 0x2f6   : > { %4954 = vst [vmem:[%s5945_s14 + $0x1d0] sm:$0xff] %v4870_v36   ;;  %v3185_v42 = vmul.f32 0.2, %v3029_v37  ;;  %v3032_v43 = vadd.f32 %v3031_v39, %v2487_v38 }
 0x2f8   : > { %v3186_v44 = vmul.f32 0.2, %v3032_v43  ;;  %v3313_v46 = vmax.f32 %v3029_v37, %v3185_v42 }
 0x2f9   : > { %v2491_v45 = vpop.f32.mrb[240].mxu1  ;;  %v3036_v50 = vpop.f32.mrb[240].mxu0 }
 0x2fa   : > { %v3314_v48 = vmax.f32 %v3032_v43, %v3186_v44  ;;  %v2492_v49 = vadd.f32 %v6216_v47, %v2491_v45  ;;  %v2493_v51 = vpop.f32.mrb[241].mxu1  ;;  %v3038_v52 = vpop.f32.mrb[241].mxu0 }
 0x2fb   : > { %v2494_v53 = vpop.f32.mrb[242].mxu1  ;;  %v3039_v56 = vpop.f32.mrb[242].mxu0 }
 0x2fc   : > { %v4875_v15 = vpack.c.bf16 %v3314_v48, %v3313_v46  ;;  %v3037_v54 = vadd.f32 %v3036_v50, %v2492_v49  ;;  %v2495_v55 = vadd.f32 %v6216_v47, %v2494_v53  ;;  %v2496_v57 = vpop.f32.mrb[243].mxu1  ;;  %v3041_v58 = vpop.f32.mrb[243].mxu0 }
 0x2fe   : > { %4955 = vst [vmem:[%s5945_s14 + $0x1d8] sm:$0xff] %v4875_v15   ;;  %v3187_v59 = vmul.f32 0.2, %v3037_v54  ;;  %v3040_v60 = vadd.f32 %v3039_v56, %v2495_v55 }
 0x300   : > { %v3188_v61 = vmul.f32 0.2, %v3040_v60  ;;  %v3315_v63 = vmax.f32 %v3037_v54, %v3187_v59 }
 0x301   : > { %v2499_v62 = vpop.f32.mrb[244].mxu1  ;;  %v3044_v2 = vpop.f32.mrb[244].mxu0 }
 0x302   : > { %v3316_v0 = vmax.f32 %v3040_v60, %v3188_v61  ;;  %v2500_v1 = vadd.f32 %v6216_v47, %v2499_v62  ;;  %v2501_v3 = vpop.f32.mrb[245].mxu1  ;;  %v3046_v4 = vpop.f32.mrb[245].mxu0 }
 0x303   : > { %v2502_v5 = vpop.f32.mrb[246].mxu1  ;;  %v3047_v9 = vpop.f32.mrb[246].mxu0 }
 0x304   : > { %v4880_v6 = vpack.c.bf16 %v3316_v0, %v3315_v63  ;;  %v3045_v7 = vadd.f32 %v3044_v2, %v2500_v1  ;;  %v2503_v8 = vadd.f32 %v6216_v47, %v2502_v5  ;;  %v2504_v10 = vpop.f32.mrb[247].mxu1  ;;  %v3049_v11 = vpop.f32.mrb[247].mxu0 }
 0x306   : > { %4956 = vst [vmem:[%s5945_s14 + $0x1e0] sm:$0xff] %v4880_v6   ;;  %v3189_v12 = vmul.f32 0.2, %v3045_v7  ;;  %v3048_v13 = vadd.f32 %v3047_v9, %v2503_v8 }
 0x308   : > { %v3190_v14 = vmul.f32 0.2, %v3048_v13  ;;  %v3317_v17 = vmax.f32 %v3045_v7, %v3189_v12 }
 0x309   : > { %v2507_v16 = vpop.f32.mrb[248].mxu1  ;;  %v3052_v20 = vpop.f32.mrb[248].mxu0 }
 0x30a   : > { %v3318_v18 = vmax.f32 %v3048_v13, %v3190_v14  ;;  %v2508_v19 = vadd.f32 %v6216_v47, %v2507_v16  ;;  %v2509_v21 = vpop.f32.mrb[249].mxu1  ;;  %v3054_v22 = vpop.f32.mrb[249].mxu0 }
 0x30b   : > { %v2510_v23 = vpop.f32.mrb[250].mxu1  ;;  %v3055_v27 = vpop.f32.mrb[250].mxu0 }
 0x30c   : > { %v4885_v24 = vpack.c.bf16 %v3318_v18, %v3317_v17  ;;  %v3053_v25 = vadd.f32 %v3052_v20, %v2508_v19  ;;  %v2511_v26 = vadd.f32 %v6216_v47, %v2510_v23  ;;  %v2512_v28 = vpop.f32.mrb[251].mxu1  ;;  %v3057_v29 = vpop.f32.mrb[251].mxu0 }
 0x30e   : > { %4957 = vst [vmem:[%s5945_s14 + $0x1e8] sm:$0xff] %v4885_v24   ;;  %v3191_v30 = vmul.f32 0.2, %v3053_v25  ;;  %v3056_v31 = vadd.f32 %v3055_v27, %v2511_v26 }
 0x310   : > { %v3192_v32 = vmul.f32 0.2, %v3056_v31  ;;  %v3319_v34 = vmax.f32 %v3053_v25, %v3191_v30 }
 0x311   : > { %v2515_v33 = vpop.f32.mrb[252].mxu1  ;;  %v3060_v37 = vpop.f32.mrb[252].mxu0 }
 0x312   : > { %v3320_v35 = vmax.f32 %v3056_v31, %v3192_v32  ;;  %v2516_v36 = vadd.f32 %v6216_v47, %v2515_v33  ;;  %v2517_v38 = vpop.f32.mrb[253].mxu1  ;;  %v3062_v39 = vpop.f32.mrb[253].mxu0 }
 0x313   : > { %v2518_v40 = vpop.f32.mrb[254].mxu1  ;;  %v3063_v44 = vpop.f32.mrb[254].mxu0 }
 0x314   : > { %v4890_v41 = vpack.c.bf16 %v3320_v35, %v3319_v34  ;;  %v3061_v42 = vadd.f32 %v3060_v37, %v2516_v36  ;;  %v2519_v43 = vadd.f32 %v6216_v47, %v2518_v40  ;;  %v2520_v45 = vpop.f32.mrb[255].mxu1  ;;  %v3065_v46 = vpop.f32.mrb[255].mxu0 }
 0x316   : > { %4958 = vst [vmem:[%s5945_s14 + $0x1f0] sm:$0xff] %v4890_v41   ;;  %v3193_v48 = vmul.f32 0.2, %v3061_v42  ;;  %v3064_v49 = vadd.f32 %v3063_v44, %v2519_v43 }
 0x318   : > { %v3194_v50 = vmul.f32 0.2, %v3064_v49  ;;  %v3321_v51 = vmax.f32 %v3061_v42, %v3193_v48 }
 0x31a   : > { %v3322_v52 = vmax.f32 %v3064_v49, %v3194_v50 }
 0x31c   : > { %v4895_v53 = vpack.c.bf16 %v3322_v52, %v3321_v51 }
 0x31e   : > { %4959 = vst [vmem:[%s5945_s14 + $0x1f8] sm:$0xff] %v4895_v53  }
 0x31f PF: > { %s13_s12 = sadd.s32 1, %s5649_s12  }
 0x320   : > { %p10_p4 = scmp.ge.s32.totalorder %s13_s12, 4  }
 0x322   :  { %12 = sbr.rel (!%p10_p4) target bundleno = 1 (0x1), region = 62 }

// kernel: _lambda_.8
= control target key start
LH: loop header
LB: loop body
LE: loop exit
PB: predicated region body
PF: predicated region fallthrough
CT: control target
= control target key end

     0   :  { %v4768_v0 = vmov 0   ;;  %s5999_s1 = inlined_call_operand.vmem [shape: bf16[1024,128], index: 1, kind: input, shape index: {}]   ;;  %s6000_s0 = inlined_call_operand.vmem [shape: bf16[512,1024], index: 0, kind: input, shape index: {}]   ;;  %s6001_s2 = inlined_call_operand.vmem [shape: f32[1,128], index: 2, kind: input, shape index: {}]   ;;  %s6002_s3 = inlined_call_operand.vmem [shape: bf16[512,128], index: 3, kind: output, shape index: {}]  }
   0x1   :  { %2070 = vmatprep.subr.bf16.mxu1 %v4768_v0  ;;  %2648 = vmatprep.subr.bf16.mxu0 %v4768_v0  ;;  %v4703_v1 = vld [vmem:[%s5999_s1] sm:$0xff]   ;;  %v4705_v3 = vld [vmem:[%s5999_s1 + $0x8] sm:$0xff]   ;;  %v4707_v5 = vld [vmem:[%s5999_s1 + $0x10] sm:$0xff]  }
   0x2   :  { %v4704_v2 = vld [vmem:[%s5999_s1 + $0x100] sm:$0xff]   ;;  %2071 = vmatpush1.bf16.msra.mxu1 %v4703_v1  ;;  %v4706_v4 = vld [vmem:[%s5999_s1 + $0x108] sm:$0xff]   ;;  %v4708_v6 = vld [vmem:[%s5999_s1 + $0x110] sm:$0xff]  }
   0x3   :  { %2649 = vmatpush1.bf16.msra.mxu0 %v4704_v2  ;;  %2072 = vmatprep.subr.bf16.mxu1 %v4768_v0  ;;  %v4709_v7 = vld [vmem:[%s5999_s1 + $0x18] sm:$0xff]   ;;  %v4711_v9 = vld [vmem:[%s5999_s1 + $0x20] sm:$0xff]   ;;  %v4713_v11 = vld [vmem:[%s5999_s1 + $0x28] sm:$0xff]  }
   0x4   :  { %2650 = vmatprep.subr.bf16.mxu0 %v4768_v0  ;;  %v4710_v8 = vld [vmem:[%s5999_s1 + $0x118] sm:$0xff]   ;;  %v4712_v10 = vld [vmem:[%s5999_s1 + $0x120] sm:$0xff]   ;;  %v4714_v12 = vld [vmem:[%s5999_s1 + $0x128] sm:$0xff]  }
   0x5   :  { %v4715_v13 = vld [vmem:[%s5999_s1 + $0x30] sm:$0xff]   ;;  %v4717_v15 = vld [vmem:[%s5999_s1 + $0x38] sm:$0xff]   ;;  %v4719_v17 = vld [vmem:[%s5999_s1 + $0x40] sm:$0xff]  }
   0x6   :  { %2073 = vmatpush1.bf16.msra.mxu1 %v4705_v3  ;;  %v4716_v14 = vld [vmem:[%s5999_s1 + $0x130] sm:$0xff]   ;;  %v4718_v16 = vld [vmem:[%s5999_s1 + $0x138] sm:$0xff]   ;;  %v4720_v18 = vld [vmem:[%s5999_s1 + $0x140] sm:$0xff]  }
   0x7   :  { %2651 = vmatpush1.bf16.msra.mxu0 %v4706_v4  ;;  %2074 = vmatprep.subr.bf16.mxu1 %v4768_v0  ;;  %v4864_v19 = vld [vmem:[%s6000_s0] sm:$0xff]  ;;  %v4874_v21 = vld [vmem:[%s6000_s0 + $0x10] sm:$0xff]  ;;  %v4721_v24 = vld [vmem:[%s5999_s1 + $0x48] sm:$0xff]  }
   0x8   :  { %2652 = vmatprep.subr.bf16.mxu0 %v4768_v0  ;;  %v4869_v20 = vld [vmem:[%s6000_s0 + $0x20] sm:$0xff]  ;;  %v4881_v23 = vld [vmem:[%s6000_s0 + $0x30] sm:$0xff]  ;;  %v4722_v26 = vld [vmem:[%s5999_s1 + $0x148] sm:$0xff]  }
   0x9   :  { %v3680_v22 = vcombine.high %v4864_v19, %v4869_v20  ;;  %v3684_v25 = vcombine.high %v4874_v21, %v4881_v23  ;;  %v4723_v27 = vld [vmem:[%s5999_s1 + $0x50] sm:$0xff]   ;;  %v4725_v29 = vld [vmem:[%s5999_s1 + $0x58] sm:$0xff]   ;;  %v4727_v31 = vld [vmem:[%s5999_s1 + $0x60] sm:$0xff]   ;;  %v3679_v42 = vcombine.low %v4864_v19, %v4869_v20  ;;  %v3683_v44 = vcombine.low %v4874_v21, %v4881_v23 }
   0xa   :  { %2075 = vmatpush1.bf16.msra.mxu1 %v4707_v5  ;;  %v4724_v28 = vld [vmem:[%s5999_s1 + $0x150] sm:$0xff]   ;;  %v4726_v30 = vld [vmem:[%s5999_s1 + $0x158] sm:$0xff]   ;;  %v4728_v32 = vld [vmem:[%s5999_s1 + $0x160] sm:$0xff]  }
   0xb   :  { %2653 = vmatpush1.bf16.msra.mxu0 %v4708_v6  ;;  %2076 = vmatprep.subr.bf16.mxu1 %v4768_v0  ;;  %v4729_v33 = vld [vmem:[%s5999_s1 + $0x68] sm:$0xff]   ;;  %v4731_v35 = vld [vmem:[%s5999_s1 + $0x70] sm:$0xff]   ;;  %v4733_v37 = vld [vmem:[%s5999_s1 + $0x78] sm:$0xff]  }
   0xc   :  { %2654 = vmatprep.subr.bf16.mxu0 %v4768_v0  ;;  %2102 = vmatprep.mubr.bf16.mxu1 %v3680_v22  ;;  %v4730_v34 = vld [vmem:[%s5999_s1 + $0x168] sm:$0xff]   ;;  %v4732_v36 = vld [vmem:[%s5999_s1 + $0x170] sm:$0xff]   ;;  %v4734_v38 = vld [vmem:[%s5999_s1 + $0x178] sm:$0xff]  }
   0xd   :  { %2680 = vmatprep.mubr.bf16.mxu0 %v3684_v25  ;;  %v23_v39 = vld [vmem:[%s6000_s0 + $0x40] sm:$0xff]  ;;  %v25_v41 = vld [vmem:[%s6000_s0 + $0x50] sm:$0xff]  ;;  %v4737_v51 = vld [vmem:[%s5999_s1 + $0x88] sm:$0xff]  }
   0xe   :  { %2077 = vmatpush1.bf16.msra.mxu1 %v4709_v7  ;;  %v27_v40 = vld [vmem:[%s6000_s0 + $0x60] sm:$0xff]  ;;  %v29_v43 = vld [vmem:[%s6000_s0 + $0x70] sm:$0xff]  ;;  %v4738_v52 = vld [vmem:[%s5999_s1 + $0x188] sm:$0xff]  }
   0xf   :  { %2655 = vmatpush1.bf16.msra.mxu0 %v4710_v8  ;;  %2078 = vmatprep.subr.bf16.mxu1 %v4768_v0  ;;  %v4735_v45 = vld [vmem:[%s5999_s1 + $0x80] sm:$0xff]   ;;  %v3688_v47 = vcombine.high %v23_v39, %v27_v40  ;;  %v3692_v48 = vcombine.high %v25_v41, %v29_v43  ;;  %v33_v53 = vld [vmem:[%s6000_s0 + $0x90] sm:$0xff]  ;;  %v3687_v55 = vcombine.low %v23_v39, %v27_v40  ;;  %v4741_v2 = vld [vmem:[%s5999_s1 + $0x98] sm:$0xff]  }
  0x10   :  { %2656 = vmatprep.subr.bf16.mxu0 %v4768_v0  ;;  %v4736_v46 = vld [vmem:[%s5999_s1 + $0x180] sm:$0xff]   ;;  %v37_v54 = vld [vmem:[%s6000_s0 + $0xb0] sm:$0xff]  ;;  %v3691_v56 = vcombine.low %v25_v41, %v29_v43  ;;  %v4742_v3 = vld [vmem:[%s5999_s1 + $0x198] sm:$0xff]  }
  0x11   :  { %v31_v49 = vld [vmem:[%s6000_s0 + $0x80] sm:$0xff]  ;;  %v3700_v58 = vcombine.high %v33_v53, %v37_v54  ;;  %v4739_v59 = vld [vmem:[%s5999_s1 + $0x90] sm:$0xff]   ;;  %v3699_v6 = vcombine.low %v33_v53, %v37_v54  ;;  %v4754_v39 = vld [vmem:[%s5999_s1 + $0x1c8] sm:$0xff]  }
  0x12   :  { %2079 = vmatpush1.bf16.msra.mxu1 %v4711_v9  ;;  %v35_v50 = vld [vmem:[%s6000_s0 + $0xa0] sm:$0xff]  ;;  %v4740_v60 = vld [vmem:[%s5999_s1 + $0x190] sm:$0xff]   ;;  %v4757_v54 = vld [vmem:[%s5999_s1 + $0xd8] sm:$0xff]  }
  0x13   :  { %2657 = vmatpush1.bf16.msra.mxu0 %v4712_v10  ;;  %2080 = vmatprep.subr.bf16.mxu1 %v4768_v0  ;;  %v3696_v57 = vcombine.high %v31_v49, %v35_v50  ;;  %v39_v61 = vld [vmem:[%s6000_s0 + $0xc0] sm:$0xff]  ;;  %v41_v63 = vld [vmem:[%s6000_s0 + $0xd0] sm:$0xff]  ;;  %v3695_v4 = vcombine.low %v31_v49, %v35_v50 }
  0x14   :  { %2658 = vmatprep.subr.bf16.mxu0 %v4768_v0  ;;  %v43_v62 = vld [vmem:[%s6000_s0 + $0xe0] sm:$0xff]  ;;  %v45_v1 = vld [vmem:[%s6000_s0 + $0xf0] sm:$0xff] }
  0x15   :  { %v4743_v5 = vld [vmem:[%s5999_s1 + $0xa0] sm:$0xff]   ;;  %v3704_v7 = vcombine.high %v39_v61, %v43_v62  ;;  %v3708_v9 = vcombine.high %v41_v63, %v45_v1  ;;  %v4747_v20 = vld [vmem:[%s5999_s1 + $0xb0] sm:$0xff]  }
  0x16   :  { %2081 = vmatpush1.bf16.msra.mxu1 %v4713_v11  ;;  %v4744_v8 = vld [vmem:[%s5999_s1 + $0x1a0] sm:$0xff]   ;;  %v4748_v21 = vld [vmem:[%s5999_s1 + $0x1b0] sm:$0xff]  }
  0x17   :  { %2659 = vmatpush1.bf16.msra.mxu0 %v4714_v12  ;;  %2082 = vmatprep.subr.bf16.mxu1 %v4768_v0  ;;  %v47_v10 = vld [vmem:[%s6000_s0 + $0x100] sm:$0xff]  ;;  %v49_v12 = vld [vmem:[%s6000_s0 + $0x110] sm:$0xff] }
  0x18   :  { %2660 = vmatprep.subr.bf16.mxu0 %v4768_v0  ;;  %v51_v11 = vld [vmem:[%s6000_s0 + $0x120] sm:$0xff]  ;;  %v57_v25 = vld [vmem:[%s6000_s0 + $0x150] sm:$0xff] }
  0x19   :  { %v55_v22 = vld [vmem:[%s6000_s0 + $0x140] sm:$0xff]  ;;  %v77_v49 = vld [vmem:[%s6000_s0 + $0x1f0] sm:$0xff] }
  0x1a   :  { %2083 = vmatpush1.bf16.msra.mxu1 %v4715_v13  ;;  %v53_v13 = vld [vmem:[%s6000_s0 + $0x130] sm:$0xff]  ;;  %v59_v23 = vld [vmem:[%s6000_s0 + $0x160] sm:$0xff] }
  0x1b   :  { %2661 = vmatpush1.bf16.msra.mxu0 %v4716_v14  ;;  %2084 = vmatprep.subr.bf16.mxu1 %v4768_v0  ;;  %v4745_v14 = vld [vmem:[%s5999_s1 + $0xa8] sm:$0xff]   ;;  %v3716_v19 = vcombine.high %v49_v12, %v53_v13  ;;  %v3719_v40 = vcombine.low %v55_v22, %v59_v23 }
  0x1c   :  { %2662 = vmatprep.subr.bf16.mxu0 %v4768_v0 }
  0x1e   :  { %2085 = vmatpush1.bf16.msra.mxu1 %v4717_v15  ;;  %v4746_v15 = vld [vmem:[%s5999_s1 + $0x1a8] sm:$0xff]  }
  0x1f   :  { %2663 = vmatpush1.bf16.msra.mxu0 %v4718_v16  ;;  %2086 = vmatprep.subr.bf16.mxu1 %v4768_v0  ;;  %v3703_v16 = vcombine.low %v39_v61, %v43_v62 }
  0x20   :  { %2664 = vmatprep.subr.bf16.mxu0 %v4768_v0 }
  0x22   :  { %2087 = vmatpush1.bf16.msra.mxu1 %v4719_v17  ;;  %v3707_v17 = vcombine.low %v41_v63, %v45_v1  ;;  %v87_v1 = vld [vmem:[%s6000_s0 + $0x240] sm:$0xff] }
  0x23   :  { %2665 = vmatpush1.bf16.msra.mxu0 %v4720_v18  ;;  %2088 = vmatprep.subr.bf16.mxu1 %v4768_v0  ;;  %v3712_v18 = vcombine.high %v47_v10, %v51_v11 }
  0x24   :  { %2666 = vmatprep.subr.bf16.mxu0 %v4768_v0 }
  0x26   :  { %2089 = vmatpush1.bf16.msra.mxu1 %v4721_v24  ;;  %v4749_v24 = vld [vmem:[%s5999_s1 + $0xb8] sm:$0xff]  }
  0x27   :  { %2667 = vmatpush1.bf16.msra.mxu0 %v4722_v26  ;;  %2090 = vmatprep.subr.bf16.mxu1 %v4768_v0  ;;  %v61_v26 = vld [vmem:[%s6000_s0 + $0x170] sm:$0xff] }
  0x28   :  { %2668 = vmatprep.subr.bf16.mxu0 %v4768_v0  ;;  %v3723_v41 = vcombine.low %v57_v25, %v61_v26 }
  0x2a   :  { %2091 = vmatpush1.bf16.msra.mxu1 %v4723_v27  ;;  %v4750_v27 = vld [vmem:[%s5999_s1 + $0x1b8] sm:$0xff]  }
  0x2b   :  { %2669 = vmatpush1.bf16.msra.mxu0 %v4724_v28  ;;  %2092 = vmatprep.subr.bf16.mxu1 %v4768_v0  ;;  %v3711_v28 = vcombine.low %v47_v10, %v51_v11  ;;  %v4760_v10 = vld [vmem:[%s5999_s1 + $0x1e0] sm:$0xff]  }
  0x2c   :  { %2670 = vmatprep.subr.bf16.mxu0 %v4768_v0  ;;  %v95_v11 = vld [vmem:[%s6000_s0 + $0x280] sm:$0xff] }
  0x2e   :  { %2093 = vmatpush1.bf16.msra.mxu1 %v4725_v29  ;;  %v3715_v29 = vcombine.low %v49_v12, %v53_v13  ;;  %v99_v12 = vld [vmem:[%s6000_s0 + $0x2a0] sm:$0xff]  ;;  %v97_v13 = vld [vmem:[%s6000_s0 + $0x290] sm:$0xff] }
  0x2f   :  { %2671 = vmatpush1.bf16.msra.mxu0 %v4726_v30  ;;  %2094 = vmatprep.subr.bf16.mxu1 %v4768_v0  ;;  %v3720_v30 = vcombine.high %v55_v22, %v59_v23  ;;  %v109_v22 = vld [vmem:[%s6000_s0 + $0x2f0] sm:$0xff]  ;;  %v3759_v23 = vcombine.low %v95_v11, %v99_v12 }
  0x30   :  { %2672 = vmatprep.subr.bf16.mxu0 %v4768_v0 }
  0x32   :  { %2095 = vmatpush1.bf16.msra.mxu1 %v4727_v31  ;;  %v3724_v31 = vcombine.high %v57_v25, %v61_v26 }
  0x33   :  { %2673 = vmatpush1.bf16.msra.mxu0 %v4728_v32  ;;  %2096 = vmatprep.subr.bf16.mxu1 %v4768_v0  ;;  %v4751_v32 = vld [vmem:[%s5999_s1 + $0xc0] sm:$0xff]  }
  0x34   :  { %2674 = vmatprep.subr.bf16.mxu0 %v4768_v0 }
  0x36   :  { %2097 = vmatpush1.bf16.msra.mxu1 %v4729_v33  ;;  %v4752_v33 = vld [vmem:[%s5999_s1 + $0x1c0] sm:$0xff]  }
  0x37   :  { %2675 = vmatpush1.bf16.msra.mxu0 %v4730_v34  ;;  %2098 = vmatprep.subr.bf16.mxu1 %v4768_v0  ;;  %v63_v34 = vld [vmem:[%s6000_s0 + $0x180] sm:$0xff] }
  0x38   :  { %2676 = vmatprep.subr.bf16.mxu0 %v4768_v0 }
  0x3a   :  { %2099 = vmatpush1.bf16.msra.mxu1 %v4731_v35  ;;  %v67_v35 = vld [vmem:[%s6000_s0 + $0x1a0] sm:$0xff] }
  0x3b   :  { %2677 = vmatpush1.bf16.msra.mxu0 %v4732_v36  ;;  %2100 = vmatprep.subr.bf16.mxu1 %v4768_v0  ;;  %v4753_v36 = vld [vmem:[%s5999_s1 + $0xc8] sm:$0xff]   ;;  %v3727_v50 = vcombine.low %v63_v34, %v67_v35 }
  0x3c   :  { %2678 = vmatprep.subr.bf16.mxu0 %v4768_v0 }
  0x3e   :  { %2101 = vmatpush1.bf16.msra.mxu1 %v4733_v37  ;;  %v65_v37 = vld [vmem:[%s6000_s0 + $0x190] sm:$0xff] }
  0x3f   :  { %2679 = vmatpush1.bf16.msra.mxu0 %v4734_v38  ;;  %2359 = vmatprep.subr.bf16.mxu1 %v4768_v0  ;;  %v69_v38 = vld [vmem:[%s6000_s0 + $0x1b0] sm:$0xff] }
  0x40   :  { %2937 = vmatprep.subr.bf16.mxu0 %v4768_v0  ;;  %v3732_v43 = vcombine.high %v65_v37, %v69_v38 }
  0x41   :  { %2103 = vmatmul.mubr.bf16.vlgmr.msra.gmra.mrb[0].mxu1 %v3679_v42  ;;  %v3728_v42 = vcombine.high %v63_v34, %v67_v35 }
  0x42   :  { %2681 = vmatmul.mubr.bf16.vlgmr.msra.gmra.mrb[0].mxu0 %v3683_v44  ;;  %2360 = vmatpush1.bf16.msra.mxu1 %v4735_v45  ;;  %v4755_v44 = vld [vmem:[%s5999_s1 + $0xd0] sm:$0xff]  }
  0x43   :  { %2938 = vmatpush1.bf16.msra.mxu0 %v4736_v46  ;;  %2110 = vmatprep.mubr.bf16.mxu1 %v3688_v47  ;;  %v4756_v45 = vld [vmem:[%s5999_s1 + $0x1d0] sm:$0xff]   ;;  %v71_v46 = vld [vmem:[%s6000_s0 + $0x1c0] sm:$0xff] }
  0x44   :  { %2688 = vmatprep.mubr.bf16.mxu0 %v3692_v48  ;;  %2361 = vmatprep.subr.bf16.mxu1 %v4768_v0  ;;  %v75_v47 = vld [vmem:[%s6000_s0 + $0x1e0] sm:$0xff]  ;;  %v73_v48 = vld [vmem:[%s6000_s0 + $0x1d0] sm:$0xff] }
  0x45   :  { %2939 = vmatprep.subr.bf16.mxu0 %v4768_v0  ;;  %v3740_v53 = vcombine.high %v73_v48, %v77_v49  ;;  %v3739_v61 = vcombine.low %v73_v48, %v77_v49  ;;  %v131_v48 = vld [vmem:[%s6000_s0 + $0x3a0] sm:$0xff]  ;;  %v129_v49 = vld [vmem:[%s6000_s0 + $0x390] sm:$0xff] }
  0x46   :  { %2362 = vmatpush1.bf16.msra.mxu1 %v4737_v51  ;;  %v3731_v51 = vcombine.low %v65_v37, %v69_v38  ;;  %v119_v37 = vld [vmem:[%s6000_s0 + $0x340] sm:$0xff] }
  0x47   :  { %2940 = vmatpush1.bf16.msra.mxu0 %v4738_v52  ;;  %2363 = vmatprep.subr.bf16.mxu1 %v4768_v0  ;;  %v3736_v52 = vcombine.high %v71_v46, %v75_v47  ;;  %v123_v38 = vld [vmem:[%s6000_s0 + $0x360] sm:$0xff] }
  0x48   :  { %2941 = vmatprep.subr.bf16.mxu0 %v4768_v0 }
  0x49   :  { %2111 = vmatmul.mubr.bf16.gmra.mrb[4].mxu1 %v3687_v55  ;;  %v4758_v55 = vld [vmem:[%s5999_s1 + $0x1d8] sm:$0xff]  }
  0x4a   :  { %2689 = vmatmul.mubr.bf16.gmra.mrb[4].mxu0 %v3691_v56  ;;  %2118 = vmatprep.mubr.bf16.mxu1 %v3696_v57  ;;  %v79_v56 = vld [vmem:[%s6000_s0 + $0x200] sm:$0xff] }
  0x4b   :  { %2696 = vmatprep.mubr.bf16.mxu0 %v3700_v58  ;;  %2364 = vmatpush1.bf16.msra.mxu1 %v4739_v59  ;;  %v83_v57 = vld [vmem:[%s6000_s0 + $0x220] sm:$0xff]  ;;  %v81_v58 = vld [vmem:[%s6000_s0 + $0x210] sm:$0xff] }
  0x4c   :  { %2942 = vmatpush1.bf16.msra.mxu0 %v4740_v60  ;;  %2365 = vmatprep.subr.bf16.mxu1 %v4768_v0  ;;  %v85_v59 = vld [vmem:[%s6000_s0 + $0x230] sm:$0xff]  ;;  %v3735_v60 = vcombine.low %v71_v46, %v75_v47  ;;  %v3744_v62 = vcombine.high %v79_v56, %v83_v57  ;;  %v127_v47 = vld [vmem:[%s6000_s0 + $0x380] sm:$0xff] }
  0x4d   :  { %2943 = vmatprep.subr.bf16.mxu0 %v4768_v0  ;;  %v3748_v63 = vcombine.high %v81_v58, %v85_v59  ;;  %v4764_v46 = vld [vmem:[%s5999_s1 + $0x1f0] sm:$0xff]  }
  0x4f   :  { %2366 = vmatpush1.bf16.msra.mxu1 %v4741_v2  ;;  %v91_v2 = vld [vmem:[%s6000_s0 + $0x260] sm:$0xff] }
  0x50   :  { %2944 = vmatpush1.bf16.msra.mxu0 %v4742_v3  ;;  %2367 = vmatprep.subr.bf16.mxu1 %v4768_v0  ;;  %v89_v3 = vld [vmem:[%s6000_s0 + $0x250] sm:$0xff] }
  0x51   :  { %2119 = vmatmul.mubr.bf16.gmra.mrb[8].mxu1 %v3695_v4  ;;  %2945 = vmatprep.subr.bf16.mxu0 %v4768_v0  ;;  %v93_v4 = vld [vmem:[%s6000_s0 + $0x270] sm:$0xff] }
  0x52   :  { %2697 = vmatmul.mubr.bf16.gmra.mrb[8].mxu0 %v3699_v6  ;;  %2126 = vmatprep.mubr.bf16.mxu1 %v3704_v7  ;;  %v3747_v6 = vcombine.low %v81_v58, %v85_v59  ;;  %v3752_v7 = vcombine.high %v87_v1, %v91_v2  ;;  %v3791_v58 = vcombine.low %v127_v47, %v131_v48 }
  0x53   :  { %2704 = vmatprep.mubr.bf16.mxu0 %v3708_v9  ;;  %2368 = vmatpush1.bf16.msra.mxu1 %v4743_v5  ;;  %v3743_v5 = vcombine.low %v79_v56, %v83_v57  ;;  %v4759_v9 = vld [vmem:[%s5999_s1 + $0xe0] sm:$0xff]   ;;  %v137_v57 = vld [vmem:[%s6000_s0 + $0x3d0] sm:$0xff] }
  0x54   :  { %2946 = vmatpush1.bf16.msra.mxu0 %v4744_v8  ;;  %2369 = vmatprep.subr.bf16.mxu1 %v4768_v0  ;;  %v3756_v8 = vcombine.high %v89_v3, %v93_v4  ;;  %v139_v56 = vld [vmem:[%s6000_s0 + $0x3e0] sm:$0xff] }
  0x55   :  { %2947 = vmatprep.subr.bf16.mxu0 %v4768_v0 }
  0x57   :  { %2370 = vmatpush1.bf16.msra.mxu1 %v4745_v14  ;;  %v101_v14 = vld [vmem:[%s6000_s0 + $0x2b0] sm:$0xff] }
  0x58   :  { %2948 = vmatpush1.bf16.msra.mxu0 %v4746_v15  ;;  %2371 = vmatprep.subr.bf16.mxu1 %v4768_v0  ;;  %v3751_v15 = vcombine.low %v87_v1, %v91_v2  ;;  %v143_v1 = vld [vmem:[%s6000_s0 + $0x400] sm:$0xff] }
  0x59   :  { %2127 = vmatmul.mubr.bf16.gmra.mrb[12].mxu1 %v3703_v16  ;;  %2949 = vmatprep.subr.bf16.mxu0 %v4768_v0  ;;  %v3755_v16 = vcombine.low %v89_v3, %v93_v4  ;;  %v147_v2 = vld [vmem:[%s6000_s0 + $0x420] sm:$0xff]  ;;  %v145_v3 = vld [vmem:[%s6000_s0 + $0x410] sm:$0xff] }
  0x5a   :  { %2705 = vmatmul.mubr.bf16.gmra.mrb[12].mxu0 %v3707_v17  ;;  %2134 = vmatprep.mubr.bf16.mxu1 %v3712_v18  ;;  %v3760_v17 = vcombine.high %v95_v11, %v99_v12  ;;  %v3764_v18 = vcombine.high %v97_v13, %v101_v14  ;;  %v149_v4 = vld [vmem:[%s6000_s0 + $0x430] sm:$0xff] }
  0x5b   :  { %2712 = vmatprep.mubr.bf16.mxu0 %v3716_v19  ;;  %2372 = vmatpush1.bf16.msra.mxu1 %v4747_v20  ;;  %v103_v19 = vld [vmem:[%s6000_s0 + $0x2c0] sm:$0xff]  ;;  %v153_v11 = vld [vmem:[%s6000_s0 + $0x450] sm:$0xff] }
  0x5c   :  { %2950 = vmatpush1.bf16.msra.mxu0 %v4748_v21  ;;  %2373 = vmatprep.subr.bf16.mxu1 %v4768_v0  ;;  %v107_v20 = vld [vmem:[%s6000_s0 + $0x2e0] sm:$0xff]  ;;  %v105_v21 = vld [vmem:[%s6000_s0 + $0x2d0] sm:$0xff] }
  0x5d   :  { %2951 = vmatprep.subr.bf16.mxu0 %v4768_v0  ;;  %v3768_v25 = vcombine.high %v103_v19, %v107_v20  ;;  %v3772_v26 = vcombine.high %v105_v21, %v109_v22  ;;  %v3771_v34 = vcombine.low %v105_v21, %v109_v22  ;;  %v157_v12 = vld [vmem:[%s6000_s0 + $0x470] sm:$0xff] }
  0x5e   :  { %v3819_v22 = vcombine.low %v153_v11, %v157_v12 }
  0x5f   :  { %2374 = vmatpush1.bf16.msra.mxu1 %v4749_v24  ;;  %v3763_v24 = vcombine.low %v97_v13, %v101_v14  ;;  %v3807_v13 = vcombine.low %v143_v1, %v147_v2  ;;  %v3811_v14 = vcombine.low %v145_v3, %v149_v4 }
  0x60   :  { %2952 = vmatpush1.bf16.msra.mxu0 %v4750_v27  ;;  %2375 = vmatprep.subr.bf16.mxu1 %v4768_v0  ;;  %v4761_v27 = vld [vmem:[%s5999_s1 + $0xe8] sm:$0xff]  }
  0x61   :  { %2135 = vmatmul.mubr.bf16.gmra.mrb[16].mxu1 %v3711_v28  ;;  %2953 = vmatprep.subr.bf16.mxu0 %v4768_v0  ;;  %v4762_v28 = vld [vmem:[%s5999_s1 + $0x1e8] sm:$0xff]  }
  0x62   :  { %2713 = vmatmul.mubr.bf16.gmra.mrb[16].mxu0 %v3715_v29  ;;  %2142 = vmatprep.mubr.bf16.mxu1 %v3720_v30  ;;  %v111_v29 = vld [vmem:[%s6000_s0 + $0x300] sm:$0xff] }
  0x63   :  { %2720 = vmatprep.mubr.bf16.mxu0 %v3724_v31  ;;  %2376 = vmatpush1.bf16.msra.mxu1 %v4751_v32  ;;  %v115_v30 = vld [vmem:[%s6000_s0 + $0x320] sm:$0xff]  ;;  %v113_v31 = vld [vmem:[%s6000_s0 + $0x310] sm:$0xff] }
  0x64   :  { %2954 = vmatpush1.bf16.msra.mxu0 %v4752_v33  ;;  %2377 = vmatprep.subr.bf16.mxu1 %v4768_v0  ;;  %v117_v32 = vld [vmem:[%s6000_s0 + $0x330] sm:$0xff]  ;;  %v3767_v33 = vcombine.low %v103_v19, %v107_v20  ;;  %v3776_v35 = vcombine.high %v111_v29, %v115_v30 }
  0x65   :  { %2955 = vmatprep.subr.bf16.mxu0 %v4768_v0  ;;  %v161_v19 = vld [vmem:[%s6000_s0 + $0x490] sm:$0xff] }
  0x66   :  { %v165_v20 = vld [vmem:[%s6000_s0 + $0x4b0] sm:$0xff] }
  0x67   :  { %2378 = vmatpush1.bf16.msra.mxu1 %v4753_v36  ;;  %v3780_v36 = vcombine.high %v113_v31, %v117_v32 }
  0x68   :  { %2956 = vmatpush1.bf16.msra.mxu0 %v4754_v39  ;;  %2379 = vmatprep.subr.bf16.mxu1 %v4768_v0  ;;  %v121_v39 = vld [vmem:[%s6000_s0 + $0x350] sm:$0xff] }
  0x69   :  { %2143 = vmatmul.mubr.bf16.gmra.mrb[20].mxu1 %v3719_v40  ;;  %2957 = vmatprep.subr.bf16.mxu0 %v4768_v0  ;;  %v125_v40 = vld [vmem:[%s6000_s0 + $0x370] sm:$0xff] }
  0x6a   :  { %2721 = vmatmul.mubr.bf16.gmra.mrb[20].mxu0 %v3723_v41  ;;  %2150 = vmatprep.mubr.bf16.mxu1 %v3728_v42  ;;  %v3775_v41 = vcombine.low %v111_v29, %v115_v30  ;;  %v3779_v42 = vcombine.low %v113_v31, %v117_v32  ;;  %v3827_v30 = vcombine.low %v161_v19, %v165_v20 }
  0x6b   :  { %2728 = vmatprep.mubr.bf16.mxu0 %v3732_v43  ;;  %2380 = vmatpush1.bf16.msra.mxu1 %v4755_v44  ;;  %v3784_v43 = vcombine.high %v119_v37, %v123_v38  ;;  %v3788_v44 = vcombine.high %v121_v39, %v125_v40 }
  0x6c   :  { %2958 = vmatpush1.bf16.msra.mxu0 %v4756_v45  ;;  %2381 = vmatprep.subr.bf16.mxu1 %v4768_v0  ;;  %v4763_v45 = vld [vmem:[%s5999_s1 + $0xf0] sm:$0xff]  }
  0x6d   :  { %2959 = vmatprep.subr.bf16.mxu0 %v4768_v0 }
  0x6f   :  { %2382 = vmatpush1.bf16.msra.mxu1 %v4757_v54 }
  0x70   :  { %2960 = vmatpush1.bf16.msra.mxu0 %v4758_v55  ;;  %2383 = vmatprep.subr.bf16.mxu1 %v4768_v0  ;;  %v135_v55 = vld [vmem:[%s6000_s0 + $0x3c0] sm:$0xff] }
  0x71   :  { %2151 = vmatmul.mubr.bf16.gmra.mrb[24].mxu1 %v3727_v50  ;;  %2961 = vmatprep.subr.bf16.mxu0 %v4768_v0  ;;  %v133_v50 = vld [vmem:[%s6000_s0 + $0x3b0] sm:$0xff] }
  0x72   :  { %2729 = vmatmul.mubr.bf16.gmra.mrb[24].mxu0 %v3731_v51  ;;  %2158 = vmatprep.mubr.bf16.mxu1 %v3736_v52  ;;  %v3783_v51 = vcombine.low %v119_v37, %v123_v38  ;;  %v3787_v52 = vcombine.low %v121_v39, %v125_v40  ;;  %v3796_v54 = vcombine.high %v129_v49, %v133_v50 }
  0x73   :  { %2736 = vmatprep.mubr.bf16.mxu0 %v3740_v53  ;;  %2384 = vmatpush1.bf16.msra.mxu1 %v4759_v9  ;;  %v3792_v53 = vcombine.high %v127_v47, %v131_v48  ;;  %v3795_v59 = vcombine.low %v129_v49, %v133_v50  ;;  %v151_v9 = vld [vmem:[%s6000_s0 + $0x440] sm:$0xff] }
  0x74   :  { %2962 = vmatpush1.bf16.msra.mxu0 %v4760_v10  ;;  %2385 = vmatprep.subr.bf16.mxu1 %v4768_v0  ;;  %v155_v10 = vld [vmem:[%s6000_s0 + $0x460] sm:$0xff] }
  0x75   :  { %2963 = vmatprep.subr.bf16.mxu0 %v4768_v0  ;;  %v3815_v21 = vcombine.low %v151_v9, %v155_v10  ;;  %v191_v49 = vld [vmem:[%s6000_s0 + $0x580] sm:$0xff] }
  0x76   :  { %v195_v50 = vld [vmem:[%s6000_s0 + $0x5a0] sm:$0xff] }
  0x77   :  { %2386 = vmatpush1.bf16.msra.mxu1 %v4761_v27  ;;  %v169_v27 = vld [vmem:[%s6000_s0 + $0x4d0] sm:$0xff] }
  0x78   :  { %2964 = vmatpush1.bf16.msra.mxu0 %v4762_v28  ;;  %2387 = vmatprep.subr.bf16.mxu1 %v4768_v0  ;;  %v173_v28 = vld [vmem:[%s6000_s0 + $0x4f0] sm:$0xff] }
  0x79   :  { %2159 = vmatmul.mubr.bf16.gmra.mrb[28].mxu1 %v3735_v60  ;;  %2965 = vmatprep.subr.bf16.mxu0 %v4768_v0  ;;  %v3800_v60 = vcombine.high %v135_v55, %v139_v56  ;;  %v3836_v32 = vcombine.high %v169_v27, %v173_v28  ;;  %v3835_v38 = vcombine.low %v169_v27, %v173_v28  ;;  %v233_v27 = vld [vmem:[%s6000_s0 + $0x6d0] sm:$0xff] }
  0x7a   :  { %2737 = vmatmul.mubr.bf16.gmra.mrb[28].mxu0 %v3739_v61  ;;  %2166 = vmatprep.mubr.bf16.mxu1 %v3744_v62  ;;  %v4765_v62 = vld [vmem:[%s5999_s1 + $0xf8] sm:$0xff]   ;;  %v237_v28 = vld [vmem:[%s6000_s0 + $0x6f0] sm:$0xff] }
  0x7b   :  { %2744 = vmatprep.mubr.bf16.mxu0 %v3748_v63  ;;  %2388 = vmatpush1.bf16.msra.mxu1 %v4763_v45  ;;  %v4766_v63 = vld [vmem:[%s5999_s1 + $0x1f8] sm:$0xff]  }
  0x7c   :  { %2966 = vmatpush1.bf16.msra.mxu0 %v4764_v46  ;;  %2389 = vmatprep.subr.bf16.mxu1 %v4768_v0 }
  0x7d   :  { %2967 = vmatprep.subr.bf16.mxu0 %v4768_v0  ;;  %v141_v0 = vld [vmem:[%s6000_s0 + $0x3f0] sm:$0xff] }
  0x7e   :  { %v3804_v61 = vcombine.high %v137_v57, %v141_v0 }
  0x7f   :  { %2390 = vmatpush1.bf16.msra.mxu1 %v4765_v62 }
  0x80   :  { %2968 = vmatpush1.bf16.msra.mxu0 %v4766_v63 }
  0x81   :  { %2167 = vmatmul.mubr.bf16.gmra.mrb[32].mxu1 %v3743_v5  ;;  %v3799_v5 = vcombine.low %v135_v55, %v139_v56  ;;  %v3856_v55 = vcombine.high %v191_v49, %v195_v50 }
  0x82   :  { %2745 = vmatmul.mubr.bf16.gmra.mrb[32].mxu0 %v3747_v6  ;;  %2174 = vmatprep.mubr.bf16.mxu1 %v3752_v7  ;;  %v3803_v6 = vcombine.low %v137_v57, %v141_v0  ;;  %v3808_v7 = vcombine.high %v143_v1, %v147_v2  ;;  %v199_v57 = vld [vmem:[%s6000_s0 + $0x5c0] sm:$0xff] }
  0x83   :  { %2752 = vmatprep.mubr.bf16.mxu0 %v3756_v8  ;;  %v3812_v8 = vcombine.high %v145_v3, %v149_v4  ;;  %v203_v0 = vld [vmem:[%s6000_s0 + $0x5e0] sm:$0xff]  ;;  %v209_v3 = vld [vmem:[%s6000_s0 + $0x610] sm:$0xff] }
  0x84   :  { %v3864_v62 = vcombine.high %v199_v57, %v203_v0  ;;  %v207_v1 = vld [vmem:[%s6000_s0 + $0x600] sm:$0xff]  ;;  %v213_v4 = vld [vmem:[%s6000_s0 + $0x630] sm:$0xff] }
  0x85   :  { %v211_v2 = vld [vmem:[%s6000_s0 + $0x620] sm:$0xff] }
  0x89   :  { %2175 = vmatmul.mubr.bf16.gmra.mrb[36].mxu1 %v3751_v15  ;;  %v3816_v15 = vcombine.high %v151_v9, %v155_v10  ;;  %v215_v9 = vld [vmem:[%s6000_s0 + $0x640] sm:$0xff] }
  0x8a   :  { %2753 = vmatmul.mubr.bf16.gmra.mrb[36].mxu0 %v3755_v16  ;;  %2182 = vmatprep.mubr.bf16.mxu1 %v3760_v17  ;;  %v3820_v16 = vcombine.high %v153_v11, %v157_v12  ;;  %v159_v17 = vld [vmem:[%s6000_s0 + $0x480] sm:$0xff]  ;;  %v217_v11 = vld [vmem:[%s6000_s0 + $0x650] sm:$0xff] }
  0x8b   :  { %2760 = vmatprep.mubr.bf16.mxu0 %v3764_v18  ;;  %v163_v18 = vld [vmem:[%s6000_s0 + $0x4a0] sm:$0xff]  ;;  %v221_v12 = vld [vmem:[%s6000_s0 + $0x670] sm:$0xff] }
  0x8c   :  { %v3823_v29 = vcombine.low %v159_v17, %v163_v18  ;;  %v219_v10 = vld [vmem:[%s6000_s0 + $0x660] sm:$0xff] }
  0x91   :  { %2183 = vmatmul.mubr.bf16.gmra.mrb[40].mxu1 %v3759_v23  ;;  %v3824_v23 = vcombine.high %v159_v17, %v163_v18  ;;  %v223_v17 = vld [vmem:[%s6000_s0 + $0x680] sm:$0xff] }
  0x92   :  { %2761 = vmatmul.mubr.bf16.gmra.mrb[40].mxu0 %v3763_v24  ;;  %2190 = vmatprep.mubr.bf16.mxu1 %v3768_v25  ;;  %v3828_v24 = vcombine.high %v161_v19, %v165_v20  ;;  %v167_v25 = vld [vmem:[%s6000_s0 + $0x4c0] sm:$0xff]  ;;  %v225_v19 = vld [vmem:[%s6000_s0 + $0x690] sm:$0xff] }
  0x93   :  { %2768 = vmatprep.mubr.bf16.mxu0 %v3772_v26  ;;  %v171_v26 = vld [vmem:[%s6000_s0 + $0x4e0] sm:$0xff]  ;;  %v229_v20 = vld [vmem:[%s6000_s0 + $0x6b0] sm:$0xff] }
  0x94   :  { %v3832_v31 = vcombine.high %v167_v25, %v171_v26  ;;  %v3831_v37 = vcombine.low %v167_v25, %v171_v26  ;;  %v227_v18 = vld [vmem:[%s6000_s0 + $0x6a0] sm:$0xff] }
  0x95   :  { %v231_v25 = vld [vmem:[%s6000_s0 + $0x6c0] sm:$0xff] }
  0x96   :  { %v235_v26 = vld [vmem:[%s6000_s0 + $0x6e0] sm:$0xff] }
  0x99   :  { %2191 = vmatmul.mubr.bf16.gmra.mrb[44].mxu1 %v3767_v33  ;;  %v175_v33 = vld [vmem:[%s6000_s0 + $0x500] sm:$0xff] }
  0x9a   :  { %2769 = vmatmul.mubr.bf16.gmra.mrb[44].mxu0 %v3771_v34  ;;  %2198 = vmatprep.mubr.bf16.mxu1 %v3776_v35  ;;  %v179_v34 = vld [vmem:[%s6000_s0 + $0x520] sm:$0xff]  ;;  %v177_v35 = vld [vmem:[%s6000_s0 + $0x510] sm:$0xff] }
  0x9b   :  { %2776 = vmatprep.mubr.bf16.mxu0 %v3780_v36  ;;  %v181_v36 = vld [vmem:[%s6000_s0 + $0x530] sm:$0xff]  ;;  %v3840_v39 = vcombine.high %v175_v33, %v179_v34  ;;  %v3839_v45 = vcombine.low %v175_v33, %v179_v34  ;;  %v239_v33 = vld [vmem:[%s6000_s0 + $0x700] sm:$0xff] }
  0x9c   :  { %v3844_v40 = vcombine.high %v177_v35, %v181_v36  ;;  %v3843_v46 = vcombine.low %v177_v35, %v181_v36  ;;  %v243_v34 = vld [vmem:[%s6000_s0 + $0x720] sm:$0xff]  ;;  %v241_v35 = vld [vmem:[%s6000_s0 + $0x710] sm:$0xff] }
  0x9d   :  { %v245_v36 = vld [vmem:[%s6000_s0 + $0x730] sm:$0xff] }
  0xa1   :  { %2199 = vmatmul.mubr.bf16.gmra.mrb[48].mxu1 %v3775_v41  ;;  %v183_v41 = vld [vmem:[%s6000_s0 + $0x540] sm:$0xff] }
  0xa2   :  { %2777 = vmatmul.mubr.bf16.gmra.mrb[48].mxu0 %v3779_v42  ;;  %2206 = vmatprep.mubr.bf16.mxu1 %v3784_v43  ;;  %v187_v42 = vld [vmem:[%s6000_s0 + $0x560] sm:$0xff]  ;;  %v185_v43 = vld [vmem:[%s6000_s0 + $0x550] sm:$0xff] }
  0xa3   :  { %2784 = vmatprep.mubr.bf16.mxu0 %v3788_v44  ;;  %v189_v44 = vld [vmem:[%s6000_s0 + $0x570] sm:$0xff]  ;;  %v3848_v47 = vcombine.high %v183_v41, %v187_v42 }
  0xa4   :  { %v3852_v48 = vcombine.high %v185_v43, %v189_v44 }
  0xa9   :  { %2207 = vmatmul.mubr.bf16.gmra.mrb[52].mxu1 %v3783_v51  ;;  %v193_v51 = vld [vmem:[%s6000_s0 + $0x590] sm:$0xff] }
  0xaa   :  { %2785 = vmatmul.mubr.bf16.gmra.mrb[52].mxu0 %v3787_v52  ;;  %2214 = vmatprep.mubr.bf16.mxu1 %v3792_v53  ;;  %v197_v52 = vld [vmem:[%s6000_s0 + $0x5b0] sm:$0xff]  ;;  %v3847_v53 = vcombine.low %v183_v41, %v187_v42  ;;  %v247_v41 = vld [vmem:[%s6000_s0 + $0x740] sm:$0xff] }
  0xab   :  { %2792 = vmatprep.mubr.bf16.mxu0 %v3796_v54  ;;  %v3851_v54 = vcombine.low %v185_v43, %v189_v44  ;;  %v3860_v56 = vcombine.high %v193_v51, %v197_v52  ;;  %v251_v42 = vld [vmem:[%s6000_s0 + $0x760] sm:$0xff]  ;;  %v249_v43 = vld [vmem:[%s6000_s0 + $0x750] sm:$0xff] }
  0xac   :  { %v253_v44 = vld [vmem:[%s6000_s0 + $0x770] sm:$0xff] }
  0xb1   :  { %2215 = vmatmul.mubr.bf16.gmra.mrb[56].mxu1 %v3791_v58  ;;  %v201_v58 = vld [vmem:[%s6000_s0 + $0x5d0] sm:$0xff] }
  0xb2   :  { %2793 = vmatmul.mubr.bf16.gmra.mrb[56].mxu0 %v3795_v59  ;;  %2222 = vmatprep.mubr.bf16.mxu1 %v3800_v60  ;;  %v205_v59 = vld [vmem:[%s6000_s0 + $0x5f0] sm:$0xff]  ;;  %v3855_v60 = vcombine.low %v191_v49, %v195_v50  ;;  %v255_v49 = vld [vmem:[%s6000_s0 + $0x780] sm:$0xff] }
  0xb3   :  { %2800 = vmatprep.mubr.bf16.mxu0 %v3804_v61  ;;  %v3859_v61 = vcombine.low %v193_v51, %v197_v52  ;;  %v3868_v63 = vcombine.high %v201_v58, %v205_v59  ;;  %v259_v50 = vld [vmem:[%s6000_s0 + $0x7a0] sm:$0xff]  ;;  %v257_v51 = vld [vmem:[%s6000_s0 + $0x790] sm:$0xff] }
  0xb4   :  { %v261_v52 = vld [vmem:[%s6000_s0 + $0x7b0] sm:$0xff] }
  0xb9   :  { %2223 = vmatmul.mubr.bf16.gmra.mrb[60].mxu1 %v3799_v5  ;;  %v3863_v5 = vcombine.low %v199_v57, %v203_v0  ;;  %v263_v57 = vld [vmem:[%s6000_s0 + $0x7c0] sm:$0xff] }
  0xba   :  { %2801 = vmatmul.mubr.bf16.gmra.mrb[60].mxu0 %v3803_v6  ;;  %2230 = vmatprep.mubr.bf16.mxu1 %v3808_v7  ;;  %v3867_v6 = vcombine.low %v201_v58, %v205_v59  ;;  %v3872_v7 = vcombine.high %v207_v1, %v211_v2  ;;  %v267_v0 = vld [vmem:[%s6000_s0 + $0x7e0] sm:$0xff]  ;;  %v265_v58 = vld [vmem:[%s6000_s0 + $0x7d0] sm:$0xff] }
  0xbb   :  { %2808 = vmatprep.mubr.bf16.mxu0 %v3812_v8  ;;  %v3876_v8 = vcombine.high %v209_v3, %v213_v4  ;;  %v269_v59 = vld [vmem:[%s6000_s0 + $0x7f0] sm:$0xff] }
  0xc1   :  { %2231 = vmatmul.mubr.bf16.gmra.mrb[64].mxu1 %v3807_v13  ;;  %v3871_v13 = vcombine.low %v207_v1, %v211_v2  ;;  %v16_v1 = vld [vmem:[%s6000_s0 + $0x8] sm:$0xff] }
  0xc2   :  { %2809 = vmatmul.mubr.bf16.gmra.mrb[64].mxu0 %v3811_v14  ;;  %2238 = vmatprep.mubr.bf16.mxu1 %v3816_v15  ;;  %v3875_v14 = vcombine.low %v209_v3, %v213_v4  ;;  %v3880_v15 = vcombine.high %v215_v9, %v219_v10  ;;  %v20_v2 = vld [vmem:[%s6000_s0 + $0x28] sm:$0xff]  ;;  %v18_v3 = vld [vmem:[%s6000_s0 + $0x18] sm:$0xff] }
  0xc3   :  { %2816 = vmatprep.mubr.bf16.mxu0 %v3820_v16  ;;  %v3884_v16 = vcombine.high %v217_v11, %v221_v12  ;;  %v22_v4 = vld [vmem:[%s6000_s0 + $0x38] sm:$0xff] }
  0xc9   :  { %2239 = vmatmul.mubr.bf16.gmra.mrb[68].mxu1 %v3815_v21  ;;  %v3879_v21 = vcombine.low %v215_v9, %v219_v10  ;;  %v24_v9 = vld [vmem:[%s6000_s0 + $0x48] sm:$0xff] }
  0xca   :  { %2817 = vmatmul.mubr.bf16.gmra.mrb[68].mxu0 %v3819_v22  ;;  %2246 = vmatprep.mubr.bf16.mxu1 %v3824_v23  ;;  %v3883_v22 = vcombine.low %v217_v11, %v221_v12  ;;  %v3888_v23 = vcombine.high %v223_v17, %v227_v18  ;;  %v28_v10 = vld [vmem:[%s6000_s0 + $0x68] sm:$0xff]  ;;  %v26_v11 = vld [vmem:[%s6000_s0 + $0x58] sm:$0xff] }
  0xcb   :  { %2824 = vmatprep.mubr.bf16.mxu0 %v3828_v24  ;;  %v3892_v24 = vcombine.high %v225_v19, %v229_v20  ;;  %v30_v12 = vld [vmem:[%s6000_s0 + $0x78] sm:$0xff] }
  0xd1   :  { %2247 = vmatmul.mubr.bf16.gmra.mrb[72].mxu1 %v3823_v29  ;;  %v3887_v29 = vcombine.low %v223_v17, %v227_v18  ;;  %v32_v17 = vld [vmem:[%s6000_s0 + $0x88] sm:$0xff] }
  0xd2   :  { %2825 = vmatmul.mubr.bf16.gmra.mrb[72].mxu0 %v3827_v30  ;;  %2254 = vmatprep.mubr.bf16.mxu1 %v3832_v31  ;;  %v3891_v30 = vcombine.low %v225_v19, %v229_v20  ;;  %v3896_v31 = vcombine.high %v231_v25, %v235_v26  ;;  %v36_v18 = vld [vmem:[%s6000_s0 + $0xa8] sm:$0xff]  ;;  %v34_v19 = vld [vmem:[%s6000_s0 + $0x98] sm:$0xff] }
  0xd3   :  { %2832 = vmatprep.mubr.bf16.mxu0 %v3836_v32  ;;  %v3900_v32 = vcombine.high %v233_v27, %v237_v28  ;;  %v38_v20 = vld [vmem:[%s6000_s0 + $0xb8] sm:$0xff] }
  0xd9   :  { %2255 = vmatmul.mubr.bf16.gmra.mrb[76].mxu1 %v3831_v37  ;;  %v3895_v37 = vcombine.low %v231_v25, %v235_v26  ;;  %v40_v25 = vld [vmem:[%s6000_s0 + $0xc8] sm:$0xff] }
  0xda   :  { %2833 = vmatmul.mubr.bf16.gmra.mrb[76].mxu0 %v3835_v38  ;;  %2262 = vmatprep.mubr.bf16.mxu1 %v3840_v39  ;;  %v3899_v38 = vcombine.low %v233_v27, %v237_v28  ;;  %v3904_v39 = vcombine.high %v239_v33, %v243_v34  ;;  %v44_v26 = vld [vmem:[%s6000_s0 + $0xe8] sm:$0xff]  ;;  %v42_v27 = vld [vmem:[%s6000_s0 + $0xd8] sm:$0xff] }
  0xdb   :  { %2840 = vmatprep.mubr.bf16.mxu0 %v3844_v40  ;;  %v3908_v40 = vcombine.high %v241_v35, %v245_v36  ;;  %v46_v28 = vld [vmem:[%s6000_s0 + $0xf8] sm:$0xff] }
  0xe1   :  { %2263 = vmatmul.mubr.bf16.gmra.mrb[80].mxu1 %v3839_v45  ;;  %v3903_v45 = vcombine.low %v239_v33, %v243_v34  ;;  %v48_v33 = vld [vmem:[%s6000_s0 + $0x108] sm:$0xff] }
  0xe2   :  { %2841 = vmatmul.mubr.bf16.gmra.mrb[80].mxu0 %v3843_v46  ;;  %2270 = vmatprep.mubr.bf16.mxu1 %v3848_v47  ;;  %v3907_v46 = vcombine.low %v241_v35, %v245_v36  ;;  %v3912_v47 = vcombine.high %v247_v41, %v251_v42  ;;  %v52_v34 = vld [vmem:[%s6000_s0 + $0x128] sm:$0xff]  ;;  %v50_v35 = vld [vmem:[%s6000_s0 + $0x118] sm:$0xff] }
  0xe3   :  { %2848 = vmatprep.mubr.bf16.mxu0 %v3852_v48  ;;  %v3916_v48 = vcombine.high %v249_v43, %v253_v44  ;;  %v54_v36 = vld [vmem:[%s6000_s0 + $0x138] sm:$0xff] }
  0xe9   :  { %2271 = vmatmul.mubr.bf16.gmra.mrb[84].mxu1 %v3847_v53  ;;  %v3911_v53 = vcombine.low %v247_v41, %v251_v42  ;;  %v56_v41 = vld [vmem:[%s6000_s0 + $0x148] sm:$0xff] }
  0xea   :  { %2849 = vmatmul.mubr.bf16.gmra.mrb[84].mxu0 %v3851_v54  ;;  %2278 = vmatprep.mubr.bf16.mxu1 %v3856_v55  ;;  %v3915_v54 = vcombine.low %v249_v43, %v253_v44  ;;  %v3920_v55 = vcombine.high %v255_v49, %v259_v50  ;;  %v60_v42 = vld [vmem:[%s6000_s0 + $0x168] sm:$0xff]  ;;  %v58_v43 = vld [vmem:[%s6000_s0 + $0x158] sm:$0xff] }
  0xeb   :  { %2856 = vmatprep.mubr.bf16.mxu0 %v3860_v56  ;;  %v3924_v56 = vcombine.high %v257_v51, %v261_v52  ;;  %v62_v44 = vld [vmem:[%s6000_s0 + $0x178] sm:$0xff] }
  0xf1   :  { %2279 = vmatmul.mubr.bf16.gmra.mrb[88].mxu1 %v3855_v60  ;;  %v3919_v60 = vcombine.low %v255_v49, %v259_v50  ;;  %v64_v49 = vld [vmem:[%s6000_s0 + $0x188] sm:$0xff] }
  0xf2   :  { %2857 = vmatmul.mubr.bf16.gmra.mrb[88].mxu0 %v3859_v61  ;;  %2286 = vmatprep.mubr.bf16.mxu1 %v3864_v62  ;;  %v3923_v61 = vcombine.low %v257_v51, %v261_v52  ;;  %v3928_v62 = vcombine.high %v263_v57, %v267_v0  ;;  %v68_v50 = vld [vmem:[%s6000_s0 + $0x1a8] sm:$0xff]  ;;  %v66_v51 = vld [vmem:[%s6000_s0 + $0x198] sm:$0xff] }
  0xf3   :  { %2864 = vmatprep.mubr.bf16.mxu0 %v3868_v63  ;;  %v3932_v63 = vcombine.high %v265_v58, %v269_v59  ;;  %v70_v52 = vld [vmem:[%s6000_s0 + $0x1b8] sm:$0xff] }
  0xf9   :  { %2287 = vmatmul.mubr.bf16.gmra.mrb[92].mxu1 %v3863_v5  ;;  %v3927_v5 = vcombine.low %v263_v57, %v267_v0  ;;  %v72_v57 = vld [vmem:[%s6000_s0 + $0x1c8] sm:$0xff] }
  0xfa   :  { %2865 = vmatmul.mubr.bf16.gmra.mrb[92].mxu0 %v3867_v6  ;;  %2294 = vmatprep.mubr.bf16.mxu1 %v3872_v7  ;;  %v3931_v6 = vcombine.low %v265_v58, %v269_v59  ;;  %v3682_v7 = vcombine.high %v16_v1, %v20_v2  ;;  %v76_v0 = vld [vmem:[%s6000_s0 + $0x1e8] sm:$0xff]  ;;  %v74_v58 = vld [vmem:[%s6000_s0 + $0x1d8] sm:$0xff] }
  0xfb   :  { %2872 = vmatprep.mubr.bf16.mxu0 %v3876_v8  ;;  %v3686_v8 = vcombine.high %v18_v3, %v22_v4  ;;  %v78_v59 = vld [vmem:[%s6000_s0 + $0x1f8] sm:$0xff] }
 0x101   :  { %2295 = vmatmul.mubr.bf16.gmra.mrb[96].mxu1 %v3871_v13  ;;  %v3681_v13 = vcombine.low %v16_v1, %v20_v2  ;;  %v80_v1 = vld [vmem:[%s6000_s0 + $0x208] sm:$0xff] }
 0x102   :  { %2873 = vmatmul.mubr.bf16.gmra.mrb[96].mxu0 %v3875_v14  ;;  %2302 = vmatprep.mubr.bf16.mxu1 %v3880_v15  ;;  %v3685_v14 = vcombine.low %v18_v3, %v22_v4  ;;  %v3690_v15 = vcombine.high %v24_v9, %v28_v10  ;;  %v84_v2 = vld [vmem:[%s6000_s0 + $0x228] sm:$0xff]  ;;  %v82_v3 = vld [vmem:[%s6000_s0 + $0x218] sm:$0xff] }
 0x103   :  { %2880 = vmatprep.mubr.bf16.mxu0 %v3884_v16  ;;  %v3694_v16 = vcombine.high %v26_v11, %v30_v12  ;;  %v86_v4 = vld [vmem:[%s6000_s0 + $0x238] sm:$0xff] }
 0x109   :  { %2303 = vmatmul.mubr.bf16.gmra.mrb[100].mxu1 %v3879_v21  ;;  %v3689_v21 = vcombine.low %v24_v9, %v28_v10  ;;  %v88_v9 = vld [vmem:[%s6000_s0 + $0x248] sm:$0xff] }
 0x10a   :  { %2881 = vmatmul.mubr.bf16.gmra.mrb[100].mxu0 %v3883_v22  ;;  %2310 = vmatprep.mubr.bf16.mxu1 %v3888_v23  ;;  %v3693_v22 = vcombine.low %v26_v11, %v30_v12  ;;  %v3698_v23 = vcombine.high %v32_v17, %v36_v18  ;;  %v92_v10 = vld [vmem:[%s6000_s0 + $0x268] sm:$0xff]  ;;  %v90_v11 = vld [vmem:[%s6000_s0 + $0x258] sm:$0xff] }
 0x10b   :  { %2888 = vmatprep.mubr.bf16.mxu0 %v3892_v24  ;;  %v3702_v24 = vcombine.high %v34_v19, %v38_v20  ;;  %v94_v12 = vld [vmem:[%s6000_s0 + $0x278] sm:$0xff] }
 0x111   :  { %2311 = vmatmul.mubr.bf16.gmra.mrb[104].mxu1 %v3887_v29  ;;  %v3697_v29 = vcombine.low %v32_v17, %v36_v18  ;;  %v96_v17 = vld [vmem:[%s6000_s0 + $0x288] sm:$0xff] }
 0x112   :  { %2889 = vmatmul.mubr.bf16.gmra.mrb[104].mxu0 %v3891_v30  ;;  %2318 = vmatprep.mubr.bf16.mxu1 %v3896_v31  ;;  %v3701_v30 = vcombine.low %v34_v19, %v38_v20  ;;  %v3706_v31 = vcombine.high %v40_v25, %v44_v26  ;;  %v100_v18 = vld [vmem:[%s6000_s0 + $0x2a8] sm:$0xff]  ;;  %v98_v19 = vld [vmem:[%s6000_s0 + $0x298] sm:$0xff] }
 0x113   :  { %2896 = vmatprep.mubr.bf16.mxu0 %v3900_v32  ;;  %v3710_v32 = vcombine.high %v42_v27, %v46_v28  ;;  %v102_v20 = vld [vmem:[%s6000_s0 + $0x2b8] sm:$0xff] }
 0x119   :  { %2319 = vmatmul.mubr.bf16.gmra.mrb[108].mxu1 %v3895_v37  ;;  %v3705_v37 = vcombine.low %v40_v25, %v44_v26  ;;  %v104_v25 = vld [vmem:[%s6000_s0 + $0x2c8] sm:$0xff] }
 0x11a   :  { %2897 = vmatmul.mubr.bf16.gmra.mrb[108].mxu0 %v3899_v38  ;;  %2326 = vmatprep.mubr.bf16.mxu1 %v3904_v39  ;;  %v3709_v38 = vcombine.low %v42_v27, %v46_v28  ;;  %v3714_v39 = vcombine.high %v48_v33, %v52_v34  ;;  %v108_v26 = vld [vmem:[%s6000_s0 + $0x2e8] sm:$0xff]  ;;  %v106_v27 = vld [vmem:[%s6000_s0 + $0x2d8] sm:$0xff] }
 0x11b   :  { %2904 = vmatprep.mubr.bf16.mxu0 %v3908_v40  ;;  %v3718_v40 = vcombine.high %v50_v35, %v54_v36  ;;  %v110_v28 = vld [vmem:[%s6000_s0 + $0x2f8] sm:$0xff] }
 0x121   :  { %2327 = vmatmul.mubr.bf16.gmra.mrb[112].mxu1 %v3903_v45  ;;  %v3713_v45 = vcombine.low %v48_v33, %v52_v34  ;;  %v112_v33 = vld [vmem:[%s6000_s0 + $0x308] sm:$0xff] }
 0x122   :  { %2905 = vmatmul.mubr.bf16.gmra.mrb[112].mxu0 %v3907_v46  ;;  %2334 = vmatprep.mubr.bf16.mxu1 %v3912_v47  ;;  %v3717_v46 = vcombine.low %v50_v35, %v54_v36  ;;  %v3722_v47 = vcombine.high %v56_v41, %v60_v42  ;;  %v116_v34 = vld [vmem:[%s6000_s0 + $0x328] sm:$0xff]  ;;  %v114_v35 = vld [vmem:[%s6000_s0 + $0x318] sm:$0xff] }
 0x123   :  { %2912 = vmatprep.mubr.bf16.mxu0 %v3916_v48  ;;  %v3726_v48 = vcombine.high %v58_v43, %v62_v44  ;;  %v118_v36 = vld [vmem:[%s6000_s0 + $0x338] sm:$0xff] }
 0x129   :  { %2335 = vmatmul.mubr.bf16.gmra.mrb[116].mxu1 %v3911_v53  ;;  %v3721_v53 = vcombine.low %v56_v41, %v60_v42  ;;  %v120_v41 = vld [vmem:[%s6000_s0 + $0x348] sm:$0xff] }
 0x12a   :  { %2913 = vmatmul.mubr.bf16.gmra.mrb[116].mxu0 %v3915_v54  ;;  %2342 = vmatprep.mubr.bf16.mxu1 %v3920_v55  ;;  %v3725_v54 = vcombine.low %v58_v43, %v62_v44  ;;  %v3730_v55 = vcombine.high %v64_v49, %v68_v50  ;;  %v124_v42 = vld [vmem:[%s6000_s0 + $0x368] sm:$0xff]  ;;  %v122_v43 = vld [vmem:[%s6000_s0 + $0x358] sm:$0xff] }
 0x12b   :  { %2920 = vmatprep.mubr.bf16.mxu0 %v3924_v56  ;;  %v3734_v56 = vcombine.high %v66_v51, %v70_v52  ;;  %v126_v44 = vld [vmem:[%s6000_s0 + $0x378] sm:$0xff] }
 0x131   :  { %2343 = vmatmul.mubr.bf16.gmra.mrb[120].mxu1 %v3919_v60  ;;  %v3729_v60 = vcombine.low %v64_v49, %v68_v50  ;;  %v128_v49 = vld [vmem:[%s6000_s0 + $0x388] sm:$0xff] }
 0x132   :  { %2921 = vmatmul.mubr.bf16.gmra.mrb[120].mxu0 %v3923_v61  ;;  %2350 = vmatprep.mubr.bf16.mxu1 %v3928_v62  ;;  %v3733_v61 = vcombine.low %v66_v51, %v70_v52  ;;  %v3738_v62 = vcombine.high %v72_v57, %v76_v0  ;;  %v132_v50 = vld [vmem:[%s6000_s0 + $0x3a8] sm:$0xff]  ;;  %v130_v51 = vld [vmem:[%s6000_s0 + $0x398] sm:$0xff] }
 0x133   :  { %2928 = vmatprep.mubr.bf16.mxu0 %v3932_v63  ;;  %v3742_v63 = vcombine.high %v74_v58, %v78_v59  ;;  %v134_v52 = vld [vmem:[%s6000_s0 + $0x3b8] sm:$0xff] }
 0x139   :  { %2351 = vmatmul.mubr.bf16.gmra.mrb[124].mxu1 %v3927_v5  ;;  %v3737_v5 = vcombine.low %v72_v57, %v76_v0  ;;  %v136_v57 = vld [vmem:[%s6000_s0 + $0x3c8] sm:$0xff] }
 0x13a   :  { %2929 = vmatmul.mubr.bf16.gmra.mrb[124].mxu0 %v3931_v6  ;;  %2391 = vmatprep.mubr.bf16.mxu1 %v3682_v7  ;;  %v3741_v6 = vcombine.low %v74_v58, %v78_v59  ;;  %v3746_v7 = vcombine.high %v80_v1, %v84_v2  ;;  %v140_v0 = vld [vmem:[%s6000_s0 + $0x3e8] sm:$0xff]  ;;  %v138_v58 = vld [vmem:[%s6000_s0 + $0x3d8] sm:$0xff] }
 0x13b   :  { %2969 = vmatprep.mubr.bf16.mxu0 %v3686_v8  ;;  %v3750_v8 = vcombine.high %v82_v3, %v86_v4  ;;  %v142_v59 = vld [vmem:[%s6000_s0 + $0x3f8] sm:$0xff] }
 0x141   :  { %2392 = vmatmul.mubr.bf16.vlgmr.msra.gmra.mrb[0].mxu1 %v3681_v13  ;;  %v3745_v13 = vcombine.low %v80_v1, %v84_v2  ;;  %v144_v1 = vld [vmem:[%s6000_s0 + $0x408] sm:$0xff] }
 0x142   :  { %2970 = vmatmul.mubr.bf16.vlgmr.msra.gmra.mrb[0].mxu0 %v3685_v14  ;;  %2399 = vmatprep.mubr.bf16.mxu1 %v3690_v15  ;;  %v3749_v14 = vcombine.low %v82_v3, %v86_v4  ;;  %v3754_v15 = vcombine.high %v88_v9, %v92_v10  ;;  %v148_v2 = vld [vmem:[%s6000_s0 + $0x428] sm:$0xff]  ;;  %v146_v3 = vld [vmem:[%s6000_s0 + $0x418] sm:$0xff] }
 0x143   :  { %2977 = vmatprep.mubr.bf16.mxu0 %v3694_v16  ;;  %v3758_v16 = vcombine.high %v90_v11, %v94_v12  ;;  %v150_v4 = vld [vmem:[%s6000_s0 + $0x438] sm:$0xff] }
 0x149   :  { %2400 = vmatmul.mubr.bf16.gmra.mrb[4].mxu1 %v3689_v21  ;;  %v3753_v21 = vcombine.low %v88_v9, %v92_v10  ;;  %v152_v9 = vld [vmem:[%s6000_s0 + $0x448] sm:$0xff] }
 0x14a   :  { %2978 = vmatmul.mubr.bf16.gmra.mrb[4].mxu0 %v3693_v22  ;;  %2407 = vmatprep.mubr.bf16.mxu1 %v3698_v23  ;;  %v3757_v22 = vcombine.low %v90_v11, %v94_v12  ;;  %v3762_v23 = vcombine.high %v96_v17, %v100_v18  ;;  %v156_v10 = vld [vmem:[%s6000_s0 + $0x468] sm:$0xff]  ;;  %v154_v11 = vld [vmem:[%s6000_s0 + $0x458] sm:$0xff] }
 0x14b   :  { %2985 = vmatprep.mubr.bf16.mxu0 %v3702_v24  ;;  %v3766_v24 = vcombine.high %v98_v19, %v102_v20  ;;  %v158_v12 = vld [vmem:[%s6000_s0 + $0x478] sm:$0xff] }
 0x151   :  { %2408 = vmatmul.mubr.bf16.gmra.mrb[8].mxu1 %v3697_v29  ;;  %v3761_v29 = vcombine.low %v96_v17, %v100_v18  ;;  %v160_v17 = vld [vmem:[%s6000_s0 + $0x488] sm:$0xff] }
 0x152   :  { %2986 = vmatmul.mubr.bf16.gmra.mrb[8].mxu0 %v3701_v30  ;;  %2415 = vmatprep.mubr.bf16.mxu1 %v3706_v31  ;;  %v3765_v30 = vcombine.low %v98_v19, %v102_v20  ;;  %v3770_v31 = vcombine.high %v104_v25, %v108_v26  ;;  %v164_v18 = vld [vmem:[%s6000_s0 + $0x4a8] sm:$0xff]  ;;  %v162_v19 = vld [vmem:[%s6000_s0 + $0x498] sm:$0xff] }
 0x153   :  { %2993 = vmatprep.mubr.bf16.mxu0 %v3710_v32  ;;  %v3774_v32 = vcombine.high %v106_v27, %v110_v28  ;;  %v166_v20 = vld [vmem:[%s6000_s0 + $0x4b8] sm:$0xff] }
 0x159   :  { %2416 = vmatmul.mubr.bf16.gmra.mrb[12].mxu1 %v3705_v37  ;;  %v3769_v37 = vcombine.low %v104_v25, %v108_v26  ;;  %v168_v25 = vld [vmem:[%s6000_s0 + $0x4c8] sm:$0xff] }
 0x15a   :  { %2994 = vmatmul.mubr.bf16.gmra.mrb[12].mxu0 %v3709_v38  ;;  %2423 = vmatprep.mubr.bf16.mxu1 %v3714_v39  ;;  %v3773_v38 = vcombine.low %v106_v27, %v110_v28  ;;  %v3778_v39 = vcombine.high %v112_v33, %v116_v34  ;;  %v172_v26 = vld [vmem:[%s6000_s0 + $0x4e8] sm:$0xff]  ;;  %v170_v27 = vld [vmem:[%s6000_s0 + $0x4d8] sm:$0xff] }
 0x15b   :  { %3001 = vmatprep.mubr.bf16.mxu0 %v3718_v40  ;;  %v3782_v40 = vcombine.high %v114_v35, %v118_v36  ;;  %v174_v28 = vld [vmem:[%s6000_s0 + $0x4f8] sm:$0xff] }
 0x161   :  { %2424 = vmatmul.mubr.bf16.gmra.mrb[16].mxu1 %v3713_v45  ;;  %v3777_v45 = vcombine.low %v112_v33, %v116_v34  ;;  %v176_v33 = vld [vmem:[%s6000_s0 + $0x508] sm:$0xff] }
 0x162   :  { %3002 = vmatmul.mubr.bf16.gmra.mrb[16].mxu0 %v3717_v46  ;;  %2431 = vmatprep.mubr.bf16.mxu1 %v3722_v47  ;;  %v3781_v46 = vcombine.low %v114_v35, %v118_v36  ;;  %v3786_v47 = vcombine.high %v120_v41, %v124_v42  ;;  %v180_v34 = vld [vmem:[%s6000_s0 + $0x528] sm:$0xff]  ;;  %v178_v35 = vld [vmem:[%s6000_s0 + $0x518] sm:$0xff] }
 0x163   :  { %3009 = vmatprep.mubr.bf16.mxu0 %v3726_v48  ;;  %v3790_v48 = vcombine.high %v122_v43, %v126_v44  ;;  %v182_v36 = vld [vmem:[%s6000_s0 + $0x538] sm:$0xff] }
 0x169   :  { %2432 = vmatmul.mubr.bf16.gmra.mrb[20].mxu1 %v3721_v53  ;;  %v3785_v53 = vcombine.low %v120_v41, %v124_v42  ;;  %v184_v41 = vld [vmem:[%s6000_s0 + $0x548] sm:$0xff] }
 0x16a   :  { %3010 = vmatmul.mubr.bf16.gmra.mrb[20].mxu0 %v3725_v54  ;;  %2439 = vmatprep.mubr.bf16.mxu1 %v3730_v55  ;;  %v3789_v54 = vcombine.low %v122_v43, %v126_v44  ;;  %v3794_v55 = vcombine.high %v128_v49, %v132_v50  ;;  %v188_v42 = vld [vmem:[%s6000_s0 + $0x568] sm:$0xff]  ;;  %v186_v43 = vld [vmem:[%s6000_s0 + $0x558] sm:$0xff] }
 0x16b   :  { %3017 = vmatprep.mubr.bf16.mxu0 %v3734_v56  ;;  %v3798_v56 = vcombine.high %v130_v51, %v134_v52  ;;  %v190_v44 = vld [vmem:[%s6000_s0 + $0x578] sm:$0xff] }
 0x171   :  { %2440 = vmatmul.mubr.bf16.gmra.mrb[24].mxu1 %v3729_v60  ;;  %v3793_v60 = vcombine.low %v128_v49, %v132_v50  ;;  %v192_v49 = vld [vmem:[%s6000_s0 + $0x588] sm:$0xff] }
 0x172   :  { %3018 = vmatmul.mubr.bf16.gmra.mrb[24].mxu0 %v3733_v61  ;;  %2447 = vmatprep.mubr.bf16.mxu1 %v3738_v62  ;;  %v3797_v61 = vcombine.low %v130_v51, %v134_v52  ;;  %v3802_v62 = vcombine.high %v136_v57, %v140_v0  ;;  %v196_v50 = vld [vmem:[%s6000_s0 + $0x5a8] sm:$0xff]  ;;  %v194_v51 = vld [vmem:[%s6000_s0 + $0x598] sm:$0xff] }
 0x173   :  { %3025 = vmatprep.mubr.bf16.mxu0 %v3742_v63  ;;  %v3806_v63 = vcombine.high %v138_v58, %v142_v59  ;;  %v198_v52 = vld [vmem:[%s6000_s0 + $0x5b8] sm:$0xff] }
 0x179   :  { %2448 = vmatmul.mubr.bf16.gmra.mrb[28].mxu1 %v3737_v5  ;;  %v3801_v5 = vcombine.low %v136_v57, %v140_v0  ;;  %v200_v57 = vld [vmem:[%s6000_s0 + $0x5c8] sm:$0xff] }
 0x17a   :  { %3026 = vmatmul.mubr.bf16.gmra.mrb[28].mxu0 %v3741_v6  ;;  %2455 = vmatprep.mubr.bf16.mxu1 %v3746_v7  ;;  %v3805_v6 = vcombine.low %v138_v58, %v142_v59  ;;  %v3810_v7 = vcombine.high %v144_v1, %v148_v2  ;;  %v204_v0 = vld [vmem:[%s6000_s0 + $0x5e8] sm:$0xff]  ;;  %v202_v58 = vld [vmem:[%s6000_s0 + $0x5d8] sm:$0xff] }
 0x17b   :  { %3033 = vmatprep.mubr.bf16.mxu0 %v3750_v8  ;;  %v3814_v8 = vcombine.high %v146_v3, %v150_v4  ;;  %v206_v59 = vld [vmem:[%s6000_s0 + $0x5f8] sm:$0xff] }
 0x181   :  { %2456 = vmatmul.mubr.bf16.gmra.mrb[32].mxu1 %v3745_v13  ;;  %v3809_v13 = vcombine.low %v144_v1, %v148_v2  ;;  %v208_v1 = vld [vmem:[%s6000_s0 + $0x608] sm:$0xff] }
 0x182   :  { %3034 = vmatmul.mubr.bf16.gmra.mrb[32].mxu0 %v3749_v14  ;;  %2463 = vmatprep.mubr.bf16.mxu1 %v3754_v15  ;;  %v3813_v14 = vcombine.low %v146_v3, %v150_v4  ;;  %v3818_v15 = vcombine.high %v152_v9, %v156_v10  ;;  %v212_v2 = vld [vmem:[%s6000_s0 + $0x628] sm:$0xff]  ;;  %v210_v3 = vld [vmem:[%s6000_s0 + $0x618] sm:$0xff] }
 0x183   :  { %3041 = vmatprep.mubr.bf16.mxu0 %v3758_v16  ;;  %v3822_v16 = vcombine.high %v154_v11, %v158_v12  ;;  %v214_v4 = vld [vmem:[%s6000_s0 + $0x638] sm:$0xff] }
 0x189   :  { %2464 = vmatmul.mubr.bf16.gmra.mrb[36].mxu1 %v3753_v21  ;;  %v3817_v21 = vcombine.low %v152_v9, %v156_v10  ;;  %v216_v9 = vld [vmem:[%s6000_s0 + $0x648] sm:$0xff] }
 0x18a   :  { %3042 = vmatmul.mubr.bf16.gmra.mrb[36].mxu0 %v3757_v22  ;;  %2471 = vmatprep.mubr.bf16.mxu1 %v3762_v23  ;;  %v3821_v22 = vcombine.low %v154_v11, %v158_v12  ;;  %v3826_v23 = vcombine.high %v160_v17, %v164_v18  ;;  %v220_v10 = vld [vmem:[%s6000_s0 + $0x668] sm:$0xff]  ;;  %v218_v11 = vld [vmem:[%s6000_s0 + $0x658] sm:$0xff] }
 0x18b   :  { %3049 = vmatprep.mubr.bf16.mxu0 %v3766_v24  ;;  %v3830_v24 = vcombine.high %v162_v19, %v166_v20  ;;  %v222_v12 = vld [vmem:[%s6000_s0 + $0x678] sm:$0xff] }
 0x191   :  { %2472 = vmatmul.mubr.bf16.gmra.mrb[40].mxu1 %v3761_v29  ;;  %v3825_v29 = vcombine.low %v160_v17, %v164_v18  ;;  %v224_v17 = vld [vmem:[%s6000_s0 + $0x688] sm:$0xff] }
 0x192   :  { %3050 = vmatmul.mubr.bf16.gmra.mrb[40].mxu0 %v3765_v30  ;;  %2479 = vmatprep.mubr.bf16.mxu1 %v3770_v31  ;;  %v3829_v30 = vcombine.low %v162_v19, %v166_v20  ;;  %v3834_v31 = vcombine.high %v168_v25, %v172_v26  ;;  %v228_v18 = vld [vmem:[%s6000_s0 + $0x6a8] sm:$0xff]  ;;  %v226_v19 = vld [vmem:[%s6000_s0 + $0x698] sm:$0xff] }
 0x193   :  { %3057 = vmatprep.mubr.bf16.mxu0 %v3774_v32  ;;  %v3838_v32 = vcombine.high %v170_v27, %v174_v28  ;;  %v230_v20 = vld [vmem:[%s6000_s0 + $0x6b8] sm:$0xff] }
 0x199   :  { %2480 = vmatmul.mubr.bf16.gmra.mrb[44].mxu1 %v3769_v37  ;;  %v3833_v37 = vcombine.low %v168_v25, %v172_v26  ;;  %v232_v25 = vld [vmem:[%s6000_s0 + $0x6c8] sm:$0xff] }
 0x19a   :  { %3058 = vmatmul.mubr.bf16.gmra.mrb[44].mxu0 %v3773_v38  ;;  %2487 = vmatprep.mubr.bf16.mxu1 %v3778_v39  ;;  %v3837_v38 = vcombine.low %v170_v27, %v174_v28  ;;  %v3842_v39 = vcombine.high %v176_v33, %v180_v34  ;;  %v236_v26 = vld [vmem:[%s6000_s0 + $0x6e8] sm:$0xff]  ;;  %v234_v27 = vld [vmem:[%s6000_s0 + $0x6d8] sm:$0xff] }
 0x19b   :  { %3065 = vmatprep.mubr.bf16.mxu0 %v3782_v40  ;;  %v3846_v40 = vcombine.high %v178_v35, %v182_v36  ;;  %v238_v28 = vld [vmem:[%s6000_s0 + $0x6f8] sm:$0xff] }
 0x1a1   :  { %2488 = vmatmul.mubr.bf16.gmra.mrb[48].mxu1 %v3777_v45  ;;  %v3841_v45 = vcombine.low %v176_v33, %v180_v34  ;;  %v5784_v33 = vld [vmem:[%s6001_s2] ss:$0 sm:$0xff]  ;;  %v240_v34 = vld [vmem:[%s6000_s0 + $0x708] sm:$0xff] }
 0x1a2   :  { %3066 = vmatmul.mubr.bf16.gmra.mrb[48].mxu0 %v3781_v46  ;;  %2495 = vmatprep.mubr.bf16.mxu1 %v3786_v47  ;;  %v3845_v46 = vcombine.low %v178_v35, %v182_v36  ;;  %v3850_v47 = vcombine.high %v184_v41, %v188_v42  ;;  %v244_v35 = vld [vmem:[%s6000_s0 + $0x728] sm:$0xff] }
 0x1a3   :  { %3073 = vmatprep.mubr.bf16.mxu0 %v3790_v48  ;;  %v3854_v48 = vcombine.high %v186_v43, %v190_v44 }
 0x1a9   :  { %2496 = vmatmul.mubr.bf16.gmra.mrb[52].mxu1 %v3785_v53  ;;  %v3849_v53 = vcombine.low %v184_v41, %v188_v42  ;;  %v3897_v42 = vcombine.low %v232_v25, %v236_v26 }
 0x1aa   :  { %3074 = vmatmul.mubr.bf16.gmra.mrb[52].mxu0 %v3789_v54  ;;  %2503 = vmatprep.mubr.bf16.mxu1 %v3794_v55  ;;  %v3853_v54 = vcombine.low %v186_v43, %v190_v44  ;;  %v3858_v55 = vcombine.high %v192_v49, %v196_v50 }
 0x1ab   :  { %3081 = vmatprep.mubr.bf16.mxu0 %v3798_v56  ;;  %v3862_v56 = vcombine.high %v194_v51, %v198_v52 }
 0x1b1   :  { %2504 = vmatmul.mubr.bf16.gmra.mrb[56].mxu1 %v3793_v60  ;;  %v3857_v60 = vcombine.low %v192_v49, %v196_v50 }
 0x1b2   :  { %3082 = vmatmul.mubr.bf16.gmra.mrb[56].mxu0 %v3797_v61  ;;  %2511 = vmatprep.mubr.bf16.mxu1 %v3802_v62  ;;  %v3861_v61 = vcombine.low %v194_v51, %v198_v52  ;;  %v3866_v62 = vcombine.high %v200_v57, %v204_v0 }
 0x1b3   :  { %3089 = vmatprep.mubr.bf16.mxu0 %v3806_v63  ;;  %v3870_v63 = vcombine.high %v202_v58, %v206_v59 }
 0x1b9   :  { %2512 = vmatmul.mubr.bf16.gmra.mrb[60].mxu1 %v3801_v5  ;;  %v3865_v5 = vcombine.low %v200_v57, %v204_v0  ;;  %v252_v57 = vld [vmem:[%s6000_s0 + $0x768] sm:$0xff] }
 0x1ba   :  { %3090 = vmatmul.mubr.bf16.gmra.mrb[60].mxu0 %v3805_v6  ;;  %2519 = vmatprep.mubr.bf16.mxu1 %v3810_v7  ;;  %v3869_v6 = vcombine.low %v202_v58, %v206_v59  ;;  %v3874_v7 = vcombine.high %v208_v1, %v212_v2  ;;  %v250_v58 = vld [vmem:[%s6000_s0 + $0x758] sm:$0xff] }
 0x1bb   :  { %3097 = vmatprep.mubr.bf16.mxu0 %v3814_v8  ;;  %v3878_v8 = vcombine.high %v210_v3, %v214_v4  ;;  %v254_v59 = vld [vmem:[%s6000_s0 + $0x778] sm:$0xff] }
 0x1c1   :  { %2520 = vmatmul.mubr.bf16.gmra.mrb[64].mxu1 %v3809_v13  ;;  %v3873_v13 = vcombine.low %v208_v1, %v212_v2  ;;  %v3905_v2 = vcombine.low %v240_v34, %v244_v35 }
 0x1c2   :  { %3098 = vmatmul.mubr.bf16.gmra.mrb[64].mxu0 %v3813_v14  ;;  %2527 = vmatprep.mubr.bf16.mxu1 %v3818_v15  ;;  %v3877_v14 = vcombine.low %v210_v3, %v214_v4  ;;  %v3882_v15 = vcombine.high %v216_v9, %v220_v10 }
 0x1c3   :  { %3105 = vmatprep.mubr.bf16.mxu0 %v3822_v16  ;;  %v3886_v16 = vcombine.high %v218_v11, %v222_v12 }
 0x1c9   :  { %2528 = vmatmul.mubr.bf16.gmra.mrb[68].mxu1 %v3817_v21  ;;  %v3881_v21 = vcombine.low %v216_v9, %v220_v10 }
 0x1ca   :  { %3106 = vmatmul.mubr.bf16.gmra.mrb[68].mxu0 %v3821_v22  ;;  %2535 = vmatprep.mubr.bf16.mxu1 %v3826_v23  ;;  %v3885_v22 = vcombine.low %v218_v11, %v222_v12  ;;  %v3890_v23 = vcombine.high %v224_v17, %v228_v18  ;;  %v3918_v12 = vcombine.high %v250_v58, %v254_v59 }
 0x1cb   :  { %3113 = vmatprep.mubr.bf16.mxu0 %v3830_v24  ;;  %v3894_v24 = vcombine.high %v226_v19, %v230_v20 }
 0x1d1   :  { %2536 = vmatmul.mubr.bf16.gmra.mrb[72].mxu1 %v3825_v29  ;;  %v3889_v29 = vcombine.low %v224_v17, %v228_v18  ;;  %v256_v17 = vld [vmem:[%s6000_s0 + $0x788] sm:$0xff] }
 0x1d2   :  { %3114 = vmatmul.mubr.bf16.gmra.mrb[72].mxu0 %v3829_v30  ;;  %2543 = vmatprep.mubr.bf16.mxu1 %v3834_v31  ;;  %v3893_v30 = vcombine.low %v226_v19, %v230_v20  ;;  %v3898_v31 = vcombine.high %v232_v25, %v236_v26  ;;  %v260_v18 = vld [vmem:[%s6000_s0 + $0x7a8] sm:$0xff]  ;;  %v258_v20 = vld [vmem:[%s6000_s0 + $0x798] sm:$0xff] }
 0x1d3   :  { %3121 = vmatprep.mubr.bf16.mxu0 %v3838_v32  ;;  %v3902_v32 = vcombine.high %v234_v27, %v238_v28 }
 0x1d9   :  { %2544 = vmatmul.mubr.bf16.gmra.mrb[76].mxu1 %v3833_v37  ;;  %v242_v37 = vld [vmem:[%s6000_s0 + $0x718] sm:$0xff] }
 0x1da   :  { %3122 = vmatmul.mubr.bf16.gmra.mrb[76].mxu0 %v3837_v38  ;;  %2551 = vmatprep.mubr.bf16.mxu1 %v3842_v39  ;;  %v246_v38 = vld [vmem:[%s6000_s0 + $0x738] sm:$0xff] }
 0x1db   :  { %3129 = vmatprep.mubr.bf16.mxu0 %v3846_v40  ;;  %v3910_v51 = vcombine.high %v242_v37, %v246_v38 }
 0x1e1   :  { %2552 = vmatmul.mubr.bf16.gmra.mrb[80].mxu1 %v3841_v45  ;;  %v3901_v45 = vcombine.low %v234_v27, %v238_v28 }
 0x1e2   :  { %3130 = vmatmul.mubr.bf16.gmra.mrb[80].mxu0 %v3845_v46  ;;  %2559 = vmatprep.mubr.bf16.mxu1 %v3850_v47  ;;  %v3906_v46 = vcombine.high %v240_v34, %v244_v35 }
 0x1e3   :  { %3137 = vmatprep.mubr.bf16.mxu0 %v3854_v48 }
 0x1e9   :  { %2560 = vmatmul.mubr.bf16.gmra.mrb[84].mxu1 %v3849_v53 }
 0x1ea   :  { %3138 = vmatmul.mubr.bf16.gmra.mrb[84].mxu0 %v3853_v54  ;;  %2567 = vmatprep.mubr.bf16.mxu1 %v3858_v55 }
 0x1eb   :  { %3145 = vmatprep.mubr.bf16.mxu0 %v3862_v56  ;;  %v248_v56 = vld [vmem:[%s6000_s0 + $0x748] sm:$0xff] }
 0x1ec   :  { %v3913_v27 = vcombine.low %v248_v56, %v252_v57 }
 0x1f1   :  { %2568 = vmatmul.mubr.bf16.gmra.mrb[88].mxu1 %v3857_v60 }
 0x1f2   :  { %3146 = vmatmul.mubr.bf16.gmra.mrb[88].mxu0 %v3861_v61  ;;  %2575 = vmatprep.mubr.bf16.mxu1 %v3866_v62 }
 0x1f3   :  { %3153 = vmatprep.mubr.bf16.mxu0 %v3870_v63 }
 0x1f9   :  { %2576 = vmatmul.mubr.bf16.gmra.mrb[92].mxu1 %v3865_v5  ;;  %v3909_v5 = vcombine.low %v242_v37, %v246_v38 }
 0x1fa   :  { %3154 = vmatmul.mubr.bf16.gmra.mrb[92].mxu0 %v3869_v6  ;;  %2583 = vmatprep.mubr.bf16.mxu1 %v3874_v7  ;;  %v3914_v6 = vcombine.high %v248_v56, %v252_v57 }
 0x1fb   :  { %3161 = vmatprep.mubr.bf16.mxu0 %v3878_v8 }
 0x201   :  { %2584 = vmatmul.mubr.bf16.gmra.mrb[96].mxu1 %v3873_v13 }
 0x202   :  { %3162 = vmatmul.mubr.bf16.gmra.mrb[96].mxu0 %v3877_v14  ;;  %2591 = vmatprep.mubr.bf16.mxu1 %v3882_v15 }
 0x203   :  { %3169 = vmatprep.mubr.bf16.mxu0 %v3886_v16 }
 0x209   :  { %2592 = vmatmul.mubr.bf16.gmra.mrb[100].mxu1 %v3881_v21  ;;  %v262_v21 = vld [vmem:[%s6000_s0 + $0x7b8] sm:$0xff] }
 0x20a   :  { %3170 = vmatmul.mubr.bf16.gmra.mrb[100].mxu0 %v3885_v22  ;;  %2599 = vmatprep.mubr.bf16.mxu1 %v3890_v23  ;;  %v3926_v38 = vcombine.high %v258_v20, %v262_v21  ;;  %v3925_v56 = vcombine.low %v258_v20, %v262_v21 }
 0x20b   :  { %3177 = vmatprep.mubr.bf16.mxu0 %v3894_v24 }
 0x211   :  { %2600 = vmatmul.mubr.bf16.gmra.mrb[104].mxu1 %v3889_v29 }
 0x212   :  { %3178 = vmatmul.mubr.bf16.gmra.mrb[104].mxu0 %v3893_v30  ;;  %2607 = vmatprep.mubr.bf16.mxu1 %v3898_v31  ;;  %v3917_v30 = vcombine.low %v250_v58, %v254_v59  ;;  %v3922_v31 = vcombine.high %v256_v17, %v260_v18 }
 0x213   :  { %3185 = vmatprep.mubr.bf16.mxu0 %v3902_v32 }
 0x214   :  { %v2393_v36 = vpop.f32.mrb[0].mxu1 }
 0x215   :  { %v4318_v39 = vadd.f32 %v5784_v33, %v2393_v36  ;;  %v2971_v40 = vpop.f32.mrb[0].mxu0  ;;  %v2395_v41 = vpop.f32.mrb[1].mxu1 }
 0x216   :  { %v2973_v43 = vpop.f32.mrb[1].mxu0  ;;  %v2396_v44 = vpop.f32.mrb[2].mxu1 }
 0x217   :  { %v4319_v47 = vadd.f32 %v4318_v39, %v2971_v40  ;;  %v4320_v48 = vadd.f32 %v5784_v33, %v2396_v44  ;;  %v2974_v49 = vpop.f32.mrb[2].mxu0  ;;  %v2398_v50 = vpop.f32.mrb[3].mxu1  ;;  %v264_v43 = vld [vmem:[%s6000_s0 + $0x7c8] sm:$0xff] }
 0x218   :  { %v2976_v52 = vpop.f32.mrb[3].mxu0  ;;  %v268_v44 = vld [vmem:[%s6000_s0 + $0x7e8] sm:$0xff] }
 0x219   :  { %v3226_v53 = vmul.f32 0.2, %v4319_v47  ;;  %v4321_v54 = vadd.f32 %v4320_v48, %v2974_v49  ;;  %2608 = vmatmul.mubr.bf16.gmra.mrb[108].mxu1 %v3897_v42  ;;  %v3930_v57 = vcombine.high %v264_v43, %v268_v44 }
 0x21a   :  { %3186 = vmatmul.mubr.bf16.gmra.mrb[108].mxu0 %v3901_v45  ;;  %2615 = vmatprep.mubr.bf16.mxu1 %v3906_v46  ;;  %v266_v46 = vld [vmem:[%s6000_s0 + $0x7d8] sm:$0xff] }
 0x21b   :  { %v3227_v55 = vmul.f32 0.2, %v4321_v54  ;;  %3193 = vmatprep.mubr.bf16.mxu0 %v3910_v51  ;;  %v3290_v60 = vmax.f32 %v4319_v47, %v3226_v53  ;;  %v270_v47 = vld [vmem:[%s6000_s0 + $0x7f8] sm:$0xff]  ;;  %v3921_v53 = vcombine.low %v256_v17, %v260_v18 }
 0x21c   :  { %v2401_v0 = vpop.f32.mrb[4].mxu1 }
 0x21d   :  { %v3291_v61 = vmax.f32 %v4321_v54, %v3227_v55  ;;  %v4322_v62 = vadd.f32 %v5784_v33, %v2401_v0  ;;  %v2979_v63 = vpop.f32.mrb[4].mxu0  ;;  %v2403_v1 = vpop.f32.mrb[5].mxu1 }
 0x21e   :  { %v2981_v3 = vpop.f32.mrb[5].mxu0  ;;  %v2404_v4 = vpop.f32.mrb[6].mxu1 }
 0x21f   :  { %v4130_v7 = vpack.c.bf16 %v3291_v61, %v3290_v60  ;;  %v4323_v8 = vadd.f32 %v4322_v62, %v2979_v63  ;;  %v4324_v9 = vadd.f32 %v5784_v33, %v2404_v4  ;;  %v2982_v10 = vpop.f32.mrb[6].mxu0  ;;  %v2406_v11 = vpop.f32.mrb[7].mxu1  ;;  %v3934_v62 = vcombine.high %v266_v46, %v270_v47 }
 0x220   :  { %v2984_v13 = vpop.f32.mrb[7].mxu0 }
 0x221   :  { %4131 = vst [vmem:[%s6002_s3] sm:$0xff] %v4130_v7   ;;  %v3228_v14 = vmul.f32 0.2, %v4323_v8  ;;  %v4325_v15 = vadd.f32 %v4324_v9, %v2982_v10  ;;  %2616 = vmatmul.mubr.bf16.gmra.mrb[112].mxu1 %v3905_v2  ;;  %v3929_v10 = vcombine.low %v264_v43, %v268_v44  ;;  %v3933_v13 = vcombine.low %v266_v46, %v270_v47 }
 0x222   :  { %3194 = vmatmul.mubr.bf16.gmra.mrb[112].mxu0 %v3909_v5  ;;  %2623 = vmatprep.mubr.bf16.mxu1 %v3914_v6 }
 0x223   :  { %v3229_v16 = vmul.f32 0.2, %v4325_v15  ;;  %3201 = vmatprep.mubr.bf16.mxu0 %v3918_v12  ;;  %v3292_v22 = vmax.f32 %v4323_v8, %v3228_v14 }
 0x224   :  { %v2409_v19 = vpop.f32.mrb[8].mxu1 }
 0x225   :  { %v3293_v23 = vmax.f32 %v4325_v15, %v3229_v16  ;;  %v4326_v24 = vadd.f32 %v5784_v33, %v2409_v19  ;;  %v2987_v25 = vpop.f32.mrb[8].mxu0  ;;  %v2411_v26 = vpop.f32.mrb[9].mxu1 }
 0x226   :  { %v2989_v28 = vpop.f32.mrb[9].mxu0  ;;  %v2412_v29 = vpop.f32.mrb[10].mxu1 }
 0x227   :  { %v4135_v32 = vpack.c.bf16 %v3293_v23, %v3292_v22  ;;  %v4327_v34 = vadd.f32 %v4326_v24, %v2987_v25  ;;  %v4328_v35 = vadd.f32 %v5784_v33, %v2412_v29  ;;  %v2990_v36 = vpop.f32.mrb[10].mxu0  ;;  %v2414_v37 = vpop.f32.mrb[11].mxu1 }
 0x228   :  { %v2992_v39 = vpop.f32.mrb[11].mxu0 }
 0x229   :  { %4287 = vst [vmem:[%s6002_s3 + $0x8] sm:$0xff] %v4135_v32   ;;  %v3230_v40 = vmul.f32 0.2, %v4327_v34  ;;  %v4329_v41 = vadd.f32 %v4328_v35, %v2990_v36  ;;  %2624 = vmatmul.mubr.bf16.gmra.mrb[116].mxu1 %v3913_v27 }
 0x22a   :  { %3202 = vmatmul.mubr.bf16.gmra.mrb[116].mxu0 %v3917_v30  ;;  %2631 = vmatprep.mubr.bf16.mxu1 %v3922_v31 }
 0x22b   :  { %v3231_v42 = vmul.f32 0.2, %v4329_v41  ;;  %3209 = vmatprep.mubr.bf16.mxu0 %v3926_v38  ;;  %v3294_v48 = vmax.f32 %v4327_v34, %v3230_v40 }
 0x22c   :  { %v2417_v45 = vpop.f32.mrb[12].mxu1 }
 0x22d   :  { %v3295_v49 = vmax.f32 %v4329_v41, %v3231_v42  ;;  %v4330_v50 = vadd.f32 %v5784_v33, %v2417_v45  ;;  %v2995_v51 = vpop.f32.mrb[12].mxu0  ;;  %v2419_v52 = vpop.f32.mrb[13].mxu1 }
 0x22e   :  { %v2997_v54 = vpop.f32.mrb[13].mxu0  ;;  %v2420_v55 = vpop.f32.mrb[14].mxu1 }
 0x22f   :  { %v4140_v0 = vpack.c.bf16 %v3295_v49, %v3294_v48  ;;  %v4331_v58 = vadd.f32 %v4330_v50, %v2995_v51  ;;  %v4332_v59 = vadd.f32 %v5784_v33, %v2420_v55  ;;  %v2998_v60 = vpop.f32.mrb[14].mxu0  ;;  %v2422_v61 = vpop.f32.mrb[15].mxu1 }
 0x230   :  { %v3000_v63 = vpop.f32.mrb[15].mxu0 }
 0x231   :  { %4288 = vst [vmem:[%s6002_s3 + $0x10] sm:$0xff] %v4140_v0   ;;  %v3232_v1 = vmul.f32 0.2, %v4331_v58  ;;  %v4333_v2 = vadd.f32 %v4332_v59, %v2998_v60  ;;  %2632 = vmatmul.mubr.bf16.gmra.mrb[120].mxu1 %v3921_v53 }
 0x232   :  { %3210 = vmatmul.mubr.bf16.gmra.mrb[120].mxu0 %v3925_v56  ;;  %2639 = vmatprep.mubr.bf16.mxu1 %v3930_v57 }
 0x233   :  { %v3233_v3 = vmul.f32 0.2, %v4333_v2  ;;  %3217 = vmatprep.mubr.bf16.mxu0 %v3934_v62  ;;  %v3296_v5 = vmax.f32 %v4331_v58, %v3232_v1 }
 0x234   :  { %v2425_v4 = vpop.f32.mrb[16].mxu1 }
 0x235   :  { %v3297_v6 = vmax.f32 %v4333_v2, %v3233_v3  ;;  %v4334_v7 = vadd.f32 %v5784_v33, %v2425_v4  ;;  %v3003_v8 = vpop.f32.mrb[16].mxu0  ;;  %v2427_v9 = vpop.f32.mrb[17].mxu1 }
 0x236   :  { %v3005_v11 = vpop.f32.mrb[17].mxu0  ;;  %v2428_v12 = vpop.f32.mrb[18].mxu1 }
 0x237   :  { %v4145_v14 = vpack.c.bf16 %v3297_v6, %v3296_v5  ;;  %v4335_v15 = vadd.f32 %v4334_v7, %v3003_v8  ;;  %v4336_v16 = vadd.f32 %v5784_v33, %v2428_v12  ;;  %v3006_v17 = vpop.f32.mrb[18].mxu0  ;;  %v2430_v18 = vpop.f32.mrb[19].mxu1 }
 0x238   :  { %v3008_v19 = vpop.f32.mrb[19].mxu0 }
 0x239   :  { %4289 = vst [vmem:[%s6002_s3 + $0x18] sm:$0xff] %v4145_v14   ;;  %v3234_v20 = vmul.f32 0.2, %v4335_v15  ;;  %v4337_v21 = vadd.f32 %v4336_v16, %v3006_v17  ;;  %2640 = vmatmul.mubr.bf16.gmra.mrb[124].mxu1 %v3929_v10 }
 0x23a   :  { %3218 = vmatmul.mubr.bf16.gmra.mrb[124].mxu0 %v3933_v13 }
 0x23b   :  { %v3235_v22 = vmul.f32 0.2, %v4337_v21  ;;  %v3298_v24 = vmax.f32 %v4335_v15, %v3234_v20 }
 0x23c   :  { %v2433_v23 = vpop.f32.mrb[20].mxu1 }
 0x23d   :  { %v3299_v25 = vmax.f32 %v4337_v21, %v3235_v22  ;;  %v4338_v26 = vadd.f32 %v5784_v33, %v2433_v23  ;;  %v3011_v27 = vpop.f32.mrb[20].mxu0  ;;  %v2435_v28 = vpop.f32.mrb[21].mxu1 }
 0x23e   :  { %v3013_v29 = vpop.f32.mrb[21].mxu0  ;;  %v2436_v30 = vpop.f32.mrb[22].mxu1 }
 0x23f   :  { %v4150_v31 = vpack.c.bf16 %v3299_v25, %v3298_v24  ;;  %v4339_v32 = vadd.f32 %v4338_v26, %v3011_v27  ;;  %v4340_v34 = vadd.f32 %v5784_v33, %v2436_v30  ;;  %v3014_v35 = vpop.f32.mrb[22].mxu0  ;;  %v2438_v36 = vpop.f32.mrb[23].mxu1 }
 0x240   :  { %v3016_v37 = vpop.f32.mrb[23].mxu0 }
 0x241   :  { %4290 = vst [vmem:[%s6002_s3 + $0x20] sm:$0xff] %v4150_v31   ;;  %v3236_v38 = vmul.f32 0.2, %v4339_v32  ;;  %v4341_v39 = vadd.f32 %v4340_v34, %v3014_v35 }
 0x243   :  { %v3237_v40 = vmul.f32 0.2, %v4341_v39  ;;  %v3300_v42 = vmax.f32 %v4339_v32, %v3236_v38 }
 0x244   :  { %v2441_v41 = vpop.f32.mrb[24].mxu1 }
 0x245   :  { %v3301_v43 = vmax.f32 %v4341_v39, %v3237_v40  ;;  %v4342_v44 = vadd.f32 %v5784_v33, %v2441_v41  ;;  %v3019_v45 = vpop.f32.mrb[24].mxu0  ;;  %v2443_v46 = vpop.f32.mrb[25].mxu1 }
 0x246   :  { %v3021_v47 = vpop.f32.mrb[25].mxu0  ;;  %v2444_v48 = vpop.f32.mrb[26].mxu1 }
 0x247   :  { %v4155_v49 = vpack.c.bf16 %v3301_v43, %v3300_v42  ;;  %v4343_v50 = vadd.f32 %v4342_v44, %v3019_v45  ;;  %v4344_v51 = vadd.f32 %v5784_v33, %v2444_v48  ;;  %v3022_v52 = vpop.f32.mrb[26].mxu0  ;;  %v2446_v53 = vpop.f32.mrb[27].mxu1 }
 0x248   :  { %v3024_v54 = vpop.f32.mrb[27].mxu0 }
 0x249   :  { %4291 = vst [vmem:[%s6002_s3 + $0x28] sm:$0xff] %v4155_v49   ;;  %v3238_v55 = vmul.f32 0.2, %v4343_v50  ;;  %v4345_v56 = vadd.f32 %v4344_v51, %v3022_v52 }
 0x24b   :  { %v3239_v57 = vmul.f32 0.2, %v4345_v56  ;;  %v3302_v58 = vmax.f32 %v4343_v50, %v3238_v55 }
 0x24c   :  { %v2449_v0 = vpop.f32.mrb[28].mxu1 }
 0x24d   :  { %v3303_v59 = vmax.f32 %v4345_v56, %v3239_v57  ;;  %v4346_v60 = vadd.f32 %v5784_v33, %v2449_v0  ;;  %v3027_v61 = vpop.f32.mrb[28].mxu0  ;;  %v2451_v62 = vpop.f32.mrb[29].mxu1 }
 0x24e   :  { %v3029_v63 = vpop.f32.mrb[29].mxu0  ;;  %v2452_v1 = vpop.f32.mrb[30].mxu1 }
 0x24f   :  { %v4160_v2 = vpack.c.bf16 %v3303_v59, %v3302_v58  ;;  %v4347_v3 = vadd.f32 %v4346_v60, %v3027_v61  ;;  %v4348_v4 = vadd.f32 %v5784_v33, %v2452_v1  ;;  %v3030_v5 = vpop.f32.mrb[30].mxu0  ;;  %v2454_v6 = vpop.f32.mrb[31].mxu1 }
 0x250   :  { %v3032_v7 = vpop.f32.mrb[31].mxu0 }
 0x251   :  { %4292 = vst [vmem:[%s6002_s3 + $0x30] sm:$0xff] %v4160_v2   ;;  %v3240_v8 = vmul.f32 0.2, %v4347_v3  ;;  %v4349_v9 = vadd.f32 %v4348_v4, %v3030_v5 }
 0x253   :  { %v3241_v10 = vmul.f32 0.2, %v4349_v9  ;;  %v3304_v12 = vmax.f32 %v4347_v3, %v3240_v8 }
 0x254   :  { %v2457_v11 = vpop.f32.mrb[32].mxu1 }
 0x255   :  { %v3305_v13 = vmax.f32 %v4349_v9, %v3241_v10  ;;  %v4350_v14 = vadd.f32 %v5784_v33, %v2457_v11  ;;  %v3035_v15 = vpop.f32.mrb[32].mxu0  ;;  %v2459_v16 = vpop.f32.mrb[33].mxu1 }
 0x256   :  { %v3037_v17 = vpop.f32.mrb[33].mxu0  ;;  %v2460_v18 = vpop.f32.mrb[34].mxu1 }
 0x257   :  { %v4165_v19 = vpack.c.bf16 %v3305_v13, %v3304_v12  ;;  %v4351_v20 = vadd.f32 %v4350_v14, %v3035_v15  ;;  %v4352_v21 = vadd.f32 %v5784_v33, %v2460_v18  ;;  %v3038_v22 = vpop.f32.mrb[34].mxu0  ;;  %v2462_v23 = vpop.f32.mrb[35].mxu1 }
 0x258   :  { %v3040_v24 = vpop.f32.mrb[35].mxu0 }
 0x259   :  { %4293 = vst [vmem:[%s6002_s3 + $0x38] sm:$0xff] %v4165_v19   ;;  %v3242_v25 = vmul.f32 0.2, %v4351_v20  ;;  %v4353_v26 = vadd.f32 %v4352_v21, %v3038_v22 }
 0x25b   :  { %v3243_v27 = vmul.f32 0.2, %v4353_v26  ;;  %v3306_v29 = vmax.f32 %v4351_v20, %v3242_v25 }
 0x25c   :  { %v2465_v28 = vpop.f32.mrb[36].mxu1 }
 0x25d   :  { %v3307_v30 = vmax.f32 %v4353_v26, %v3243_v27  ;;  %v4354_v31 = vadd.f32 %v5784_v33, %v2465_v28  ;;  %v3043_v32 = vpop.f32.mrb[36].mxu0  ;;  %v2467_v34 = vpop.f32.mrb[37].mxu1 }
 0x25e   :  { %v3045_v35 = vpop.f32.mrb[37].mxu0  ;;  %v2468_v36 = vpop.f32.mrb[38].mxu1 }
 0x25f   :  { %v4170_v37 = vpack.c.bf16 %v3307_v30, %v3306_v29  ;;  %v4355_v38 = vadd.f32 %v4354_v31, %v3043_v32  ;;  %v4356_v39 = vadd.f32 %v5784_v33, %v2468_v36  ;;  %v3046_v40 = vpop.f32.mrb[38].mxu0  ;;  %v2470_v41 = vpop.f32.mrb[39].mxu1 }
 0x260   :  { %v3048_v42 = vpop.f32.mrb[39].mxu0 }
 0x261   :  { %4294 = vst [vmem:[%s6002_s3 + $0x40] sm:$0xff] %v4170_v37   ;;  %v3244_v43 = vmul.f32 0.2, %v4355_v38  ;;  %v4357_v44 = vadd.f32 %v4356_v39, %v3046_v40 }
 0x263   :  { %v3245_v45 = vmul.f32 0.2, %v4357_v44  ;;  %v3308_v47 = vmax.f32 %v4355_v38, %v3244_v43 }
 0x264   :  { %v2473_v46 = vpop.f32.mrb[40].mxu1 }
 0x265   :  { %v3309_v48 = vmax.f32 %v4357_v44, %v3245_v45  ;;  %v4358_v49 = vadd.f32 %v5784_v33, %v2473_v46  ;;  %v3051_v50 = vpop.f32.mrb[40].mxu0  ;;  %v2475_v51 = vpop.f32.mrb[41].mxu1 }
 0x266   :  { %v3053_v52 = vpop.f32.mrb[41].mxu0  ;;  %v2476_v53 = vpop.f32.mrb[42].mxu1 }
 0x267   :  { %v4175_v54 = vpack.c.bf16 %v3309_v48, %v3308_v47  ;;  %v4359_v55 = vadd.f32 %v4358_v49, %v3051_v50  ;;  %v4360_v56 = vadd.f32 %v5784_v33, %v2476_v53  ;;  %v3054_v57 = vpop.f32.mrb[42].mxu0  ;;  %v2478_v0 = vpop.f32.mrb[43].mxu1 }
 0x268   :  { %v3056_v58 = vpop.f32.mrb[43].mxu0 }
 0x269   :  { %4295 = vst [vmem:[%s6002_s3 + $0x48] sm:$0xff] %v4175_v54   ;;  %v3246_v59 = vmul.f32 0.2, %v4359_v55  ;;  %v4361_v60 = vadd.f32 %v4360_v56, %v3054_v57 }
 0x26b   :  { %v3247_v61 = vmul.f32 0.2, %v4361_v60  ;;  %v3310_v63 = vmax.f32 %v4359_v55, %v3246_v59 }
 0x26c   :  { %v2481_v62 = vpop.f32.mrb[44].mxu1 }
 0x26d   :  { %v3311_v1 = vmax.f32 %v4361_v60, %v3247_v61  ;;  %v4362_v2 = vadd.f32 %v5784_v33, %v2481_v62  ;;  %v3059_v3 = vpop.f32.mrb[44].mxu0  ;;  %v2483_v4 = vpop.f32.mrb[45].mxu1 }
 0x26e   :  { %v3061_v5 = vpop.f32.mrb[45].mxu0  ;;  %v2484_v6 = vpop.f32.mrb[46].mxu1 }
 0x26f   :  { %v4180_v7 = vpack.c.bf16 %v3311_v1, %v3310_v63  ;;  %v4363_v8 = vadd.f32 %v4362_v2, %v3059_v3  ;;  %v4364_v9 = vadd.f32 %v5784_v33, %v2484_v6  ;;  %v3062_v10 = vpop.f32.mrb[46].mxu0  ;;  %v2486_v11 = vpop.f32.mrb[47].mxu1 }
 0x270   :  { %v3064_v12 = vpop.f32.mrb[47].mxu0 }
 0x271   :  { %4296 = vst [vmem:[%s6002_s3 + $0x50] sm:$0xff] %v4180_v7   ;;  %v3248_v13 = vmul.f32 0.2, %v4363_v8  ;;  %v4365_v14 = vadd.f32 %v4364_v9, %v3062_v10 }
 0x273   :  { %v3249_v15 = vmul.f32 0.2, %v4365_v14  ;;  %v3312_v17 = vmax.f32 %v4363_v8, %v3248_v13 }
 0x274   :  { %v2489_v16 = vpop.f32.mrb[48].mxu1 }
 0x275   :  { %v3313_v18 = vmax.f32 %v4365_v14, %v3249_v15  ;;  %v4366_v19 = vadd.f32 %v5784_v33, %v2489_v16  ;;  %v3067_v20 = vpop.f32.mrb[48].mxu0  ;;  %v2491_v21 = vpop.f32.mrb[49].mxu1 }
 0x276   :  { %v3069_v22 = vpop.f32.mrb[49].mxu0  ;;  %v2492_v23 = vpop.f32.mrb[50].mxu1 }
 0x277   :  { %v4185_v24 = vpack.c.bf16 %v3313_v18, %v3312_v17  ;;  %v4367_v25 = vadd.f32 %v4366_v19, %v3067_v20  ;;  %v4368_v26 = vadd.f32 %v5784_v33, %v2492_v23  ;;  %v3070_v27 = vpop.f32.mrb[50].mxu0  ;;  %v2494_v28 = vpop.f32.mrb[51].mxu1 }
 0x278   :  { %v3072_v29 = vpop.f32.mrb[51].mxu0 }
 0x279   :  { %4297 = vst [vmem:[%s6002_s3 + $0x58] sm:$0xff] %v4185_v24   ;;  %v3250_v30 = vmul.f32 0.2, %v4367_v25  ;;  %v4369_v31 = vadd.f32 %v4368_v26, %v3070_v27 }
 0x27b   :  { %v3251_v32 = vmul.f32 0.2, %v4369_v31  ;;  %v3314_v35 = vmax.f32 %v4367_v25, %v3250_v30 }
 0x27c   :  { %v2497_v34 = vpop.f32.mrb[52].mxu1 }
 0x27d   :  { %v3315_v36 = vmax.f32 %v4369_v31, %v3251_v32  ;;  %v4370_v37 = vadd.f32 %v5784_v33, %v2497_v34  ;;  %v3075_v38 = vpop.f32.mrb[52].mxu0  ;;  %v2499_v39 = vpop.f32.mrb[53].mxu1 }
 0x27e   :  { %v3077_v40 = vpop.f32.mrb[53].mxu0  ;;  %v2500_v41 = vpop.f32.mrb[54].mxu1 }
 0x27f   :  { %v4190_v42 = vpack.c.bf16 %v3315_v36, %v3314_v35  ;;  %v4371_v43 = vadd.f32 %v4370_v37, %v3075_v38  ;;  %v4372_v44 = vadd.f32 %v5784_v33, %v2500_v41  ;;  %v3078_v45 = vpop.f32.mrb[54].mxu0  ;;  %v2502_v46 = vpop.f32.mrb[55].mxu1 }
 0x280   :  { %v3080_v47 = vpop.f32.mrb[55].mxu0 }
 0x281   :  { %4298 = vst [vmem:[%s6002_s3 + $0x60] sm:$0xff] %v4190_v42   ;;  %v3252_v48 = vmul.f32 0.2, %v4371_v43  ;;  %v4373_v49 = vadd.f32 %v4372_v44, %v3078_v45 }
 0x283   :  { %v3253_v50 = vmul.f32 0.2, %v4373_v49  ;;  %v3316_v52 = vmax.f32 %v4371_v43, %v3252_v48 }
 0x284   :  { %v2505_v51 = vpop.f32.mrb[56].mxu1 }
 0x285   :  { %v3317_v53 = vmax.f32 %v4373_v49, %v3253_v50  ;;  %v4374_v54 = vadd.f32 %v5784_v33, %v2505_v51  ;;  %v3083_v55 = vpop.f32.mrb[56].mxu0  ;;  %v2507_v56 = vpop.f32.mrb[57].mxu1 }
 0x286   :  { %v3085_v57 = vpop.f32.mrb[57].mxu0  ;;  %v2508_v0 = vpop.f32.mrb[58].mxu1 }
 0x287   :  { %v4195_v58 = vpack.c.bf16 %v3317_v53, %v3316_v52  ;;  %v4375_v59 = vadd.f32 %v4374_v54, %v3083_v55  ;;  %v4376_v60 = vadd.f32 %v5784_v33, %v2508_v0  ;;  %v3086_v61 = vpop.f32.mrb[58].mxu0  ;;  %v2510_v62 = vpop.f32.mrb[59].mxu1 }
 0x288   :  { %v3088_v63 = vpop.f32.mrb[59].mxu0 }
 0x289   :  { %4299 = vst [vmem:[%s6002_s3 + $0x68] sm:$0xff] %v4195_v58   ;;  %v3254_v1 = vmul.f32 0.2, %v4375_v59  ;;  %v4377_v2 = vadd.f32 %v4376_v60, %v3086_v61 }
 0x28b   :  { %v3255_v3 = vmul.f32 0.2, %v4377_v2  ;;  %v3318_v5 = vmax.f32 %v4375_v59, %v3254_v1 }
 0x28c   :  { %v2513_v4 = vpop.f32.mrb[60].mxu1 }
 0x28d   :  { %v3319_v6 = vmax.f32 %v4377_v2, %v3255_v3  ;;  %v4378_v7 = vadd.f32 %v5784_v33, %v2513_v4  ;;  %v3091_v8 = vpop.f32.mrb[60].mxu0  ;;  %v2515_v9 = vpop.f32.mrb[61].mxu1 }
 0x28e   :  { %v3093_v10 = vpop.f32.mrb[61].mxu0  ;;  %v2516_v11 = vpop.f32.mrb[62].mxu1 }
 0x28f   :  { %v4200_v12 = vpack.c.bf16 %v3319_v6, %v3318_v5  ;;  %v4379_v13 = vadd.f32 %v4378_v7, %v3091_v8  ;;  %v4380_v14 = vadd.f32 %v5784_v33, %v2516_v11  ;;  %v3094_v15 = vpop.f32.mrb[62].mxu0  ;;  %v2518_v16 = vpop.f32.mrb[63].mxu1 }
 0x290   :  { %v3096_v17 = vpop.f32.mrb[63].mxu0 }
 0x291   :  { %4300 = vst [vmem:[%s6002_s3 + $0x70] sm:$0xff] %v4200_v12   ;;  %v3256_v18 = vmul.f32 0.2, %v4379_v13  ;;  %v4381_v19 = vadd.f32 %v4380_v14, %v3094_v15 }
 0x293   :  { %v3257_v20 = vmul.f32 0.2, %v4381_v19  ;;  %v3320_v22 = vmax.f32 %v4379_v13, %v3256_v18 }
 0x294   :  { %v2521_v21 = vpop.f32.mrb[64].mxu1 }
 0x295   :  { %v3321_v23 = vmax.f32 %v4381_v19, %v3257_v20  ;;  %v4382_v24 = vadd.f32 %v5784_v33, %v2521_v21  ;;  %v3099_v25 = vpop.f32.mrb[64].mxu0  ;;  %v2523_v26 = vpop.f32.mrb[65].mxu1 }
 0x296   :  { %v3101_v27 = vpop.f32.mrb[65].mxu0  ;;  %v2524_v28 = vpop.f32.mrb[66].mxu1 }
 0x297   :  { %v4205_v29 = vpack.c.bf16 %v3321_v23, %v3320_v22  ;;  %v4383_v30 = vadd.f32 %v4382_v24, %v3099_v25  ;;  %v4384_v31 = vadd.f32 %v5784_v33, %v2524_v28  ;;  %v3102_v32 = vpop.f32.mrb[66].mxu0  ;;  %v2526_v34 = vpop.f32.mrb[67].mxu1 }
 0x298   :  { %v3104_v35 = vpop.f32.mrb[67].mxu0 }
 0x299   :  { %4301 = vst [vmem:[%s6002_s3 + $0x78] sm:$0xff] %v4205_v29   ;;  %v3258_v36 = vmul.f32 0.2, %v4383_v30  ;;  %v4385_v37 = vadd.f32 %v4384_v31, %v3102_v32 }
 0x29b   :  { %v3259_v38 = vmul.f32 0.2, %v4385_v37  ;;  %v3322_v40 = vmax.f32 %v4383_v30, %v3258_v36 }
 0x29c   :  { %v2529_v39 = vpop.f32.mrb[68].mxu1 }
 0x29d   :  { %v3323_v41 = vmax.f32 %v4385_v37, %v3259_v38  ;;  %v4386_v42 = vadd.f32 %v5784_v33, %v2529_v39  ;;  %v3107_v43 = vpop.f32.mrb[68].mxu0  ;;  %v2531_v44 = vpop.f32.mrb[69].mxu1 }
 0x29e   :  { %v3109_v45 = vpop.f32.mrb[69].mxu0  ;;  %v2532_v46 = vpop.f32.mrb[70].mxu1 }
 0x29f   :  { %v4210_v47 = vpack.c.bf16 %v3323_v41, %v3322_v40  ;;  %v4387_v48 = vadd.f32 %v4386_v42, %v3107_v43  ;;  %v4388_v49 = vadd.f32 %v5784_v33, %v2532_v46  ;;  %v3110_v50 = vpop.f32.mrb[70].mxu0  ;;  %v2534_v51 = vpop.f32.mrb[71].mxu1 }
 0x2a0   :  { %v3112_v52 = vpop.f32.mrb[71].mxu0 }
 0x2a1   :  { %4302 = vst [vmem:[%s6002_s3 + $0x80] sm:$0xff] %v4210_v47   ;;  %v3260_v53 = vmul.f32 0.2, %v4387_v48  ;;  %v4389_v54 = vadd.f32 %v4388_v49, %v3110_v50 }
 0x2a3   :  { %v3261_v55 = vmul.f32 0.2, %v4389_v54  ;;  %v3324_v57 = vmax.f32 %v4387_v48, %v3260_v53 }
 0x2a4   :  { %v2537_v56 = vpop.f32.mrb[72].mxu1 }
 0x2a5   :  { %v3325_v0 = vmax.f32 %v4389_v54, %v3261_v55  ;;  %v4390_v58 = vadd.f32 %v5784_v33, %v2537_v56  ;;  %v3115_v59 = vpop.f32.mrb[72].mxu0  ;;  %v2539_v60 = vpop.f32.mrb[73].mxu1 }
 0x2a6   :  { %v3117_v61 = vpop.f32.mrb[73].mxu0  ;;  %v2540_v62 = vpop.f32.mrb[74].mxu1 }
 0x2a7   :  { %v4215_v63 = vpack.c.bf16 %v3325_v0, %v3324_v57  ;;  %v4391_v1 = vadd.f32 %v4390_v58, %v3115_v59  ;;  %v4392_v2 = vadd.f32 %v5784_v33, %v2540_v62  ;;  %v3118_v3 = vpop.f32.mrb[74].mxu0  ;;  %v2542_v4 = vpop.f32.mrb[75].mxu1 }
 0x2a8   :  { %v3120_v5 = vpop.f32.mrb[75].mxu0 }
 0x2a9   :  { %4303 = vst [vmem:[%s6002_s3 + $0x88] sm:$0xff] %v4215_v63   ;;  %v3262_v6 = vmul.f32 0.2, %v4391_v1  ;;  %v4393_v7 = vadd.f32 %v4392_v2, %v3118_v3 }
 0x2ab   :  { %v3263_v8 = vmul.f32 0.2, %v4393_v7  ;;  %v3326_v10 = vmax.f32 %v4391_v1, %v3262_v6 }
 0x2ac   :  { %v2545_v9 = vpop.f32.mrb[76].mxu1 }
 0x2ad   :  { %v3327_v11 = vmax.f32 %v4393_v7, %v3263_v8  ;;  %v4394_v12 = vadd.f32 %v5784_v33, %v2545_v9  ;;  %v3123_v13 = vpop.f32.mrb[76].mxu0  ;;  %v2547_v14 = vpop.f32.mrb[77].mxu1 }
 0x2ae   :  { %v3125_v15 = vpop.f32.mrb[77].mxu0  ;;  %v2548_v16 = vpop.f32.mrb[78].mxu1 }
 0x2af   :  { %v4220_v17 = vpack.c.bf16 %v3327_v11, %v3326_v10  ;;  %v4395_v18 = vadd.f32 %v4394_v12, %v3123_v13  ;;  %v4396_v19 = vadd.f32 %v5784_v33, %v2548_v16  ;;  %v3126_v20 = vpop.f32.mrb[78].mxu0  ;;  %v2550_v21 = vpop.f32.mrb[79].mxu1 }
 0x2b0   :  { %v3128_v22 = vpop.f32.mrb[79].mxu0 }
 0x2b1   :  { %4304 = vst [vmem:[%s6002_s3 + $0x90] sm:$0xff] %v4220_v17   ;;  %v3264_v23 = vmul.f32 0.2, %v4395_v18  ;;  %v4397_v24 = vadd.f32 %v4396_v19, %v3126_v20 }
 0x2b3   :  { %v3265_v25 = vmul.f32 0.2, %v4397_v24  ;;  %v3328_v27 = vmax.f32 %v4395_v18, %v3264_v23 }
 0x2b4   :  { %v2553_v26 = vpop.f32.mrb[80].mxu1 }
 0x2b5   :  { %v3329_v28 = vmax.f32 %v4397_v24, %v3265_v25  ;;  %v4398_v29 = vadd.f32 %v5784_v33, %v2553_v26  ;;  %v3131_v30 = vpop.f32.mrb[80].mxu0  ;;  %v2555_v31 = vpop.f32.mrb[81].mxu1 }
 0x2b6   :  { %v3133_v32 = vpop.f32.mrb[81].mxu0  ;;  %v2556_v34 = vpop.f32.mrb[82].mxu1 }
 0x2b7   :  { %v4225_v35 = vpack.c.bf16 %v3329_v28, %v3328_v27  ;;  %v4399_v36 = vadd.f32 %v4398_v29, %v3131_v30  ;;  %v4400_v37 = vadd.f32 %v5784_v33, %v2556_v34  ;;  %v3134_v38 = vpop.f32.mrb[82].mxu0  ;;  %v2558_v39 = vpop.f32.mrb[83].mxu1 }
 0x2b8   :  { %v3136_v40 = vpop.f32.mrb[83].mxu0 }
 0x2b9   :  { %4305 = vst [vmem:[%s6002_s3 + $0x98] sm:$0xff] %v4225_v35   ;;  %v3266_v41 = vmul.f32 0.2, %v4399_v36  ;;  %v4401_v42 = vadd.f32 %v4400_v37, %v3134_v38 }
 0x2bb   :  { %v3267_v43 = vmul.f32 0.2, %v4401_v42  ;;  %v3330_v45 = vmax.f32 %v4399_v36, %v3266_v41 }
 0x2bc   :  { %v2561_v44 = vpop.f32.mrb[84].mxu1 }
 0x2bd   :  { %v3331_v46 = vmax.f32 %v4401_v42, %v3267_v43  ;;  %v4402_v47 = vadd.f32 %v5784_v33, %v2561_v44  ;;  %v3139_v48 = vpop.f32.mrb[84].mxu0  ;;  %v2563_v49 = vpop.f32.mrb[85].mxu1 }
 0x2be   :  { %v3141_v50 = vpop.f32.mrb[85].mxu0  ;;  %v2564_v51 = vpop.f32.mrb[86].mxu1 }
 0x2bf   :  { %v4230_v52 = vpack.c.bf16 %v3331_v46, %v3330_v45  ;;  %v4403_v53 = vadd.f32 %v4402_v47, %v3139_v48  ;;  %v4404_v54 = vadd.f32 %v5784_v33, %v2564_v51  ;;  %v3142_v55 = vpop.f32.mrb[86].mxu0  ;;  %v2566_v56 = vpop.f32.mrb[87].mxu1 }
 0x2c0   :  { %v3144_v57 = vpop.f32.mrb[87].mxu0 }
 0x2c1   :  { %4306 = vst [vmem:[%s6002_s3 + $0xa0] sm:$0xff] %v4230_v52   ;;  %v3268_v0 = vmul.f32 0.2, %v4403_v53  ;;  %v4405_v58 = vadd.f32 %v4404_v54, %v3142_v55 }
 0x2c3   :  { %v3269_v59 = vmul.f32 0.2, %v4405_v58  ;;  %v3332_v61 = vmax.f32 %v4403_v53, %v3268_v0 }
 0x2c4   :  { %v2569_v60 = vpop.f32.mrb[88].mxu1 }
 0x2c5   :  { %v3333_v62 = vmax.f32 %v4405_v58, %v3269_v59  ;;  %v4406_v63 = vadd.f32 %v5784_v33, %v2569_v60  ;;  %v3147_v1 = vpop.f32.mrb[88].mxu0  ;;  %v2571_v2 = vpop.f32.mrb[89].mxu1  ;;  %v5960_v58 = vld [vmem:[%s6001_s2] ss:$0 sm:$0xff] }
 0x2c6   :  { %v3149_v3 = vpop.f32.mrb[89].mxu0  ;;  %v2572_v4 = vpop.f32.mrb[90].mxu1 }
 0x2c7   :  { %v4235_v5 = vpack.c.bf16 %v3333_v62, %v3332_v61  ;;  %v4407_v6 = vadd.f32 %v4406_v63, %v3147_v1  ;;  %v4408_v7 = vadd.f32 %v5784_v33, %v2572_v4  ;;  %v3150_v8 = vpop.f32.mrb[90].mxu0  ;;  %v2574_v9 = vpop.f32.mrb[91].mxu1 }
 0x2c8   :  { %v3152_v10 = vpop.f32.mrb[91].mxu0 }
 0x2c9   :  { %4307 = vst [vmem:[%s6002_s3 + $0xa8] sm:$0xff] %v4235_v5   ;;  %v3270_v11 = vmul.f32 0.2, %v4407_v6  ;;  %v4409_v12 = vadd.f32 %v4408_v7, %v3150_v8 }
 0x2cb   :  { %v3271_v13 = vmul.f32 0.2, %v4409_v12  ;;  %v3334_v15 = vmax.f32 %v4407_v6, %v3270_v11 }
 0x2cc   :  { %v2577_v14 = vpop.f32.mrb[92].mxu1 }
 0x2cd   :  { %v3335_v16 = vmax.f32 %v4409_v12, %v3271_v13  ;;  %v4410_v17 = vadd.f32 %v5784_v33, %v2577_v14  ;;  %v3155_v18 = vpop.f32.mrb[92].mxu0  ;;  %v2579_v19 = vpop.f32.mrb[93].mxu1 }
 0x2ce   :  { %v3157_v20 = vpop.f32.mrb[93].mxu0  ;;  %v2580_v21 = vpop.f32.mrb[94].mxu1 }
 0x2cf   :  { %v4240_v22 = vpack.c.bf16 %v3335_v16, %v3334_v15  ;;  %v4411_v23 = vadd.f32 %v4410_v17, %v3155_v18  ;;  %v4412_v24 = vadd.f32 %v5784_v33, %v2580_v21  ;;  %v3158_v25 = vpop.f32.mrb[94].mxu0  ;;  %v2582_v26 = vpop.f32.mrb[95].mxu1 }
 0x2d0   :  { %v3160_v27 = vpop.f32.mrb[95].mxu0 }
 0x2d1   :  { %4308 = vst [vmem:[%s6002_s3 + $0xb0] sm:$0xff] %v4240_v22   ;;  %v3272_v28 = vmul.f32 0.2, %v4411_v23  ;;  %v4413_v29 = vadd.f32 %v4412_v24, %v3158_v25 }
 0x2d3   :  { %v3273_v30 = vmul.f32 0.2, %v4413_v29  ;;  %v3336_v32 = vmax.f32 %v4411_v23, %v3272_v28 }
 0x2d4   :  { %v2585_v31 = vpop.f32.mrb[96].mxu1 }
 0x2d5   :  { %v3337_v34 = vmax.f32 %v4413_v29, %v3273_v30  ;;  %v4414_v35 = vadd.f32 %v5784_v33, %v2585_v31  ;;  %v3163_v36 = vpop.f32.mrb[96].mxu0  ;;  %v2587_v37 = vpop.f32.mrb[97].mxu1 }
 0x2d6   :  { %v3165_v38 = vpop.f32.mrb[97].mxu0  ;;  %v2588_v39 = vpop.f32.mrb[98].mxu1 }
 0x2d7   :  { %v4245_v40 = vpack.c.bf16 %v3337_v34, %v3336_v32  ;;  %v4415_v41 = vadd.f32 %v4414_v35, %v3163_v36  ;;  %v4416_v42 = vadd.f32 %v5784_v33, %v2588_v39  ;;  %v3166_v43 = vpop.f32.mrb[98].mxu0  ;;  %v2590_v44 = vpop.f32.mrb[99].mxu1 }
 0x2d8   :  { %v3168_v45 = vpop.f32.mrb[99].mxu0 }
 0x2d9   :  { %4309 = vst [vmem:[%s6002_s3 + $0xb8] sm:$0xff] %v4245_v40   ;;  %v3274_v46 = vmul.f32 0.2, %v4415_v41  ;;  %v4417_v47 = vadd.f32 %v4416_v42, %v3166_v43 }
 0x2db   :  { %v3275_v48 = vmul.f32 0.2, %v4417_v47  ;;  %v3338_v50 = vmax.f32 %v4415_v41, %v3274_v46 }
 0x2dc   :  { %v2593_v49 = vpop.f32.mrb[100].mxu1 }
 0x2dd   :  { %v3339_v51 = vmax.f32 %v4417_v47, %v3275_v48  ;;  %v4418_v52 = vadd.f32 %v5784_v33, %v2593_v49  ;;  %v3171_v53 = vpop.f32.mrb[100].mxu0  ;;  %v2595_v54 = vpop.f32.mrb[101].mxu1 }
 0x2de   :  { %v3173_v55 = vpop.f32.mrb[101].mxu0  ;;  %v2596_v56 = vpop.f32.mrb[102].mxu1 }
 0x2df   :  { %v4250_v57 = vpack.c.bf16 %v3339_v51, %v3338_v50  ;;  %v4419_v0 = vadd.f32 %v4418_v52, %v3171_v53  ;;  %v4420_v59 = vadd.f32 %v5960_v58, %v2596_v56  ;;  %v3174_v60 = vpop.f32.mrb[102].mxu0  ;;  %v2598_v61 = vpop.f32.mrb[103].mxu1 }
 0x2e0   :  { %v3176_v62 = vpop.f32.mrb[103].mxu0 }
 0x2e1   :  { %4310 = vst [vmem:[%s6002_s3 + $0xc0] sm:$0xff] %v4250_v57   ;;  %v3276_v33 = vmul.f32 0.2, %v4419_v0  ;;  %v4421_v63 = vadd.f32 %v4420_v59, %v3174_v60 }
 0x2e3   :  { %v3277_v1 = vmul.f32 0.2, %v4421_v63  ;;  %v3340_v3 = vmax.f32 %v4419_v0, %v3276_v33 }
 0x2e4   :  { %v2601_v2 = vpop.f32.mrb[104].mxu1 }
 0x2e5   :  { %v3341_v4 = vmax.f32 %v4421_v63, %v3277_v1  ;;  %v4422_v5 = vadd.f32 %v5960_v58, %v2601_v2  ;;  %v3179_v6 = vpop.f32.mrb[104].mxu0  ;;  %v2603_v7 = vpop.f32.mrb[105].mxu1 }
 0x2e6   :  { %v3181_v8 = vpop.f32.mrb[105].mxu0  ;;  %v2604_v9 = vpop.f32.mrb[106].mxu1 }
 0x2e7   :  { %v4255_v10 = vpack.c.bf16 %v3341_v4, %v3340_v3  ;;  %v4423_v11 = vadd.f32 %v4422_v5, %v3179_v6  ;;  %v4424_v12 = vadd.f32 %v5960_v58, %v2604_v9  ;;  %v3182_v13 = vpop.f32.mrb[106].mxu0  ;;  %v2606_v14 = vpop.f32.mrb[107].mxu1 }
 0x2e8   :  { %v3184_v15 = vpop.f32.mrb[107].mxu0 }
 0x2e9   :  { %4311 = vst [vmem:[%s6002_s3 + $0xc8] sm:$0xff] %v4255_v10   ;;  %v3278_v16 = vmul.f32 0.2, %v4423_v11  ;;  %v4425_v17 = vadd.f32 %v4424_v12, %v3182_v13 }
 0x2eb   :  { %v3279_v18 = vmul.f32 0.2, %v4425_v17  ;;  %v3342_v20 = vmax.f32 %v4423_v11, %v3278_v16 }
 0x2ec   :  { %v2609_v19 = vpop.f32.mrb[108].mxu1 }
 0x2ed   :  { %v3343_v21 = vmax.f32 %v4425_v17, %v3279_v18  ;;  %v4426_v22 = vadd.f32 %v5960_v58, %v2609_v19  ;;  %v3187_v23 = vpop.f32.mrb[108].mxu0  ;;  %v2611_v24 = vpop.f32.mrb[109].mxu1 }
 0x2ee   :  { %v3189_v25 = vpop.f32.mrb[109].mxu0  ;;  %v2612_v26 = vpop.f32.mrb[110].mxu1 }
 0x2ef   :  { %v4260_v27 = vpack.c.bf16 %v3343_v21, %v3342_v20  ;;  %v4427_v28 = vadd.f32 %v4426_v22, %v3187_v23  ;;  %v4428_v29 = vadd.f32 %v5960_v58, %v2612_v26  ;;  %v3190_v30 = vpop.f32.mrb[110].mxu0  ;;  %v2614_v31 = vpop.f32.mrb[111].mxu1 }
 0x2f0   :  { %v3192_v32 = vpop.f32.mrb[111].mxu0 }
 0x2f1   :  { %4312 = vst [vmem:[%s6002_s3 + $0xd0] sm:$0xff] %v4260_v27   ;;  %v3280_v34 = vmul.f32 0.2, %v4427_v28  ;;  %v4429_v35 = vadd.f32 %v4428_v29, %v3190_v30 }
 0x2f3   :  { %v3281_v36 = vmul.f32 0.2, %v4429_v35  ;;  %v3344_v38 = vmax.f32 %v4427_v28, %v3280_v34 }
 0x2f4   :  { %v2617_v37 = vpop.f32.mrb[112].mxu1 }
 0x2f5   :  { %v3345_v39 = vmax.f32 %v4429_v35, %v3281_v36  ;;  %v4430_v40 = vadd.f32 %v5960_v58, %v2617_v37  ;;  %v3195_v41 = vpop.f32.mrb[112].mxu0  ;;  %v2619_v42 = vpop.f32.mrb[113].mxu1 }
 0x2f6   :  { %v3197_v43 = vpop.f32.mrb[113].mxu0  ;;  %v2620_v44 = vpop.f32.mrb[114].mxu1 }
 0x2f7   :  { %v4265_v45 = vpack.c.bf16 %v3345_v39, %v3344_v38  ;;  %v4431_v46 = vadd.f32 %v4430_v40, %v3195_v41  ;;  %v4432_v47 = vadd.f32 %v5960_v58, %v2620_v44  ;;  %v3198_v48 = vpop.f32.mrb[114].mxu0  ;;  %v2622_v49 = vpop.f32.mrb[115].mxu1 }
 0x2f8   :  { %v3200_v50 = vpop.f32.mrb[115].mxu0 }
 0x2f9   :  { %4313 = vst [vmem:[%s6002_s3 + $0xd8] sm:$0xff] %v4265_v45   ;;  %v3282_v51 = vmul.f32 0.2, %v4431_v46  ;;  %v4433_v52 = vadd.f32 %v4432_v47, %v3198_v48 }
 0x2fb   :  { %v3283_v53 = vmul.f32 0.2, %v4433_v52  ;;  %v3346_v55 = vmax.f32 %v4431_v46, %v3282_v51 }
 0x2fc   :  { %v2625_v54 = vpop.f32.mrb[116].mxu1 }
 0x2fd   :  { %v3347_v56 = vmax.f32 %v4433_v52, %v3283_v53  ;;  %v4434_v57 = vadd.f32 %v5960_v58, %v2625_v54  ;;  %v3203_v0 = vpop.f32.mrb[116].mxu0  ;;  %v2627_v59 = vpop.f32.mrb[117].mxu1 }
 0x2fe   :  { %v3205_v60 = vpop.f32.mrb[117].mxu0  ;;  %v2628_v61 = vpop.f32.mrb[118].mxu1 }
 0x2ff   :  { %v4270_v62 = vpack.c.bf16 %v3347_v56, %v3346_v55  ;;  %v4435_v33 = vadd.f32 %v4434_v57, %v3203_v0  ;;  %v4436_v63 = vadd.f32 %v5960_v58, %v2628_v61  ;;  %v3206_v1 = vpop.f32.mrb[118].mxu0  ;;  %v2630_v2 = vpop.f32.mrb[119].mxu1 }
 0x300   :  { %v3208_v3 = vpop.f32.mrb[119].mxu0 }
 0x301   :  { %4314 = vst [vmem:[%s6002_s3 + $0xe0] sm:$0xff] %v4270_v62   ;;  %v3284_v4 = vmul.f32 0.2, %v4435_v33  ;;  %v4437_v5 = vadd.f32 %v4436_v63, %v3206_v1 }
 0x303   :  { %v3285_v6 = vmul.f32 0.2, %v4437_v5  ;;  %v3348_v8 = vmax.f32 %v4435_v33, %v3284_v4 }
 0x304   :  { %v2633_v7 = vpop.f32.mrb[120].mxu1 }
 0x305   :  { %v3349_v9 = vmax.f32 %v4437_v5, %v3285_v6  ;;  %v4438_v10 = vadd.f32 %v5960_v58, %v2633_v7  ;;  %v3211_v11 = vpop.f32.mrb[120].mxu0  ;;  %v2635_v12 = vpop.f32.mrb[121].mxu1 }
 0x306   :  { %v3213_v13 = vpop.f32.mrb[121].mxu0  ;;  %v2636_v14 = vpop.f32.mrb[122].mxu1 }
 0x307   :  { %v4275_v15 = vpack.c.bf16 %v3349_v9, %v3348_v8  ;;  %v4439_v16 = vadd.f32 %v4438_v10, %v3211_v11  ;;  %v4440_v17 = vadd.f32 %v5960_v58, %v2636_v14  ;;  %v3214_v18 = vpop.f32.mrb[122].mxu0  ;;  %v2638_v19 = vpop.f32.mrb[123].mxu1 }
 0x308   :  { %v3216_v20 = vpop.f32.mrb[123].mxu0 }
 0x309   :  { %4315 = vst [vmem:[%s6002_s3 + $0xe8] sm:$0xff] %v4275_v15   ;;  %v3286_v21 = vmul.f32 0.2, %v4439_v16  ;;  %v4441_v22 = vadd.f32 %v4440_v17, %v3214_v18 }
 0x30b   :  { %v3287_v23 = vmul.f32 0.2, %v4441_v22  ;;  %v3350_v25 = vmax.f32 %v4439_v16, %v3286_v21 }
 0x30c   :  { %v2641_v24 = vpop.f32.mrb[124].mxu1 }
 0x30d   :  { %v3351_v26 = vmax.f32 %v4441_v22, %v3287_v23  ;;  %v4442_v27 = vadd.f32 %v5960_v58, %v2641_v24  ;;  %v3219_v28 = vpop.f32.mrb[124].mxu0  ;;  %v2643_v29 = vpop.f32.mrb[125].mxu1 }
 0x30e   :  { %v3221_v30 = vpop.f32.mrb[125].mxu0  ;;  %v2644_v31 = vpop.f32.mrb[126].mxu1 }
 0x30f   :  { %v4280_v32 = vpack.c.bf16 %v3351_v26, %v3350_v25  ;;  %v4443_v34 = vadd.f32 %v4442_v27, %v3219_v28  ;;  %v4444_v35 = vadd.f32 %v5960_v58, %v2644_v31  ;;  %v3222_v36 = vpop.f32.mrb[126].mxu0  ;;  %v2646_v37 = vpop.f32.mrb[127].mxu1 }
 0x310   :  { %v3224_v38 = vpop.f32.mrb[127].mxu0 }
 0x311   :  { %4316 = vst [vmem:[%s6002_s3 + $0xf0] sm:$0xff] %v4280_v32   ;;  %v3288_v39 = vmul.f32 0.2, %v4443_v34  ;;  %v4445_v40 = vadd.f32 %v4444_v35, %v3222_v36 }
 0x313   :  { %v3289_v41 = vmul.f32 0.2, %v4445_v40  ;;  %v3352_v42 = vmax.f32 %v4443_v34, %v3288_v39 }
 0x315   :  { %v3353_v43 = vmax.f32 %v4445_v40, %v3289_v41 }
 0x317   :  { %v4285_v44 = vpack.c.bf16 %v3353_v43, %v3352_v42 }
 0x319   :  { %4317 = vst [vmem:[%s6002_s3 + $0xf8] sm:$0xff] %v4285_v44  }

// kernel: _lambda_.9
= control target key start
LH: loop header
LB: loop body
LE: loop exit
PB: predicated region body
PF: predicated region fallthrough
CT: control target
= control target key end

     0   :  { %s4659_s1 = inlined_call_operand.vmem [shape: bf16[2048,128], index: 1, kind: input, shape index: {}]   ;;  %s4660_s0 = inlined_call_operand.vmem [shape: bf16[128,2048], index: 0, kind: input, shape index: {}]   ;;  %s4661_s2 = inlined_call_operand.vmem [shape: f32[1,128], index: 2, kind: input, shape index: {}]   ;;  %s4662_s3 = inlined_call_operand.vmem [shape: bf16[128,128], index: 3, kind: output, shape index: {}]  }
   0x1   :  { %v3554_v0 = vld [vmem:[%s4659_s1 + $0x40] sm:$0xff]   ;;  %v3558_v4 = vld [vmem:[%s4659_s1 + $0x48] sm:$0xff]   ;;  %v3562_v8 = vld [vmem:[%s4659_s1 + $0x50] sm:$0xff]  }
   0x2   :  { %v3555_v1 = vld [vmem:[%s4659_s1 + $0xc0] sm:$0xff]   ;;  %3042 = vmatprep.subr.bf16.mxu0 %v3554_v0  ;;  %v3559_v5 = vld [vmem:[%s4659_s1 + $0xc8] sm:$0xff]   ;;  %v3563_v9 = vld [vmem:[%s4659_s1 + $0xd0] sm:$0xff]  }
   0x3   :  { %v3556_v2 = vld [vmem:[%s4659_s1] sm:$0xff]   ;;  %3106 = vmatprep.subr.bf16.mxu1 %v3555_v1  ;;  %v3560_v6 = vld [vmem:[%s4659_s1 + $0x8] sm:$0xff]   ;;  %v3564_v10 = vld [vmem:[%s4659_s1 + $0x10] sm:$0xff]  }
   0x4   :  { %v3557_v3 = vld [vmem:[%s4659_s1 + $0x80] sm:$0xff]   ;;  %3043 = vmatpush3.bf16.msra.mxu0 %v3556_v2  ;;  %v3561_v7 = vld [vmem:[%s4659_s1 + $0x88] sm:$0xff]   ;;  %v3565_v11 = vld [vmem:[%s4659_s1 + $0x90] sm:$0xff]  }
   0x5   :  { %3107 = vmatpush3.bf16.msra.mxu1 %v3557_v3  ;;  %3044 = vmatprep.subr.bf16.mxu0 %v3558_v4  ;;  %v3566_v12 = vld [vmem:[%s4659_s1 + $0x58] sm:$0xff]   ;;  %v3570_v16 = vld [vmem:[%s4659_s1 + $0x60] sm:$0xff]   ;;  %v3574_v20 = vld [vmem:[%s4659_s1 + $0x68] sm:$0xff]  }
   0x6   :  { %3108 = vmatprep.subr.bf16.mxu1 %v3559_v5  ;;  %v3567_v13 = vld [vmem:[%s4659_s1 + $0xd8] sm:$0xff]   ;;  %v3571_v17 = vld [vmem:[%s4659_s1 + $0xe0] sm:$0xff]   ;;  %v3575_v21 = vld [vmem:[%s4659_s1 + $0xe8] sm:$0xff]  }
   0x7   :  { %v3568_v14 = vld [vmem:[%s4659_s1 + $0x18] sm:$0xff]   ;;  %v3572_v18 = vld [vmem:[%s4659_s1 + $0x20] sm:$0xff]   ;;  %v3576_v22 = vld [vmem:[%s4659_s1 + $0x28] sm:$0xff]  }
   0x8   :  { %3045 = vmatpush3.bf16.msra.mxu0 %v3560_v6  ;;  %v3569_v15 = vld [vmem:[%s4659_s1 + $0x98] sm:$0xff]   ;;  %v3573_v19 = vld [vmem:[%s4659_s1 + $0xa0] sm:$0xff]   ;;  %v3577_v23 = vld [vmem:[%s4659_s1 + $0xa8] sm:$0xff]  }
   0x9   :  { %3109 = vmatpush3.bf16.msra.mxu1 %v3561_v7  ;;  %3046 = vmatprep.subr.bf16.mxu0 %v3562_v8  ;;  %v3578_v24 = vld [vmem:[%s4659_s1 + $0x70] sm:$0xff]   ;;  %v3582_v28 = vld [vmem:[%s4659_s1 + $0x78] sm:$0xff]   ;;  %v15_v32 = vld [vmem:[%s4660_s0] sm:$0xff] }
   0xa   :  { %3110 = vmatprep.subr.bf16.mxu1 %v3563_v9  ;;  %v3579_v25 = vld [vmem:[%s4659_s1 + $0xf0] sm:$0xff]   ;;  %v3583_v29 = vld [vmem:[%s4659_s1 + $0xf8] sm:$0xff]   ;;  %v23_v33 = vld [vmem:[%s4660_s0 + $0x40] sm:$0xff] }
   0xb   :  { %v3580_v26 = vld [vmem:[%s4659_s1 + $0x30] sm:$0xff]   ;;  %v3584_v30 = vld [vmem:[%s4659_s1 + $0x38] sm:$0xff]   ;;  %v16_v34 = vld [vmem:[%s4660_s0 + $0x8] sm:$0xff]  ;;  %v2707_v35 = vcombine.low %v15_v32, %v23_v33  ;;  %v2708_v36 = vcombine.high %v15_v32, %v23_v33 }
   0xc   :  { %3047 = vmatpush3.bf16.msra.mxu0 %v3564_v10  ;;  %v3581_v27 = vld [vmem:[%s4659_s1 + $0xb0] sm:$0xff]   ;;  %v3585_v31 = vld [vmem:[%s4659_s1 + $0xb8] sm:$0xff]   ;;  %v24_v37 = vld [vmem:[%s4660_s0 + $0x48] sm:$0xff] }
   0xd   :  { %3111 = vmatpush3.bf16.msra.mxu1 %v3565_v11  ;;  %3048 = vmatprep.subr.bf16.mxu0 %v3566_v12  ;;  %v2709_v38 = vcombine.low %v16_v34, %v24_v37  ;;  %v2710_v39 = vcombine.high %v16_v34, %v24_v37  ;;  %v3586_v40 = vld [vmem:[%s4659_s1 + $0x140] sm:$0xff]   ;;  %v32_v47 = vld [vmem:[%s4660_s0 + $0x88] sm:$0xff]  ;;  %v3594_v62 = vld [vmem:[%s4659_s1 + $0x150] sm:$0xff]  }
   0xe   :  { %3112 = vmatprep.subr.bf16.mxu1 %v3567_v13  ;;  %1846 = vmatprep.mubr.bf16.mxu0 %v2708_v36  ;;  %v3587_v41 = vld [vmem:[%s4659_s1 + $0x100] sm:$0xff]   ;;  %v40_v48 = vld [vmem:[%s4660_s0 + $0xc8] sm:$0xff]  ;;  %v3595_v63 = vld [vmem:[%s4659_s1 + $0x110] sm:$0xff]  }
   0xf   :  { %1943 = vmatprep.mubr.bf16.mxu1 %v2710_v39  ;;  %v3588_v42 = vld [vmem:[%s4659_s1 + $0x1c0] sm:$0xff]   ;;  %v2726_v49 = vcombine.high %v32_v47, %v40_v48  ;;  %v3590_v50 = vld [vmem:[%s4659_s1 + $0x148] sm:$0xff]   ;;  %v2725_v53 = vcombine.low %v32_v47, %v40_v48  ;;  %v3596_v0 = vld [vmem:[%s4659_s1 + $0x1d0] sm:$0xff]  }
  0x10   :  { %3049 = vmatpush3.bf16.msra.mxu0 %v3568_v14  ;;  %v3589_v43 = vld [vmem:[%s4659_s1 + $0x180] sm:$0xff]   ;;  %v3591_v52 = vld [vmem:[%s4659_s1 + $0x108] sm:$0xff]   ;;  %v3597_v1 = vld [vmem:[%s4659_s1 + $0x190] sm:$0xff]  }
  0x11   :  { %3113 = vmatpush3.bf16.msra.mxu1 %v3569_v15  ;;  %3050 = vmatprep.subr.bf16.mxu0 %v3570_v16  ;;  %v31_v44 = vld [vmem:[%s4660_s0 + $0x80] sm:$0xff]  ;;  %v3592_v54 = vld [vmem:[%s4659_s1 + $0x1c8] sm:$0xff]   ;;  %v3598_v10 = vld [vmem:[%s4659_s1 + $0x158] sm:$0xff]  }
  0x12   :  { %3114 = vmatprep.subr.bf16.mxu1 %v3571_v17  ;;  %v39_v45 = vld [vmem:[%s4660_s0 + $0xc0] sm:$0xff]  ;;  %v3593_v55 = vld [vmem:[%s4659_s1 + $0x188] sm:$0xff]   ;;  %v3599_v11 = vld [vmem:[%s4659_s1 + $0x118] sm:$0xff]  }
  0x13   :  { %v2724_v46 = vcombine.high %v31_v44, %v39_v45  ;;  %v2723_v51 = vcombine.low %v31_v44, %v39_v45  ;;  %v47_v56 = vld [vmem:[%s4660_s0 + $0x100] sm:$0xff]  ;;  %v48_v58 = vld [vmem:[%s4660_s0 + $0x108] sm:$0xff]  ;;  %v3600_v12 = vld [vmem:[%s4659_s1 + $0x1d8] sm:$0xff]  }
  0x14   :  { %3051 = vmatpush3.bf16.msra.mxu0 %v3572_v18  ;;  %v55_v57 = vld [vmem:[%s4660_s0 + $0x140] sm:$0xff]  ;;  %v56_v59 = vld [vmem:[%s4660_s0 + $0x148] sm:$0xff]  ;;  %v3601_v13 = vld [vmem:[%s4659_s1 + $0x198] sm:$0xff]  }
  0x15   :  { %3115 = vmatpush3.bf16.msra.mxu1 %v3573_v19  ;;  %3052 = vmatprep.subr.bf16.mxu0 %v3574_v20  ;;  %v2740_v60 = vcombine.high %v47_v56, %v55_v57  ;;  %v2742_v61 = vcombine.high %v48_v58, %v56_v59  ;;  %v2739_v2 = vcombine.low %v47_v56, %v55_v57  ;;  %v63_v3 = vld [vmem:[%s4660_s0 + $0x180] sm:$0xff]  ;;  %v64_v5 = vld [vmem:[%s4660_s0 + $0x188] sm:$0xff]  ;;  %v3611_v39 = vld [vmem:[%s4659_s1 + $0x130] sm:$0xff]  }
  0x16   :  { %3116 = vmatprep.subr.bf16.mxu1 %v3575_v21  ;;  %v71_v4 = vld [vmem:[%s4660_s0 + $0x1c0] sm:$0xff]  ;;  %v2741_v6 = vcombine.low %v48_v58, %v56_v59  ;;  %v72_v8 = vld [vmem:[%s4660_s0 + $0x1c8] sm:$0xff]  ;;  %v3615_v48 = vld [vmem:[%s4659_s1 + $0x138] sm:$0xff]  }
  0x17   :  { %v2756_v7 = vcombine.high %v63_v3, %v71_v4  ;;  %v2758_v9 = vcombine.high %v64_v5, %v72_v8  ;;  %v79_v14 = vld [vmem:[%s4660_s0 + $0x200] sm:$0xff]  ;;  %v80_v16 = vld [vmem:[%s4660_s0 + $0x208] sm:$0xff]  ;;  %v2755_v19 = vcombine.low %v63_v3, %v71_v4  ;;  %v2757_v21 = vcombine.low %v64_v5, %v72_v8  ;;  %v26_v3 = vld [vmem:[%s4660_s0 + $0x58] sm:$0xff] }
  0x18   :  { %3053 = vmatpush3.bf16.msra.mxu0 %v3576_v22  ;;  %v87_v15 = vld [vmem:[%s4660_s0 + $0x240] sm:$0xff]  ;;  %v88_v17 = vld [vmem:[%s4660_s0 + $0x248] sm:$0xff]  ;;  %v33_v8 = vld [vmem:[%s4660_s0 + $0x90] sm:$0xff] }
  0x19   :  { %3117 = vmatpush3.bf16.msra.mxu1 %v3577_v23  ;;  %3054 = vmatprep.subr.bf16.mxu0 %v3578_v24  ;;  %v3602_v18 = vld [vmem:[%s4659_s1 + $0x160] sm:$0xff]   ;;  %v2772_v22 = vcombine.high %v79_v14, %v87_v15  ;;  %v2774_v24 = vcombine.high %v80_v16, %v88_v17  ;;  %v3608_v32 = vld [vmem:[%s4659_s1 + $0x1e8] sm:$0xff]   ;;  %v2771_v34 = vcombine.low %v79_v14, %v87_v15 }
  0x1a   :  { %3118 = vmatprep.subr.bf16.mxu1 %v3579_v25  ;;  %v3603_v20 = vld [vmem:[%s4659_s1 + $0x120] sm:$0xff]   ;;  %v3609_v33 = vld [vmem:[%s4659_s1 + $0x1a8] sm:$0xff]  }
  0x1b   :  { %v3604_v23 = vld [vmem:[%s4659_s1 + $0x1e0] sm:$0xff]   ;;  %v112_v44 = vld [vmem:[%s4660_s0 + $0x308] sm:$0xff] }
  0x1c   :  { %3055 = vmatpush3.bf16.msra.mxu0 %v3580_v26  ;;  %v3605_v25 = vld [vmem:[%s4659_s1 + $0x1a0] sm:$0xff]   ;;  %v120_v45 = vld [vmem:[%s4660_s0 + $0x348] sm:$0xff] }
  0x1d   :  { %3119 = vmatpush3.bf16.msra.mxu1 %v3581_v27  ;;  %3056 = vmatprep.subr.bf16.mxu0 %v3582_v28  ;;  %v95_v26 = vld [vmem:[%s4660_s0 + $0x280] sm:$0xff]  ;;  %v3606_v28 = vld [vmem:[%s4659_s1 + $0x168] sm:$0xff]  }
  0x1e   :  { %3120 = vmatprep.subr.bf16.mxu1 %v3583_v29  ;;  %v103_v27 = vld [vmem:[%s4660_s0 + $0x2c0] sm:$0xff]  ;;  %v96_v29 = vld [vmem:[%s4660_s0 + $0x288] sm:$0xff] }
  0x1f   :  { %v2788_v36 = vcombine.high %v95_v26, %v103_v27  ;;  %v2787_v47 = vcombine.low %v95_v26, %v103_v27  ;;  %v3618_v56 = vld [vmem:[%s4659_s1 + $0x240] sm:$0xff]   ;;  %v128_v57 = vld [vmem:[%s4660_s0 + $0x388] sm:$0xff]  ;;  %v3626_v26 = vld [vmem:[%s4659_s1 + $0x250] sm:$0xff]  }
  0x20   :  { %3057 = vmatpush3.bf16.msra.mxu0 %v3584_v30  ;;  %v104_v30 = vld [vmem:[%s4660_s0 + $0x2c8] sm:$0xff]  ;;  %v3620_v58 = vld [vmem:[%s4659_s1 + $0x2c0] sm:$0xff]   ;;  %v3628_v27 = vld [vmem:[%s4659_s1 + $0x2d0] sm:$0xff]  }
  0x21   :  { %3121 = vmatpush3.bf16.msra.mxu1 %v3585_v31  ;;  %3170 = vmatprep.subr.bf16.mxu0 %v3586_v40  ;;  %v3607_v31 = vld [vmem:[%s4659_s1 + $0x128] sm:$0xff]   ;;  %v2790_v37 = vcombine.high %v96_v29, %v104_v30  ;;  %v3612_v40 = vld [vmem:[%s4659_s1 + $0x1f0] sm:$0xff]   ;;  %v3621_v15 = vld [vmem:[%s4659_s1 + $0x280] sm:$0xff]  }
  0x22   :  { %3234 = vmatprep.subr.bf16.mxu1 %v3588_v42  ;;  %v119_v42 = vld [vmem:[%s4660_s0 + $0x340] sm:$0xff]  ;;  %v136_v59 = vld [vmem:[%s4660_s0 + $0x3c8] sm:$0xff] }
  0x23   :  { %1847 = vmatmul.mubr.bf16.vlgmr.msra.gmra.mrb[0].mxu0 %v2707_v35  ;;  %v2773_v35 = vcombine.low %v80_v16, %v88_v17  ;;  %v2821_v5 = vcombine.low %v128_v57, %v136_v59  ;;  %v3622_v17 = vld [vmem:[%s4659_s1 + $0x248] sm:$0xff]  }
  0x24   :  { %1944 = vmatmul.mubr.bf16.vlgmr.msra.gmra.mrb[0].mxu1 %v2709_v38  ;;  %3171 = vmatpush3.bf16.msra.mxu0 %v3587_v41  ;;  %v3610_v38 = vld [vmem:[%s4659_s1 + $0x170] sm:$0xff]   ;;  %v111_v41 = vld [vmem:[%s4660_s0 + $0x300] sm:$0xff] }
  0x25   :  { %3235 = vmatpush3.bf16.msra.mxu1 %v3589_v43  ;;  %1854 = vmatprep.mubr.bf16.mxu0 %v2724_v46  ;;  %v3613_v43 = vld [vmem:[%s4659_s1 + $0x1b0] sm:$0xff]   ;;  %v3614_v46 = vld [vmem:[%s4659_s1 + $0x178] sm:$0xff]  }
  0x26   :  { %1951 = vmatprep.mubr.bf16.mxu1 %v2726_v49  ;;  %3172 = vmatprep.subr.bf16.mxu0 %v3590_v50  ;;  %v2789_v49 = vcombine.low %v96_v29, %v104_v30  ;;  %v2804_v50 = vcombine.high %v111_v41, %v119_v42 }
  0x27   :  { %3236 = vmatprep.subr.bf16.mxu1 %v3592_v54  ;;  %v127_v54 = vld [vmem:[%s4660_s0 + $0x380] sm:$0xff] }
  0x28   :  { %3173 = vmatpush3.bf16.msra.mxu0 %v3591_v52  ;;  %v2806_v52 = vcombine.high %v112_v44, %v120_v45 }
  0x29   :  { %3237 = vmatpush3.bf16.msra.mxu1 %v3593_v55  ;;  %3174 = vmatprep.subr.bf16.mxu0 %v3594_v62  ;;  %v135_v55 = vld [vmem:[%s4660_s0 + $0x3c0] sm:$0xff] }
  0x2a   :  { %3238 = vmatprep.subr.bf16.mxu1 %v3596_v0  ;;  %v2820_v62 = vcombine.high %v127_v54, %v135_v55  ;;  %v17_v0 = vld [vmem:[%s4660_s0 + $0x10] sm:$0xff]  ;;  %v2819_v4 = vcombine.low %v127_v54, %v135_v55  ;;  %v82_v54 = vld [vmem:[%s4660_s0 + $0x218] sm:$0xff] }
  0x2b   :  { %1855 = vmatmul.mubr.bf16.gmra.mrb[4].mxu0 %v2723_v51  ;;  %v3616_v51 = vld [vmem:[%s4659_s1 + $0x1f8] sm:$0xff]  }
  0x2c   :  { %1952 = vmatmul.mubr.bf16.gmra.mrb[4].mxu1 %v2725_v53  ;;  %1862 = vmatprep.mubr.bf16.mxu0 %v2740_v60  ;;  %v3617_v53 = vld [vmem:[%s4659_s1 + $0x1b8] sm:$0xff]   ;;  %v2803_v60 = vcombine.low %v111_v41, %v119_v42  ;;  %v3634_v42 = vld [vmem:[%s4659_s1 + $0x260] sm:$0xff]  }
  0x2d   :  { %1959 = vmatprep.mubr.bf16.mxu1 %v2742_v61  ;;  %3175 = vmatpush3.bf16.msra.mxu0 %v3595_v63  ;;  %v2805_v61 = vcombine.low %v112_v44, %v120_v45  ;;  %v2822_v63 = vcombine.high %v128_v57, %v136_v59  ;;  %v3633_v41 = vld [vmem:[%s4659_s1 + $0x298] sm:$0xff]   ;;  %v3636_v44 = vld [vmem:[%s4659_s1 + $0x2e0] sm:$0xff]   ;;  %v3641_v57 = vld [vmem:[%s4659_s1 + $0x2a8] sm:$0xff]  }
  0x2e   :  { %3239 = vmatpush3.bf16.msra.mxu1 %v3597_v1  ;;  %3176 = vmatprep.subr.bf16.mxu0 %v3598_v10  ;;  %v25_v1 = vld [vmem:[%s4660_s0 + $0x50] sm:$0xff]  ;;  %v90_v55 = vld [vmem:[%s4660_s0 + $0x258] sm:$0xff] }
  0x2f   :  { %3240 = vmatprep.subr.bf16.mxu1 %v3600_v12  ;;  %v2711_v10 = vcombine.low %v17_v0, %v25_v1  ;;  %v34_v12 = vld [vmem:[%s4660_s0 + $0x98] sm:$0xff] }
  0x31   :  { %3177 = vmatpush3.bf16.msra.mxu0 %v3599_v11  ;;  %v3619_v11 = vld [vmem:[%s4659_s1 + $0x200] sm:$0xff]  }
  0x32   :  { %3241 = vmatpush3.bf16.msra.mxu1 %v3601_v13  ;;  %3178 = vmatprep.subr.bf16.mxu0 %v3602_v18  ;;  %v42_v13 = vld [vmem:[%s4660_s0 + $0xd8] sm:$0xff] }
  0x33   :  { %1863 = vmatmul.mubr.bf16.gmra.mrb[8].mxu0 %v2739_v2  ;;  %3242 = vmatprep.subr.bf16.mxu1 %v3604_v23  ;;  %v18_v2 = vld [vmem:[%s4660_s0 + $0x18] sm:$0xff]  ;;  %v2730_v18 = vcombine.high %v34_v12, %v42_v13  ;;  %v57_v23 = vld [vmem:[%s4660_s0 + $0x150] sm:$0xff]  ;;  %v2729_v29 = vcombine.low %v34_v12, %v42_v13  ;;  %v3652_v12 = vld [vmem:[%s4659_s1 + $0x3c0] sm:$0xff]   ;;  %v2777_v13 = vcombine.low %v82_v54, %v90_v55 }
  0x34   :  { %1960 = vmatmul.mubr.bf16.gmra.mrb[8].mxu1 %v2741_v6  ;;  %1870 = vmatprep.mubr.bf16.mxu0 %v2756_v7  ;;  %v2712_v6 = vcombine.high %v17_v0, %v25_v1  ;;  %v2714_v7 = vcombine.high %v18_v2, %v26_v3  ;;  %v2713_v14 = vcombine.low %v18_v2, %v26_v3  ;;  %v3643_v0 = vld [vmem:[%s4659_s1 + $0x230] sm:$0xff]   ;;  %v3646_v2 = vld [vmem:[%s4659_s1 + $0x278] sm:$0xff]  }
  0x35   :  { %1967 = vmatprep.mubr.bf16.mxu1 %v2758_v9  ;;  %3179 = vmatpush3.bf16.msra.mxu0 %v3603_v20  ;;  %v41_v9 = vld [vmem:[%s4660_s0 + $0xd0] sm:$0xff]  ;;  %v3624_v20 = vld [vmem:[%s4659_s1 + $0x2c8] sm:$0xff]  }
  0x36   :  { %3243 = vmatpush3.bf16.msra.mxu1 %v3605_v25  ;;  %3180 = vmatprep.subr.bf16.mxu0 %v3606_v28  ;;  %v2728_v16 = vcombine.high %v33_v8, %v41_v9  ;;  %v58_v25 = vld [vmem:[%s4660_s0 + $0x158] sm:$0xff]  ;;  %v2727_v28 = vcombine.low %v33_v8, %v41_v9  ;;  %v3645_v1 = vld [vmem:[%s4659_s1 + $0x2b0] sm:$0xff]  }
  0x37   :  { %3244 = vmatprep.subr.bf16.mxu1 %v3608_v32  ;;  %v3627_v32 = vld [vmem:[%s4659_s1 + $0x210] sm:$0xff]   ;;  %v3647_v8 = vld [vmem:[%s4659_s1 + $0x238] sm:$0xff]  }
  0x38   :  { %v97_v3 = vld [vmem:[%s4660_s0 + $0x290] sm:$0xff]  ;;  %v3649_v9 = vld [vmem:[%s4659_s1 + $0x2b8] sm:$0xff]  }
  0x39   :  { %3181 = vmatpush3.bf16.msra.mxu0 %v3607_v31 }
  0x3a   :  { %3245 = vmatpush3.bf16.msra.mxu1 %v3609_v33  ;;  %3182 = vmatprep.subr.bf16.mxu0 %v3610_v38  ;;  %v3629_v33 = vld [vmem:[%s4659_s1 + $0x290] sm:$0xff]   ;;  %v66_v38 = vld [vmem:[%s4660_s0 + $0x198] sm:$0xff] }
  0x3b   :  { %1871 = vmatmul.mubr.bf16.gmra.mrb[12].mxu0 %v2755_v19  ;;  %3246 = vmatprep.subr.bf16.mxu1 %v3612_v40  ;;  %v3623_v19 = vld [vmem:[%s4659_s1 + $0x208] sm:$0xff]   ;;  %v3631_v40 = vld [vmem:[%s4659_s1 + $0x218] sm:$0xff]  }
  0x3c   :  { %1968 = vmatmul.mubr.bf16.gmra.mrb[12].mxu1 %v2757_v21  ;;  %1878 = vmatprep.mubr.bf16.mxu0 %v2772_v22  ;;  %v3625_v21 = vld [vmem:[%s4659_s1 + $0x288] sm:$0xff]   ;;  %v49_v22 = vld [vmem:[%s4660_s0 + $0x110] sm:$0xff] }
  0x3d   :  { %1975 = vmatprep.mubr.bf16.mxu1 %v2774_v24  ;;  %3183 = vmatpush3.bf16.msra.mxu0 %v3611_v39  ;;  %v50_v24 = vld [vmem:[%s4660_s0 + $0x118] sm:$0xff]  ;;  %v2744_v30 = vcombine.high %v49_v22, %v57_v23 }
  0x3e   :  { %3247 = vmatpush3.bf16.msra.mxu1 %v3613_v43  ;;  %3184 = vmatprep.subr.bf16.mxu0 %v3614_v46  ;;  %v2746_v31 = vcombine.high %v50_v24, %v58_v25  ;;  %v74_v39 = vld [vmem:[%s4660_s0 + $0x1d8] sm:$0xff]  ;;  %v2743_v43 = vcombine.low %v49_v22, %v57_v23  ;;  %v2745_v45 = vcombine.low %v50_v24, %v58_v25  ;;  %v129_v24 = vld [vmem:[%s4660_s0 + $0x390] sm:$0xff] }
  0x3f   :  { %3248 = vmatprep.subr.bf16.mxu1 %v3616_v51  ;;  %v81_v51 = vld [vmem:[%s4660_s0 + $0x210] sm:$0xff] }
  0x40   :  { %v137_v25 = vld [vmem:[%s4660_s0 + $0x3d0] sm:$0xff] }
  0x41   :  { %3185 = vmatpush3.bf16.msra.mxu0 %v3615_v48  ;;  %v2762_v48 = vcombine.high %v66_v38, %v74_v39 }
  0x42   :  { %3249 = vmatpush3.bf16.msra.mxu1 %v3617_v53  ;;  %3298 = vmatprep.subr.bf16.mxu0 %v3618_v56  ;;  %v89_v53 = vld [vmem:[%s4660_s0 + $0x250] sm:$0xff]  ;;  %v3639_v56 = vld [vmem:[%s4659_s1 + $0x228] sm:$0xff]  }
  0x43   :  { %1879 = vmatmul.mubr.bf16.gmra.mrb[16].mxu0 %v2771_v34  ;;  %3362 = vmatprep.subr.bf16.mxu1 %v3620_v58  ;;  %v3630_v34 = vld [vmem:[%s4659_s1 + $0x258] sm:$0xff]   ;;  %v3642_v58 = vld [vmem:[%s4659_s1 + $0x270] sm:$0xff]  }
  0x44   :  { %1976 = vmatmul.mubr.bf16.gmra.mrb[16].mxu1 %v2773_v35  ;;  %1886 = vmatprep.mubr.bf16.mxu0 %v2788_v36  ;;  %v65_v35 = vld [vmem:[%s4660_s0 + $0x190] sm:$0xff] }
  0x45   :  { %1983 = vmatprep.mubr.bf16.mxu1 %v2790_v37  ;;  %v73_v36 = vld [vmem:[%s4660_s0 + $0x1d0] sm:$0xff]  ;;  %v3632_v37 = vld [vmem:[%s4659_s1 + $0x2d8] sm:$0xff]  }
  0x46   :  { %v2760_v46 = vcombine.high %v65_v35, %v73_v36  ;;  %v2759_v59 = vcombine.low %v65_v35, %v73_v36  ;;  %v28_v35 = vld [vmem:[%s4660_s0 + $0x68] sm:$0xff]  ;;  %v2823_v36 = vcombine.low %v129_v24, %v137_v25 }
  0x4b   :  { %1887 = vmatmul.mubr.bf16.gmra.mrb[20].mxu0 %v2787_v47  ;;  %v3635_v47 = vld [vmem:[%s4659_s1 + $0x220] sm:$0xff]  }
  0x4c   :  { %1984 = vmatmul.mubr.bf16.gmra.mrb[20].mxu1 %v2789_v49  ;;  %1894 = vmatprep.mubr.bf16.mxu0 %v2804_v50  ;;  %v3637_v49 = vld [vmem:[%s4659_s1 + $0x2a0] sm:$0xff]   ;;  %v3638_v50 = vld [vmem:[%s4659_s1 + $0x268] sm:$0xff]  }
  0x4d   :  { %1991 = vmatprep.mubr.bf16.mxu1 %v2806_v52  ;;  %v3640_v52 = vld [vmem:[%s4659_s1 + $0x2e8] sm:$0xff]  }
  0x53   :  { %1895 = vmatmul.mubr.bf16.gmra.mrb[24].mxu0 %v2803_v60  ;;  %v3644_v60 = vld [vmem:[%s4659_s1 + $0x2f0] sm:$0xff]  }
  0x54   :  { %1992 = vmatmul.mubr.bf16.gmra.mrb[24].mxu1 %v2805_v61  ;;  %1902 = vmatprep.mubr.bf16.mxu0 %v2820_v62  ;;  %v2761_v61 = vcombine.low %v66_v38, %v74_v39  ;;  %v2776_v62 = vcombine.high %v81_v51, %v89_v53 }
  0x55   :  { %1999 = vmatprep.mubr.bf16.mxu1 %v2822_v63  ;;  %v2778_v63 = vcombine.high %v82_v54, %v90_v55  ;;  %v51_v54 = vld [vmem:[%s4660_s0 + $0x120] sm:$0xff] }
  0x56   :  { %v59_v55 = vld [vmem:[%s4660_s0 + $0x160] sm:$0xff] }
  0x5b   :  { %1903 = vmatmul.mubr.bf16.gmra.mrb[28].mxu0 %v2819_v4  ;;  %v105_v4 = vld [vmem:[%s4660_s0 + $0x2d0] sm:$0xff] }
  0x5c   :  { %2000 = vmatmul.mubr.bf16.gmra.mrb[28].mxu1 %v2821_v5  ;;  %2040 = vmatprep.mubr.bf16.mxu0 %v2712_v6  ;;  %v3648_v5 = vld [vmem:[%s4659_s1 + $0x2f8] sm:$0xff]  }
  0x5d   :  { %2137 = vmatprep.mubr.bf16.mxu1 %v2714_v7  ;;  %v98_v6 = vld [vmem:[%s4660_s0 + $0x298] sm:$0xff] }
  0x5e   :  { %v106_v7 = vld [vmem:[%s4660_s0 + $0x2d8] sm:$0xff] }
  0x63   :  { %2041 = vmatmul.mubr.bf16.vlgmr.msra.gmra.mrb[32].mxu0 %v2711_v10  ;;  %v3650_v10 = vld [vmem:[%s4659_s1 + $0x340] sm:$0xff]  }
  0x64   :  { %2138 = vmatmul.mubr.bf16.vlgmr.msra.gmra.mrb[32].mxu1 %v2713_v14  ;;  %3299 = vmatpush3.bf16.msra.mxu0 %v3619_v11  ;;  %v2775_v11 = vcombine.low %v81_v51, %v89_v53  ;;  %v2792_v14 = vcombine.high %v97_v3, %v105_v4  ;;  %v3656_v51 = vld [vmem:[%s4659_s1 + $0x3c8] sm:$0xff]  }
  0x65   :  { %3363 = vmatpush3.bf16.msra.mxu1 %v3621_v15  ;;  %2048 = vmatprep.mubr.bf16.mxu0 %v2728_v16  ;;  %v2794_v15 = vcombine.high %v98_v6, %v106_v7  ;;  %v113_v16 = vld [vmem:[%s4660_s0 + $0x310] sm:$0xff]  ;;  %v3657_v53 = vld [vmem:[%s4659_s1 + $0x388] sm:$0xff]  }
  0x66   :  { %2145 = vmatprep.mubr.bf16.mxu1 %v2730_v18  ;;  %3300 = vmatprep.subr.bf16.mxu0 %v3622_v17  ;;  %v121_v17 = vld [vmem:[%s4660_s0 + $0x350] sm:$0xff]  ;;  %v114_v18 = vld [vmem:[%s4660_s0 + $0x318] sm:$0xff] }
  0x67   :  { %3364 = vmatprep.subr.bf16.mxu1 %v3624_v20  ;;  %v2791_v20 = vcombine.low %v97_v3, %v105_v4  ;;  %v2808_v22 = vcombine.high %v113_v16, %v121_v17  ;;  %v3664_v3 = vld [vmem:[%s4659_s1 + $0x3d8] sm:$0xff]   ;;  %v67_v4 = vld [vmem:[%s4660_s0 + $0x1a0] sm:$0xff] }
  0x68   :  { %3301 = vmatpush3.bf16.msra.mxu0 %v3623_v19  ;;  %v122_v19 = vld [vmem:[%s4660_s0 + $0x358] sm:$0xff] }
  0x69   :  { %3365 = vmatpush3.bf16.msra.mxu1 %v3625_v21  ;;  %3302 = vmatprep.subr.bf16.mxu0 %v3626_v26  ;;  %v2793_v21 = vcombine.low %v98_v6, %v106_v7  ;;  %v2810_v23 = vcombine.high %v114_v18, %v122_v19  ;;  %v130_v26 = vld [vmem:[%s4660_s0 + $0x398] sm:$0xff]  ;;  %v68_v6 = vld [vmem:[%s4660_s0 + $0x1a8] sm:$0xff] }
  0x6a   :  { %3366 = vmatprep.subr.bf16.mxu1 %v3628_v27  ;;  %v138_v27 = vld [vmem:[%s4660_s0 + $0x3d8] sm:$0xff] }
  0x6b   :  { %2049 = vmatmul.mubr.bf16.gmra.mrb[36].mxu0 %v2727_v28  ;;  %v2807_v28 = vcombine.low %v113_v16, %v121_v17  ;;  %v3663_v7 = vld [vmem:[%s4659_s1 + $0x318] sm:$0xff]   ;;  %v3667_v16 = vld [vmem:[%s4659_s1 + $0x320] sm:$0xff]  }
  0x6c   :  { %2146 = vmatmul.mubr.bf16.gmra.mrb[36].mxu1 %v2729_v29  ;;  %2056 = vmatprep.mubr.bf16.mxu0 %v2744_v30  ;;  %v2809_v29 = vcombine.low %v114_v18, %v122_v19  ;;  %v2824_v30 = vcombine.high %v129_v24, %v137_v25  ;;  %v3669_v17 = vld [vmem:[%s4659_s1 + $0x3a0] sm:$0xff]   ;;  %v3670_v18 = vld [vmem:[%s4659_s1 + $0x368] sm:$0xff]  }
  0x6d   :  { %2153 = vmatprep.mubr.bf16.mxu1 %v2746_v31  ;;  %3303 = vmatpush3.bf16.msra.mxu0 %v3627_v32  ;;  %v2826_v31 = vcombine.high %v130_v26, %v138_v27  ;;  %v19_v32 = vld [vmem:[%s4660_s0 + $0x20] sm:$0xff]  ;;  %v3672_v19 = vld [vmem:[%s4659_s1 + $0x3e8] sm:$0xff]  }
  0x6e   :  { %3367 = vmatpush3.bf16.msra.mxu1 %v3629_v33  ;;  %3304 = vmatprep.subr.bf16.mxu0 %v3630_v34  ;;  %v27_v33 = vld [vmem:[%s4660_s0 + $0x60] sm:$0xff]  ;;  %v20_v34 = vld [vmem:[%s4660_s0 + $0x28] sm:$0xff] }
  0x6f   :  { %3368 = vmatprep.subr.bf16.mxu1 %v3632_v37  ;;  %v2825_v37 = vcombine.low %v130_v26, %v138_v27  ;;  %v2716_v38 = vcombine.high %v19_v32, %v27_v33  ;;  %v2718_v39 = vcombine.high %v20_v34, %v28_v35  ;;  %v92_v24 = vld [vmem:[%s4660_s0 + $0x268] sm:$0xff]  ;;  %v3674_v26 = vld [vmem:[%s4659_s1 + $0x370] sm:$0xff]  }
  0x70   :  { %v3673_v25 = vld [vmem:[%s4659_s1 + $0x3a8] sm:$0xff]  }
  0x71   :  { %3305 = vmatpush3.bf16.msra.mxu0 %v3631_v40  ;;  %v35_v40 = vld [vmem:[%s4660_s0 + $0xa0] sm:$0xff] }
  0x72   :  { %3369 = vmatpush3.bf16.msra.mxu1 %v3633_v41  ;;  %3306 = vmatprep.subr.bf16.mxu0 %v3634_v42  ;;  %v43_v41 = vld [vmem:[%s4660_s0 + $0xe0] sm:$0xff]  ;;  %v2715_v42 = vcombine.low %v19_v32, %v27_v33  ;;  %v3675_v32 = vld [vmem:[%s4659_s1 + $0x330] sm:$0xff]  }
  0x73   :  { %2057 = vmatmul.mubr.bf16.gmra.mrb[40].mxu0 %v2743_v43  ;;  %3370 = vmatprep.subr.bf16.mxu1 %v3636_v44  ;;  %v36_v43 = vld [vmem:[%s4660_s0 + $0xa8] sm:$0xff]  ;;  %v3677_v33 = vld [vmem:[%s4659_s1 + $0x3b0] sm:$0xff]  }
  0x74   :  { %2154 = vmatmul.mubr.bf16.gmra.mrb[40].mxu1 %v2745_v45  ;;  %2064 = vmatprep.mubr.bf16.mxu0 %v2760_v46  ;;  %v44_v44 = vld [vmem:[%s4660_s0 + $0xe8] sm:$0xff]  ;;  %v2717_v45 = vcombine.low %v20_v34, %v28_v35  ;;  %v3651_v46 = vld [vmem:[%s4659_s1 + $0x300] sm:$0xff]   ;;  %v3678_v34 = vld [vmem:[%s4659_s1 + $0x378] sm:$0xff]  }
  0x75   :  { %2161 = vmatprep.mubr.bf16.mxu1 %v2762_v48  ;;  %3307 = vmatpush3.bf16.msra.mxu0 %v3635_v47  ;;  %v3653_v47 = vld [vmem:[%s4659_s1 + $0x380] sm:$0xff]   ;;  %v2732_v48 = vcombine.high %v35_v40, %v43_v41  ;;  %v3680_v35 = vld [vmem:[%s4659_s1 + $0x3f8] sm:$0xff]  }
  0x76   :  { %3371 = vmatpush3.bf16.msra.mxu1 %v3637_v49  ;;  %3308 = vmatprep.subr.bf16.mxu0 %v3638_v50  ;;  %v2734_v49 = vcombine.high %v36_v43, %v44_v44  ;;  %v3654_v50 = vld [vmem:[%s4659_s1 + $0x348] sm:$0xff]  }
  0x77   :  { %3372 = vmatprep.subr.bf16.mxu1 %v3640_v52  ;;  %v3655_v52 = vld [vmem:[%s4659_s1 + $0x308] sm:$0xff]  }
  0x79   :  { %3309 = vmatpush3.bf16.msra.mxu0 %v3639_v56  ;;  %v3658_v56 = vld [vmem:[%s4659_s1 + $0x350] sm:$0xff]  }
  0x7a   :  { %3373 = vmatpush3.bf16.msra.mxu1 %v3641_v57  ;;  %3310 = vmatprep.subr.bf16.mxu0 %v3642_v58  ;;  %v52_v57 = vld [vmem:[%s4660_s0 + $0x128] sm:$0xff] }
  0x7b   :  { %2065 = vmatmul.mubr.bf16.gmra.mrb[44].mxu0 %v2759_v59  ;;  %3374 = vmatprep.subr.bf16.mxu1 %v3644_v60  ;;  %v60_v58 = vld [vmem:[%s4660_s0 + $0x168] sm:$0xff]  ;;  %v3660_v59 = vld [vmem:[%s4659_s1 + $0x3d0] sm:$0xff]   ;;  %v2731_v60 = vcombine.low %v35_v40, %v43_v41  ;;  %v3681_v41 = vld [vmem:[%s4659_s1 + $0x3b8] sm:$0xff]  }
  0x7c   :  { %2162 = vmatmul.mubr.bf16.gmra.mrb[44].mxu1 %v2761_v61  ;;  %2072 = vmatprep.mubr.bf16.mxu0 %v2776_v62  ;;  %v2733_v61 = vcombine.low %v36_v43, %v44_v44  ;;  %v2748_v62 = vcombine.high %v51_v54, %v59_v55  ;;  %v108_v40 = vld [vmem:[%s4660_s0 + $0x2e8] sm:$0xff] }
  0x7d   :  { %2169 = vmatprep.mubr.bf16.mxu1 %v2778_v63  ;;  %3311 = vmatpush3.bf16.msra.mxu0 %v3643_v0  ;;  %v2750_v63 = vcombine.high %v52_v57, %v60_v58  ;;  %v3659_v0 = vld [vmem:[%s4659_s1 + $0x310] sm:$0xff]  }
  0x7e   :  { %3375 = vmatpush3.bf16.msra.mxu1 %v3645_v1  ;;  %3312 = vmatprep.subr.bf16.mxu0 %v3646_v2  ;;  %v3661_v1 = vld [vmem:[%s4659_s1 + $0x390] sm:$0xff]   ;;  %v3662_v2 = vld [vmem:[%s4659_s1 + $0x358] sm:$0xff]  }
  0x7f   :  { %3376 = vmatprep.subr.bf16.mxu1 %v3648_v5  ;;  %v75_v5 = vld [vmem:[%s4660_s0 + $0x1e0] sm:$0xff] }
  0x80   :  { %v2763_v27 = vcombine.low %v67_v4, %v75_v5 }
  0x81   :  { %3313 = vmatpush3.bf16.msra.mxu0 %v3647_v8  ;;  %v76_v8 = vld [vmem:[%s4660_s0 + $0x1e8] sm:$0xff] }
  0x82   :  { %3377 = vmatpush3.bf16.msra.mxu1 %v3649_v9  ;;  %3426 = vmatprep.subr.bf16.mxu0 %v3650_v10  ;;  %v3665_v9 = vld [vmem:[%s4659_s1 + $0x398] sm:$0xff]   ;;  %v3666_v10 = vld [vmem:[%s4659_s1 + $0x360] sm:$0xff]  }
  0x83   :  { %2073 = vmatmul.mubr.bf16.gmra.mrb[48].mxu0 %v2775_v11  ;;  %3490 = vmatprep.subr.bf16.mxu1 %v3652_v12  ;;  %v2747_v11 = vcombine.low %v51_v54, %v59_v55  ;;  %v3668_v12 = vld [vmem:[%s4659_s1 + $0x3e0] sm:$0xff]  }
  0x84   :  { %2170 = vmatmul.mubr.bf16.gmra.mrb[48].mxu1 %v2777_v13  ;;  %2080 = vmatprep.mubr.bf16.mxu0 %v2792_v14  ;;  %v2749_v13 = vcombine.low %v52_v57, %v60_v58  ;;  %v2764_v14 = vcombine.high %v67_v4, %v75_v5  ;;  %v131_v54 = vld [vmem:[%s4660_s0 + $0x3a0] sm:$0xff]  ;;  %v140_v57 = vld [vmem:[%s4660_s0 + $0x3e8] sm:$0xff] }
  0x85   :  { %2177 = vmatprep.mubr.bf16.mxu1 %v2794_v15  ;;  %v2766_v15 = vcombine.high %v68_v6, %v76_v8  ;;  %v139_v55 = vld [vmem:[%s4660_s0 + $0x3e0] sm:$0xff] }
  0x8b   :  { %2081 = vmatmul.mubr.bf16.gmra.mrb[52].mxu0 %v2791_v20  ;;  %v83_v20 = vld [vmem:[%s4660_s0 + $0x220] sm:$0xff] }
  0x8c   :  { %2178 = vmatmul.mubr.bf16.gmra.mrb[52].mxu1 %v2793_v21  ;;  %2088 = vmatprep.mubr.bf16.mxu0 %v2808_v22  ;;  %v91_v21 = vld [vmem:[%s4660_s0 + $0x260] sm:$0xff]  ;;  %v84_v22 = vld [vmem:[%s4660_s0 + $0x228] sm:$0xff] }
  0x8d   :  { %2185 = vmatprep.mubr.bf16.mxu1 %v2810_v23  ;;  %v3671_v23 = vld [vmem:[%s4659_s1 + $0x328] sm:$0xff]   ;;  %v2781_v43 = vcombine.low %v84_v22, %v92_v24 }
  0x93   :  { %2089 = vmatmul.mubr.bf16.gmra.mrb[56].mxu0 %v2807_v28  ;;  %v3676_v28 = vld [vmem:[%s4659_s1 + $0x3f0] sm:$0xff]  }
  0x94   :  { %2186 = vmatmul.mubr.bf16.gmra.mrb[56].mxu1 %v2809_v29  ;;  %2096 = vmatprep.mubr.bf16.mxu0 %v2824_v30  ;;  %v2765_v29 = vcombine.low %v68_v6, %v76_v8  ;;  %v2780_v30 = vcombine.high %v83_v20, %v91_v21  ;;  %v37_v6 = vld [vmem:[%s4660_s0 + $0xb0] sm:$0xff]  ;;  %v38_v8 = vld [vmem:[%s4660_s0 + $0xb8] sm:$0xff] }
  0x95   :  { %2193 = vmatprep.mubr.bf16.mxu1 %v2826_v31  ;;  %v2782_v31 = vcombine.high %v84_v22, %v92_v24  ;;  %v69_v22 = vld [vmem:[%s4660_s0 + $0x1b0] sm:$0xff]  ;;  %v70_v24 = vld [vmem:[%s4660_s0 + $0x1b8] sm:$0xff] }
  0x9b   :  { %2097 = vmatmul.mubr.bf16.gmra.mrb[60].mxu0 %v2823_v36  ;;  %v99_v36 = vld [vmem:[%s4660_s0 + $0x2a0] sm:$0xff] }
  0x9c   :  { %2194 = vmatmul.mubr.bf16.gmra.mrb[60].mxu1 %v2825_v37  ;;  %2234 = vmatprep.mubr.bf16.mxu0 %v2716_v38  ;;  %v107_v37 = vld [vmem:[%s4660_s0 + $0x2e0] sm:$0xff]  ;;  %v3679_v38 = vld [vmem:[%s4659_s1 + $0x338] sm:$0xff]  }
  0x9d   :  { %2331 = vmatprep.mubr.bf16.mxu1 %v2718_v39  ;;  %v100_v39 = vld [vmem:[%s4660_s0 + $0x2a8] sm:$0xff]  ;;  %v2796_v44 = vcombine.high %v99_v36, %v107_v37 }
  0xa3   :  { %2235 = vmatmul.mubr.bf16.vlgmr.msra.gmra.mrb[64].mxu0 %v2715_v42  ;;  %v2779_v42 = vcombine.low %v83_v20, %v91_v21 }
  0xa4   :  { %2332 = vmatmul.mubr.bf16.vlgmr.msra.gmra.mrb[64].mxu1 %v2717_v45  ;;  %3427 = vmatpush3.bf16.msra.mxu0 %v3651_v46  ;;  %v2798_v45 = vcombine.high %v100_v39, %v108_v40  ;;  %v115_v46 = vld [vmem:[%s4660_s0 + $0x320] sm:$0xff] }
  0xa5   :  { %3491 = vmatpush3.bf16.msra.mxu1 %v3653_v47  ;;  %2242 = vmatprep.mubr.bf16.mxu0 %v2732_v48  ;;  %v123_v47 = vld [vmem:[%s4660_s0 + $0x360] sm:$0xff]  ;;  %v116_v48 = vld [vmem:[%s4660_s0 + $0x328] sm:$0xff] }
  0xa6   :  { %2339 = vmatprep.mubr.bf16.mxu1 %v2734_v49  ;;  %3428 = vmatprep.subr.bf16.mxu0 %v3654_v50  ;;  %v124_v49 = vld [vmem:[%s4660_s0 + $0x368] sm:$0xff]  ;;  %v2795_v50 = vcombine.low %v99_v36, %v107_v37  ;;  %v2811_v58 = vcombine.low %v115_v46, %v123_v47  ;;  %v4437_v36 = vld [vmem:[%s4661_s2] ss:$0 sm:$0xff] }
  0xa7   :  { %3492 = vmatprep.subr.bf16.mxu1 %v3656_v51  ;;  %v2797_v51 = vcombine.low %v100_v39, %v108_v40 }
  0xa8   :  { %3429 = vmatpush3.bf16.msra.mxu0 %v3655_v52  ;;  %v2812_v52 = vcombine.high %v115_v46, %v123_v47 }
  0xa9   :  { %3493 = vmatpush3.bf16.msra.mxu1 %v3657_v53  ;;  %3430 = vmatprep.subr.bf16.mxu0 %v3658_v56  ;;  %v2814_v53 = vcombine.high %v116_v48, %v124_v49  ;;  %v132_v56 = vld [vmem:[%s4660_s0 + $0x3a8] sm:$0xff] }
  0xaa   :  { %3494 = vmatprep.subr.bf16.mxu1 %v3660_v59  ;;  %v2813_v59 = vcombine.low %v116_v48, %v124_v49 }
  0xab   :  { %2243 = vmatmul.mubr.bf16.gmra.mrb[68].mxu0 %v2731_v60  ;;  %v2828_v60 = vcombine.high %v131_v54, %v139_v55 }
  0xac   :  { %2340 = vmatmul.mubr.bf16.gmra.mrb[68].mxu1 %v2733_v61  ;;  %2250 = vmatprep.mubr.bf16.mxu0 %v2748_v62  ;;  %v2830_v61 = vcombine.high %v132_v56, %v140_v57  ;;  %v21_v62 = vld [vmem:[%s4660_s0 + $0x30] sm:$0xff] }
  0xad   :  { %2347 = vmatprep.mubr.bf16.mxu1 %v2750_v63  ;;  %3431 = vmatpush3.bf16.msra.mxu0 %v3659_v0  ;;  %v29_v63 = vld [vmem:[%s4660_s0 + $0x70] sm:$0xff]  ;;  %v22_v0 = vld [vmem:[%s4660_s0 + $0x38] sm:$0xff] }
  0xae   :  { %3495 = vmatpush3.bf16.msra.mxu1 %v3661_v1  ;;  %3432 = vmatprep.subr.bf16.mxu0 %v3662_v2  ;;  %v30_v1 = vld [vmem:[%s4660_s0 + $0x78] sm:$0xff]  ;;  %v2827_v2 = vcombine.low %v131_v54, %v139_v55  ;;  %v2720_v4 = vcombine.high %v21_v62, %v29_v63  ;;  %v101_v54 = vld [vmem:[%s4660_s0 + $0x2b0] sm:$0xff] }
  0xaf   :  { %3496 = vmatprep.subr.bf16.mxu1 %v3664_v3  ;;  %v2829_v3 = vcombine.low %v132_v56, %v140_v57  ;;  %v2722_v5 = vcombine.high %v22_v0, %v30_v1  ;;  %v109_v55 = vld [vmem:[%s4660_s0 + $0x2f0] sm:$0xff] }
  0xb1   :  { %3433 = vmatpush3.bf16.msra.mxu0 %v3663_v7  ;;  %v45_v7 = vld [vmem:[%s4660_s0 + $0xf0] sm:$0xff] }
  0xb2   :  { %3497 = vmatpush3.bf16.msra.mxu1 %v3665_v9  ;;  %3434 = vmatprep.subr.bf16.mxu0 %v3666_v10  ;;  %v46_v9 = vld [vmem:[%s4660_s0 + $0xf8] sm:$0xff]  ;;  %v2719_v10 = vcombine.low %v21_v62, %v29_v63 }
  0xb3   :  { %2251 = vmatmul.mubr.bf16.gmra.mrb[72].mxu0 %v2747_v11  ;;  %3498 = vmatprep.subr.bf16.mxu1 %v3668_v12  ;;  %v2721_v11 = vcombine.low %v22_v0, %v30_v1  ;;  %v2736_v12 = vcombine.high %v37_v6, %v45_v7 }
  0xb4   :  { %2348 = vmatmul.mubr.bf16.gmra.mrb[72].mxu1 %v2749_v13  ;;  %2258 = vmatprep.mubr.bf16.mxu0 %v2764_v14  ;;  %v2738_v13 = vcombine.high %v38_v8, %v46_v9  ;;  %v53_v14 = vld [vmem:[%s4660_s0 + $0x130] sm:$0xff] }
  0xb5   :  { %2355 = vmatprep.mubr.bf16.mxu1 %v2766_v15  ;;  %3435 = vmatpush3.bf16.msra.mxu0 %v3667_v16  ;;  %v61_v15 = vld [vmem:[%s4660_s0 + $0x170] sm:$0xff]  ;;  %v54_v16 = vld [vmem:[%s4660_s0 + $0x138] sm:$0xff] }
  0xb6   :  { %3499 = vmatpush3.bf16.msra.mxu1 %v3669_v17  ;;  %3436 = vmatprep.subr.bf16.mxu0 %v3670_v18  ;;  %v62_v17 = vld [vmem:[%s4660_s0 + $0x178] sm:$0xff]  ;;  %v2735_v18 = vcombine.low %v37_v6, %v45_v7  ;;  %v2752_v20 = vcombine.high %v53_v14, %v61_v15 }
  0xb7   :  { %3500 = vmatprep.subr.bf16.mxu1 %v3672_v19  ;;  %v2737_v19 = vcombine.low %v38_v8, %v46_v9  ;;  %v2754_v21 = vcombine.high %v54_v16, %v62_v17 }
  0xb9   :  { %3437 = vmatpush3.bf16.msra.mxu0 %v3671_v23  ;;  %v77_v23 = vld [vmem:[%s4660_s0 + $0x1f0] sm:$0xff] }
  0xba   :  { %3501 = vmatpush3.bf16.msra.mxu1 %v3673_v25  ;;  %3438 = vmatprep.subr.bf16.mxu0 %v3674_v26  ;;  %v78_v25 = vld [vmem:[%s4660_s0 + $0x1f8] sm:$0xff]  ;;  %v2751_v26 = vcombine.low %v53_v14, %v61_v15  ;;  %v117_v14 = vld [vmem:[%s4660_s0 + $0x330] sm:$0xff] }
  0xbb   :  { %2259 = vmatmul.mubr.bf16.gmra.mrb[76].mxu0 %v2763_v27  ;;  %3502 = vmatprep.subr.bf16.mxu1 %v3676_v28  ;;  %v2753_v27 = vcombine.low %v54_v16, %v62_v17  ;;  %v2768_v28 = vcombine.high %v69_v22, %v77_v23  ;;  %v125_v15 = vld [vmem:[%s4660_s0 + $0x370] sm:$0xff] }
  0xbc   :  { %2356 = vmatmul.mubr.bf16.gmra.mrb[76].mxu1 %v2765_v29  ;;  %2266 = vmatprep.mubr.bf16.mxu0 %v2780_v30  ;;  %v2770_v29 = vcombine.high %v70_v24, %v78_v25  ;;  %v85_v30 = vld [vmem:[%s4660_s0 + $0x230] sm:$0xff] }
  0xbd   :  { %2363 = vmatprep.mubr.bf16.mxu1 %v2782_v31  ;;  %3439 = vmatpush3.bf16.msra.mxu0 %v3675_v32  ;;  %v93_v31 = vld [vmem:[%s4660_s0 + $0x270] sm:$0xff] }
  0xbe   :  { %3503 = vmatpush3.bf16.msra.mxu1 %v3677_v33  ;;  %3440 = vmatprep.subr.bf16.mxu0 %v3678_v34  ;;  %v86_v33 = vld [vmem:[%s4660_s0 + $0x238] sm:$0xff]  ;;  %v2783_v62 = vcombine.low %v85_v30, %v93_v31 }
  0xbf   :  { %3504 = vmatprep.subr.bf16.mxu1 %v3680_v35  ;;  %v94_v34 = vld [vmem:[%s4660_s0 + $0x278] sm:$0xff] }
  0xc0   :  { %v2786_v47 = vcombine.high %v86_v33, %v94_v34 }
  0xc1   :  { %3441 = vmatpush3.bf16.msra.mxu0 %v3679_v38  ;;  %v2767_v38 = vcombine.low %v69_v22, %v77_v23  ;;  %v2799_v22 = vcombine.low %v101_v54, %v109_v55 }
  0xc2   :  { %3505 = vmatpush3.bf16.msra.mxu1 %v3681_v41 }
  0xc3   :  { %2267 = vmatmul.mubr.bf16.gmra.mrb[80].mxu0 %v2779_v42  ;;  %v2769_v42 = vcombine.low %v70_v24, %v78_v25 }
  0xc4   :  { %2364 = vmatmul.mubr.bf16.gmra.mrb[80].mxu1 %v2781_v43  ;;  %2274 = vmatprep.mubr.bf16.mxu0 %v2796_v44  ;;  %v2784_v43 = vcombine.high %v85_v30, %v93_v31 }
  0xc5   :  { %2371 = vmatprep.mubr.bf16.mxu1 %v2798_v45 }
  0xcb   :  { %2275 = vmatmul.mubr.bf16.gmra.mrb[84].mxu0 %v2795_v50 }
  0xcc   :  { %2372 = vmatmul.mubr.bf16.gmra.mrb[84].mxu1 %v2797_v51  ;;  %2282 = vmatprep.mubr.bf16.mxu0 %v2812_v52 }
  0xcd   :  { %2379 = vmatprep.mubr.bf16.mxu1 %v2814_v53 }
  0xd3   :  { %2283 = vmatmul.mubr.bf16.gmra.mrb[88].mxu0 %v2811_v58  ;;  %v102_v58 = vld [vmem:[%s4660_s0 + $0x2b8] sm:$0xff] }
  0xd4   :  { %2380 = vmatmul.mubr.bf16.gmra.mrb[88].mxu1 %v2813_v59  ;;  %2290 = vmatprep.mubr.bf16.mxu0 %v2828_v60  ;;  %v110_v59 = vld [vmem:[%s4660_s0 + $0x2f8] sm:$0xff] }
  0xd5   :  { %2387 = vmatprep.mubr.bf16.mxu1 %v2830_v61  ;;  %v2802_v7 = vcombine.high %v102_v58, %v110_v59 }
  0xdb   :  { %2291 = vmatmul.mubr.bf16.gmra.mrb[92].mxu0 %v2827_v2  ;;  %v2785_v2 = vcombine.low %v86_v33, %v94_v34 }
  0xdc   :  { %2388 = vmatmul.mubr.bf16.gmra.mrb[92].mxu1 %v2829_v3  ;;  %2428 = vmatprep.mubr.bf16.mxu0 %v2720_v4  ;;  %v2800_v3 = vcombine.high %v101_v54, %v109_v55 }
  0xdd   :  { %2525 = vmatprep.mubr.bf16.mxu1 %v2722_v5 }
  0xe3   :  { %2429 = vmatmul.mubr.bf16.vlgmr.msra.gmra.mrb[96].mxu0 %v2719_v10 }
  0xe4   :  { %2526 = vmatmul.mubr.bf16.vlgmr.msra.gmra.mrb[96].mxu1 %v2721_v11  ;;  %2436 = vmatprep.mubr.bf16.mxu0 %v2736_v12 }
  0xe5   :  { %2533 = vmatprep.mubr.bf16.mxu1 %v2738_v13 }
  0xeb   :  { %2437 = vmatmul.mubr.bf16.gmra.mrb[100].mxu0 %v2735_v18  ;;  %v118_v18 = vld [vmem:[%s4660_s0 + $0x338] sm:$0xff] }
  0xec   :  { %2534 = vmatmul.mubr.bf16.gmra.mrb[100].mxu1 %v2737_v19  ;;  %2444 = vmatprep.mubr.bf16.mxu0 %v2752_v20  ;;  %v126_v19 = vld [vmem:[%s4660_s0 + $0x378] sm:$0xff] }
  0xed   :  { %2541 = vmatprep.mubr.bf16.mxu1 %v2754_v21  ;;  %v2818_v31 = vcombine.high %v118_v18, %v126_v19 }
  0xf3   :  { %2445 = vmatmul.mubr.bf16.gmra.mrb[104].mxu0 %v2751_v26  ;;  %v2801_v26 = vcombine.low %v102_v58, %v110_v59 }
  0xf4   :  { %2542 = vmatmul.mubr.bf16.gmra.mrb[104].mxu1 %v2753_v27  ;;  %2452 = vmatprep.mubr.bf16.mxu0 %v2768_v28  ;;  %v2816_v27 = vcombine.high %v117_v14, %v125_v15 }
  0xf5   :  { %2549 = vmatprep.mubr.bf16.mxu1 %v2770_v29 }
  0xf6   :  { %v3058_v32 = vpop.f32.mrb[0].mxu0 }
  0xf7   :  { %v3122_v35 = vpop.f32.mrb[0].mxu1  ;;  %v3059_v37 = vpop.f32.mrb[1].mxu0 }
  0xf8   :  { %v3060_v39 = vadd.f32 %v3059_v37, %v3058_v32  ;;  %v3123_v40 = vpop.f32.mrb[1].mxu1  ;;  %v3061_v41 = vpop.f32.mrb[2].mxu0 }
  0xf9   :  { %v3124_v44 = vadd.f32 %v3123_v40, %v3122_v35  ;;  %v3125_v45 = vpop.f32.mrb[2].mxu1  ;;  %v3062_v46 = vpop.f32.mrb[3].mxu0  ;;  %v141_v40 = vld [vmem:[%s4660_s0 + $0x3f0] sm:$0xff] }
  0xfa   :  { %v1849_v48 = vadd.f32 %v3060_v39, %v4437_v36  ;;  %v3063_v49 = vadd.f32 %v3062_v46, %v3061_v41  ;;  %v3126_v50 = vpop.f32.mrb[3].mxu1  ;;  %v133_v39 = vld [vmem:[%s4660_s0 + $0x3b0] sm:$0xff] }
  0xfb   :  { %v3127_v51 = vadd.f32 %v3126_v50, %v3125_v45  ;;  %2453 = vmatmul.mubr.bf16.gmra.mrb[108].mxu0 %v2767_v38 }
  0xfc   :  { %v4440_v52 = vadd.f32 %v3124_v44, %v1849_v48  ;;  %v1852_v53 = vadd.f32 %v3063_v49, %v4437_v36  ;;  %2550 = vmatmul.mubr.bf16.gmra.mrb[108].mxu1 %v2769_v42  ;;  %2460 = vmatprep.mubr.bf16.mxu0 %v2784_v43  ;;  %v134_v43 = vld [vmem:[%s4660_s0 + $0x3b8] sm:$0xff] }
  0xfd   :  { %2557 = vmatprep.mubr.bf16.mxu1 %v2786_v47  ;;  %v142_v44 = vld [vmem:[%s4660_s0 + $0x3f8] sm:$0xff]  ;;  %v2815_v47 = vcombine.low %v117_v14, %v125_v15 }
  0xfe   :  { %v4449_v56 = vadd.f32 %v3127_v51, %v1852_v53  ;;  %v3064_v57 = vpop.f32.mrb[4].mxu0  ;;  %v2817_v51 = vcombine.low %v118_v18, %v126_v19  ;;  %v2832_v53 = vcombine.high %v133_v39, %v141_v40  ;;  %v2834_v58 = vcombine.high %v134_v43, %v142_v44 }
  0xff   :  { %v3128_v60 = vpop.f32.mrb[4].mxu1  ;;  %v3065_v61 = vpop.f32.mrb[5].mxu0 }
 0x100   :  { %v3066_v63 = vadd.f32 %v3065_v61, %v3064_v57  ;;  %v3129_v0 = vpop.f32.mrb[5].mxu1  ;;  %v3067_v1 = vpop.f32.mrb[6].mxu0 }
 0x101   :  { %v3130_v4 = vadd.f32 %v3129_v0, %v3128_v60  ;;  %v3131_v5 = vpop.f32.mrb[6].mxu1  ;;  %v3068_v6 = vpop.f32.mrb[7].mxu0 }
 0x102   :  { %v1857_v8 = vadd.f32 %v3066_v63, %v4437_v36  ;;  %v3069_v9 = vadd.f32 %v3068_v6, %v3067_v1  ;;  %v3132_v10 = vpop.f32.mrb[7].mxu1 }
 0x103   :  { %v3133_v11 = vadd.f32 %v3132_v10, %v3131_v5  ;;  %2461 = vmatmul.mubr.bf16.gmra.mrb[112].mxu0 %v2783_v62  ;;  %v2831_v5 = vcombine.low %v133_v39, %v141_v40 }
 0x104   :  { %v4458_v12 = vadd.f32 %v3130_v4, %v1857_v8  ;;  %v1860_v13 = vadd.f32 %v3069_v9, %v4437_v36  ;;  %2558 = vmatmul.mubr.bf16.gmra.mrb[112].mxu1 %v2785_v2  ;;  %2468 = vmatprep.mubr.bf16.mxu0 %v2800_v3  ;;  %v2833_v9 = vcombine.low %v134_v43, %v142_v44 }
 0x105   :  { %2565 = vmatprep.mubr.bf16.mxu1 %v2802_v7 }
 0x106   :  { %v4467_v16 = vadd.f32 %v3133_v11, %v1860_v13  ;;  %v3070_v17 = vpop.f32.mrb[8].mxu0 }
 0x107   :  { %v3134_v20 = vpop.f32.mrb[8].mxu1  ;;  %v3071_v21 = vpop.f32.mrb[9].mxu0 }
 0x108   :  { %v3072_v23 = vadd.f32 %v3071_v21, %v3070_v17  ;;  %v3135_v24 = vpop.f32.mrb[9].mxu1  ;;  %v3073_v25 = vpop.f32.mrb[10].mxu0 }
 0x109   :  { %v3136_v28 = vadd.f32 %v3135_v24, %v3134_v20  ;;  %v3137_v29 = vpop.f32.mrb[10].mxu1  ;;  %v3074_v30 = vpop.f32.mrb[11].mxu0 }
 0x10a   :  { %v1865_v32 = vadd.f32 %v3072_v23, %v4437_v36  ;;  %v3075_v33 = vadd.f32 %v3074_v30, %v3073_v25  ;;  %v3138_v34 = vpop.f32.mrb[11].mxu1 }
 0x10b   :  { %v3139_v35 = vadd.f32 %v3138_v34, %v3137_v29  ;;  %2469 = vmatmul.mubr.bf16.gmra.mrb[116].mxu0 %v2799_v22 }
 0x10c   :  { %v4476_v37 = vadd.f32 %v3136_v28, %v1865_v32  ;;  %v1868_v38 = vadd.f32 %v3075_v33, %v4437_v36  ;;  %2566 = vmatmul.mubr.bf16.gmra.mrb[116].mxu1 %v2801_v26  ;;  %2476 = vmatprep.mubr.bf16.mxu0 %v2816_v27 }
 0x10d   :  { %2573 = vmatprep.mubr.bf16.mxu1 %v2818_v31 }
 0x10e   :  { %v4485_v41 = vadd.f32 %v3139_v35, %v1868_v38  ;;  %v3076_v42 = vpop.f32.mrb[12].mxu0 }
 0x10f   :  { %v3140_v45 = vpop.f32.mrb[12].mxu1  ;;  %v3077_v46 = vpop.f32.mrb[13].mxu0 }
 0x110   :  { %v3078_v48 = vadd.f32 %v3077_v46, %v3076_v42  ;;  %v3141_v49 = vpop.f32.mrb[13].mxu1  ;;  %v3079_v50 = vpop.f32.mrb[14].mxu0 }
 0x111   :  { %v3142_v54 = vadd.f32 %v3141_v49, %v3140_v45  ;;  %v3143_v55 = vpop.f32.mrb[14].mxu1  ;;  %v3080_v57 = vpop.f32.mrb[15].mxu0 }
 0x112   :  { %v1873_v59 = vadd.f32 %v3078_v48, %v4437_v36  ;;  %v3081_v60 = vadd.f32 %v3080_v57, %v3079_v50  ;;  %v3144_v61 = vpop.f32.mrb[15].mxu1 }
 0x113   :  { %v3145_v62 = vadd.f32 %v3144_v61, %v3143_v55  ;;  %2477 = vmatmul.mubr.bf16.gmra.mrb[120].mxu0 %v2815_v47 }
 0x114   :  { %v4494_v63 = vadd.f32 %v3142_v54, %v1873_v59  ;;  %v1876_v0 = vadd.f32 %v3081_v60, %v4437_v36  ;;  %2574 = vmatmul.mubr.bf16.gmra.mrb[120].mxu1 %v2817_v51  ;;  %2484 = vmatprep.mubr.bf16.mxu0 %v2832_v53 }
 0x115   :  { %2581 = vmatprep.mubr.bf16.mxu1 %v2834_v58 }
 0x116   :  { %v4497_v1 = vadd.f32 %v3145_v62, %v1876_v0  ;;  %v3082_v2 = vpop.f32.mrb[16].mxu0 }
 0x117   :  { %v3146_v3 = vpop.f32.mrb[16].mxu1  ;;  %v3083_v4 = vpop.f32.mrb[17].mxu0 }
 0x118   :  { %v3084_v6 = vadd.f32 %v3083_v4, %v3082_v2  ;;  %v3147_v7 = vpop.f32.mrb[17].mxu1  ;;  %v3085_v8 = vpop.f32.mrb[18].mxu0 }
 0x119   :  { %v3148_v10 = vadd.f32 %v3147_v7, %v3146_v3  ;;  %v3149_v11 = vpop.f32.mrb[18].mxu1  ;;  %v3086_v13 = vpop.f32.mrb[19].mxu0 }
 0x11a   :  { %v1881_v14 = vadd.f32 %v3084_v6, %v4437_v36  ;;  %v3087_v15 = vadd.f32 %v3086_v13, %v3085_v8  ;;  %v3150_v17 = vpop.f32.mrb[19].mxu1 }
 0x11b   :  { %v3151_v18 = vadd.f32 %v3150_v17, %v3149_v11  ;;  %2485 = vmatmul.mubr.bf16.gmra.mrb[124].mxu0 %v2831_v5 }
 0x11c   :  { %v4500_v19 = vadd.f32 %v3148_v10, %v1881_v14  ;;  %v1884_v20 = vadd.f32 %v3087_v15, %v4437_v36  ;;  %2582 = vmatmul.mubr.bf16.gmra.mrb[124].mxu1 %v2833_v9 }
 0x11e   :  { %v4503_v21 = vadd.f32 %v3151_v18, %v1884_v20  ;;  %v3088_v22 = vpop.f32.mrb[20].mxu0 }
 0x11f   :  { %v3152_v23 = vpop.f32.mrb[20].mxu1  ;;  %v3089_v24 = vpop.f32.mrb[21].mxu0 }
 0x120   :  { %v3090_v25 = vadd.f32 %v3089_v24, %v3088_v22  ;;  %v3153_v26 = vpop.f32.mrb[21].mxu1  ;;  %v3091_v27 = vpop.f32.mrb[22].mxu0 }
 0x121   :  { %v3154_v28 = vadd.f32 %v3153_v26, %v3152_v23  ;;  %v3155_v29 = vpop.f32.mrb[22].mxu1  ;;  %v3092_v30 = vpop.f32.mrb[23].mxu0 }
 0x122   :  { %v1889_v31 = vadd.f32 %v3090_v25, %v4437_v36  ;;  %v3093_v32 = vadd.f32 %v3092_v30, %v3091_v27  ;;  %v3156_v33 = vpop.f32.mrb[23].mxu1 }
 0x123   :  { %v3157_v34 = vadd.f32 %v3156_v33, %v3155_v29 }
 0x124   :  { %v4506_v35 = vadd.f32 %v3154_v28, %v1889_v31  ;;  %v1892_v38 = vadd.f32 %v3093_v32, %v4437_v36 }
 0x126   :  { %v4509_v39 = vadd.f32 %v3157_v34, %v1892_v38  ;;  %v3094_v40 = vpop.f32.mrb[24].mxu0 }
 0x127   :  { %v3158_v42 = vpop.f32.mrb[24].mxu1  ;;  %v3095_v43 = vpop.f32.mrb[25].mxu0 }
 0x128   :  { %v3096_v44 = vadd.f32 %v3095_v43, %v3094_v40  ;;  %v3159_v45 = vpop.f32.mrb[25].mxu1  ;;  %v3097_v46 = vpop.f32.mrb[26].mxu0 }
 0x129   :  { %v3160_v47 = vadd.f32 %v3159_v45, %v3158_v42  ;;  %v3161_v48 = vpop.f32.mrb[26].mxu1  ;;  %v3098_v49 = vpop.f32.mrb[27].mxu0 }
 0x12a   :  { %v1897_v50 = vadd.f32 %v3096_v44, %v4437_v36  ;;  %v3099_v51 = vadd.f32 %v3098_v49, %v3097_v46  ;;  %v3162_v53 = vpop.f32.mrb[27].mxu1 }
 0x12b   :  { %v3163_v54 = vadd.f32 %v3162_v53, %v3161_v48 }
 0x12c   :  { %v4512_v55 = vadd.f32 %v3160_v47, %v1897_v50  ;;  %v1900_v57 = vadd.f32 %v3099_v51, %v4437_v36 }
 0x12e   :  { %v4515_v58 = vadd.f32 %v3163_v54, %v1900_v57  ;;  %v3100_v59 = vpop.f32.mrb[28].mxu0 }
 0x12f   :  { %v3164_v60 = vpop.f32.mrb[28].mxu1  ;;  %v3101_v61 = vpop.f32.mrb[29].mxu0 }
 0x130   :  { %v3102_v62 = vadd.f32 %v3101_v61, %v3100_v59  ;;  %v3165_v0 = vpop.f32.mrb[29].mxu1  ;;  %v3103_v2 = vpop.f32.mrb[30].mxu0 }
 0x131   :  { %v3166_v3 = vadd.f32 %v3165_v0, %v3164_v60  ;;  %v3167_v4 = vpop.f32.mrb[30].mxu1  ;;  %v3104_v5 = vpop.f32.mrb[31].mxu0 }
 0x132   :  { %v1905_v6 = vadd.f32 %v3102_v62, %v4437_v36  ;;  %v3105_v7 = vadd.f32 %v3104_v5, %v3103_v2  ;;  %v3168_v8 = vpop.f32.mrb[31].mxu1 }
 0x133   :  { %v3169_v9 = vadd.f32 %v3168_v8, %v3167_v4 }
 0x134   :  { %v4518_v10 = vadd.f32 %v3166_v3, %v1905_v6  ;;  %v1908_v11 = vadd.f32 %v3105_v7, %v4437_v36 }
 0x136   :  { %v4521_v13 = vadd.f32 %v3169_v9, %v1908_v11  ;;  %v3186_v14 = vpop.f32.mrb[32].mxu0 }
 0x137   :  { %v3250_v15 = vpop.f32.mrb[32].mxu1  ;;  %v3187_v17 = vpop.f32.mrb[33].mxu0 }
 0x138   :  { %v3188_v18 = vadd.f32 %v3187_v17, %v3186_v14  ;;  %v3251_v20 = vpop.f32.mrb[33].mxu1  ;;  %v3189_v22 = vpop.f32.mrb[34].mxu0 }
 0x139   :  { %v3252_v23 = vadd.f32 %v3251_v20, %v3250_v15  ;;  %v3253_v24 = vpop.f32.mrb[34].mxu1  ;;  %v3190_v25 = vpop.f32.mrb[35].mxu0 }
 0x13a   :  { %v2043_v26 = vadd.f32 %v3188_v18, %v4440_v52  ;;  %v3191_v27 = vadd.f32 %v3190_v25, %v3189_v22  ;;  %v3254_v28 = vpop.f32.mrb[35].mxu1 }
 0x13b   :  { %v3255_v29 = vadd.f32 %v3254_v28, %v3253_v24 }
 0x13c   :  { %v4524_v30 = vadd.f32 %v3252_v23, %v2043_v26  ;;  %v2046_v36 = vadd.f32 %v3191_v27, %v4449_v56 }
 0x13e   :  { %v4527_v31 = vadd.f32 %v3255_v29, %v2046_v36  ;;  %v3192_v32 = vpop.f32.mrb[36].mxu0 }
 0x13f   :  { %v3256_v33 = vpop.f32.mrb[36].mxu1  ;;  %v3193_v34 = vpop.f32.mrb[37].mxu0 }
 0x140   :  { %v3194_v38 = vadd.f32 %v3193_v34, %v3192_v32  ;;  %v3257_v40 = vpop.f32.mrb[37].mxu1  ;;  %v3195_v42 = vpop.f32.mrb[38].mxu0 }
 0x141   :  { %v3258_v43 = vadd.f32 %v3257_v40, %v3256_v33  ;;  %v3259_v44 = vpop.f32.mrb[38].mxu1  ;;  %v3196_v45 = vpop.f32.mrb[39].mxu0 }
 0x142   :  { %v2051_v52 = vadd.f32 %v3194_v38, %v4458_v12  ;;  %v3197_v46 = vadd.f32 %v3196_v45, %v3195_v42  ;;  %v3260_v47 = vpop.f32.mrb[39].mxu1 }
 0x143   :  { %v3261_v48 = vadd.f32 %v3260_v47, %v3259_v44 }
 0x144   :  { %v4530_v49 = vadd.f32 %v3258_v43, %v2051_v52  ;;  %v2054_v56 = vadd.f32 %v3197_v46, %v4467_v16 }
 0x146   :  { %v4533_v50 = vadd.f32 %v3261_v48, %v2054_v56  ;;  %v3198_v51 = vpop.f32.mrb[40].mxu0 }
 0x147   :  { %v3262_v53 = vpop.f32.mrb[40].mxu1  ;;  %v3199_v54 = vpop.f32.mrb[41].mxu0 }
 0x148   :  { %v3200_v57 = vadd.f32 %v3199_v54, %v3198_v51  ;;  %v3263_v59 = vpop.f32.mrb[41].mxu1  ;;  %v3201_v60 = vpop.f32.mrb[42].mxu0 }
 0x149   :  { %v3264_v61 = vadd.f32 %v3263_v59, %v3262_v53  ;;  %v3265_v62 = vpop.f32.mrb[42].mxu1  ;;  %v3202_v0 = vpop.f32.mrb[43].mxu0 }
 0x14a   :  { %v2059_v12 = vadd.f32 %v3200_v57, %v4476_v37  ;;  %v3203_v2 = vadd.f32 %v3202_v0, %v3201_v60  ;;  %v3266_v3 = vpop.f32.mrb[43].mxu1 }
 0x14b   :  { %v3267_v4 = vadd.f32 %v3266_v3, %v3265_v62 }
 0x14c   :  { %v4536_v5 = vadd.f32 %v3264_v61, %v2059_v12  ;;  %v2062_v16 = vadd.f32 %v3203_v2, %v4485_v41 }
 0x14e   :  { %v4539_v6 = vadd.f32 %v3267_v4, %v2062_v16  ;;  %v3204_v7 = vpop.f32.mrb[44].mxu0 }
 0x14f   :  { %v3268_v8 = vpop.f32.mrb[44].mxu1  ;;  %v3205_v9 = vpop.f32.mrb[45].mxu0 }
 0x150   :  { %v3206_v11 = vadd.f32 %v3205_v9, %v3204_v7  ;;  %v3269_v14 = vpop.f32.mrb[45].mxu1  ;;  %v3207_v15 = vpop.f32.mrb[46].mxu0 }
 0x151   :  { %v3270_v17 = vadd.f32 %v3269_v14, %v3268_v8  ;;  %v3271_v18 = vpop.f32.mrb[46].mxu1  ;;  %v3208_v20 = vpop.f32.mrb[47].mxu0 }
 0x152   :  { %v2067_v37 = vadd.f32 %v3206_v11, %v4494_v63  ;;  %v3209_v22 = vadd.f32 %v3208_v20, %v3207_v15  ;;  %v3272_v23 = vpop.f32.mrb[47].mxu1 }
 0x153   :  { %v3273_v24 = vadd.f32 %v3272_v23, %v3271_v18 }
 0x154   :  { %v4542_v25 = vadd.f32 %v3270_v17, %v2067_v37  ;;  %v2070_v41 = vadd.f32 %v3209_v22, %v4497_v1 }
 0x156   :  { %v4545_v26 = vadd.f32 %v3273_v24, %v2070_v41  ;;  %v3210_v27 = vpop.f32.mrb[48].mxu0 }
 0x157   :  { %v3274_v28 = vpop.f32.mrb[48].mxu1  ;;  %v3211_v29 = vpop.f32.mrb[49].mxu0 }
 0x158   :  { %v3212_v36 = vadd.f32 %v3211_v29, %v3210_v27  ;;  %v3275_v32 = vpop.f32.mrb[49].mxu1  ;;  %v3213_v33 = vpop.f32.mrb[50].mxu0 }
 0x159   :  { %v3276_v34 = vadd.f32 %v3275_v32, %v3274_v28  ;;  %v3277_v38 = vpop.f32.mrb[50].mxu1  ;;  %v3214_v40 = vpop.f32.mrb[51].mxu0 }
 0x15a   :  { %v2075_v63 = vadd.f32 %v3212_v36, %v4500_v19  ;;  %v3215_v42 = vadd.f32 %v3214_v40, %v3213_v33  ;;  %v3278_v43 = vpop.f32.mrb[51].mxu1 }
 0x15b   :  { %v3279_v44 = vadd.f32 %v3278_v43, %v3277_v38 }
 0x15c   :  { %v4548_v45 = vadd.f32 %v3276_v34, %v2075_v63  ;;  %v2078_v1 = vadd.f32 %v3215_v42, %v4503_v21 }
 0x15e   :  { %v4551_v52 = vadd.f32 %v3279_v44, %v2078_v1  ;;  %v3216_v46 = vpop.f32.mrb[52].mxu0 }
 0x15f   :  { %v3280_v47 = vpop.f32.mrb[52].mxu1  ;;  %v3217_v48 = vpop.f32.mrb[53].mxu0 }
 0x160   :  { %v3218_v56 = vadd.f32 %v3217_v48, %v3216_v46  ;;  %v3281_v51 = vpop.f32.mrb[53].mxu1  ;;  %v3219_v53 = vpop.f32.mrb[54].mxu0 }
 0x161   :  { %v3282_v54 = vadd.f32 %v3281_v51, %v3280_v47  ;;  %v3283_v57 = vpop.f32.mrb[54].mxu1  ;;  %v3220_v59 = vpop.f32.mrb[55].mxu0 }
 0x162   :  { %v2083_v19 = vadd.f32 %v3218_v56, %v4506_v35  ;;  %v3221_v60 = vadd.f32 %v3220_v59, %v3219_v53  ;;  %v3284_v61 = vpop.f32.mrb[55].mxu1 }
 0x163   :  { %v3285_v62 = vadd.f32 %v3284_v61, %v3283_v57 }
 0x164   :  { %v4554_v0 = vadd.f32 %v3282_v54, %v2083_v19  ;;  %v2086_v21 = vadd.f32 %v3221_v60, %v4509_v39 }
 0x166   :  { %v4557_v12 = vadd.f32 %v3285_v62, %v2086_v21  ;;  %v3222_v2 = vpop.f32.mrb[56].mxu0 }
 0x167   :  { %v3286_v3 = vpop.f32.mrb[56].mxu1  ;;  %v3223_v4 = vpop.f32.mrb[57].mxu0 }
 0x168   :  { %v3224_v16 = vadd.f32 %v3223_v4, %v3222_v2  ;;  %v3287_v7 = vpop.f32.mrb[57].mxu1  ;;  %v3225_v8 = vpop.f32.mrb[58].mxu0 }
 0x169   :  { %v3288_v9 = vadd.f32 %v3287_v7, %v3286_v3  ;;  %v3289_v11 = vpop.f32.mrb[58].mxu1  ;;  %v3226_v14 = vpop.f32.mrb[59].mxu0 }
 0x16a   :  { %v2091_v35 = vadd.f32 %v3224_v16, %v4512_v55  ;;  %v3227_v15 = vadd.f32 %v3226_v14, %v3225_v8  ;;  %v3290_v17 = vpop.f32.mrb[59].mxu1 }
 0x16b   :  { %v3291_v18 = vadd.f32 %v3290_v17, %v3289_v11 }
 0x16c   :  { %v4560_v20 = vadd.f32 %v3288_v9, %v2091_v35  ;;  %v2094_v39 = vadd.f32 %v3227_v15, %v4515_v58 }
 0x16e   :  { %v4563_v37 = vadd.f32 %v3291_v18, %v2094_v39  ;;  %v3228_v22 = vpop.f32.mrb[60].mxu0 }
 0x16f   :  { %v3292_v23 = vpop.f32.mrb[60].mxu1  ;;  %v3229_v24 = vpop.f32.mrb[61].mxu0 }
 0x170   :  { %v3230_v41 = vadd.f32 %v3229_v24, %v3228_v22  ;;  %v3293_v27 = vpop.f32.mrb[61].mxu1  ;;  %v3231_v28 = vpop.f32.mrb[62].mxu0 }
 0x171   :  { %v3294_v29 = vadd.f32 %v3293_v27, %v3292_v23  ;;  %v3295_v36 = vpop.f32.mrb[62].mxu1  ;;  %v3232_v32 = vpop.f32.mrb[63].mxu0 }
 0x172   :  { %v2099_v55 = vadd.f32 %v3230_v41, %v4518_v10  ;;  %v3233_v33 = vadd.f32 %v3232_v32, %v3231_v28  ;;  %v3296_v34 = vpop.f32.mrb[63].mxu1 }
 0x173   :  { %v3297_v38 = vadd.f32 %v3296_v34, %v3295_v36 }
 0x174   :  { %v4566_v40 = vadd.f32 %v3294_v29, %v2099_v55  ;;  %v2102_v58 = vadd.f32 %v3233_v33, %v4521_v13 }
 0x176   :  { %v4569_v63 = vadd.f32 %v3297_v38, %v2102_v58  ;;  %v3314_v42 = vpop.f32.mrb[64].mxu0 }
 0x177   :  { %v3378_v43 = vpop.f32.mrb[64].mxu1  ;;  %v3315_v44 = vpop.f32.mrb[65].mxu0 }
 0x178   :  { %v3316_v1 = vadd.f32 %v3315_v44, %v3314_v42  ;;  %v3379_v46 = vpop.f32.mrb[65].mxu1  ;;  %v3317_v47 = vpop.f32.mrb[66].mxu0 }
 0x179   :  { %v3380_v48 = vadd.f32 %v3379_v46, %v3378_v43  ;;  %v3381_v56 = vpop.f32.mrb[66].mxu1  ;;  %v3318_v51 = vpop.f32.mrb[67].mxu0 }
 0x17a   :  { %v2237_v10 = vadd.f32 %v3316_v1, %v4524_v30  ;;  %v3319_v53 = vadd.f32 %v3318_v51, %v3317_v47  ;;  %v3382_v54 = vpop.f32.mrb[67].mxu1 }
 0x17b   :  { %v3383_v57 = vadd.f32 %v3382_v54, %v3381_v56 }
 0x17c   :  { %v4572_v59 = vadd.f32 %v3380_v48, %v2237_v10  ;;  %v2240_v13 = vadd.f32 %v3319_v53, %v4527_v31 }
 0x17e   :  { %v4575_v19 = vadd.f32 %v3383_v57, %v2240_v13  ;;  %v3320_v60 = vpop.f32.mrb[68].mxu0 }
 0x17f   :  { %v3384_v61 = vpop.f32.mrb[68].mxu1  ;;  %v3321_v62 = vpop.f32.mrb[69].mxu0 }
 0x180   :  { %v3322_v21 = vadd.f32 %v3321_v62, %v3320_v60  ;;  %v3385_v2 = vpop.f32.mrb[69].mxu1  ;;  %v3323_v3 = vpop.f32.mrb[70].mxu0 }
 0x181   :  { %v3386_v4 = vadd.f32 %v3385_v2, %v3384_v61  ;;  %v3387_v16 = vpop.f32.mrb[70].mxu1  ;;  %v3324_v7 = vpop.f32.mrb[71].mxu0 }
 0x182   :  { %v2245_v30 = vadd.f32 %v3322_v21, %v4530_v49  ;;  %v3325_v8 = vadd.f32 %v3324_v7, %v3323_v3  ;;  %v3388_v9 = vpop.f32.mrb[71].mxu1 }
 0x183   :  { %v3389_v11 = vadd.f32 %v3388_v9, %v3387_v16 }
 0x184   :  { %v4578_v14 = vadd.f32 %v3386_v4, %v2245_v30  ;;  %v2248_v31 = vadd.f32 %v3325_v8, %v4533_v50 }
 0x186   :  { %v4581_v35 = vadd.f32 %v3389_v11, %v2248_v31  ;;  %v3326_v15 = vpop.f32.mrb[72].mxu0 }
 0x187   :  { %v3390_v17 = vpop.f32.mrb[72].mxu1  ;;  %v3327_v18 = vpop.f32.mrb[73].mxu0 }
 0x188   :  { %v3328_v39 = vadd.f32 %v3327_v18, %v3326_v15  ;;  %v3391_v22 = vpop.f32.mrb[73].mxu1  ;;  %v3329_v23 = vpop.f32.mrb[74].mxu0 }
 0x189   :  { %v3392_v24 = vadd.f32 %v3391_v22, %v3390_v17  ;;  %v3393_v41 = vpop.f32.mrb[74].mxu1  ;;  %v3330_v27 = vpop.f32.mrb[75].mxu0 }
 0x18a   :  { %v2253_v49 = vadd.f32 %v3328_v39, %v4536_v5  ;;  %v3331_v28 = vadd.f32 %v3330_v27, %v3329_v23  ;;  %v3394_v29 = vpop.f32.mrb[75].mxu1 }
 0x18b   :  { %v3395_v36 = vadd.f32 %v3394_v29, %v3393_v41 }
 0x18c   :  { %v4584_v32 = vadd.f32 %v3392_v24, %v2253_v49  ;;  %v2256_v50 = vadd.f32 %v3331_v28, %v4539_v6 }
 0x18e   :  { %v4587_v55 = vadd.f32 %v3395_v36, %v2256_v50  ;;  %v3332_v33 = vpop.f32.mrb[76].mxu0 }
 0x18f   :  { %v3396_v34 = vpop.f32.mrb[76].mxu1  ;;  %v3333_v38 = vpop.f32.mrb[77].mxu0 }
 0x190   :  { %v3334_v58 = vadd.f32 %v3333_v38, %v3332_v33  ;;  %v3397_v42 = vpop.f32.mrb[77].mxu1  ;;  %v3335_v43 = vpop.f32.mrb[78].mxu0 }
 0x191   :  { %v3398_v44 = vadd.f32 %v3397_v42, %v3396_v34  ;;  %v3399_v1 = vpop.f32.mrb[78].mxu1  ;;  %v3336_v46 = vpop.f32.mrb[79].mxu0 }
 0x192   :  { %v2261_v5 = vadd.f32 %v3334_v58, %v4542_v25  ;;  %v3337_v47 = vadd.f32 %v3336_v46, %v3335_v43  ;;  %v3400_v48 = vpop.f32.mrb[79].mxu1 }
 0x193   :  { %v3401_v56 = vadd.f32 %v3400_v48, %v3399_v1 }
 0x194   :  { %v4590_v51 = vadd.f32 %v3398_v44, %v2261_v5  ;;  %v2264_v6 = vadd.f32 %v3337_v47, %v4545_v26 }
 0x196   :  { %v4593_v10 = vadd.f32 %v3401_v56, %v2264_v6  ;;  %v3338_v53 = vpop.f32.mrb[80].mxu0 }
 0x197   :  { %v3402_v54 = vpop.f32.mrb[80].mxu1  ;;  %v3339_v57 = vpop.f32.mrb[81].mxu0 }
 0x198   :  { %v3340_v13 = vadd.f32 %v3339_v57, %v3338_v53  ;;  %v3403_v60 = vpop.f32.mrb[81].mxu1  ;;  %v3341_v61 = vpop.f32.mrb[82].mxu0 }
 0x199   :  { %v3404_v62 = vadd.f32 %v3403_v60, %v3402_v54  ;;  %v3405_v21 = vpop.f32.mrb[82].mxu1  ;;  %v3342_v2 = vpop.f32.mrb[83].mxu0 }
 0x19a   :  { %v2269_v25 = vadd.f32 %v3340_v13, %v4548_v45  ;;  %v3343_v3 = vadd.f32 %v3342_v2, %v3341_v61  ;;  %v3406_v4 = vpop.f32.mrb[83].mxu1 }
 0x19b   :  { %v3407_v16 = vadd.f32 %v3406_v4, %v3405_v21 }
 0x19c   :  { %v4596_v7 = vadd.f32 %v3404_v62, %v2269_v25  ;;  %v2272_v26 = vadd.f32 %v3343_v3, %v4551_v52 }
 0x19e   :  { %v4599_v30 = vadd.f32 %v3407_v16, %v2272_v26  ;;  %v3344_v8 = vpop.f32.mrb[84].mxu0 }
 0x19f   :  { %v3408_v9 = vpop.f32.mrb[84].mxu1  ;;  %v3345_v11 = vpop.f32.mrb[85].mxu0 }
 0x1a0   :  { %v3346_v31 = vadd.f32 %v3345_v11, %v3344_v8  ;;  %v3409_v15 = vpop.f32.mrb[85].mxu1  ;;  %v3347_v17 = vpop.f32.mrb[86].mxu0 }
 0x1a1   :  { %v3410_v18 = vadd.f32 %v3409_v15, %v3408_v9  ;;  %v3411_v39 = vpop.f32.mrb[86].mxu1  ;;  %v3348_v22 = vpop.f32.mrb[87].mxu0 }
 0x1a2   :  { %v2277_v45 = vadd.f32 %v3346_v31, %v4554_v0  ;;  %v3349_v23 = vadd.f32 %v3348_v22, %v3347_v17  ;;  %v3412_v24 = vpop.f32.mrb[87].mxu1 }
 0x1a3   :  { %v3413_v41 = vadd.f32 %v3412_v24, %v3411_v39 }
 0x1a4   :  { %v4602_v27 = vadd.f32 %v3410_v18, %v2277_v45  ;;  %v2280_v52 = vadd.f32 %v3349_v23, %v4557_v12 }
 0x1a6   :  { %v4605_v49 = vadd.f32 %v3413_v41, %v2280_v52  ;;  %v3350_v28 = vpop.f32.mrb[88].mxu0 }
 0x1a7   :  { %v3414_v29 = vpop.f32.mrb[88].mxu1  ;;  %v3351_v36 = vpop.f32.mrb[89].mxu0 }
 0x1a8   :  { %v3352_v50 = vadd.f32 %v3351_v36, %v3350_v28  ;;  %v3415_v33 = vpop.f32.mrb[89].mxu1  ;;  %v3353_v34 = vpop.f32.mrb[90].mxu0 }
 0x1a9   :  { %v3416_v38 = vadd.f32 %v3415_v33, %v3414_v29  ;;  %v3417_v58 = vpop.f32.mrb[90].mxu1  ;;  %v3354_v42 = vpop.f32.mrb[91].mxu0 }
 0x1aa   :  { %v2285_v0 = vadd.f32 %v3352_v50, %v4560_v20  ;;  %v3355_v43 = vadd.f32 %v3354_v42, %v3353_v34  ;;  %v3418_v44 = vpop.f32.mrb[91].mxu1 }
 0x1ab   :  { %v3419_v1 = vadd.f32 %v3418_v44, %v3417_v58 }
 0x1ac   :  { %v4608_v46 = vadd.f32 %v3416_v38, %v2285_v0  ;;  %v2288_v12 = vadd.f32 %v3355_v43, %v4563_v37 }
 0x1ae   :  { %v4611_v5 = vadd.f32 %v3419_v1, %v2288_v12  ;;  %v3356_v47 = vpop.f32.mrb[92].mxu0 }
 0x1af   :  { %v3420_v48 = vpop.f32.mrb[92].mxu1  ;;  %v3357_v56 = vpop.f32.mrb[93].mxu0 }
 0x1b0   :  { %v3358_v6 = vadd.f32 %v3357_v56, %v3356_v47  ;;  %v3421_v53 = vpop.f32.mrb[93].mxu1  ;;  %v3359_v54 = vpop.f32.mrb[94].mxu0 }
 0x1b1   :  { %v3422_v57 = vadd.f32 %v3421_v53, %v3420_v48  ;;  %v3423_v13 = vpop.f32.mrb[94].mxu1  ;;  %v3360_v60 = vpop.f32.mrb[95].mxu0 }
 0x1b2   :  { %v2293_v20 = vadd.f32 %v3358_v6, %v4566_v40  ;;  %v3361_v61 = vadd.f32 %v3360_v60, %v3359_v54  ;;  %v3424_v62 = vpop.f32.mrb[95].mxu1 }
 0x1b3   :  { %v3425_v21 = vadd.f32 %v3424_v62, %v3423_v13 }
 0x1b4   :  { %v4614_v2 = vadd.f32 %v3422_v57, %v2293_v20  ;;  %v2296_v37 = vadd.f32 %v3361_v61, %v4569_v63 }
 0x1b6   :  { %v4617_v25 = vadd.f32 %v3425_v21, %v2296_v37  ;;  %v3442_v3 = vpop.f32.mrb[96].mxu0 }
 0x1b7   :  { %v3506_v4 = vpop.f32.mrb[96].mxu1  ;;  %v3443_v16 = vpop.f32.mrb[97].mxu0 }
 0x1b8   :  { %v3444_v26 = vadd.f32 %v3443_v16, %v3442_v3  ;;  %v3507_v8 = vpop.f32.mrb[97].mxu1  ;;  %v3445_v9 = vpop.f32.mrb[98].mxu0 }
 0x1b9   :  { %v3508_v11 = vadd.f32 %v3507_v8, %v3506_v4  ;;  %v3509_v31 = vpop.f32.mrb[98].mxu1  ;;  %v3446_v15 = vpop.f32.mrb[99].mxu0 }
 0x1ba   :  { %v2431_v40 = vadd.f32 %v3444_v26, %v4572_v59  ;;  %v3447_v17 = vadd.f32 %v3446_v15, %v3445_v9  ;;  %v3510_v18 = vpop.f32.mrb[99].mxu1 }
 0x1bb   :  { %v3511_v39 = vadd.f32 %v3510_v18, %v3509_v31 }
 0x1bc   :  { %v2528_v22 = vadd.f32 %v3508_v11, %v2431_v40  ;;  %v2434_v45 = vadd.f32 %v3447_v17, %v4575_v19 }
 0x1be   :  { %v2590_v63 = vmul.f32 0.2, %v2528_v22  ;;  %v2531_v23 = vadd.f32 %v3511_v39, %v2434_v45  ;;  %v3448_v24 = vpop.f32.mrb[100].mxu0 }
 0x1bf   :  { %v3512_v41 = vpop.f32.mrb[100].mxu1  ;;  %v3449_v52 = vpop.f32.mrb[101].mxu0 }
 0x1c0   :  { %v2591_v28 = vmul.f32 0.2, %v2531_v23  ;;  %v3450_v29 = vadd.f32 %v3449_v52, %v3448_v24  ;;  %v3513_v36 = vpop.f32.mrb[101].mxu1  ;;  %v3451_v50 = vpop.f32.mrb[102].mxu0  ;;  %v2606_v58 = vmax.f32 %v2528_v22, %v2590_v63 }
 0x1c1   :  { %v3514_v33 = vadd.f32 %v3513_v36, %v3512_v41  ;;  %v3515_v34 = vpop.f32.mrb[102].mxu1  ;;  %v3452_v38 = vpop.f32.mrb[103].mxu0 }
 0x1c2   :  { %v2607_v59 = vmax.f32 %v2531_v23, %v2591_v28  ;;  %v2439_v42 = vadd.f32 %v3450_v29, %v4578_v14  ;;  %v3453_v0 = vadd.f32 %v3452_v38, %v3451_v50  ;;  %v3516_v43 = vpop.f32.mrb[103].mxu1 }
 0x1c3   :  { %v3517_v44 = vadd.f32 %v3516_v43, %v3515_v34 }
 0x1c4   :  { %v2998_v19 = vpack.c.bf16 %v2607_v59, %v2606_v58  ;;  %v2536_v1 = vadd.f32 %v3514_v33, %v2439_v42  ;;  %v2442_v12 = vadd.f32 %v3453_v0, %v4581_v35 }
 0x1c6   :  { %2999 = vst [vmem:[%s4662_s3] sm:$0xff] %v2998_v19   ;;  %v2592_v47 = vmul.f32 0.2, %v2536_v1  ;;  %v2539_v48 = vadd.f32 %v3517_v44, %v2442_v12  ;;  %v3454_v56 = vpop.f32.mrb[104].mxu0 }
 0x1c7   :  { %v3518_v6 = vpop.f32.mrb[104].mxu1  ;;  %v3455_v53 = vpop.f32.mrb[105].mxu0 }
 0x1c8   :  { %v2593_v54 = vmul.f32 0.2, %v2539_v48  ;;  %v3456_v57 = vadd.f32 %v3455_v53, %v3454_v56  ;;  %v3519_v13 = vpop.f32.mrb[105].mxu1  ;;  %v3457_v14 = vpop.f32.mrb[106].mxu0  ;;  %v2608_v62 = vmax.f32 %v2536_v1, %v2592_v47 }
 0x1c9   :  { %v3520_v60 = vadd.f32 %v3519_v13, %v3518_v6  ;;  %v3521_v20 = vpop.f32.mrb[106].mxu1  ;;  %v3458_v61 = vpop.f32.mrb[107].mxu0 }
 0x1ca   :  { %v2609_v21 = vmax.f32 %v2539_v48, %v2593_v54  ;;  %v2447_v35 = vadd.f32 %v3456_v57, %v4584_v32  ;;  %v3459_v37 = vadd.f32 %v3458_v61, %v3457_v14  ;;  %v3522_v3 = vpop.f32.mrb[107].mxu1 }
 0x1cb   :  { %v3523_v4 = vadd.f32 %v3522_v3, %v3521_v20 }
 0x1cc   :  { %v3003_v16 = vpack.c.bf16 %v2609_v21, %v2608_v62  ;;  %v2544_v26 = vadd.f32 %v3520_v60, %v2447_v35  ;;  %v2450_v8 = vadd.f32 %v3459_v37, %v4587_v55 }
 0x1ce   :  { %3035 = vst [vmem:[%s4662_s3 + $0x8] sm:$0xff] %v3003_v16   ;;  %v2594_v9 = vmul.f32 0.2, %v2544_v26  ;;  %v2547_v11 = vadd.f32 %v3523_v4, %v2450_v8  ;;  %v3460_v31 = vpop.f32.mrb[108].mxu0 }
 0x1cf   :  { %v3524_v15 = vpop.f32.mrb[108].mxu1  ;;  %v3461_v40 = vpop.f32.mrb[109].mxu0 }
 0x1d0   :  { %v2595_v17 = vmul.f32 0.2, %v2547_v11  ;;  %v3462_v18 = vadd.f32 %v3461_v40, %v3460_v31  ;;  %v3525_v39 = vpop.f32.mrb[109].mxu1  ;;  %v3463_v32 = vpop.f32.mrb[110].mxu0  ;;  %v2610_v23 = vmax.f32 %v2544_v26, %v2594_v9 }
 0x1d1   :  { %v3526_v22 = vadd.f32 %v3525_v39, %v3524_v15  ;;  %v3527_v45 = vpop.f32.mrb[110].mxu1  ;;  %v3464_v63 = vpop.f32.mrb[111].mxu0 }
 0x1d2   :  { %v2611_v24 = vmax.f32 %v2547_v11, %v2595_v17  ;;  %v2455_v55 = vadd.f32 %v3462_v18, %v4590_v51  ;;  %v3465_v41 = vadd.f32 %v3464_v63, %v3463_v32  ;;  %v3528_v52 = vpop.f32.mrb[111].mxu1 }
 0x1d3   :  { %v3529_v28 = vadd.f32 %v3528_v52, %v3527_v45 }
 0x1d4   :  { %v3008_v29 = vpack.c.bf16 %v2611_v24, %v2610_v23  ;;  %v2552_v36 = vadd.f32 %v3526_v22, %v2455_v55  ;;  %v2458_v50 = vadd.f32 %v3465_v41, %v4593_v10 }
 0x1d6   :  { %3036 = vst [vmem:[%s4662_s3 + $0x10] sm:$0xff] %v3008_v29   ;;  %v2596_v33 = vmul.f32 0.2, %v2552_v36  ;;  %v2555_v34 = vadd.f32 %v3529_v28, %v2458_v50  ;;  %v3466_v38 = vpop.f32.mrb[112].mxu0 }
 0x1d7   :  { %v3530_v58 = vpop.f32.mrb[112].mxu1  ;;  %v3467_v59 = vpop.f32.mrb[113].mxu0 }
 0x1d8   :  { %v2597_v42 = vmul.f32 0.2, %v2555_v34  ;;  %v3468_v0 = vadd.f32 %v3467_v59, %v3466_v38  ;;  %v3531_v43 = vpop.f32.mrb[113].mxu1  ;;  %v3469_v51 = vpop.f32.mrb[114].mxu0  ;;  %v2612_v12 = vmax.f32 %v2552_v36, %v2596_v33 }
 0x1d9   :  { %v3532_v44 = vadd.f32 %v3531_v43, %v3530_v58  ;;  %v3533_v19 = vpop.f32.mrb[114].mxu1  ;;  %v3470_v1 = vpop.f32.mrb[115].mxu0 }
 0x1da   :  { %v2613_v47 = vmax.f32 %v2555_v34, %v2597_v42  ;;  %v2463_v10 = vadd.f32 %v3468_v0, %v4596_v7  ;;  %v3471_v48 = vadd.f32 %v3470_v1, %v3469_v51  ;;  %v3534_v56 = vpop.f32.mrb[115].mxu1 }
 0x1db   :  { %v3535_v6 = vadd.f32 %v3534_v56, %v3533_v19 }
 0x1dc   :  { %v3013_v53 = vpack.c.bf16 %v2613_v47, %v2612_v12  ;;  %v2560_v54 = vadd.f32 %v3532_v44, %v2463_v10  ;;  %v2466_v57 = vadd.f32 %v3471_v48, %v4599_v30 }
 0x1de   :  { %3037 = vst [vmem:[%s4662_s3 + $0x18] sm:$0xff] %v3013_v53   ;;  %v2598_v13 = vmul.f32 0.2, %v2560_v54  ;;  %v2563_v14 = vadd.f32 %v3535_v6, %v2466_v57  ;;  %v3472_v60 = vpop.f32.mrb[116].mxu0 }
 0x1df   :  { %v3536_v20 = vpop.f32.mrb[116].mxu1  ;;  %v3473_v61 = vpop.f32.mrb[117].mxu0 }
 0x1e0   :  { %v2599_v62 = vmul.f32 0.2, %v2563_v14  ;;  %v3474_v21 = vadd.f32 %v3473_v61, %v3472_v60  ;;  %v3537_v35 = vpop.f32.mrb[117].mxu1  ;;  %v3475_v7 = vpop.f32.mrb[118].mxu0  ;;  %v2614_v16 = vmax.f32 %v2560_v54, %v2598_v13 }
 0x1e1   :  { %v3538_v37 = vadd.f32 %v3537_v35, %v3536_v20  ;;  %v3539_v3 = vpop.f32.mrb[118].mxu1  ;;  %v3476_v4 = vpop.f32.mrb[119].mxu0 }
 0x1e2   :  { %v2615_v26 = vmax.f32 %v2563_v14, %v2599_v62  ;;  %v2471_v30 = vadd.f32 %v3474_v21, %v4602_v27  ;;  %v3477_v8 = vadd.f32 %v3476_v4, %v3475_v7  ;;  %v3540_v9 = vpop.f32.mrb[119].mxu1 }
 0x1e3   :  { %v3541_v11 = vadd.f32 %v3540_v9, %v3539_v3 }
 0x1e4   :  { %v3018_v31 = vpack.c.bf16 %v2615_v26, %v2614_v16  ;;  %v2568_v15 = vadd.f32 %v3538_v37, %v2471_v30  ;;  %v2474_v40 = vadd.f32 %v3477_v8, %v4605_v49 }
 0x1e6   :  { %3038 = vst [vmem:[%s4662_s3 + $0x20] sm:$0xff] %v3018_v31   ;;  %v2600_v17 = vmul.f32 0.2, %v2568_v15  ;;  %v2571_v18 = vadd.f32 %v3541_v11, %v2474_v40  ;;  %v3478_v39 = vpop.f32.mrb[120].mxu0 }
 0x1e7   :  { %v3542_v32 = vpop.f32.mrb[120].mxu1  ;;  %v3479_v22 = vpop.f32.mrb[121].mxu0 }
 0x1e8   :  { %v2601_v45 = vmul.f32 0.2, %v2571_v18  ;;  %v3480_v63 = vadd.f32 %v3479_v22, %v3478_v39  ;;  %v3543_v23 = vpop.f32.mrb[121].mxu1  ;;  %v3481_v27 = vpop.f32.mrb[122].mxu0  ;;  %v2616_v52 = vmax.f32 %v2568_v15, %v2600_v17 }
 0x1e9   :  { %v3544_v24 = vadd.f32 %v3543_v23, %v3542_v32  ;;  %v3545_v55 = vpop.f32.mrb[122].mxu1  ;;  %v3482_v41 = vpop.f32.mrb[123].mxu0 }
 0x1ea   :  { %v2617_v28 = vmax.f32 %v2571_v18, %v2601_v45  ;;  %v2479_v49 = vadd.f32 %v3480_v63, %v4608_v46  ;;  %v3483_v29 = vadd.f32 %v3482_v41, %v3481_v27  ;;  %v3546_v36 = vpop.f32.mrb[123].mxu1 }
 0x1eb   :  { %v3547_v50 = vadd.f32 %v3546_v36, %v3545_v55 }
 0x1ec   :  { %v3023_v33 = vpack.c.bf16 %v2617_v28, %v2616_v52  ;;  %v2576_v34 = vadd.f32 %v3544_v24, %v2479_v49  ;;  %v2482_v38 = vadd.f32 %v3483_v29, %v4611_v5 }
 0x1ee   :  { %3039 = vst [vmem:[%s4662_s3 + $0x28] sm:$0xff] %v3023_v33   ;;  %v2602_v58 = vmul.f32 0.2, %v2576_v34  ;;  %v2579_v59 = vadd.f32 %v3547_v50, %v2482_v38  ;;  %v3484_v42 = vpop.f32.mrb[124].mxu0 }
 0x1ef   :  { %v3548_v0 = vpop.f32.mrb[124].mxu1  ;;  %v3485_v43 = vpop.f32.mrb[125].mxu0 }
 0x1f0   :  { %v2603_v51 = vmul.f32 0.2, %v2579_v59  ;;  %v3486_v44 = vadd.f32 %v3485_v43, %v3484_v42  ;;  %v3549_v19 = vpop.f32.mrb[125].mxu1  ;;  %v3487_v46 = vpop.f32.mrb[126].mxu0  ;;  %v2618_v10 = vmax.f32 %v2576_v34, %v2602_v58 }
 0x1f1   :  { %v3550_v1 = vadd.f32 %v3549_v19, %v3548_v0  ;;  %v3551_v12 = vpop.f32.mrb[126].mxu1  ;;  %v3488_v47 = vpop.f32.mrb[127].mxu0 }
 0x1f2   :  { %v2619_v48 = vmax.f32 %v2579_v59, %v2603_v51  ;;  %v2487_v5 = vadd.f32 %v3486_v44, %v4614_v2  ;;  %v3489_v56 = vadd.f32 %v3488_v47, %v3487_v46  ;;  %v3552_v6 = vpop.f32.mrb[127].mxu1 }
 0x1f3   :  { %v3553_v53 = vadd.f32 %v3552_v6, %v3551_v12 }
 0x1f4   :  { %v3028_v54 = vpack.c.bf16 %v2619_v48, %v2618_v10  ;;  %v2584_v57 = vadd.f32 %v3550_v1, %v2487_v5  ;;  %v2490_v13 = vadd.f32 %v3489_v56, %v4617_v25 }
 0x1f6   :  { %3040 = vst [vmem:[%s4662_s3 + $0x30] sm:$0xff] %v3028_v54   ;;  %v2604_v14 = vmul.f32 0.2, %v2584_v57  ;;  %v2587_v60 = vadd.f32 %v3553_v53, %v2490_v13 }
 0x1f8   :  { %v2605_v20 = vmul.f32 0.2, %v2587_v60  ;;  %v2620_v61 = vmax.f32 %v2584_v57, %v2604_v14 }
 0x1fa   :  { %v2621_v62 = vmax.f32 %v2587_v60, %v2605_v20 }
 0x1fc   :  { %v3033_v21 = vpack.c.bf16 %v2621_v62, %v2620_v61 }
 0x1fe   :  { %3041 = vst [vmem:[%s4662_s3 + $0x38] sm:$0xff] %v3033_v21  }

// kernel: _lambda_.10
= control target key start
LH: loop header
LB: loop body
LE: loop exit
PB: predicated region body
PF: predicated region fallthrough
CT: control target
= control target key end

     0   :  { %s2703_s1 = inlined_call_operand.vmem [shape: bf16[2048,128], index: 1, kind: input, shape index: {}]   ;;  %s2704_s0 = inlined_call_operand.vmem [shape: bf16[32,2048], index: 0, kind: input, shape index: {}]   ;;  %s2705_s2 = inlined_call_operand.vmem [shape: f32[1,128], index: 2, kind: input, shape index: {}]   ;;  %s2706_s3 = inlined_call_operand.vmem [shape: bf16[32,128], index: 3, kind: output, shape index: {}]  }
   0x1   :  { %v2066_v0 = vld [vmem:[%s2703_s1 + $0x40] sm:$0xff]   ;;  %v2070_v4 = vld [vmem:[%s2703_s1 + $0x48] sm:$0xff]   ;;  %v2074_v8 = vld [vmem:[%s2703_s1 + $0x50] sm:$0xff]  }
   0x2   :  { %v2067_v1 = vld [vmem:[%s2703_s1 + $0xc0] sm:$0xff]   ;;  %1842 = vmatprep.subr.bf16.mxu0 %v2066_v0  ;;  %v2071_v5 = vld [vmem:[%s2703_s1 + $0xc8] sm:$0xff]   ;;  %v2075_v9 = vld [vmem:[%s2703_s1 + $0xd0] sm:$0xff]  }
   0x3   :  { %v2068_v2 = vld [vmem:[%s2703_s1] sm:$0xff]   ;;  %1870 = vmatprep.subr.bf16.mxu1 %v2067_v1  ;;  %v2072_v6 = vld [vmem:[%s2703_s1 + $0x8] sm:$0xff]   ;;  %v2076_v10 = vld [vmem:[%s2703_s1 + $0x10] sm:$0xff]  }
   0x4   :  { %v2069_v3 = vld [vmem:[%s2703_s1 + $0x80] sm:$0xff]   ;;  %1843 = vmatpush3.bf16.msra.mxu0 %v2068_v2  ;;  %v2073_v7 = vld [vmem:[%s2703_s1 + $0x88] sm:$0xff]   ;;  %v2077_v11 = vld [vmem:[%s2703_s1 + $0x90] sm:$0xff]  }
   0x5   :  { %1871 = vmatpush3.bf16.msra.mxu1 %v2069_v3  ;;  %1844 = vmatprep.subr.bf16.mxu0 %v2070_v4  ;;  %v2078_v12 = vld [vmem:[%s2703_s1 + $0x58] sm:$0xff]   ;;  %v2082_v16 = vld [vmem:[%s2703_s1 + $0x60] sm:$0xff]   ;;  %v2086_v20 = vld [vmem:[%s2703_s1 + $0x68] sm:$0xff]  }
   0x6   :  { %1872 = vmatprep.subr.bf16.mxu1 %v2071_v5  ;;  %v2079_v13 = vld [vmem:[%s2703_s1 + $0xd8] sm:$0xff]   ;;  %v2083_v17 = vld [vmem:[%s2703_s1 + $0xe0] sm:$0xff]   ;;  %v2087_v21 = vld [vmem:[%s2703_s1 + $0xe8] sm:$0xff]  }
   0x7   :  { %v2080_v14 = vld [vmem:[%s2703_s1 + $0x18] sm:$0xff]   ;;  %v2084_v18 = vld [vmem:[%s2703_s1 + $0x20] sm:$0xff]   ;;  %v2088_v22 = vld [vmem:[%s2703_s1 + $0x28] sm:$0xff]  }
   0x8   :  { %1845 = vmatpush3.bf16.msra.mxu0 %v2072_v6  ;;  %v2081_v15 = vld [vmem:[%s2703_s1 + $0x98] sm:$0xff]   ;;  %v2085_v19 = vld [vmem:[%s2703_s1 + $0xa0] sm:$0xff]   ;;  %v2089_v23 = vld [vmem:[%s2703_s1 + $0xa8] sm:$0xff]  }
   0x9   :  { %1873 = vmatpush3.bf16.msra.mxu1 %v2073_v7  ;;  %1846 = vmatprep.subr.bf16.mxu0 %v2074_v8  ;;  %v2090_v24 = vld [vmem:[%s2703_s1 + $0x70] sm:$0xff]   ;;  %v2094_v28 = vld [vmem:[%s2703_s1 + $0x78] sm:$0xff]   ;;  %v15_v32 = vld [vmem:[%s2704_s0] sm:$0xff] }
   0xa   :  { %1874 = vmatprep.subr.bf16.mxu1 %v2075_v9  ;;  %v2091_v25 = vld [vmem:[%s2703_s1 + $0xf0] sm:$0xff]   ;;  %v2095_v29 = vld [vmem:[%s2703_s1 + $0xf8] sm:$0xff]   ;;  %v23_v33 = vld [vmem:[%s2704_s0 + $0x40] sm:$0xff] }
   0xb   :  { %v2092_v26 = vld [vmem:[%s2703_s1 + $0x30] sm:$0xff]   ;;  %v2096_v30 = vld [vmem:[%s2703_s1 + $0x38] sm:$0xff]   ;;  %v16_v34 = vld [vmem:[%s2704_s0 + $0x8] sm:$0xff]  ;;  %v1663_v35 = vcombine.low %v15_v32, %v23_v33  ;;  %v1664_v36 = vcombine.high %v15_v32, %v23_v33 }
   0xc   :  { %1847 = vmatpush3.bf16.msra.mxu0 %v2076_v10  ;;  %v2093_v27 = vld [vmem:[%s2703_s1 + $0xb0] sm:$0xff]   ;;  %v2097_v31 = vld [vmem:[%s2703_s1 + $0xb8] sm:$0xff]   ;;  %v24_v37 = vld [vmem:[%s2704_s0 + $0x48] sm:$0xff] }
   0xd   :  { %1875 = vmatpush3.bf16.msra.mxu1 %v2077_v11  ;;  %1848 = vmatprep.subr.bf16.mxu0 %v2078_v12  ;;  %v1665_v38 = vcombine.low %v16_v34, %v24_v37  ;;  %v1666_v39 = vcombine.high %v16_v34, %v24_v37  ;;  %v2098_v40 = vld [vmem:[%s2703_s1 + $0x140] sm:$0xff]   ;;  %v2102_v44 = vld [vmem:[%s2703_s1 + $0x148] sm:$0xff]   ;;  %v2106_v48 = vld [vmem:[%s2703_s1 + $0x150] sm:$0xff]  }
   0xe   :  { %1876 = vmatprep.subr.bf16.mxu1 %v2079_v13  ;;  %1270 = vmatprep.mubr.bf16.mxu0 %v1664_v36  ;;  %v2099_v41 = vld [vmem:[%s2703_s1 + $0x1c0] sm:$0xff]   ;;  %v2103_v45 = vld [vmem:[%s2703_s1 + $0x1c8] sm:$0xff]   ;;  %v2107_v49 = vld [vmem:[%s2703_s1 + $0x1d0] sm:$0xff]  }
   0xf   :  { %1319 = vmatprep.mubr.bf16.mxu1 %v1666_v39  ;;  %v2100_v42 = vld [vmem:[%s2703_s1 + $0x100] sm:$0xff]   ;;  %v2104_v46 = vld [vmem:[%s2703_s1 + $0x108] sm:$0xff]   ;;  %v2108_v50 = vld [vmem:[%s2703_s1 + $0x110] sm:$0xff]  }
  0x10   :  { %1849 = vmatpush3.bf16.msra.mxu0 %v2080_v14  ;;  %v2101_v43 = vld [vmem:[%s2703_s1 + $0x180] sm:$0xff]   ;;  %v2105_v47 = vld [vmem:[%s2703_s1 + $0x188] sm:$0xff]   ;;  %v2109_v51 = vld [vmem:[%s2703_s1 + $0x190] sm:$0xff]  }
  0x11   :  { %1877 = vmatpush3.bf16.msra.mxu1 %v2081_v15  ;;  %1850 = vmatprep.subr.bf16.mxu0 %v2082_v16  ;;  %v2110_v52 = vld [vmem:[%s2703_s1 + $0x158] sm:$0xff]   ;;  %v2114_v56 = vld [vmem:[%s2703_s1 + $0x160] sm:$0xff]   ;;  %v2118_v60 = vld [vmem:[%s2703_s1 + $0x168] sm:$0xff]  }
  0x12   :  { %1878 = vmatprep.subr.bf16.mxu1 %v2083_v17  ;;  %v2111_v53 = vld [vmem:[%s2703_s1 + $0x1d8] sm:$0xff]   ;;  %v2115_v57 = vld [vmem:[%s2703_s1 + $0x1e0] sm:$0xff]   ;;  %v2119_v61 = vld [vmem:[%s2703_s1 + $0x1e8] sm:$0xff]  }
  0x13   :  { %v2112_v54 = vld [vmem:[%s2703_s1 + $0x118] sm:$0xff]   ;;  %v2116_v58 = vld [vmem:[%s2703_s1 + $0x120] sm:$0xff]   ;;  %v2120_v1 = vld [vmem:[%s2703_s1 + $0x128] sm:$0xff]  }
  0x14   :  { %1851 = vmatpush3.bf16.msra.mxu0 %v2084_v18  ;;  %v2113_v55 = vld [vmem:[%s2703_s1 + $0x198] sm:$0xff]   ;;  %v2117_v59 = vld [vmem:[%s2703_s1 + $0x1a0] sm:$0xff]   ;;  %v2121_v3 = vld [vmem:[%s2703_s1 + $0x1a8] sm:$0xff]  }
  0x15   :  { %1879 = vmatpush3.bf16.msra.mxu1 %v2085_v19  ;;  %1852 = vmatprep.subr.bf16.mxu0 %v2086_v20  ;;  %v31_v62 = vld [vmem:[%s2704_s0 + $0x80] sm:$0xff]  ;;  %v32_v4 = vld [vmem:[%s2704_s0 + $0x88] sm:$0xff]  ;;  %v2122_v8 = vld [vmem:[%s2703_s1 + $0x170] sm:$0xff]  }
  0x16   :  { %1880 = vmatprep.subr.bf16.mxu1 %v2087_v21  ;;  %v39_v63 = vld [vmem:[%s2704_s0 + $0xc0] sm:$0xff]  ;;  %v40_v5 = vld [vmem:[%s2704_s0 + $0xc8] sm:$0xff]  ;;  %v2123_v9 = vld [vmem:[%s2703_s1 + $0x1f0] sm:$0xff]  }
  0x17   :  { %v1680_v0 = vcombine.high %v31_v62, %v39_v63  ;;  %v1679_v2 = vcombine.low %v31_v62, %v39_v63  ;;  %v1682_v6 = vcombine.high %v32_v4, %v40_v5  ;;  %v1681_v7 = vcombine.low %v32_v4, %v40_v5  ;;  %v2124_v10 = vld [vmem:[%s2703_s1 + $0x130] sm:$0xff]   ;;  %v2126_v12 = vld [vmem:[%s2703_s1 + $0x178] sm:$0xff]   ;;  %v20_v4 = vld [vmem:[%s2704_s0 + $0x28] sm:$0xff] }
  0x18   :  { %1853 = vmatpush3.bf16.msra.mxu0 %v2088_v22  ;;  %v2125_v11 = vld [vmem:[%s2703_s1 + $0x1b0] sm:$0xff]   ;;  %v2127_v13 = vld [vmem:[%s2703_s1 + $0x1f8] sm:$0xff]   ;;  %v28_v5 = vld [vmem:[%s2704_s0 + $0x68] sm:$0xff] }
  0x19   :  { %1881 = vmatpush3.bf16.msra.mxu1 %v2089_v23  ;;  %1854 = vmatprep.subr.bf16.mxu0 %v2090_v24  ;;  %v2128_v14 = vld [vmem:[%s2703_s1 + $0x138] sm:$0xff]   ;;  %v17_v16 = vld [vmem:[%s2704_s0 + $0x10] sm:$0xff]  ;;  %v2130_v24 = vld [vmem:[%s2703_s1 + $0x240] sm:$0xff]  }
  0x1a   :  { %1882 = vmatprep.subr.bf16.mxu1 %v2091_v25  ;;  %v2129_v15 = vld [vmem:[%s2703_s1 + $0x1b8] sm:$0xff]   ;;  %v25_v17 = vld [vmem:[%s2704_s0 + $0x50] sm:$0xff]  ;;  %v2131_v25 = vld [vmem:[%s2703_s1 + $0x2c0] sm:$0xff]  }
  0x1b   :  { %v18_v18 = vld [vmem:[%s2704_s0 + $0x18] sm:$0xff]  ;;  %v1667_v20 = vcombine.low %v17_v16, %v25_v17  ;;  %v1668_v21 = vcombine.high %v17_v16, %v25_v17  ;;  %v33_v32 = vld [vmem:[%s2704_s0 + $0x90] sm:$0xff]  ;;  %v35_v16 = vld [vmem:[%s2704_s0 + $0xa0] sm:$0xff] }
  0x1c   :  { %1855 = vmatpush3.bf16.msra.mxu0 %v2092_v26  ;;  %v26_v19 = vld [vmem:[%s2704_s0 + $0x58] sm:$0xff]  ;;  %v2132_v26 = vld [vmem:[%s2703_s1 + $0x200] sm:$0xff]   ;;  %v41_v33 = vld [vmem:[%s2704_s0 + $0xd0] sm:$0xff] }
  0x1d   :  { %1883 = vmatpush3.bf16.msra.mxu1 %v2093_v27  ;;  %1856 = vmatprep.subr.bf16.mxu0 %v2094_v28  ;;  %v1669_v22 = vcombine.low %v18_v18, %v26_v19  ;;  %v1670_v23 = vcombine.high %v18_v18, %v26_v19  ;;  %v2133_v27 = vld [vmem:[%s2703_s1 + $0x280] sm:$0xff]   ;;  %v2134_v28 = vld [vmem:[%s2703_s1 + $0x248] sm:$0xff]   ;;  %v1684_v34 = vcombine.high %v33_v32, %v41_v33  ;;  %v2138_v36 = vld [vmem:[%s2703_s1 + $0x250] sm:$0xff]  }
  0x1e   :  { %1884 = vmatprep.subr.bf16.mxu1 %v2095_v29  ;;  %v2135_v29 = vld [vmem:[%s2703_s1 + $0x2c8] sm:$0xff]   ;;  %v2139_v37 = vld [vmem:[%s2703_s1 + $0x2d0] sm:$0xff]   ;;  %v42_v39 = vld [vmem:[%s2704_s0 + $0xd8] sm:$0xff] }
  0x1f   :  { %v2160_v62 = vld [vmem:[%s2703_s1 + $0x238] sm:$0xff]   ;;  %v43_v17 = vld [vmem:[%s2704_s0 + $0xe0] sm:$0xff] }
  0x20   :  { %1857 = vmatpush3.bf16.msra.mxu0 %v2096_v30  ;;  %v2136_v30 = vld [vmem:[%s2703_s1 + $0x208] sm:$0xff]   ;;  %v2161_v63 = vld [vmem:[%s2703_s1 + $0x2b8] sm:$0xff]   ;;  %v1688_v18 = vcombine.high %v35_v16, %v43_v17  ;;  %v1687_v19 = vcombine.low %v35_v16, %v43_v17 }
  0x21   :  { %1885 = vmatpush3.bf16.msra.mxu1 %v2097_v31  ;;  %1898 = vmatprep.subr.bf16.mxu0 %v2098_v40  ;;  %v2137_v31 = vld [vmem:[%s2703_s1 + $0x288] sm:$0xff]  }
  0x22   :  { %1926 = vmatprep.subr.bf16.mxu1 %v2099_v41  ;;  %v2140_v41 = vld [vmem:[%s2703_s1 + $0x210] sm:$0xff]  }
  0x23   :  { %1271 = vmatmul.mubr.bf16.vlgmr.msra.gmra.mrb[0].mxu0 %v1663_v35  ;;  %v1683_v35 = vcombine.low %v33_v32, %v41_v33  ;;  %v2178_v32 = vld [vmem:[%s2703_s1 + $0x360] sm:$0xff]  }
  0x24   :  { %1320 = vmatmul.mubr.bf16.vlgmr.msra.gmra.mrb[0].mxu1 %v1665_v38  ;;  %1899 = vmatpush3.bf16.msra.mxu0 %v2100_v42  ;;  %v34_v38 = vld [vmem:[%s2704_s0 + $0x98] sm:$0xff]  ;;  %v2179_v33 = vld [vmem:[%s2703_s1 + $0x3e0] sm:$0xff]  }
  0x25   :  { %1927 = vmatpush3.bf16.msra.mxu1 %v2101_v43  ;;  %1900 = vmatprep.subr.bf16.mxu0 %v2102_v44  ;;  %v1686_v40 = vcombine.high %v34_v38, %v42_v39  ;;  %v1685_v42 = vcombine.low %v34_v38, %v42_v39  ;;  %v2141_v43 = vld [vmem:[%s2703_s1 + $0x290] sm:$0xff]   ;;  %v2142_v44 = vld [vmem:[%s2703_s1 + $0x258] sm:$0xff]   ;;  %v2184_v38 = vld [vmem:[%s2703_s1 + $0x328] sm:$0xff]  }
  0x26   :  { %1928 = vmatprep.subr.bf16.mxu1 %v2103_v45  ;;  %1278 = vmatprep.mubr.bf16.mxu0 %v1680_v0  ;;  %v2143_v45 = vld [vmem:[%s2703_s1 + $0x2d8] sm:$0xff]   ;;  %v19_v0 = vld [vmem:[%s2704_s0 + $0x20] sm:$0xff]  ;;  %v2185_v39 = vld [vmem:[%s2703_s1 + $0x3a8] sm:$0xff]  }
  0x27   :  { %1327 = vmatprep.mubr.bf16.mxu1 %v1682_v6  ;;  %v1673_v6 = vcombine.low %v20_v4, %v28_v5 }
  0x28   :  { %1901 = vmatpush3.bf16.msra.mxu0 %v2104_v46  ;;  %v2144_v46 = vld [vmem:[%s2703_s1 + $0x218] sm:$0xff]  }
  0x29   :  { %1929 = vmatpush3.bf16.msra.mxu1 %v2105_v47  ;;  %1902 = vmatprep.subr.bf16.mxu0 %v2106_v48  ;;  %v2145_v47 = vld [vmem:[%s2703_s1 + $0x298] sm:$0xff]   ;;  %v2146_v48 = vld [vmem:[%s2703_s1 + $0x260] sm:$0xff]  }
  0x2a   :  { %1930 = vmatprep.subr.bf16.mxu1 %v2107_v49  ;;  %v2147_v49 = vld [vmem:[%s2703_s1 + $0x2e0] sm:$0xff]  }
  0x2b   :  { %1279 = vmatmul.mubr.bf16.gmra.mrb[4].mxu0 %v1679_v2 }
  0x2c   :  { %1903 = vmatpush3.bf16.msra.mxu0 %v2108_v50  ;;  %1328 = vmatmul.mubr.bf16.gmra.mrb[4].mxu1 %v1681_v7  ;;  %v2148_v50 = vld [vmem:[%s2703_s1 + $0x220] sm:$0xff]   ;;  %v1674_v7 = vcombine.high %v20_v4, %v28_v5 }
  0x2d   :  { %1931 = vmatpush3.bf16.msra.mxu1 %v2109_v51  ;;  %1904 = vmatprep.subr.bf16.mxu0 %v2110_v52  ;;  %v2149_v51 = vld [vmem:[%s2703_s1 + $0x2a0] sm:$0xff]   ;;  %v2150_v52 = vld [vmem:[%s2703_s1 + $0x268] sm:$0xff]  }
  0x2e   :  { %1932 = vmatprep.subr.bf16.mxu1 %v2111_v53  ;;  %1368 = vmatprep.mubr.bf16.mxu0 %v1668_v21  ;;  %v2151_v53 = vld [vmem:[%s2703_s1 + $0x2e8] sm:$0xff]   ;;  %v2171_v21 = vld [vmem:[%s2703_s1 + $0x3d0] sm:$0xff]  }
  0x2f   :  { %1417 = vmatprep.mubr.bf16.mxu1 %v1670_v23  ;;  %v44_v23 = vld [vmem:[%s2704_s0 + $0xe8] sm:$0xff] }
  0x30   :  { %1905 = vmatpush3.bf16.msra.mxu0 %v2112_v54  ;;  %v2152_v54 = vld [vmem:[%s2703_s1 + $0x228] sm:$0xff]  }
  0x31   :  { %1933 = vmatpush3.bf16.msra.mxu1 %v2113_v55  ;;  %1906 = vmatprep.subr.bf16.mxu0 %v2114_v56  ;;  %v2153_v55 = vld [vmem:[%s2703_s1 + $0x2a8] sm:$0xff]   ;;  %v2154_v56 = vld [vmem:[%s2703_s1 + $0x270] sm:$0xff]  }
  0x32   :  { %1934 = vmatprep.subr.bf16.mxu1 %v2115_v57  ;;  %v2155_v57 = vld [vmem:[%s2703_s1 + $0x2f0] sm:$0xff]  }
  0x34   :  { %1907 = vmatpush3.bf16.msra.mxu0 %v2116_v58  ;;  %v2156_v58 = vld [vmem:[%s2703_s1 + $0x230] sm:$0xff]  }
  0x35   :  { %1935 = vmatpush3.bf16.msra.mxu1 %v2117_v59  ;;  %1908 = vmatprep.subr.bf16.mxu0 %v2118_v60  ;;  %v2157_v59 = vld [vmem:[%s2703_s1 + $0x2b0] sm:$0xff]   ;;  %v2158_v60 = vld [vmem:[%s2703_s1 + $0x278] sm:$0xff]  }
  0x36   :  { %1936 = vmatprep.subr.bf16.mxu1 %v2119_v61  ;;  %v2159_v61 = vld [vmem:[%s2703_s1 + $0x2f8] sm:$0xff]  }
  0x38   :  { %1909 = vmatpush3.bf16.msra.mxu0 %v2120_v1  ;;  %v27_v1 = vld [vmem:[%s2704_s0 + $0x60] sm:$0xff] }
  0x39   :  { %1937 = vmatpush3.bf16.msra.mxu1 %v2121_v3  ;;  %1910 = vmatprep.subr.bf16.mxu0 %v2122_v8  ;;  %v1671_v2 = vcombine.low %v19_v0, %v27_v1  ;;  %v1672_v3 = vcombine.high %v19_v0, %v27_v1  ;;  %v2162_v8 = vld [vmem:[%s2703_s1 + $0x340] sm:$0xff]  }
  0x3a   :  { %1938 = vmatprep.subr.bf16.mxu1 %v2123_v9  ;;  %v2163_v9 = vld [vmem:[%s2703_s1 + $0x3c0] sm:$0xff]  }
  0x3c   :  { %1911 = vmatpush3.bf16.msra.mxu0 %v2124_v10  ;;  %v2164_v10 = vld [vmem:[%s2703_s1 + $0x300] sm:$0xff]  }
  0x3d   :  { %1939 = vmatpush3.bf16.msra.mxu1 %v2125_v11  ;;  %1912 = vmatprep.subr.bf16.mxu0 %v2126_v12  ;;  %v2165_v11 = vld [vmem:[%s2703_s1 + $0x380] sm:$0xff]   ;;  %v2166_v12 = vld [vmem:[%s2703_s1 + $0x348] sm:$0xff]  }
  0x3e   :  { %1940 = vmatprep.subr.bf16.mxu1 %v2127_v13  ;;  %v2167_v13 = vld [vmem:[%s2703_s1 + $0x3c8] sm:$0xff]  }
  0x40   :  { %1913 = vmatpush3.bf16.msra.mxu0 %v2128_v14  ;;  %v2168_v14 = vld [vmem:[%s2703_s1 + $0x308] sm:$0xff]  }
  0x41   :  { %1941 = vmatpush3.bf16.msra.mxu1 %v2129_v15  ;;  %1954 = vmatprep.subr.bf16.mxu0 %v2130_v24  ;;  %v2169_v15 = vld [vmem:[%s2703_s1 + $0x388] sm:$0xff]  }
  0x42   :  { %1982 = vmatprep.subr.bf16.mxu1 %v2131_v25  ;;  %v2172_v25 = vld [vmem:[%s2703_s1 + $0x310] sm:$0xff]  }
  0x43   :  { %1369 = vmatmul.mubr.bf16.vlgmr.msra.gmra.mrb[8].mxu0 %v1667_v20  ;;  %v2170_v20 = vld [vmem:[%s2703_s1 + $0x350] sm:$0xff]  }
  0x44   :  { %1418 = vmatmul.mubr.bf16.vlgmr.msra.gmra.mrb[8].mxu1 %v1669_v22  ;;  %1955 = vmatpush3.bf16.msra.mxu0 %v2132_v26  ;;  %v36_v22 = vld [vmem:[%s2704_s0 + $0xa8] sm:$0xff] }
  0x45   :  { %1983 = vmatpush3.bf16.msra.mxu1 %v2133_v27  ;;  %1956 = vmatprep.subr.bf16.mxu0 %v2134_v28  ;;  %v1690_v24 = vcombine.high %v36_v22, %v44_v23  ;;  %v1689_v26 = vcombine.low %v36_v22, %v44_v23  ;;  %v2173_v27 = vld [vmem:[%s2703_s1 + $0x390] sm:$0xff]   ;;  %v2174_v28 = vld [vmem:[%s2703_s1 + $0x358] sm:$0xff]  }
  0x46   :  { %1984 = vmatprep.subr.bf16.mxu1 %v2135_v29  ;;  %1376 = vmatprep.mubr.bf16.mxu0 %v1684_v34  ;;  %v2175_v29 = vld [vmem:[%s2703_s1 + $0x3d8] sm:$0xff]   ;;  %v2180_v34 = vld [vmem:[%s2703_s1 + $0x320] sm:$0xff]  }
  0x47   :  { %1425 = vmatprep.mubr.bf16.mxu1 %v1686_v40  ;;  %v2186_v40 = vld [vmem:[%s2703_s1 + $0x370] sm:$0xff]  }
  0x48   :  { %1957 = vmatpush3.bf16.msra.mxu0 %v2136_v30  ;;  %v2176_v30 = vld [vmem:[%s2703_s1 + $0x318] sm:$0xff]  }
  0x49   :  { %1985 = vmatpush3.bf16.msra.mxu1 %v2137_v31  ;;  %1958 = vmatprep.subr.bf16.mxu0 %v2138_v36  ;;  %v2177_v31 = vld [vmem:[%s2703_s1 + $0x398] sm:$0xff]   ;;  %v2182_v36 = vld [vmem:[%s2703_s1 + $0x368] sm:$0xff]  }
  0x4a   :  { %1986 = vmatprep.subr.bf16.mxu1 %v2139_v37  ;;  %v2183_v37 = vld [vmem:[%s2703_s1 + $0x3e8] sm:$0xff]  }
  0x4b   :  { %1377 = vmatmul.mubr.bf16.gmra.mrb[12].mxu0 %v1683_v35  ;;  %v2181_v35 = vld [vmem:[%s2703_s1 + $0x3a0] sm:$0xff]  }
  0x4c   :  { %1959 = vmatpush3.bf16.msra.mxu0 %v2140_v41  ;;  %1426 = vmatmul.mubr.bf16.gmra.mrb[12].mxu1 %v1685_v42  ;;  %v2187_v41 = vld [vmem:[%s2703_s1 + $0x3f0] sm:$0xff]  }
  0x4d   :  { %1987 = vmatpush3.bf16.msra.mxu1 %v2141_v43  ;;  %1960 = vmatprep.subr.bf16.mxu0 %v2142_v44  ;;  %v2188_v42 = vld [vmem:[%s2703_s1 + $0x330] sm:$0xff]   ;;  %v2190_v44 = vld [vmem:[%s2703_s1 + $0x378] sm:$0xff]  }
  0x4e   :  { %1988 = vmatprep.subr.bf16.mxu1 %v2143_v45  ;;  %1466 = vmatprep.mubr.bf16.mxu0 %v1672_v3  ;;  %v2189_v43 = vld [vmem:[%s2703_s1 + $0x3b0] sm:$0xff]   ;;  %v2191_v45 = vld [vmem:[%s2703_s1 + $0x3f8] sm:$0xff]  }
  0x4f   :  { %1515 = vmatprep.mubr.bf16.mxu1 %v1674_v7 }
  0x50   :  { %1961 = vmatpush3.bf16.msra.mxu0 %v2144_v46  ;;  %v2192_v46 = vld [vmem:[%s2703_s1 + $0x338] sm:$0xff]  }
  0x51   :  { %1989 = vmatpush3.bf16.msra.mxu1 %v2145_v47  ;;  %1962 = vmatprep.subr.bf16.mxu0 %v2146_v48  ;;  %v2193_v47 = vld [vmem:[%s2703_s1 + $0x3b8] sm:$0xff]   ;;  %v21_v48 = vld [vmem:[%s2704_s0 + $0x30] sm:$0xff] }
  0x52   :  { %1990 = vmatprep.subr.bf16.mxu1 %v2147_v49  ;;  %v29_v49 = vld [vmem:[%s2704_s0 + $0x70] sm:$0xff] }
  0x54   :  { %1963 = vmatpush3.bf16.msra.mxu0 %v2148_v50  ;;  %v22_v50 = vld [vmem:[%s2704_s0 + $0x38] sm:$0xff] }
  0x55   :  { %1991 = vmatpush3.bf16.msra.mxu1 %v2149_v51  ;;  %1964 = vmatprep.subr.bf16.mxu0 %v2150_v52  ;;  %v1675_v51 = vcombine.low %v21_v48, %v29_v49  ;;  %v1676_v52 = vcombine.high %v21_v48, %v29_v49 }
  0x56   :  { %1992 = vmatprep.subr.bf16.mxu1 %v2151_v53  ;;  %v30_v53 = vld [vmem:[%s2704_s0 + $0x78] sm:$0xff] }
  0x58   :  { %1965 = vmatpush3.bf16.msra.mxu0 %v2152_v54  ;;  %v37_v54 = vld [vmem:[%s2704_s0 + $0xb0] sm:$0xff] }
  0x59   :  { %1993 = vmatpush3.bf16.msra.mxu1 %v2153_v55  ;;  %1966 = vmatprep.subr.bf16.mxu0 %v2154_v56  ;;  %v45_v55 = vld [vmem:[%s2704_s0 + $0xf0] sm:$0xff]  ;;  %v1677_v56 = vcombine.low %v22_v50, %v30_v53 }
  0x5a   :  { %1994 = vmatprep.subr.bf16.mxu1 %v2155_v57  ;;  %v1678_v57 = vcombine.high %v22_v50, %v30_v53 }
  0x5c   :  { %1967 = vmatpush3.bf16.msra.mxu0 %v2156_v58  ;;  %v1692_v58 = vcombine.high %v37_v54, %v45_v55 }
  0x5d   :  { %1995 = vmatpush3.bf16.msra.mxu1 %v2157_v59  ;;  %1968 = vmatprep.subr.bf16.mxu0 %v2158_v60  ;;  %v38_v59 = vld [vmem:[%s2704_s0 + $0xb8] sm:$0xff] }
  0x5e   :  { %1996 = vmatprep.subr.bf16.mxu1 %v2159_v61  ;;  %v46_v60 = vld [vmem:[%s2704_s0 + $0xf8] sm:$0xff] }
  0x5f   :  { %v1694_v61 = vcombine.high %v38_v59, %v46_v60 }
  0x60   :  { %1969 = vmatpush3.bf16.msra.mxu0 %v2160_v62  ;;  %v1691_v62 = vcombine.low %v37_v54, %v45_v55 }
  0x61   :  { %1997 = vmatpush3.bf16.msra.mxu1 %v2161_v63  ;;  %2010 = vmatprep.subr.bf16.mxu0 %v2162_v8  ;;  %v1693_v63 = vcombine.low %v38_v59, %v46_v60 }
  0x62   :  { %2038 = vmatprep.subr.bf16.mxu1 %v2163_v9 }
  0x63   :  { %1467 = vmatmul.mubr.bf16.vlgmr.msra.gmra.mrb[16].mxu0 %v1671_v2  ;;  %v1662_v2 = vld [vmem:[%s2705_s2] ss:$0 sm:$0xff] }
  0x64   :  { %1516 = vmatmul.mubr.bf16.vlgmr.msra.gmra.mrb[16].mxu1 %v1673_v6  ;;  %2011 = vmatpush3.bf16.msra.mxu0 %v2164_v10 }
  0x65   :  { %2039 = vmatpush3.bf16.msra.mxu1 %v2165_v11  ;;  %2012 = vmatprep.subr.bf16.mxu0 %v2166_v12 }
  0x66   :  { %2040 = vmatprep.subr.bf16.mxu1 %v2167_v13  ;;  %1474 = vmatprep.mubr.bf16.mxu0 %v1688_v18 }
  0x67   :  { %1523 = vmatprep.mubr.bf16.mxu1 %v1690_v24 }
  0x68   :  { %2013 = vmatpush3.bf16.msra.mxu0 %v2168_v14 }
  0x69   :  { %2041 = vmatpush3.bf16.msra.mxu1 %v2169_v15  ;;  %2014 = vmatprep.subr.bf16.mxu0 %v2170_v20 }
  0x6a   :  { %2042 = vmatprep.subr.bf16.mxu1 %v2171_v21 }
  0x6b   :  { %1475 = vmatmul.mubr.bf16.gmra.mrb[20].mxu0 %v1687_v19 }
  0x6c   :  { %2015 = vmatpush3.bf16.msra.mxu0 %v2172_v25  ;;  %1524 = vmatmul.mubr.bf16.gmra.mrb[20].mxu1 %v1689_v26 }
  0x6d   :  { %2043 = vmatpush3.bf16.msra.mxu1 %v2173_v27  ;;  %2016 = vmatprep.subr.bf16.mxu0 %v2174_v28 }
  0x6e   :  { %2044 = vmatprep.subr.bf16.mxu1 %v2175_v29  ;;  %1564 = vmatprep.mubr.bf16.mxu0 %v1676_v52 }
  0x6f   :  { %1613 = vmatprep.mubr.bf16.mxu1 %v1678_v57 }
  0x70   :  { %2017 = vmatpush3.bf16.msra.mxu0 %v2176_v30 }
  0x71   :  { %2045 = vmatpush3.bf16.msra.mxu1 %v2177_v31  ;;  %2018 = vmatprep.subr.bf16.mxu0 %v2178_v32 }
  0x72   :  { %2046 = vmatprep.subr.bf16.mxu1 %v2179_v33 }
  0x74   :  { %2019 = vmatpush3.bf16.msra.mxu0 %v2180_v34 }
  0x75   :  { %2047 = vmatpush3.bf16.msra.mxu1 %v2181_v35  ;;  %2020 = vmatprep.subr.bf16.mxu0 %v2182_v36 }
  0x76   :  { %2048 = vmatprep.subr.bf16.mxu1 %v2183_v37 }
  0x78   :  { %2021 = vmatpush3.bf16.msra.mxu0 %v2184_v38 }
  0x79   :  { %2049 = vmatpush3.bf16.msra.mxu1 %v2185_v39  ;;  %2022 = vmatprep.subr.bf16.mxu0 %v2186_v40 }
  0x7a   :  { %2050 = vmatprep.subr.bf16.mxu1 %v2187_v41 }
  0x7c   :  { %2023 = vmatpush3.bf16.msra.mxu0 %v2188_v42 }
  0x7d   :  { %2051 = vmatpush3.bf16.msra.mxu1 %v2189_v43  ;;  %2024 = vmatprep.subr.bf16.mxu0 %v2190_v44 }
  0x7e   :  { %2052 = vmatprep.subr.bf16.mxu1 %v2191_v45 }
  0x80   :  { %2025 = vmatpush3.bf16.msra.mxu0 %v2192_v46 }
  0x81   :  { %2053 = vmatpush3.bf16.msra.mxu1 %v2193_v47 }
  0x83   :  { %1565 = vmatmul.mubr.bf16.vlgmr.msra.gmra.mrb[24].mxu0 %v1675_v51 }
  0x84   :  { %1614 = vmatmul.mubr.bf16.vlgmr.msra.gmra.mrb[24].mxu1 %v1677_v56  ;;  %1572 = vmatprep.mubr.bf16.mxu0 %v1692_v58 }
  0x85   :  { %1621 = vmatprep.mubr.bf16.mxu1 %v1694_v61 }
  0x8b   :  { %1573 = vmatmul.mubr.bf16.gmra.mrb[28].mxu0 %v1691_v62 }
  0x8c   :  { %1622 = vmatmul.mubr.bf16.gmra.mrb[28].mxu1 %v1693_v63 }
  0xf6   :  { %v1858_v0 = vpop.f32.mrb[0].mxu0 }
  0xf7   :  { %v1886_v1 = vpop.f32.mrb[0].mxu1  ;;  %v1859_v3 = vpop.f32.mrb[1].mxu0 }
  0xf8   :  { %v1860_v4 = vadd.f32 %v1859_v3, %v1858_v0  ;;  %v1887_v5 = vpop.f32.mrb[1].mxu1  ;;  %v1861_v6 = vpop.f32.mrb[2].mxu0 }
  0xf9   :  { %v1888_v7 = vadd.f32 %v1887_v5, %v1886_v1  ;;  %v1889_v8 = vpop.f32.mrb[2].mxu1  ;;  %v1862_v9 = vpop.f32.mrb[3].mxu0 }
  0xfa   :  { %v1273_v10 = vadd.f32 %v1860_v4, %v1662_v2  ;;  %v1863_v11 = vadd.f32 %v1862_v9, %v1861_v6  ;;  %v1890_v12 = vpop.f32.mrb[3].mxu1 }
  0xfb   :  { %v1891_v13 = vadd.f32 %v1890_v12, %v1889_v8 }
  0xfc   :  { %v1322_v14 = vadd.f32 %v1888_v7, %v1273_v10  ;;  %v1276_v15 = vadd.f32 %v1863_v11, %v1662_v2 }
  0xfe   :  { %v1325_v16 = vadd.f32 %v1891_v13, %v1276_v15  ;;  %v1864_v17 = vpop.f32.mrb[4].mxu0 }
  0xff   :  { %v1865_v18 = vpop.f32.mrb[5].mxu0  ;;  %v1892_v21 = vpop.f32.mrb[4].mxu1 }
 0x100   :  { %v1866_v19 = vadd.f32 %v1865_v18, %v1864_v17  ;;  %v1867_v20 = vpop.f32.mrb[6].mxu0  ;;  %v1893_v25 = vpop.f32.mrb[5].mxu1 }
 0x101   :  { %v1868_v22 = vpop.f32.mrb[7].mxu0  ;;  %v1894_v26 = vadd.f32 %v1893_v25, %v1892_v21  ;;  %v1895_v27 = vpop.f32.mrb[6].mxu1 }
 0x102   :  { %v1281_v23 = vadd.f32 %v1866_v19, %v1662_v2  ;;  %v1869_v24 = vadd.f32 %v1868_v22, %v1867_v20  ;;  %v1896_v29 = vpop.f32.mrb[7].mxu1 }
 0x103   :  { %v1897_v31 = vadd.f32 %v1896_v29, %v1895_v27 }
 0x104   :  { %v1284_v28 = vadd.f32 %v1869_v24, %v1662_v2  ;;  %v1330_v30 = vadd.f32 %v1894_v26, %v1281_v23 }
 0x106   :  { %v1333_v32 = vadd.f32 %v1897_v31, %v1284_v28 }
 0x116   :  { %v1914_v33 = vpop.f32.mrb[8].mxu0 }
 0x117   :  { %v1942_v34 = vpop.f32.mrb[8].mxu1  ;;  %v1915_v35 = vpop.f32.mrb[9].mxu0 }
 0x118   :  { %v1943_v36 = vpop.f32.mrb[9].mxu1  ;;  %v1916_v37 = vadd.f32 %v1915_v35, %v1914_v33  ;;  %v1917_v39 = vpop.f32.mrb[10].mxu0 }
 0x119   :  { %v1944_v38 = vadd.f32 %v1943_v36, %v1942_v34  ;;  %v1945_v40 = vpop.f32.mrb[10].mxu1  ;;  %v1918_v41 = vpop.f32.mrb[11].mxu0 }
 0x11a   :  { %v1946_v42 = vpop.f32.mrb[11].mxu1  ;;  %v1371_v43 = vadd.f32 %v1916_v37, %v1322_v14  ;;  %v1919_v44 = vadd.f32 %v1918_v41, %v1917_v39 }
 0x11b   :  { %v1947_v45 = vadd.f32 %v1946_v42, %v1945_v40 }
 0x11c   :  { %v1420_v46 = vadd.f32 %v1944_v38, %v1371_v43  ;;  %v1374_v47 = vadd.f32 %v1919_v44, %v1325_v16 }
 0x11e   :  { %v1423_v48 = vadd.f32 %v1947_v45, %v1374_v47  ;;  %v1920_v49 = vpop.f32.mrb[12].mxu0 }
 0x11f   :  { %v1921_v50 = vpop.f32.mrb[13].mxu0  ;;  %v1948_v55 = vpop.f32.mrb[12].mxu1 }
 0x120   :  { %v1922_v51 = vadd.f32 %v1921_v50, %v1920_v49  ;;  %v1923_v52 = vpop.f32.mrb[14].mxu0  ;;  %v1949_v57 = vpop.f32.mrb[13].mxu1 }
 0x121   :  { %v1924_v53 = vpop.f32.mrb[15].mxu0  ;;  %v1950_v59 = vadd.f32 %v1949_v57, %v1948_v55  ;;  %v1951_v60 = vpop.f32.mrb[14].mxu1 }
 0x122   :  { %v1379_v54 = vadd.f32 %v1922_v51, %v1330_v30  ;;  %v1925_v56 = vadd.f32 %v1924_v53, %v1923_v52  ;;  %v1952_v61 = vpop.f32.mrb[15].mxu1 }
 0x123   :  { %v1953_v63 = vadd.f32 %v1952_v61, %v1951_v60 }
 0x124   :  { %v1382_v58 = vadd.f32 %v1925_v56, %v1333_v32  ;;  %v1428_v62 = vadd.f32 %v1950_v59, %v1379_v54 }
 0x126   :  { %v1431_v0 = vadd.f32 %v1953_v63, %v1382_v58 }
 0x136   :  { %v1970_v1 = vpop.f32.mrb[16].mxu0 }
 0x137   :  { %v1998_v2 = vpop.f32.mrb[16].mxu1  ;;  %v1971_v3 = vpop.f32.mrb[17].mxu0 }
 0x138   :  { %v1972_v4 = vadd.f32 %v1971_v3, %v1970_v1  ;;  %v1999_v5 = vpop.f32.mrb[17].mxu1  ;;  %v1973_v6 = vpop.f32.mrb[18].mxu0 }
 0x139   :  { %v2000_v7 = vadd.f32 %v1999_v5, %v1998_v2  ;;  %v2001_v8 = vpop.f32.mrb[18].mxu1  ;;  %v1974_v9 = vpop.f32.mrb[19].mxu0 }
 0x13a   :  { %v1469_v10 = vadd.f32 %v1972_v4, %v1420_v46  ;;  %v1975_v11 = vadd.f32 %v1974_v9, %v1973_v6  ;;  %v2002_v12 = vpop.f32.mrb[19].mxu1 }
 0x13b   :  { %v2003_v13 = vadd.f32 %v2002_v12, %v2001_v8 }
 0x13c   :  { %v1518_v14 = vadd.f32 %v2000_v7, %v1469_v10  ;;  %v1472_v15 = vadd.f32 %v1975_v11, %v1423_v48 }
 0x13e   :  { %v1521_v16 = vadd.f32 %v2003_v13, %v1472_v15  ;;  %v1976_v17 = vpop.f32.mrb[20].mxu0 }
 0x13f   :  { %v1977_v18 = vpop.f32.mrb[21].mxu0  ;;  %v2004_v21 = vpop.f32.mrb[20].mxu1 }
 0x140   :  { %v1978_v19 = vadd.f32 %v1977_v18, %v1976_v17  ;;  %v1979_v20 = vpop.f32.mrb[22].mxu0  ;;  %v2005_v25 = vpop.f32.mrb[21].mxu1 }
 0x141   :  { %v1980_v22 = vpop.f32.mrb[23].mxu0  ;;  %v2006_v26 = vadd.f32 %v2005_v25, %v2004_v21  ;;  %v2007_v27 = vpop.f32.mrb[22].mxu1 }
 0x142   :  { %v1477_v23 = vadd.f32 %v1978_v19, %v1428_v62  ;;  %v1981_v24 = vadd.f32 %v1980_v22, %v1979_v20  ;;  %v2008_v29 = vpop.f32.mrb[23].mxu1 }
 0x143   :  { %v2009_v31 = vadd.f32 %v2008_v29, %v2007_v27 }
 0x144   :  { %v1480_v28 = vadd.f32 %v1981_v24, %v1431_v0  ;;  %v1526_v30 = vadd.f32 %v2006_v26, %v1477_v23 }
 0x146   :  { %v1529_v32 = vadd.f32 %v2009_v31, %v1480_v28 }
 0x156   :  { %v2026_v33 = vpop.f32.mrb[24].mxu0 }
 0x157   :  { %v2054_v34 = vpop.f32.mrb[24].mxu1  ;;  %v2027_v35 = vpop.f32.mrb[25].mxu0 }
 0x158   :  { %v2028_v36 = vadd.f32 %v2027_v35, %v2026_v33  ;;  %v2055_v37 = vpop.f32.mrb[25].mxu1  ;;  %v2029_v38 = vpop.f32.mrb[26].mxu0 }
 0x159   :  { %v2056_v39 = vadd.f32 %v2055_v37, %v2054_v34  ;;  %v2057_v40 = vpop.f32.mrb[26].mxu1  ;;  %v2030_v41 = vpop.f32.mrb[27].mxu0 }
 0x15a   :  { %v1567_v42 = vadd.f32 %v2028_v36, %v1518_v14  ;;  %v2031_v43 = vadd.f32 %v2030_v41, %v2029_v38  ;;  %v2058_v44 = vpop.f32.mrb[27].mxu1 }
 0x15b   :  { %v2059_v45 = vadd.f32 %v2058_v44, %v2057_v40 }
 0x15c   :  { %v1616_v46 = vadd.f32 %v2056_v39, %v1567_v42  ;;  %v1570_v47 = vadd.f32 %v2031_v43, %v1521_v16 }
 0x15e   :  { %v1630_v48 = vmul.f32 0.2, %v1616_v46  ;;  %v1619_v49 = vadd.f32 %v2059_v45, %v1570_v47  ;;  %v2032_v50 = vpop.f32.mrb[28].mxu0 }
 0x15f   :  { %v2060_v51 = vpop.f32.mrb[28].mxu1  ;;  %v2033_v52 = vpop.f32.mrb[29].mxu0 }
 0x160   :  { %v1631_v53 = vmul.f32 0.2, %v1619_v49  ;;  %v2034_v54 = vadd.f32 %v2033_v52, %v2032_v50  ;;  %v2061_v55 = vpop.f32.mrb[29].mxu1  ;;  %v2035_v56 = vpop.f32.mrb[30].mxu0  ;;  %v1634_v60 = vmax.f32 %v1616_v46, %v1630_v48 }
 0x161   :  { %v2062_v57 = vadd.f32 %v2061_v55, %v2060_v51  ;;  %v2063_v58 = vpop.f32.mrb[30].mxu1  ;;  %v2036_v59 = vpop.f32.mrb[31].mxu0 }
 0x162   :  { %v1635_v61 = vmax.f32 %v1619_v49, %v1631_v53  ;;  %v1575_v62 = vadd.f32 %v2034_v54, %v1526_v30  ;;  %v2037_v63 = vadd.f32 %v2036_v59, %v2035_v56  ;;  %v2064_v0 = vpop.f32.mrb[31].mxu1 }
 0x163   :  { %v2065_v1 = vadd.f32 %v2064_v0, %v2063_v58 }
 0x164   :  { %v1834_v2 = vpack.c.bf16 %v1635_v61, %v1634_v60  ;;  %v1624_v3 = vadd.f32 %v2062_v57, %v1575_v62  ;;  %v1578_v4 = vadd.f32 %v2037_v63, %v1529_v32 }
 0x166   :  { %1835 = vst [vmem:[%s2706_s3] sm:$0xff] %v1834_v2   ;;  %v1632_v5 = vmul.f32 0.2, %v1624_v3  ;;  %v1627_v6 = vadd.f32 %v2065_v1, %v1578_v4 }
 0x168   :  { %v1633_v7 = vmul.f32 0.2, %v1627_v6  ;;  %v1636_v8 = vmax.f32 %v1624_v3, %v1632_v5 }
 0x16a   :  { %v1637_v9 = vmax.f32 %v1627_v6, %v1633_v7 }
 0x16c   :  { %v1839_v10 = vpack.c.bf16 %v1637_v9, %v1636_v8 }
 0x16e   :  { %1841 = vst [vmem:[%s2706_s3 + $0x8] sm:$0xff] %v1839_v10  }

// kernel: _lambda_.11
= control target key start
LH: loop header
LB: loop body
LE: loop exit
PB: predicated region body
PF: predicated region fallthrough
CT: control target
= control target key end

     0   :  { %s2404_s1 = inlined_call_operand.vmem [shape: bf16[2048,128], index: 1, kind: input, shape index: {}]   ;;  %s2405_s0 = inlined_call_operand.vmem [shape: bf16[16,2048], index: 0, kind: input, shape index: {}]   ;;  %s2406_s2 = inlined_call_operand.vmem [shape: f32[1,128], index: 2, kind: input, shape index: {}]   ;;  %s2407_s3 = inlined_call_operand.vmem [shape: bf16[16,128], index: 3, kind: output, shape index: {}]  }
   0x1   :  { %v1818_v0 = vld [vmem:[%s2404_s1 + $0x40] sm:$0xff]   ;;  %v1822_v4 = vld [vmem:[%s2404_s1 + $0x48] sm:$0xff]   ;;  %v1826_v8 = vld [vmem:[%s2404_s1 + $0x50] sm:$0xff]  }
   0x2   :  { %v1819_v1 = vld [vmem:[%s2404_s1 + $0xc0] sm:$0xff]   ;;  %1642 = vmatprep.subr.bf16.mxu0 %v1818_v0  ;;  %v1823_v5 = vld [vmem:[%s2404_s1 + $0xc8] sm:$0xff]   ;;  %v1827_v9 = vld [vmem:[%s2404_s1 + $0xd0] sm:$0xff]  }
   0x3   :  { %v1820_v2 = vld [vmem:[%s2404_s1] sm:$0xff]   ;;  %1664 = vmatprep.subr.bf16.mxu1 %v1819_v1  ;;  %v1824_v6 = vld [vmem:[%s2404_s1 + $0x8] sm:$0xff]   ;;  %v1828_v10 = vld [vmem:[%s2404_s1 + $0x10] sm:$0xff]  }
   0x4   :  { %v1821_v3 = vld [vmem:[%s2404_s1 + $0x80] sm:$0xff]   ;;  %1643 = vmatpush3.bf16.msra.mxu0 %v1820_v2  ;;  %v1825_v7 = vld [vmem:[%s2404_s1 + $0x88] sm:$0xff]   ;;  %v1829_v11 = vld [vmem:[%s2404_s1 + $0x90] sm:$0xff]  }
   0x5   :  { %1665 = vmatpush3.bf16.msra.mxu1 %v1821_v3  ;;  %1644 = vmatprep.subr.bf16.mxu0 %v1822_v4  ;;  %v1830_v12 = vld [vmem:[%s2404_s1 + $0x58] sm:$0xff]   ;;  %v1834_v16 = vld [vmem:[%s2404_s1 + $0x60] sm:$0xff]   ;;  %v1838_v20 = vld [vmem:[%s2404_s1 + $0x68] sm:$0xff]  }
   0x6   :  { %1666 = vmatprep.subr.bf16.mxu1 %v1823_v5  ;;  %v1831_v13 = vld [vmem:[%s2404_s1 + $0xd8] sm:$0xff]   ;;  %v1835_v17 = vld [vmem:[%s2404_s1 + $0xe0] sm:$0xff]   ;;  %v1839_v21 = vld [vmem:[%s2404_s1 + $0xe8] sm:$0xff]  }
   0x7   :  { %v1832_v14 = vld [vmem:[%s2404_s1 + $0x18] sm:$0xff]   ;;  %v1836_v18 = vld [vmem:[%s2404_s1 + $0x20] sm:$0xff]   ;;  %v1840_v22 = vld [vmem:[%s2404_s1 + $0x28] sm:$0xff]  }
   0x8   :  { %1645 = vmatpush3.bf16.msra.mxu0 %v1824_v6  ;;  %v1833_v15 = vld [vmem:[%s2404_s1 + $0x98] sm:$0xff]   ;;  %v1837_v19 = vld [vmem:[%s2404_s1 + $0xa0] sm:$0xff]   ;;  %v1841_v23 = vld [vmem:[%s2404_s1 + $0xa8] sm:$0xff]  }
   0x9   :  { %1667 = vmatpush3.bf16.msra.mxu1 %v1825_v7  ;;  %1646 = vmatprep.subr.bf16.mxu0 %v1826_v8  ;;  %v1842_v24 = vld [vmem:[%s2404_s1 + $0x70] sm:$0xff]   ;;  %v1846_v28 = vld [vmem:[%s2404_s1 + $0x78] sm:$0xff]   ;;  %v15_v32 = vld [vmem:[%s2405_s0] sm:$0xff] }
   0xa   :  { %1668 = vmatprep.subr.bf16.mxu1 %v1827_v9  ;;  %v1843_v25 = vld [vmem:[%s2404_s1 + $0xf0] sm:$0xff]   ;;  %v1847_v29 = vld [vmem:[%s2404_s1 + $0xf8] sm:$0xff]   ;;  %v23_v33 = vld [vmem:[%s2405_s0 + $0x40] sm:$0xff] }
   0xb   :  { %v1844_v26 = vld [vmem:[%s2404_s1 + $0x30] sm:$0xff]   ;;  %v1848_v30 = vld [vmem:[%s2404_s1 + $0x38] sm:$0xff]   ;;  %v16_v34 = vld [vmem:[%s2405_s0 + $0x8] sm:$0xff]  ;;  %v1489_v35 = vcombine.low %v15_v32, %v23_v33  ;;  %v1490_v36 = vcombine.high %v15_v32, %v23_v33 }
   0xc   :  { %1647 = vmatpush3.bf16.msra.mxu0 %v1828_v10  ;;  %v1845_v27 = vld [vmem:[%s2404_s1 + $0xb0] sm:$0xff]   ;;  %v1849_v31 = vld [vmem:[%s2404_s1 + $0xb8] sm:$0xff]   ;;  %v24_v37 = vld [vmem:[%s2405_s0 + $0x48] sm:$0xff] }
   0xd   :  { %1669 = vmatpush3.bf16.msra.mxu1 %v1829_v11  ;;  %1648 = vmatprep.subr.bf16.mxu0 %v1830_v12  ;;  %v1491_v38 = vcombine.low %v16_v34, %v24_v37  ;;  %v1492_v39 = vcombine.high %v16_v34, %v24_v37  ;;  %v1850_v40 = vld [vmem:[%s2404_s1 + $0x140] sm:$0xff]   ;;  %v1854_v44 = vld [vmem:[%s2404_s1 + $0x148] sm:$0xff]   ;;  %v1858_v48 = vld [vmem:[%s2404_s1 + $0x150] sm:$0xff]  }
   0xe   :  { %1670 = vmatprep.subr.bf16.mxu1 %v1831_v13  ;;  %1174 = vmatprep.mubr.bf16.mxu0 %v1490_v36  ;;  %v1851_v41 = vld [vmem:[%s2404_s1 + $0x1c0] sm:$0xff]   ;;  %v1855_v45 = vld [vmem:[%s2404_s1 + $0x1c8] sm:$0xff]   ;;  %v1859_v49 = vld [vmem:[%s2404_s1 + $0x1d0] sm:$0xff]  }
   0xf   :  { %1215 = vmatprep.mubr.bf16.mxu1 %v1492_v39  ;;  %v1852_v42 = vld [vmem:[%s2404_s1 + $0x100] sm:$0xff]   ;;  %v1856_v46 = vld [vmem:[%s2404_s1 + $0x108] sm:$0xff]   ;;  %v1860_v50 = vld [vmem:[%s2404_s1 + $0x110] sm:$0xff]  }
  0x10   :  { %1649 = vmatpush3.bf16.msra.mxu0 %v1832_v14  ;;  %v1853_v43 = vld [vmem:[%s2404_s1 + $0x180] sm:$0xff]   ;;  %v1857_v47 = vld [vmem:[%s2404_s1 + $0x188] sm:$0xff]   ;;  %v1861_v51 = vld [vmem:[%s2404_s1 + $0x190] sm:$0xff]  }
  0x11   :  { %1671 = vmatpush3.bf16.msra.mxu1 %v1833_v15  ;;  %1650 = vmatprep.subr.bf16.mxu0 %v1834_v16  ;;  %v1862_v52 = vld [vmem:[%s2404_s1 + $0x158] sm:$0xff]   ;;  %v1866_v56 = vld [vmem:[%s2404_s1 + $0x160] sm:$0xff]   ;;  %v1870_v60 = vld [vmem:[%s2404_s1 + $0x168] sm:$0xff]  }
  0x12   :  { %1672 = vmatprep.subr.bf16.mxu1 %v1835_v17  ;;  %v1863_v53 = vld [vmem:[%s2404_s1 + $0x1d8] sm:$0xff]   ;;  %v1867_v57 = vld [vmem:[%s2404_s1 + $0x1e0] sm:$0xff]   ;;  %v1871_v61 = vld [vmem:[%s2404_s1 + $0x1e8] sm:$0xff]  }
  0x13   :  { %v1864_v54 = vld [vmem:[%s2404_s1 + $0x118] sm:$0xff]   ;;  %v1868_v58 = vld [vmem:[%s2404_s1 + $0x120] sm:$0xff]   ;;  %v1872_v62 = vld [vmem:[%s2404_s1 + $0x128] sm:$0xff]  }
  0x14   :  { %1651 = vmatpush3.bf16.msra.mxu0 %v1836_v18  ;;  %v1865_v55 = vld [vmem:[%s2404_s1 + $0x198] sm:$0xff]   ;;  %v1869_v59 = vld [vmem:[%s2404_s1 + $0x1a0] sm:$0xff]   ;;  %v1873_v63 = vld [vmem:[%s2404_s1 + $0x1a8] sm:$0xff]  }
  0x15   :  { %1673 = vmatpush3.bf16.msra.mxu1 %v1837_v19  ;;  %1652 = vmatprep.subr.bf16.mxu0 %v1838_v20  ;;  %v1874_v0 = vld [vmem:[%s2404_s1 + $0x170] sm:$0xff]   ;;  %v1878_v4 = vld [vmem:[%s2404_s1 + $0x178] sm:$0xff]   ;;  %v1882_v16 = vld [vmem:[%s2404_s1 + $0x240] sm:$0xff]  }
  0x16   :  { %1674 = vmatprep.subr.bf16.mxu1 %v1839_v21  ;;  %v1875_v1 = vld [vmem:[%s2404_s1 + $0x1f0] sm:$0xff]   ;;  %v1879_v5 = vld [vmem:[%s2404_s1 + $0x1f8] sm:$0xff]   ;;  %v1883_v17 = vld [vmem:[%s2404_s1 + $0x2c0] sm:$0xff]  }
  0x17   :  { %v1876_v2 = vld [vmem:[%s2404_s1 + $0x130] sm:$0xff]   ;;  %v1880_v6 = vld [vmem:[%s2404_s1 + $0x138] sm:$0xff]   ;;  %v1884_v18 = vld [vmem:[%s2404_s1 + $0x200] sm:$0xff]  }
  0x18   :  { %1653 = vmatpush3.bf16.msra.mxu0 %v1840_v22  ;;  %v1877_v3 = vld [vmem:[%s2404_s1 + $0x1b0] sm:$0xff]   ;;  %v1881_v7 = vld [vmem:[%s2404_s1 + $0x1b8] sm:$0xff]   ;;  %v1885_v19 = vld [vmem:[%s2404_s1 + $0x280] sm:$0xff]  }
  0x19   :  { %1675 = vmatpush3.bf16.msra.mxu1 %v1841_v23  ;;  %1654 = vmatprep.subr.bf16.mxu0 %v1842_v24  ;;  %v17_v8 = vld [vmem:[%s2405_s0 + $0x10] sm:$0xff]  ;;  %v18_v12 = vld [vmem:[%s2405_s0 + $0x18] sm:$0xff]  ;;  %v1886_v20 = vld [vmem:[%s2404_s1 + $0x248] sm:$0xff]  }
  0x1a   :  { %1676 = vmatprep.subr.bf16.mxu1 %v1843_v25  ;;  %v25_v9 = vld [vmem:[%s2405_s0 + $0x50] sm:$0xff]  ;;  %v26_v13 = vld [vmem:[%s2405_s0 + $0x58] sm:$0xff]  ;;  %v1887_v21 = vld [vmem:[%s2404_s1 + $0x2c8] sm:$0xff]  }
  0x1b   :  { %v1493_v10 = vcombine.low %v17_v8, %v25_v9  ;;  %v1494_v11 = vcombine.high %v17_v8, %v25_v9  ;;  %v1495_v14 = vcombine.low %v18_v12, %v26_v13  ;;  %v1496_v15 = vcombine.high %v18_v12, %v26_v13  ;;  %v1888_v22 = vld [vmem:[%s2404_s1 + $0x208] sm:$0xff]   ;;  %v1890_v24 = vld [vmem:[%s2404_s1 + $0x250] sm:$0xff]   ;;  %v1898_v32 = vld [vmem:[%s2404_s1 + $0x260] sm:$0xff]  }
  0x1c   :  { %1655 = vmatpush3.bf16.msra.mxu0 %v1844_v26  ;;  %v1889_v23 = vld [vmem:[%s2404_s1 + $0x288] sm:$0xff]   ;;  %v1891_v25 = vld [vmem:[%s2404_s1 + $0x2d0] sm:$0xff]   ;;  %v1899_v33 = vld [vmem:[%s2404_s1 + $0x2e0] sm:$0xff]  }
  0x1d   :  { %1677 = vmatpush3.bf16.msra.mxu1 %v1845_v27  ;;  %1656 = vmatprep.subr.bf16.mxu0 %v1846_v28  ;;  %v1892_v26 = vld [vmem:[%s2404_s1 + $0x210] sm:$0xff]   ;;  %v1894_v28 = vld [vmem:[%s2404_s1 + $0x258] sm:$0xff]   ;;  %v1900_v34 = vld [vmem:[%s2404_s1 + $0x220] sm:$0xff]  }
  0x1e   :  { %1678 = vmatprep.subr.bf16.mxu1 %v1847_v29  ;;  %v1893_v27 = vld [vmem:[%s2404_s1 + $0x290] sm:$0xff]   ;;  %v1895_v29 = vld [vmem:[%s2404_s1 + $0x2d8] sm:$0xff]   ;;  %v1902_v36 = vld [vmem:[%s2404_s1 + $0x268] sm:$0xff]  }
  0x1f   :  { %v1903_v37 = vld [vmem:[%s2404_s1 + $0x2e8] sm:$0xff]   ;;  %v1930_v8 = vld [vmem:[%s2404_s1 + $0x360] sm:$0xff]  }
  0x20   :  { %1657 = vmatpush3.bf16.msra.mxu0 %v1848_v30  ;;  %v1896_v30 = vld [vmem:[%s2404_s1 + $0x218] sm:$0xff]   ;;  %v1905_v39 = vld [vmem:[%s2404_s1 + $0x2a8] sm:$0xff]   ;;  %v1931_v9 = vld [vmem:[%s2404_s1 + $0x3e0] sm:$0xff]  }
  0x21   :  { %1679 = vmatpush3.bf16.msra.mxu1 %v1849_v31  ;;  %1686 = vmatprep.subr.bf16.mxu0 %v1850_v40  ;;  %v1897_v31 = vld [vmem:[%s2404_s1 + $0x298] sm:$0xff]   ;;  %v1906_v40 = vld [vmem:[%s2404_s1 + $0x270] sm:$0xff]   ;;  %v1934_v12 = vld [vmem:[%s2404_s1 + $0x368] sm:$0xff]  }
  0x22   :  { %1708 = vmatprep.subr.bf16.mxu1 %v1851_v41  ;;  %v1907_v41 = vld [vmem:[%s2404_s1 + $0x2f0] sm:$0xff]   ;;  %v1935_v13 = vld [vmem:[%s2404_s1 + $0x3e8] sm:$0xff]  }
  0x23   :  { %1175 = vmatmul.mubr.bf16.vlgmr.msra.gmra.mrb[0].mxu0 %v1489_v35  ;;  %v1901_v35 = vld [vmem:[%s2404_s1 + $0x2a0] sm:$0xff]  }
  0x24   :  { %1216 = vmatmul.mubr.bf16.vlgmr.msra.gmra.mrb[0].mxu1 %v1491_v38  ;;  %1687 = vmatpush3.bf16.msra.mxu0 %v1852_v42  ;;  %v1904_v38 = vld [vmem:[%s2404_s1 + $0x228] sm:$0xff]   ;;  %v1908_v42 = vld [vmem:[%s2404_s1 + $0x230] sm:$0xff]  }
  0x25   :  { %1709 = vmatpush3.bf16.msra.mxu1 %v1853_v43  ;;  %1688 = vmatprep.subr.bf16.mxu0 %v1854_v44  ;;  %v1909_v43 = vld [vmem:[%s2404_s1 + $0x2b0] sm:$0xff]   ;;  %v1910_v44 = vld [vmem:[%s2404_s1 + $0x278] sm:$0xff]  }
  0x26   :  { %1710 = vmatprep.subr.bf16.mxu1 %v1855_v45  ;;  %1256 = vmatprep.mubr.bf16.mxu0 %v1494_v11  ;;  %v1911_v45 = vld [vmem:[%s2404_s1 + $0x2f8] sm:$0xff]   ;;  %v1933_v11 = vld [vmem:[%s2404_s1 + $0x3a0] sm:$0xff]  }
  0x27   :  { %1297 = vmatprep.mubr.bf16.mxu1 %v1496_v15  ;;  %v1937_v15 = vld [vmem:[%s2404_s1 + $0x3a8] sm:$0xff]  }
  0x28   :  { %1689 = vmatpush3.bf16.msra.mxu0 %v1856_v46  ;;  %v1912_v46 = vld [vmem:[%s2404_s1 + $0x238] sm:$0xff]  }
  0x29   :  { %1711 = vmatpush3.bf16.msra.mxu1 %v1857_v47  ;;  %1690 = vmatprep.subr.bf16.mxu0 %v1858_v48  ;;  %v1913_v47 = vld [vmem:[%s2404_s1 + $0x2b8] sm:$0xff]   ;;  %v19_v48 = vld [vmem:[%s2405_s0 + $0x20] sm:$0xff] }
  0x2a   :  { %1712 = vmatprep.subr.bf16.mxu1 %v1859_v49  ;;  %v27_v49 = vld [vmem:[%s2405_s0 + $0x60] sm:$0xff] }
  0x2c   :  { %1691 = vmatpush3.bf16.msra.mxu0 %v1860_v50  ;;  %v20_v50 = vld [vmem:[%s2405_s0 + $0x28] sm:$0xff] }
  0x2d   :  { %1713 = vmatpush3.bf16.msra.mxu1 %v1861_v51  ;;  %1692 = vmatprep.subr.bf16.mxu0 %v1862_v52  ;;  %v28_v51 = vld [vmem:[%s2405_s0 + $0x68] sm:$0xff]  ;;  %v1497_v52 = vcombine.low %v19_v48, %v27_v49 }
  0x2e   :  { %1714 = vmatprep.subr.bf16.mxu1 %v1863_v53  ;;  %v1498_v53 = vcombine.high %v19_v48, %v27_v49 }
  0x30   :  { %1693 = vmatpush3.bf16.msra.mxu0 %v1864_v54  ;;  %v1499_v54 = vcombine.low %v20_v50, %v28_v51 }
  0x31   :  { %1715 = vmatpush3.bf16.msra.mxu1 %v1865_v55  ;;  %1694 = vmatprep.subr.bf16.mxu0 %v1866_v56  ;;  %v1500_v55 = vcombine.high %v20_v50, %v28_v51  ;;  %v1914_v56 = vld [vmem:[%s2404_s1 + $0x340] sm:$0xff]  }
  0x32   :  { %1716 = vmatprep.subr.bf16.mxu1 %v1867_v57  ;;  %v1915_v57 = vld [vmem:[%s2404_s1 + $0x3c0] sm:$0xff]  }
  0x34   :  { %1695 = vmatpush3.bf16.msra.mxu0 %v1868_v58  ;;  %v1916_v58 = vld [vmem:[%s2404_s1 + $0x300] sm:$0xff]  }
  0x35   :  { %1717 = vmatpush3.bf16.msra.mxu1 %v1869_v59  ;;  %1696 = vmatprep.subr.bf16.mxu0 %v1870_v60  ;;  %v1917_v59 = vld [vmem:[%s2404_s1 + $0x380] sm:$0xff]   ;;  %v1918_v60 = vld [vmem:[%s2404_s1 + $0x348] sm:$0xff]  }
  0x36   :  { %1718 = vmatprep.subr.bf16.mxu1 %v1871_v61  ;;  %v1919_v61 = vld [vmem:[%s2404_s1 + $0x3c8] sm:$0xff]  }
  0x38   :  { %1697 = vmatpush3.bf16.msra.mxu0 %v1872_v62  ;;  %v1920_v62 = vld [vmem:[%s2404_s1 + $0x308] sm:$0xff]  }
  0x39   :  { %1719 = vmatpush3.bf16.msra.mxu1 %v1873_v63  ;;  %1698 = vmatprep.subr.bf16.mxu0 %v1874_v0  ;;  %v1921_v63 = vld [vmem:[%s2404_s1 + $0x388] sm:$0xff]   ;;  %v1922_v0 = vld [vmem:[%s2404_s1 + $0x350] sm:$0xff]  }
  0x3a   :  { %1720 = vmatprep.subr.bf16.mxu1 %v1875_v1  ;;  %v1923_v1 = vld [vmem:[%s2404_s1 + $0x3d0] sm:$0xff]  }
  0x3c   :  { %1699 = vmatpush3.bf16.msra.mxu0 %v1876_v2  ;;  %v1924_v2 = vld [vmem:[%s2404_s1 + $0x310] sm:$0xff]  }
  0x3d   :  { %1721 = vmatpush3.bf16.msra.mxu1 %v1877_v3  ;;  %1700 = vmatprep.subr.bf16.mxu0 %v1878_v4  ;;  %v1925_v3 = vld [vmem:[%s2404_s1 + $0x390] sm:$0xff]   ;;  %v1926_v4 = vld [vmem:[%s2404_s1 + $0x358] sm:$0xff]  }
  0x3e   :  { %1722 = vmatprep.subr.bf16.mxu1 %v1879_v5  ;;  %v1927_v5 = vld [vmem:[%s2404_s1 + $0x3d8] sm:$0xff]  }
  0x40   :  { %1701 = vmatpush3.bf16.msra.mxu0 %v1880_v6  ;;  %v1928_v6 = vld [vmem:[%s2404_s1 + $0x318] sm:$0xff]  }
  0x41   :  { %1723 = vmatpush3.bf16.msra.mxu1 %v1881_v7  ;;  %1730 = vmatprep.subr.bf16.mxu0 %v1882_v16  ;;  %v1929_v7 = vld [vmem:[%s2404_s1 + $0x398] sm:$0xff]   ;;  %v1938_v16 = vld [vmem:[%s2404_s1 + $0x370] sm:$0xff]  }
  0x42   :  { %1752 = vmatprep.subr.bf16.mxu1 %v1883_v17  ;;  %v1939_v17 = vld [vmem:[%s2404_s1 + $0x3f0] sm:$0xff]  }
  0x43   :  { %1257 = vmatmul.mubr.bf16.vlgmr.msra.gmra.mrb[4].mxu0 %v1493_v10  ;;  %v1932_v10 = vld [vmem:[%s2404_s1 + $0x320] sm:$0xff]  }
  0x44   :  { %1298 = vmatmul.mubr.bf16.vlgmr.msra.gmra.mrb[4].mxu1 %v1495_v14  ;;  %1731 = vmatpush3.bf16.msra.mxu0 %v1884_v18  ;;  %v1936_v14 = vld [vmem:[%s2404_s1 + $0x328] sm:$0xff]   ;;  %v1940_v18 = vld [vmem:[%s2404_s1 + $0x330] sm:$0xff]  }
  0x45   :  { %1753 = vmatpush3.bf16.msra.mxu1 %v1885_v19  ;;  %1732 = vmatprep.subr.bf16.mxu0 %v1886_v20  ;;  %v1941_v19 = vld [vmem:[%s2404_s1 + $0x3b0] sm:$0xff]   ;;  %v1942_v20 = vld [vmem:[%s2404_s1 + $0x378] sm:$0xff]  }
  0x46   :  { %1754 = vmatprep.subr.bf16.mxu1 %v1887_v21  ;;  %1338 = vmatprep.mubr.bf16.mxu0 %v1498_v53  ;;  %v1943_v21 = vld [vmem:[%s2404_s1 + $0x3f8] sm:$0xff]  }
  0x47   :  { %1379 = vmatprep.mubr.bf16.mxu1 %v1500_v55 }
  0x48   :  { %1733 = vmatpush3.bf16.msra.mxu0 %v1888_v22  ;;  %v1944_v22 = vld [vmem:[%s2404_s1 + $0x338] sm:$0xff]  }
  0x49   :  { %1755 = vmatpush3.bf16.msra.mxu1 %v1889_v23  ;;  %1734 = vmatprep.subr.bf16.mxu0 %v1890_v24  ;;  %v1945_v23 = vld [vmem:[%s2404_s1 + $0x3b8] sm:$0xff]   ;;  %v21_v24 = vld [vmem:[%s2405_s0 + $0x30] sm:$0xff] }
  0x4a   :  { %1756 = vmatprep.subr.bf16.mxu1 %v1891_v25  ;;  %v29_v25 = vld [vmem:[%s2405_s0 + $0x70] sm:$0xff] }
  0x4c   :  { %1735 = vmatpush3.bf16.msra.mxu0 %v1892_v26  ;;  %v22_v26 = vld [vmem:[%s2405_s0 + $0x38] sm:$0xff] }
  0x4d   :  { %1757 = vmatpush3.bf16.msra.mxu1 %v1893_v27  ;;  %1736 = vmatprep.subr.bf16.mxu0 %v1894_v28  ;;  %v1501_v27 = vcombine.low %v21_v24, %v29_v25  ;;  %v1502_v28 = vcombine.high %v21_v24, %v29_v25 }
  0x4e   :  { %1758 = vmatprep.subr.bf16.mxu1 %v1895_v29  ;;  %v30_v29 = vld [vmem:[%s2405_s0 + $0x78] sm:$0xff] }
  0x50   :  { %1737 = vmatpush3.bf16.msra.mxu0 %v1896_v30  ;;  %v1503_v30 = vcombine.low %v22_v26, %v30_v29 }
  0x51   :  { %1759 = vmatpush3.bf16.msra.mxu1 %v1897_v31  ;;  %1738 = vmatprep.subr.bf16.mxu0 %v1898_v32  ;;  %v1504_v31 = vcombine.high %v22_v26, %v30_v29 }
  0x52   :  { %1760 = vmatprep.subr.bf16.mxu1 %v1899_v33 }
  0x54   :  { %1739 = vmatpush3.bf16.msra.mxu0 %v1900_v34  ;;  %v1488_v34 = vld [vmem:[%s2406_s2] ss:$0 sm:$0xff] }
  0x55   :  { %1761 = vmatpush3.bf16.msra.mxu1 %v1901_v35  ;;  %1740 = vmatprep.subr.bf16.mxu0 %v1902_v36 }
  0x56   :  { %1762 = vmatprep.subr.bf16.mxu1 %v1903_v37 }
  0x58   :  { %1741 = vmatpush3.bf16.msra.mxu0 %v1904_v38 }
  0x59   :  { %1763 = vmatpush3.bf16.msra.mxu1 %v1905_v39  ;;  %1742 = vmatprep.subr.bf16.mxu0 %v1906_v40 }
  0x5a   :  { %1764 = vmatprep.subr.bf16.mxu1 %v1907_v41 }
  0x5c   :  { %1743 = vmatpush3.bf16.msra.mxu0 %v1908_v42 }
  0x5d   :  { %1765 = vmatpush3.bf16.msra.mxu1 %v1909_v43  ;;  %1744 = vmatprep.subr.bf16.mxu0 %v1910_v44 }
  0x5e   :  { %1766 = vmatprep.subr.bf16.mxu1 %v1911_v45 }
  0x60   :  { %1745 = vmatpush3.bf16.msra.mxu0 %v1912_v46 }
  0x61   :  { %1767 = vmatpush3.bf16.msra.mxu1 %v1913_v47  ;;  %1774 = vmatprep.subr.bf16.mxu0 %v1914_v56 }
  0x62   :  { %1796 = vmatprep.subr.bf16.mxu1 %v1915_v57 }
  0x63   :  { %1339 = vmatmul.mubr.bf16.vlgmr.msra.gmra.mrb[8].mxu0 %v1497_v52 }
  0x64   :  { %1380 = vmatmul.mubr.bf16.vlgmr.msra.gmra.mrb[8].mxu1 %v1499_v54  ;;  %1775 = vmatpush3.bf16.msra.mxu0 %v1916_v58 }
  0x65   :  { %1797 = vmatpush3.bf16.msra.mxu1 %v1917_v59  ;;  %1776 = vmatprep.subr.bf16.mxu0 %v1918_v60 }
  0x66   :  { %1798 = vmatprep.subr.bf16.mxu1 %v1919_v61  ;;  %1420 = vmatprep.mubr.bf16.mxu0 %v1502_v28 }
  0x67   :  { %1461 = vmatprep.mubr.bf16.mxu1 %v1504_v31 }
  0x68   :  { %1777 = vmatpush3.bf16.msra.mxu0 %v1920_v62 }
  0x69   :  { %1799 = vmatpush3.bf16.msra.mxu1 %v1921_v63  ;;  %1778 = vmatprep.subr.bf16.mxu0 %v1922_v0 }
  0x6a   :  { %1800 = vmatprep.subr.bf16.mxu1 %v1923_v1 }
  0x6c   :  { %1779 = vmatpush3.bf16.msra.mxu0 %v1924_v2 }
  0x6d   :  { %1801 = vmatpush3.bf16.msra.mxu1 %v1925_v3  ;;  %1780 = vmatprep.subr.bf16.mxu0 %v1926_v4 }
  0x6e   :  { %1802 = vmatprep.subr.bf16.mxu1 %v1927_v5 }
  0x70   :  { %1781 = vmatpush3.bf16.msra.mxu0 %v1928_v6 }
  0x71   :  { %1803 = vmatpush3.bf16.msra.mxu1 %v1929_v7  ;;  %1782 = vmatprep.subr.bf16.mxu0 %v1930_v8 }
  0x72   :  { %1804 = vmatprep.subr.bf16.mxu1 %v1931_v9 }
  0x74   :  { %1783 = vmatpush3.bf16.msra.mxu0 %v1932_v10 }
  0x75   :  { %1805 = vmatpush3.bf16.msra.mxu1 %v1933_v11  ;;  %1784 = vmatprep.subr.bf16.mxu0 %v1934_v12 }
  0x76   :  { %1806 = vmatprep.subr.bf16.mxu1 %v1935_v13 }
  0x78   :  { %1785 = vmatpush3.bf16.msra.mxu0 %v1936_v14 }
  0x79   :  { %1807 = vmatpush3.bf16.msra.mxu1 %v1937_v15  ;;  %1786 = vmatprep.subr.bf16.mxu0 %v1938_v16 }
  0x7a   :  { %1808 = vmatprep.subr.bf16.mxu1 %v1939_v17 }
  0x7c   :  { %1787 = vmatpush3.bf16.msra.mxu0 %v1940_v18 }
  0x7d   :  { %1809 = vmatpush3.bf16.msra.mxu1 %v1941_v19  ;;  %1788 = vmatprep.subr.bf16.mxu0 %v1942_v20 }
  0x7e   :  { %1810 = vmatprep.subr.bf16.mxu1 %v1943_v21 }
  0x80   :  { %1789 = vmatpush3.bf16.msra.mxu0 %v1944_v22 }
  0x81   :  { %1811 = vmatpush3.bf16.msra.mxu1 %v1945_v23 }
  0x83   :  { %1421 = vmatmul.mubr.bf16.vlgmr.msra.gmra.mrb[12].mxu0 %v1501_v27 }
  0x84   :  { %1462 = vmatmul.mubr.bf16.vlgmr.msra.gmra.mrb[12].mxu1 %v1503_v30 }
  0xf6   :  { %v1658_v32 = vpop.f32.mrb[0].mxu0 }
  0xf7   :  { %v1680_v33 = vpop.f32.mrb[0].mxu1  ;;  %v1659_v35 = vpop.f32.mrb[1].mxu0 }
  0xf8   :  { %v1660_v36 = vadd.f32 %v1659_v35, %v1658_v32  ;;  %v1681_v37 = vpop.f32.mrb[1].mxu1  ;;  %v1661_v38 = vpop.f32.mrb[2].mxu0 }
  0xf9   :  { %v1682_v39 = vadd.f32 %v1681_v37, %v1680_v33  ;;  %v1683_v40 = vpop.f32.mrb[2].mxu1  ;;  %v1662_v41 = vpop.f32.mrb[3].mxu0 }
  0xfa   :  { %v1177_v42 = vadd.f32 %v1660_v36, %v1488_v34  ;;  %v1663_v43 = vadd.f32 %v1662_v41, %v1661_v38  ;;  %v1684_v44 = vpop.f32.mrb[3].mxu1 }
  0xfb   :  { %v1685_v45 = vadd.f32 %v1684_v44, %v1683_v40 }
  0xfc   :  { %v1218_v46 = vadd.f32 %v1682_v39, %v1177_v42  ;;  %v1180_v47 = vadd.f32 %v1663_v43, %v1488_v34 }
  0xfe   :  { %v1221_v48 = vadd.f32 %v1685_v45, %v1180_v47 }
 0x116   :  { %v1702_v49 = vpop.f32.mrb[4].mxu0 }
 0x117   :  { %v1724_v50 = vpop.f32.mrb[4].mxu1  ;;  %v1703_v51 = vpop.f32.mrb[5].mxu0 }
 0x118   :  { %v1704_v52 = vadd.f32 %v1703_v51, %v1702_v49  ;;  %v1725_v53 = vpop.f32.mrb[5].mxu1  ;;  %v1705_v54 = vpop.f32.mrb[6].mxu0 }
 0x119   :  { %v1726_v55 = vadd.f32 %v1725_v53, %v1724_v50  ;;  %v1727_v56 = vpop.f32.mrb[6].mxu1  ;;  %v1706_v57 = vpop.f32.mrb[7].mxu0 }
 0x11a   :  { %v1259_v58 = vadd.f32 %v1704_v52, %v1218_v46  ;;  %v1707_v59 = vadd.f32 %v1706_v57, %v1705_v54  ;;  %v1728_v60 = vpop.f32.mrb[7].mxu1 }
 0x11b   :  { %v1729_v61 = vadd.f32 %v1728_v60, %v1727_v56 }
 0x11c   :  { %v1300_v62 = vadd.f32 %v1726_v55, %v1259_v58  ;;  %v1262_v63 = vadd.f32 %v1707_v59, %v1221_v48 }
 0x11e   :  { %v1303_v0 = vadd.f32 %v1729_v61, %v1262_v63 }
 0x136   :  { %v1746_v1 = vpop.f32.mrb[8].mxu0 }
 0x137   :  { %v1768_v2 = vpop.f32.mrb[8].mxu1  ;;  %v1747_v3 = vpop.f32.mrb[9].mxu0 }
 0x138   :  { %v1769_v4 = vpop.f32.mrb[9].mxu1  ;;  %v1748_v5 = vadd.f32 %v1747_v3, %v1746_v1  ;;  %v1749_v7 = vpop.f32.mrb[10].mxu0 }
 0x139   :  { %v1770_v6 = vadd.f32 %v1769_v4, %v1768_v2  ;;  %v1771_v8 = vpop.f32.mrb[10].mxu1  ;;  %v1750_v9 = vpop.f32.mrb[11].mxu0 }
 0x13a   :  { %v1772_v10 = vpop.f32.mrb[11].mxu1  ;;  %v1341_v11 = vadd.f32 %v1748_v5, %v1300_v62  ;;  %v1751_v12 = vadd.f32 %v1750_v9, %v1749_v7 }
 0x13b   :  { %v1773_v13 = vadd.f32 %v1772_v10, %v1771_v8 }
 0x13c   :  { %v1382_v14 = vadd.f32 %v1770_v6, %v1341_v11  ;;  %v1344_v15 = vadd.f32 %v1751_v12, %v1303_v0 }
 0x13e   :  { %v1385_v16 = vadd.f32 %v1773_v13, %v1344_v15 }
 0x156   :  { %v1790_v17 = vpop.f32.mrb[12].mxu0 }
 0x157   :  { %v1812_v18 = vpop.f32.mrb[12].mxu1  ;;  %v1791_v19 = vpop.f32.mrb[13].mxu0 }
 0x158   :  { %v1792_v20 = vadd.f32 %v1791_v19, %v1790_v17  ;;  %v1813_v21 = vpop.f32.mrb[13].mxu1  ;;  %v1793_v22 = vpop.f32.mrb[14].mxu0 }
 0x159   :  { %v1814_v23 = vadd.f32 %v1813_v21, %v1812_v18  ;;  %v1815_v24 = vpop.f32.mrb[14].mxu1  ;;  %v1794_v25 = vpop.f32.mrb[15].mxu0 }
 0x15a   :  { %v1423_v26 = vadd.f32 %v1792_v20, %v1382_v14  ;;  %v1795_v27 = vadd.f32 %v1794_v25, %v1793_v22  ;;  %v1816_v28 = vpop.f32.mrb[15].mxu1 }
 0x15b   :  { %v1817_v29 = vadd.f32 %v1816_v28, %v1815_v24 }
 0x15c   :  { %v1464_v30 = vadd.f32 %v1814_v23, %v1423_v26  ;;  %v1426_v31 = vadd.f32 %v1795_v27, %v1385_v16 }
 0x15e   :  { %v1470_v32 = vmul.f32 0.2, %v1464_v30  ;;  %v1467_v33 = vadd.f32 %v1817_v29, %v1426_v31 }
 0x160   :  { %v1471_v34 = vmul.f32 0.2, %v1467_v33  ;;  %v1472_v35 = vmax.f32 %v1464_v30, %v1470_v32 }
 0x162   :  { %v1473_v36 = vmax.f32 %v1467_v33, %v1471_v34 }
 0x164   :  { %v1640_v37 = vpack.c.bf16 %v1473_v36, %v1472_v35 }
 0x166   :  { %1641 = vst [vmem:[%s2407_s3] sm:$0xff] %v1640_v37  }

</bundles_post_ra>
